<compile_context>
chip_gen: v7x
topology: tpu7x:2x2x1
jax: 0.10.0
libtpu: 0.0.40
codegen_flags: <defaults>
</compile_context>

<pallas_src>
import functools
import math

import jax
import jax.numpy as jnp
from jax.experimental import pallas as pl
from jax.experimental.pallas import tpu as pltpu

BN_EPS = 1e-5


# ----------------------------------------------------------------------------
# Pallas kernels
# ----------------------------------------------------------------------------
def _conv3x3_kernel(*refs, n_in, H, W, act):
    """3x3 conv (stride 1, padding 1) + folded-BN affine + activation.

    refs = (x_pad_0 .. x_pad_{n-1}, w_0 .. w_{n-1}, scale, shift, out)
      x_pad_i : (1, H+2, W+2, Cin_i)  bf16 (spatially padded)
      w_i     : (3, 3, Cin_i, Cout)   bf16
      scale   : (1, Cout) f32, shift : (1, Cout) f32
      out     : (1, H, W, Cout)       bf16
    Accumulates 9*n_in shifted MXU matmuls per output row in f32.
    """
    x_refs = refs[:n_in]
    w_refs = refs[n_in:2 * n_in]
    scale_ref, shift_ref, o_ref = refs[2 * n_in:2 * n_in + 3]

    w_vals = [w_ref[...] for w_ref in w_refs]          # hoist weight loads
    scale = scale_ref[...]
    shift = shift_ref[...]
    cout = o_ref.shape[-1]

    def row(y, carry):
        acc = jnp.zeros((W, cout), jnp.float32)
        for xi in range(n_in):
            # three padded input rows that feed output row y
            rows = [x_refs[xi][0, y + dy, :, :] for dy in range(3)]   # (W+2, Cin)
            for dy in range(3):
                for dx in range(3):
                    a = rows[dy][dx:dx + W, :]                        # (W, Cin) bf16
                    acc = acc + jnp.dot(a, w_vals[xi][dy, dx],
                                        preferred_element_type=jnp.float32)
        out = acc * scale + shift
        if act == "relu":
            out = jnp.maximum(out, 0.0)
        o_ref[0, y, :, :] = out.astype(o_ref.dtype)
        return carry

    jax.lax.fori_loop(0, H, row, 0)


def _conv_transpose_kernel(x_ref, w0_ref, w1_ref, b_ref, o_ref, *, H):
    """ConvTranspose2d(k=2, s=2) + ReLU; 2x2 taps packed into the matmul N dim.

      x  : (1, H, W, Cin) bf16
      w0 : (Cin, 2*Cout) bf16  taps (di=0, dj=0|1)   -> output row 2y
      w1 : (Cin, 2*Cout) bf16  taps (di=1, dj=0|1)   -> output row 2y+1
      b  : (1, 2*Cout) f32     (bias, repeated for dj=0|1)
      o  : (1, 2H, W, 2*Cout) bf16  (caller reinterprets as (1, 2H, 2W, Cout))
    """
    w0 = w0_ref[...]
    w1 = w1_ref[...]
    b = b_ref[...]

    def row(y, carry):
        a = x_ref[0, y, :, :]                                           # (W, Cin)
        y0 = jnp.dot(a, w0, preferred_element_type=jnp.float32) + b     # (W, 2*Cout)
        y1 = jnp.dot(a, w1, preferred_element_type=jnp.float32) + b
        o_ref[0, 2 * y, :, :] = jnp.maximum(y0, 0.0).astype(o_ref.dtype)
        o_ref[0, 2 * y + 1, :, :] = jnp.maximum(y1, 0.0).astype(o_ref.dtype)
        return carry

    jax.lax.fori_loop(0, H, row, 0)


def _maxpool_kernel(x_ref, o_ref, *, C):
    """MaxPool2d(2,2) on a (1, Ho, 2, Wo, 2C)-viewed NHWC input block."""
    a = x_ref[0, :, 0, :, :]                    # input rows 2y   -> (Ho, Wo, 2C)
    b = x_ref[0, :, 1, :, :]                    # input rows 2y+1 -> (Ho, Wo, 2C)
    m = jnp.maximum(a, b)
    o_ref[0, :, :, :] = jnp.maximum(m[:, :, :C], m[:, :, C:])


def _attention_gate_kernel(g_ref, x_ref, wg_ref, wx_ref, sg_ref, hg_ref,
                           sx_ref, hx_ref, wpsi_ref, psh_ref, o_ref):
    """out = x * sigmoid(BN(psi(relu(BN(Wg g) + BN(Wx x)))))  -- fully fused."""
    g1 = jnp.dot(g_ref[...], wg_ref[...], preferred_element_type=jnp.float32)
    g1 = g1 * sg_ref[...] + hg_ref[...]
    x1 = jnp.dot(x_ref[...], wx_ref[...], preferred_element_type=jnp.float32)
    x1 = x1 * sx_ref[...] + hx_ref[...]
    p = jnp.maximum(g1 + x1, 0.0)                                      # (tm, F_int)
    s = jnp.sum(p * wpsi_ref[...], axis=-1, keepdims=True) + psh_ref[...]
    s = jax.nn.sigmoid(s)                                              # (tm, 1)
    o_ref[...] = (x_ref[...].astype(jnp.float32) * s).astype(o_ref.dtype)


def _matmul_affine_kernel(a_ref, w_ref, scale_ref, shift_ref, o_ref, *, act):
    """y = act((A @ W) * scale + shift); bf16 operands, f32 accumulate/epilogue."""
    y = jnp.dot(a_ref[...], w_ref[...], preferred_element_type=jnp.float32)
    y = y * scale_ref[...] + shift_ref[...]
    if act == "relu":
        y = jnp.maximum(y, 0.0)
    o_ref[...] = y.astype(o_ref.dtype)


# ----------------------------------------------------------------------------
# Wrappers
# ----------------------------------------------------------------------------
def conv3x3_bn_act(xs, ws, scale, shift, act="relu"):
    """3x3 conv over one or more NHWC channel groups (fused BN affine + act).

    Passing several (x_i, w_i) groups accumulates over them inside the kernel,
    which lets the decoder's channel-reducer consume [attn, dec] without a
    jnp.concatenate HBM pass.
    """
    n, h, w, _ = xs[0].shape
    cout = ws[0].shape[-1]
    xps = [jnp.pad(x, ((0, 0), (1, 1), (1, 1), (0, 0))) for x in xs]

    in_specs = [pl.BlockSpec((1, h + 2, w + 2, xp.shape[-1]),
                             lambda i: (i, 0, 0, 0)) for xp in xps]
    in_specs += [pl.BlockSpec(wk.shape, lambda i: (0, 0, 0, 0)) for wk in ws]
    in_specs += [pl.BlockSpec((1, cout), lambda i: (0, 0)),
                 pl.BlockSpec((1, cout), lambda i: (0, 0))]

    return pl.pallas_call(
        functools.partial(_conv3x3_kernel, n_in=len(xs), H=h, W=w, act=act),
        out_shape=jax.ShapeDtypeStruct((n, h, w, cout), jnp.bfloat16),
        grid=(n,),
        in_specs=in_specs,
        out_specs=pl.BlockSpec((1, h, w, cout), lambda i: (i, 0, 0, 0)),
        compiler_params=pltpu.CompilerParams(dimension_semantics=("parallel",)),
    )(*xps, *ws, scale, shift)


def maxpool2x2(x):
    """x: (N, H, W, C) -> (N, H//2, W//2, C)."""
    n, h, w, c = x.shape
    ho, wo = h // 2, w // 2
    xr = x.reshape(n, ho, 2, wo, 2 * c)            # free reinterpretation
    return pl.pallas_call(
        functools.partial(_maxpool_kernel, C=c),
        out_shape=jax.ShapeDtypeStruct((n, ho, wo, c), x.dtype),
        grid=(n,),
        in_specs=[pl.BlockSpec((1, ho, 2, wo, 2 * c),
                               lambda i: (i, 0, 0, 0, 0))],
        out_specs=pl.BlockSpec((1, ho, wo, c), lambda i: (i, 0, 0, 0)),
        compiler_params=pltpu.CompilerParams(dimension_semantics=("parallel",)),
    )(xr)


def conv_transpose2x2_relu(x, w0, w1, b):
    """x: (N, H, W, Cin) -> (N, 2H, 2W, Cout); ReLU fused (as in the module spec)."""
    n, h, w, cin = x.shape
    cout = w0.shape[1] // 2
    out = pl.pallas_call(
        functools.partial(_conv_transpose_kernel, H=h),
        out_shape=jax.ShapeDtypeStruct((n, 2 * h, w, 2 * cout), jnp.bfloat16),
        grid=(n,),
        in_specs=[pl.BlockSpec((1, h, w, cin), lambda i: (i, 0, 0, 0)),
                  pl.BlockSpec(w0.shape, lambda i: (0, 0)),
                  pl.BlockSpec(w1.shape, lambda i: (0, 0)),
                  pl.BlockSpec(b.shape, lambda i: (0, 0))],
        out_specs=pl.BlockSpec((1, 2 * h, w, 2 * cout), lambda i: (i, 0, 0, 0)),
        compiler_params=pltpu.CompilerParams(dimension_semantics=("parallel",)),
    )(x, w0, w1, b)
    return out.reshape(n, 2 * h, 2 * w, cout)      # free reinterpretation


def attention_block(g, x, p):
    """Attention_block: g (decoder) gates x (encoder skip). Returns x * psi."""
    n, h, w, fl = x.shape
    fg = g.shape[-1]
    fint = p["wg"].shape[1]
    m = n * h * w
    tm = min(512, m)
    g2 = g.reshape(m, fg)
    x2 = x.reshape(m, fl)
    out = pl.pallas_call(
        _attention_gate_kernel,
        out_shape=jax.ShapeDtypeStruct((m, fl), x.dtype),
        grid=(pl.cdiv(m, tm),),
        in_specs=[
            pl.BlockSpec((tm, fg), lambda i: (i, 0)),
            pl.BlockSpec((tm, fl), lambda i: (i, 0)),
            pl.BlockSpec((fg, fint), lambda i: (0, 0)),
            pl.BlockSpec((fl, fint), lambda i: (0, 0)),
            pl.BlockSpec((1, fint), lambda i: (0, 0)),
            pl.BlockSpec((1, fint), lambda i: (0, 0)),
            pl.BlockSpec((1, fint), lambda i: (0, 0)),
            pl.BlockSpec((1, fint), lambda i: (0, 0)),
            pl.BlockSpec((1, fint), lambda i: (0, 0)),
            pl.BlockSpec((1, 1), lambda i: (0, 0)),
        ],
        out_specs=pl.BlockSpec((tm, fl), lambda i: (i, 0)),
        compiler_params=pltpu.CompilerParams(dimension_semantics=("parallel",)),
    )(g2, x2, p["wg"], p["wx"], p["sg"], p["hg"], p["sx"], p["hx"],
      p["wpsi"], p["psh"])
    return out.reshape(n, h, w, fl)


def conv1x1_bn_act(x, w, scale, shift, act="relu", out_dtype=jnp.float32, tm=512):
    """1x1 conv as a gridded matmul with fused affine + activation."""
    n, h, wd, c = x.shape
    cout = w.shape[1]
    m = n * h * wd
    tm = min(tm, m)
    a = x.reshape(m, c)
    out = pl.pallas_call(
        functools.partial(_matmul_affine_kernel, act=act),
        out_shape=jax.ShapeDtypeStruct((m, cout), out_dtype),
        grid=(pl.cdiv(m, tm),),
        in_specs=[pl.BlockSpec((tm, c), lambda i: (i, 0)),
                  pl.BlockSpec((c, cout), lambda i: (0, 0)),
                  pl.BlockSpec((1, cout), lambda i: (0, 0)),
                  pl.BlockSpec((1, cout), lambda i: (0, 0))],
        out_specs=pl.BlockSpec((tm, cout), lambda i: (i, 0)),
        compiler_params=pltpu.CompilerParams(dimension_semantics=("parallel",)),
    )(a, w, scale, shift)
    return out.reshape(n, h, wd, cout)


# ----------------------------------------------------------------------------
# Deterministic parameter init (mirrors AttentionUNet.__init__ shapes)
# ----------------------------------------------------------------------------
def _init_conv(key, cin, cout, k):
    kw, kb = jax.random.split(key)
    bound = 1.0 / math.sqrt(cin * k * k)
    w = jax.random.uniform(kw, (cout, cin, k, k), jnp.float32, -bound, bound)
    b = jax.random.uniform(kb, (cout,), jnp.float32, -bound, bound)
    return w, b


def _init_conv_transpose(key, cin, cout, k=2):
    kw, kb = jax.random.split(key)
    bound = 1.0 / math.sqrt(cin * k * k)
    w = jax.random.uniform(kw, (cin, cout, k, k), jnp.float32, -bound, bound)
    b = jax.random.uniform(kb, (cout,), jnp.float32, -bound, bound)
    return w, b


def _bn_fold(conv_bias, c):
    # eval-mode BN with init running stats: scale = gamma/sqrt(var+eps),
    # shift folds (conv_bias - mean)*scale + beta.
    gamma = jnp.ones((c,), jnp.float32)
    beta = jnp.zeros((c,), jnp.float32)
    mean = jnp.zeros((c,), jnp.float32)
    var = jnp.ones((c,), jnp.float32)
    scale = gamma / jnp.sqrt(var + BN_EPS)
    shift = (conv_bias - mean) * scale + beta
    return scale.reshape(1, c), shift.reshape(1, c)


def _to_k3(w_torch):
    # torch (Cout, Cin, 3, 3) -> kernel (3, 3, Cin, Cout), bf16 for the MXU.
    return jnp.transpose(w_torch, (2, 3, 1, 0)).astype(jnp.bfloat16)


def init_params(key, input_channels, num_layers, num_first_filters):
    keys = iter(jax.random.split(key, 128))
    params = {"encoder": [], "bottleneck": [], "decoder": [], "attention": [],
              "reducers": []}
    num_filters = num_first_filters
    encoder_filters = []
    in_ch = input_channels
    for _ in range(num_layers):
        w, b = _init_conv(next(keys), in_ch, num_filters, 3)
        scale, shift = _bn_fold(b, num_filters)
        params["encoder"].append({"w": _to_k3(w), "scale": scale, "shift": shift})
        encoder_filters.append(num_filters)
        in_ch = num_filters
        num_filters *= 2
    bneck = num_filters // 2
    for _ in range(2):
        w, b = _init_conv(next(keys), bneck, bneck, 3)
        scale, shift = _bn_fold(b, bneck)
        params["bottleneck"].append({"w": _to_k3(w), "scale": scale, "shift": shift})
    for i in range(num_layers):
        num_filters //= 2
        wt, bt = _init_conv_transpose(next(keys), bneck, num_filters, 2)
        # pack the 2x2 taps: (Cin, Cout, 2, 2) -> (Cin, kH, kW, Cout) -> split by kH
        w_pk = jnp.transpose(wt, (0, 2, 3, 1)).reshape(bneck, 4 * num_filters)
        params["decoder"].append({
            "w0": w_pk[:, :2 * num_filters].astype(jnp.bfloat16),   # di = 0 taps
            "w1": w_pk[:, 2 * num_filters:].astype(jnp.bfloat16),   # di = 1 taps
            "b": jnp.tile(bt, 2).reshape(1, 2 * num_filters).astype(jnp.float32),
        })
        bneck = num_filters
        f_g, f_l, f_int = num_filters, encoder_filters[-(i + 1)], num_filters // 2
        wg, wg_b = _init_conv(next(keys), f_g, f_int, 1)
        sg, hg = _bn_fold(wg_b, f_int)
        wx, wx_b = _init_conv(next(keys), f_l, f_int, 1)
        sx, hx = _bn_fold(wx_b, f_int)
        wpsi, psi_b = _init_conv(next(keys), f_int, 1, 1)
        psc, psh = _bn_fold(psi_b, 1)
        params["attention"].append({
            "wg": wg.reshape(f_int, f_g).T.astype(jnp.bfloat16),
            "sg": sg, "hg": hg,
            "wx": wx.reshape(f_int, f_l).T.astype(jnp.bfloat16),
            "sx": sx, "hx": hx,
            # fold the psi BatchNorm scale straight into the psi weight row
            "wpsi": (wpsi.reshape(1, f_int) * psc).astype(jnp.float32),
            "psh": psh,
        })
        wr, br = _init_conv(next(keys), f_l + num_filters, num_filters, 3)
        r_scale, r_shift = _bn_fold(br, num_filters)
        params["reducers"].append({
            # split the reducer weight over the (attn, decoder) channel groups so
            # the kernel can consume them without a channel concat.
            "w_attn": _to_k3(wr[:, :f_l]),
            "w_dec": _to_k3(wr[:, f_l:]),
            "scale": r_scale, "shift": r_shift,
        })
    wf, bf = _init_conv(next(keys), num_first_filters, 1, 1)
    params["final"] = {
        "w": wf.reshape(1, num_first_filters).T.astype(jnp.bfloat16),
        "scale": jnp.ones((1, 1), jnp.float32),
        "shift": bf.reshape(1, 1).astype(jnp.float32),
    }
    return params


# ----------------------------------------------------------------------------
# Forward pass (semantics of AttentionUNet.forward)
# ----------------------------------------------------------------------------
def attention_unet_forward(params, x_nchw):
    x = jnp.transpose(x_nchw, (0, 2, 3, 1)).astype(jnp.bfloat16)  # NCHW -> NHWC
    enc_outputs = []
    for i, lp in enumerate(params["encoder"]):
        if i > 0:
            x = maxpool2x2(x)
        x = conv3x3_bn_act([x], [lp["w"]], lp["scale"], lp["shift"], act="relu")
        enc_outputs.append(x)
    x = maxpool2x2(x)
    for bp in params["bottleneck"]:
        x = conv3x3_bn_act([x], [bp["w"]], bp["scale"], bp["shift"], act="relu")
    for i, dp in enumerate(params["decoder"]):
        x = conv_transpose2x2_relu(x, dp["w0"], dp["w1"], dp["b"])  # ReLU in spec
        enc = enc_outputs[-(i + 1)]
        attn = attention_block(x, enc, params["attention"][i])
        rp = params["reducers"][i]
        # torch.cat((attn, x), dim=1) + Conv3x3 fused: accumulate both groups.
        x = conv3x3_bn_act([attn, x], [rp["w_attn"], rp["w_dec"]],
                           rp["scale"], rp["shift"], act="relu")
    fp = params["final"]
    y = conv1x1_bn_act(x, fp["w"], fp["scale"], fp["shift"], act="relu",
                       out_dtype=jnp.float32)
    return jnp.transpose(y, (0, 3, 1, 2))  # NHWC -> NCHW


if __name__ == "__main__":
    key = jax.random.PRNGKey(0)
    pkey, xkey = jax.random.split(key)
    # AttentionUNet(input_channels=3, num_layers=2, num_first_filters=4)
    params = init_params(pkey, input_channels=3, num_layers=2, num_first_filters=4)
    x = jax.random.normal(xkey, (2, 3, 16, 16), dtype=jnp.float32)

    out = jax.jit(attention_unet_forward)(params, x)
    out = jax.block_until_ready(out)
    assert out.shape == (2, 1, 16, 16), out.shape
    assert bool(jnp.all(jnp.isfinite(out)))
    print("KERNEL_OK")
</pallas_src>

<mosaic_0001>
module attributes {stable_mosaic.version = 11 : i64} {
  func.func @_conv3x3_kernel(%arg0: i32, %arg1: memref<1x18x18x3xbf16, #tpu.memory_space<vmem>>, %arg2: memref<3x3x3x4xbf16, #tpu.memory_space<vmem>>, %arg3: memref<1x4xf32, #tpu.memory_space<vmem>>, %arg4: memref<1x4xf32, #tpu.memory_space<vmem>>, %arg5: memref<1x16x16x4xbf16, #tpu.memory_space<vmem>>) attributes {dimension_semantics = [#tpu.dimension_semantics<parallel>], iteration_bounds = array<i64: 2>, scalar_prefetch = 0 : i64, scratch_operands = 0 : i64, tpu.core_type = #tpu.core_type<tc>, window_params = [{transform_indices = @transform_0, window_bounds = array<i64: 1, 18, 18, 3>}, {pipeline_mode = #tpu.pipeline_mode<synchronous>, transform_indices = @transform_1, window_bounds = array<i64: 3, 3, 3, 4>}, {pipeline_mode = #tpu.pipeline_mode<synchronous>, transform_indices = @transform_2, window_bounds = array<i64: 1, 4>}, {pipeline_mode = #tpu.pipeline_mode<synchronous>, transform_indices = @transform_3, window_bounds = array<i64: 1, 4>}, {transform_indices = @transform_4, window_bounds = array<i64: 1, 16, 16, 4>}]} {
    %c0 = arith.constant 0 : index
    %c0_0 = arith.constant 0 : index
    %c0_1 = arith.constant 0 : index
    %c0_2 = arith.constant 0 : index
    %0 = vector.load %arg2[%c0, %c0_0, %c0_1, %c0_2] : memref<3x3x3x4xbf16, #tpu.memory_space<vmem>>, vector<3x3x3x4xbf16>
    %c0_3 = arith.constant 0 : index
    %c0_4 = arith.constant 0 : index
    %1 = vector.load %arg3[%c0_3, %c0_4] : memref<1x4xf32, #tpu.memory_space<vmem>>, vector<1x4xf32>
    %c0_5 = arith.constant 0 : index
    %c0_6 = arith.constant 0 : index
    %2 = vector.load %arg4[%c0_5, %c0_6] : memref<1x4xf32, #tpu.memory_space<vmem>>, vector<1x4xf32>
    %c0_i32 = arith.constant 0 : i32
    %c16_i32 = arith.constant 16 : i32
    %3 = arith.addi %c0_i32, %c16_i32 : i32
    %c1_i32 = arith.constant 1 : i32
    scf.for %arg6 = %c0_i32 to %3 step %c1_i32  : i32 {
      %cst = arith.constant 0.000000e+00 : f32
      %4 = vector.broadcast %cst : f32 to vector<16x4xf32>
      %c0_i32_8 = arith.constant 0 : i32
      %5 = arith.addi %arg6, %c0_i32_8 : i32
      %c0_9 = arith.constant 0 : index
      %6 = arith.index_cast %5 : i32 to index
      %c0_10 = arith.constant 0 : index
      %c0_11 = arith.constant 0 : index
      %7 = vector.load %arg1[%c0_9, %6, %c0_10, %c0_11] : memref<1x18x18x3xbf16, #tpu.memory_space<vmem>>, vector<1x1x18x3xbf16>
      %8 = vector.shape_cast %7 : vector<1x1x18x3xbf16> to vector<18x3xbf16>
      %c1_i32_12 = arith.constant 1 : i32
      %9 = arith.addi %arg6, %c1_i32_12 : i32
      %c0_13 = arith.constant 0 : index
      %10 = arith.index_cast %9 : i32 to index
      %c0_14 = arith.constant 0 : index
      %c0_15 = arith.constant 0 : index
      %11 = vector.load %arg1[%c0_13, %10, %c0_14, %c0_15] : memref<1x18x18x3xbf16, #tpu.memory_space<vmem>>, vector<1x1x18x3xbf16>
      %12 = vector.shape_cast %11 : vector<1x1x18x3xbf16> to vector<18x3xbf16>
      %c2_i32 = arith.constant 2 : i32
      %13 = arith.addi %arg6, %c2_i32 : i32
      %c0_16 = arith.constant 0 : index
      %14 = arith.index_cast %13 : i32 to index
      %c0_17 = arith.constant 0 : index
      %c0_18 = arith.constant 0 : index
      %15 = vector.load %arg1[%c0_16, %14, %c0_17, %c0_18] : memref<1x18x18x3xbf16, #tpu.memory_space<vmem>>, vector<1x1x18x3xbf16>
      %16 = vector.shape_cast %15 : vector<1x1x18x3xbf16> to vector<18x3xbf16>
      %17 = vector.extract_strided_slice %8 {offsets = [0, 0], sizes = [16, 3], strides = [1, 1]} : vector<18x3xbf16> to vector<16x3xbf16>
      %18 = vector.extract_strided_slice %0 {offsets = [0, 0, 0, 0], sizes = [1, 1, 3, 4], strides = [1, 1, 1, 1]} : vector<3x3x3x4xbf16> to vector<1x1x3x4xbf16>
      %19 = vector.shape_cast %18 : vector<1x1x3x4xbf16> to vector<3x4xbf16>
      %cst_19 = arith.constant dense<0.000000e+00> : vector<16x4xf32>
      %20 = tpu.matmul %17, %19, %cst_19 {dimension_numbers = #tpu.dot_dimension_numbers<[1], [0], [0], [1], [0, 0, 1, 1], [], []>} : vector<16x3xbf16>, vector<3x4xbf16>, vector<16x4xf32> -> vector<16x4xf32>
      %21 = arith.addf %4, %20 : vector<16x4xf32>
      %22 = vector.extract_strided_slice %8 {offsets = [1, 0], sizes = [16, 3], strides = [1, 1]} : vector<18x3xbf16> to vector<16x3xbf16>
      %23 = vector.extract_strided_slice %0 {offsets = [0, 1, 0, 0], sizes = [1, 1, 3, 4], strides = [1, 1, 1, 1]} : vector<3x3x3x4xbf16> to vector<1x1x3x4xbf16>
      %24 = vector.shape_cast %23 : vector<1x1x3x4xbf16> to vector<3x4xbf16>
      %cst_20 = arith.constant dense<0.000000e+00> : vector<16x4xf32>
      %25 = tpu.matmul %22, %24, %cst_20 {dimension_numbers = #tpu.dot_dimension_numbers<[1], [0], [0], [1], [0, 0, 1, 1], [], []>} : vector<16x3xbf16>, vector<3x4xbf16>, vector<16x4xf32> -> vector<16x4xf32>
      %26 = arith.addf %21, %25 : vector<16x4xf32>
      %27 = vector.extract_strided_slice %8 {offsets = [2, 0], sizes = [16, 3], strides = [1, 1]} : vector<18x3xbf16> to vector<16x3xbf16>
      %28 = vector.extract_strided_slice %0 {offsets = [0, 2, 0, 0], sizes = [1, 1, 3, 4], strides = [1, 1, 1, 1]} : vector<3x3x3x4xbf16> to vector<1x1x3x4xbf16>
      %29 = vector.shape_cast %28 : vector<1x1x3x4xbf16> to vector<3x4xbf16>
      %cst_21 = arith.constant dense<0.000000e+00> : vector<16x4xf32>
      %30 = tpu.matmul %27, %29, %cst_21 {dimension_numbers = #tpu.dot_dimension_numbers<[1], [0], [0], [1], [0, 0, 1, 1], [], []>} : vector<16x3xbf16>, vector<3x4xbf16>, vector<16x4xf32> -> vector<16x4xf32>
      %31 = arith.addf %26, %30 : vector<16x4xf32>
      %32 = vector.extract_strided_slice %12 {offsets = [0, 0], sizes = [16, 3], strides = [1, 1]} : vector<18x3xbf16> to vector<16x3xbf16>
      %33 = vector.extract_strided_slice %0 {offsets = [1, 0, 0, 0], sizes = [1, 1, 3, 4], strides = [1, 1, 1, 1]} : vector<3x3x3x4xbf16> to vector<1x1x3x4xbf16>
      %34 = vector.shape_cast %33 : vector<1x1x3x4xbf16> to vector<3x4xbf16>
      %cst_22 = arith.constant dense<0.000000e+00> : vector<16x4xf32>
      %35 = tpu.matmul %32, %34, %cst_22 {dimension_numbers = #tpu.dot_dimension_numbers<[1], [0], [0], [1], [0, 0, 1, 1], [], []>} : vector<16x3xbf16>, vector<3x4xbf16>, vector<16x4xf32> -> vector<16x4xf32>
      %36 = arith.addf %31, %35 : vector<16x4xf32>
      %37 = vector.extract_strided_slice %12 {offsets = [1, 0], sizes = [16, 3], strides = [1, 1]} : vector<18x3xbf16> to vector<16x3xbf16>
      %38 = vector.extract_strided_slice %0 {offsets = [1, 1, 0, 0], sizes = [1, 1, 3, 4], strides = [1, 1, 1, 1]} : vector<3x3x3x4xbf16> to vector<1x1x3x4xbf16>
      %39 = vector.shape_cast %38 : vector<1x1x3x4xbf16> to vector<3x4xbf16>
      %cst_23 = arith.constant dense<0.000000e+00> : vector<16x4xf32>
      %40 = tpu.matmul %37, %39, %cst_23 {dimension_numbers = #tpu.dot_dimension_numbers<[1], [0], [0], [1], [0, 0, 1, 1], [], []>} : vector<16x3xbf16>, vector<3x4xbf16>, vector<16x4xf32> -> vector<16x4xf32>
      %41 = arith.addf %36, %40 : vector<16x4xf32>
      %42 = vector.extract_strided_slice %12 {offsets = [2, 0], sizes = [16, 3], strides = [1, 1]} : vector<18x3xbf16> to vector<16x3xbf16>
      %43 = vector.extract_strided_slice %0 {offsets = [1, 2, 0, 0], sizes = [1, 1, 3, 4], strides = [1, 1, 1, 1]} : vector<3x3x3x4xbf16> to vector<1x1x3x4xbf16>
      %44 = vector.shape_cast %43 : vector<1x1x3x4xbf16> to vector<3x4xbf16>
      %cst_24 = arith.constant dense<0.000000e+00> : vector<16x4xf32>
      %45 = tpu.matmul %42, %44, %cst_24 {dimension_numbers = #tpu.dot_dimension_numbers<[1], [0], [0], [1], [0, 0, 1, 1], [], []>} : vector<16x3xbf16>, vector<3x4xbf16>, vector<16x4xf32> -> vector<16x4xf32>
      %46 = arith.addf %41, %45 : vector<16x4xf32>
      %47 = vector.extract_strided_slice %16 {offsets = [0, 0], sizes = [16, 3], strides = [1, 1]} : vector<18x3xbf16> to vector<16x3xbf16>
      %48 = vector.extract_strided_slice %0 {offsets = [2, 0, 0, 0], sizes = [1, 1, 3, 4], strides = [1, 1, 1, 1]} : vector<3x3x3x4xbf16> to vector<1x1x3x4xbf16>
      %49 = vector.shape_cast %48 : vector<1x1x3x4xbf16> to vector<3x4xbf16>
      %cst_25 = arith.constant dense<0.000000e+00> : vector<16x4xf32>
      %50 = tpu.matmul %47, %49, %cst_25 {dimension_numbers = #tpu.dot_dimension_numbers<[1], [0], [0], [1], [0, 0, 1, 1], [], []>} : vector<16x3xbf16>, vector<3x4xbf16>, vector<16x4xf32> -> vector<16x4xf32>
      %51 = arith.addf %46, %50 : vector<16x4xf32>
      %52 = vector.extract_strided_slice %16 {offsets = [1, 0], sizes = [16, 3], strides = [1, 1]} : vector<18x3xbf16> to vector<16x3xbf16>
      %53 = vector.extract_strided_slice %0 {offsets = [2, 1, 0, 0], sizes = [1, 1, 3, 4], strides = [1, 1, 1, 1]} : vector<3x3x3x4xbf16> to vector<1x1x3x4xbf16>
      %54 = vector.shape_cast %53 : vector<1x1x3x4xbf16> to vector<3x4xbf16>
      %cst_26 = arith.constant dense<0.000000e+00> : vector<16x4xf32>
      %55 = tpu.matmul %52, %54, %cst_26 {dimension_numbers = #tpu.dot_dimension_numbers<[1], [0], [0], [1], [0, 0, 1, 1], [], []>} : vector<16x3xbf16>, vector<3x4xbf16>, vector<16x4xf32> -> vector<16x4xf32>
      %56 = arith.addf %51, %55 : vector<16x4xf32>
      %57 = vector.extract_strided_slice %16 {offsets = [2, 0], sizes = [16, 3], strides = [1, 1]} : vector<18x3xbf16> to vector<16x3xbf16>
      %58 = vector.extract_strided_slice %0 {offsets = [2, 2, 0, 0], sizes = [1, 1, 3, 4], strides = [1, 1, 1, 1]} : vector<3x3x3x4xbf16> to vector<1x1x3x4xbf16>
      %59 = vector.shape_cast %58 : vector<1x1x3x4xbf16> to vector<3x4xbf16>
      %cst_27 = arith.constant dense<0.000000e+00> : vector<16x4xf32>
      %60 = tpu.matmul %57, %59, %cst_27 {dimension_numbers = #tpu.dot_dimension_numbers<[1], [0], [0], [1], [0, 0, 1, 1], [], []>} : vector<16x3xbf16>, vector<3x4xbf16>, vector<16x4xf32> -> vector<16x4xf32>
      %61 = arith.addf %56, %60 : vector<16x4xf32>
      %62 = vector.broadcast %1 : vector<1x4xf32> to vector<16x4xf32>
      %63 = arith.mulf %61, %62 : vector<16x4xf32>
      %64 = vector.broadcast %2 : vector<1x4xf32> to vector<16x4xf32>
      %65 = arith.addf %63, %64 : vector<16x4xf32>
      %cst_28 = arith.constant 0.000000e+00 : f32
      %66 = vector.broadcast %cst_28 : f32 to vector<16x4xf32>
      %67 = arith.maximumf %65, %66 : vector<16x4xf32>
      %68 = arith.truncf %67 : vector<16x4xf32> to vector<16x4xbf16>
      %c0_29 = arith.constant 0 : index
      %69 = arith.index_cast %arg6 : i32 to index
      %c0_30 = arith.constant 0 : index
      %c0_31 = arith.constant 0 : index
      %70 = vector.load %arg5[%c0_29, %69, %c0_30, %c0_31] : memref<1x16x16x4xbf16, #tpu.memory_space<vmem>>, vector<1x1x16x4xbf16>
      %71 = vector.shape_cast %70 : vector<1x1x16x4xbf16> to vector<16x4xbf16>
      %72 = vector.shape_cast %68 : vector<16x4xbf16> to vector<1x1x16x4xbf16>
      tpu.vector_store %arg5[%c0_29, %69, %c0_30, %c0_31], %72 {strides = array<i32>} : memref<1x16x16x4xbf16, #tpu.memory_space<vmem>>, vector<1x1x16x4xbf16>,
    }
    %c16_i32_7 = arith.constant 16 : i32
    return
  }
  func.func @transform_0(%arg0: i32) -> (i32, i32, i32, i32) {
    %c0_i32 = arith.constant 0 : i32
    %c0_i32_0 = arith.constant 0 : i32
    %c0_i32_1 = arith.constant 0 : i32
    %c0_i32_2 = arith.constant 0 : i32
    return %arg0, %c0_i32, %c0_i32_0, %c0_i32_1 : i32, i32, i32, i32
  }
  func.func @transform_1(%arg0: i32) -> (i32, i32, i32, i32) {
    %c0_i32 = arith.constant 0 : i32
    %c0_i32_0 = arith.constant 0 : i32
    %c0_i32_1 = arith.constant 0 : i32
    %c0_i32_2 = arith.constant 0 : i32
    %c0_i32_3 = arith.constant 0 : i32
    return %c0_i32, %c0_i32_0, %c0_i32_1, %c0_i32_2 : i32, i32, i32, i32
  }
  func.func @transform_2(%arg0: i32) -> (i32, i32) {
    %c0_i32 = arith.constant 0 : i32
    %c0_i32_0 = arith.constant 0 : i32
    %c0_i32_1 = arith.constant 0 : i32
    return %c0_i32, %c0_i32_0 : i32, i32
  }
  func.func @transform_3(%arg0: i32) -> (i32, i32) {
    %c0_i32 = arith.constant 0 : i32
    %c0_i32_0 = arith.constant 0 : i32
    %c0_i32_1 = arith.constant 0 : i32
    return %c0_i32, %c0_i32_0 : i32, i32
  }
  func.func @transform_4(%arg0: i32) -> (i32, i32, i32, i32) {
    %c0_i32 = arith.constant 0 : i32
    %c0_i32_0 = arith.constant 0 : i32
    %c0_i32_1 = arith.constant 0 : i32
    %c0_i32_2 = arith.constant 0 : i32
    return %arg0, %c0_i32, %c0_i32_0, %c0_i32_1 : i32, i32, i32, i32
  }
}

module attributes {stable_mosaic.version = 11 : i64} {
  func.func @_maxpool_kernel(%arg0: i32, %arg1: memref<1x8x2x8x8xbf16, #tpu.memory_space<vmem>>, %arg2: memref<1x8x8x4xbf16, #tpu.memory_space<vmem>>) attributes {dimension_semantics = [#tpu.dimension_semantics<parallel>], iteration_bounds = array<i64: 2>, scalar_prefetch = 0 : i64, scratch_operands = 0 : i64, tpu.core_type = #tpu.core_type<tc>, window_params = [{transform_indices = @transform_0, window_bounds = array<i64: 1, 8, 2, 8, 8>}, {transform_indices = @transform_1, window_bounds = array<i64: 1, 8, 8, 4>}]} {
    %c0 = arith.constant 0 : index
    %c0_0 = arith.constant 0 : index
    %c0_1 = arith.constant 0 : index
    %c0_2 = arith.constant 0 : index
    %c0_3 = arith.constant 0 : index
    %0 = vector.load %arg1[%c0, %c0_0, %c0_1, %c0_2, %c0_3] : memref<1x8x2x8x8xbf16, #tpu.memory_space<vmem>>, vector<1x8x1x8x8xbf16>
    %1 = vector.shape_cast %0 : vector<1x8x1x8x8xbf16> to vector<8x8x8xbf16>
    %c0_4 = arith.constant 0 : index
    %c0_5 = arith.constant 0 : index
    %c1 = arith.constant 1 : index
    %c0_6 = arith.constant 0 : index
    %c0_7 = arith.constant 0 : index
    %2 = vector.load %arg1[%c0_4, %c0_5, %c1, %c0_6, %c0_7] : memref<1x8x2x8x8xbf16, #tpu.memory_space<vmem>>, vector<1x8x1x8x8xbf16>
    %3 = vector.shape_cast %2 : vector<1x8x1x8x8xbf16> to vector<8x8x8xbf16>
    %4 = arith.maximumf %1, %3 : vector<8x8x8xbf16>
    %5 = vector.extract_strided_slice %4 {offsets = [0, 0, 0], sizes = [8, 8, 4], strides = [1, 1, 1]} : vector<8x8x8xbf16> to vector<8x8x4xbf16>
    %6 = vector.extract_strided_slice %4 {offsets = [0, 0, 4], sizes = [8, 8, 4], strides = [1, 1, 1]} : vector<8x8x8xbf16> to vector<8x8x4xbf16>
    %7 = arith.maximumf %5, %6 : vector<8x8x4xbf16>
    %c0_8 = arith.constant 0 : index
    %c0_9 = arith.constant 0 : index
    %c0_10 = arith.constant 0 : index
    %c0_11 = arith.constant 0 : index
    %8 = vector.load %arg2[%c0_8, %c0_9, %c0_10, %c0_11] : memref<1x8x8x4xbf16, #tpu.memory_space<vmem>>, vector<1x8x8x4xbf16>
    %9 = vector.shape_cast %8 : vector<1x8x8x4xbf16> to vector<8x8x4xbf16>
    %10 = vector.shape_cast %7 : vector<8x8x4xbf16> to vector<1x8x8x4xbf16>
    tpu.vector_store %arg2[%c0_8, %c0_9, %c0_10, %c0_11], %10 {strides = array<i32>} : memref<1x8x8x4xbf16, #tpu.memory_space<vmem>>, vector<1x8x8x4xbf16>,
    return
  }
  func.func @transform_0(%arg0: i32) -> (i32, i32, i32, i32, i32) {
    %c0_i32 = arith.constant 0 : i32
    %c0_i32_0 = arith.constant 0 : i32
    %c0_i32_1 = arith.constant 0 : i32
    %c0_i32_2 = arith.constant 0 : i32
    %c0_i32_3 = arith.constant 0 : i32
    return %arg0, %c0_i32, %c0_i32_0, %c0_i32_1, %c0_i32_2 : i32, i32, i32, i32, i32
  }
  func.func @transform_1(%arg0: i32) -> (i32, i32, i32, i32) {
    %c0_i32 = arith.constant 0 : i32
    %c0_i32_0 = arith.constant 0 : i32
    %c0_i32_1 = arith.constant 0 : i32
    %c0_i32_2 = arith.constant 0 : i32
    return %arg0, %c0_i32, %c0_i32_0, %c0_i32_1 : i32, i32, i32, i32
  }
}

module attributes {stable_mosaic.version = 11 : i64} {
  func.func @_conv3x3_kernel(%arg0: i32, %arg1: memref<1x10x10x4xbf16, #tpu.memory_space<vmem>>, %arg2: memref<3x3x4x8xbf16, #tpu.memory_space<vmem>>, %arg3: memref<1x8xf32, #tpu.memory_space<vmem>>, %arg4: memref<1x8xf32, #tpu.memory_space<vmem>>, %arg5: memref<1x8x8x8xbf16, #tpu.memory_space<vmem>>) attributes {dimension_semantics = [#tpu.dimension_semantics<parallel>], iteration_bounds = array<i64: 2>, scalar_prefetch = 0 : i64, scratch_operands = 0 : i64, tpu.core_type = #tpu.core_type<tc>, window_params = [{transform_indices = @transform_0, window_bounds = array<i64: 1, 10, 10, 4>}, {pipeline_mode = #tpu.pipeline_mode<synchronous>, transform_indices = @transform_1, window_bounds = array<i64: 3, 3, 4, 8>}, {pipeline_mode = #tpu.pipeline_mode<synchronous>, transform_indices = @transform_2, window_bounds = array<i64: 1, 8>}, {pipeline_mode = #tpu.pipeline_mode<synchronous>, transform_indices = @transform_3, window_bounds = array<i64: 1, 8>}, {transform_indices = @transform_4, window_bounds = array<i64: 1, 8, 8, 8>}]} {
    %c0 = arith.constant 0 : index
    %c0_0 = arith.constant 0 : index
    %c0_1 = arith.constant 0 : index
    %c0_2 = arith.constant 0 : index
    %0 = vector.load %arg2[%c0, %c0_0, %c0_1, %c0_2] : memref<3x3x4x8xbf16, #tpu.memory_space<vmem>>, vector<3x3x4x8xbf16>
    %c0_3 = arith.constant 0 : index
    %c0_4 = arith.constant 0 : index
    %1 = vector.load %arg3[%c0_3, %c0_4] : memref<1x8xf32, #tpu.memory_space<vmem>>, vector<1x8xf32>
    %c0_5 = arith.constant 0 : index
    %c0_6 = arith.constant 0 : index
    %2 = vector.load %arg4[%c0_5, %c0_6] : memref<1x8xf32, #tpu.memory_space<vmem>>, vector<1x8xf32>
    %c0_i32 = arith.constant 0 : i32
    %c8_i32 = arith.constant 8 : i32
    %3 = arith.addi %c0_i32, %c8_i32 : i32
    %c1_i32 = arith.constant 1 : i32
    scf.for %arg6 = %c0_i32 to %3 step %c1_i32  : i32 {
      %cst = arith.constant 0.000000e+00 : f32
      %4 = vector.broadcast %cst : f32 to vector<8x8xf32>
      %c0_i32_8 = arith.constant 0 : i32
      %5 = arith.addi %arg6, %c0_i32_8 : i32
      %c0_9 = arith.constant 0 : index
      %6 = arith.index_cast %5 : i32 to index
      %c0_10 = arith.constant 0 : index
      %c0_11 = arith.constant 0 : index
      %7 = vector.load %arg1[%c0_9, %6, %c0_10, %c0_11] : memref<1x10x10x4xbf16, #tpu.memory_space<vmem>>, vector<1x1x10x4xbf16>
      %8 = vector.shape_cast %7 : vector<1x1x10x4xbf16> to vector<10x4xbf16>
      %c1_i32_12 = arith.constant 1 : i32
      %9 = arith.addi %arg6, %c1_i32_12 : i32
      %c0_13 = arith.constant 0 : index
      %10 = arith.index_cast %9 : i32 to index
      %c0_14 = arith.constant 0 : index
      %c0_15 = arith.constant 0 : index
      %11 = vector.load %arg1[%c0_13, %10, %c0_14, %c0_15] : memref<1x10x10x4xbf16, #tpu.memory_space<vmem>>, vector<1x1x10x4xbf16>
      %12 = vector.shape_cast %11 : vector<1x1x10x4xbf16> to vector<10x4xbf16>
      %c2_i32 = arith.constant 2 : i32
      %13 = arith.addi %arg6, %c2_i32 : i32
      %c0_16 = arith.constant 0 : index
      %14 = arith.index_cast %13 : i32 to index
      %c0_17 = arith.constant 0 : index
      %c0_18 = arith.constant 0 : index
      %15 = vector.load %arg1[%c0_16, %14, %c0_17, %c0_18] : memref<1x10x10x4xbf16, #tpu.memory_space<vmem>>, vector<1x1x10x4xbf16>
      %16 = vector.shape_cast %15 : vector<1x1x10x4xbf16> to vector<10x4xbf16>
      %17 = vector.extract_strided_slice %8 {offsets = [0, 0], sizes = [8, 4], strides = [1, 1]} : vector<10x4xbf16> to vector<8x4xbf16>
      %18 = vector.extract_strided_slice %0 {offsets = [0, 0, 0, 0], sizes = [1, 1, 4, 8], strides = [1, 1, 1, 1]} : vector<3x3x4x8xbf16> to vector<1x1x4x8xbf16>
      %19 = vector.shape_cast %18 : vector<1x1x4x8xbf16> to vector<4x8xbf16>
      %cst_19 = arith.constant dense<0.000000e+00> : vector<8x8xf32>
      %20 = tpu.matmul %17, %19, %cst_19 {dimension_numbers = #tpu.dot_dimension_numbers<[1], [0], [0], [1], [0, 0, 1, 1], [], []>} : vector<8x4xbf16>, vector<4x8xbf16>, vector<8x8xf32> -> vector<8x8xf32>
      %21 = arith.addf %4, %20 : vector<8x8xf32>
      %22 = vector.extract_strided_slice %8 {offsets = [1, 0], sizes = [8, 4], strides = [1, 1]} : vector<10x4xbf16> to vector<8x4xbf16>
      %23 = vector.extract_strided_slice %0 {offsets = [0, 1, 0, 0], sizes = [1, 1, 4, 8], strides = [1, 1, 1, 1]} : vector<3x3x4x8xbf16> to vector<1x1x4x8xbf16>
      %24 = vector.shape_cast %23 : vector<1x1x4x8xbf16> to vector<4x8xbf16>
      %cst_20 = arith.constant dense<0.000000e+00> : vector<8x8xf32>
      %25 = tpu.matmul %22, %24, %cst_20 {dimension_numbers = #tpu.dot_dimension_numbers<[1], [0], [0], [1], [0, 0, 1, 1], [], []>} : vector<8x4xbf16>, vector<4x8xbf16>, vector<8x8xf32> -> vector<8x8xf32>
      %26 = arith.addf %21, %25 : vector<8x8xf32>
      %27 = vector.extract_strided_slice %8 {offsets = [2, 0], sizes = [8, 4], strides = [1, 1]} : vector<10x4xbf16> to vector<8x4xbf16>
      %28 = vector.extract_strided_slice %0 {offsets = [0, 2, 0, 0], sizes = [1, 1, 4, 8], strides = [1, 1, 1, 1]} : vector<3x3x4x8xbf16> to vector<1x1x4x8xbf16>
      %29 = vector.shape_cast %28 : vector<1x1x4x8xbf16> to vector<4x8xbf16>
      %cst_21 = arith.constant dense<0.000000e+00> : vector<8x8xf32>
      %30 = tpu.matmul %27, %29, %cst_21 {dimension_numbers = #tpu.dot_dimension_numbers<[1], [0], [0], [1], [0, 0, 1, 1], [], []>} : vector<8x4xbf16>, vector<4x8xbf16>, vector<8x8xf32> -> vector<8x8xf32>
      %31 = arith.addf %26, %30 : vector<8x8xf32>
      %32 = vector.extract_strided_slice %12 {offsets = [0, 0], sizes = [8, 4], strides = [1, 1]} : vector<10x4xbf16> to vector<8x4xbf16>
      %33 = vector.extract_strided_slice %0 {offsets = [1, 0, 0, 0], sizes = [1, 1, 4, 8], strides = [1, 1, 1, 1]} : vector<3x3x4x8xbf16> to vector<1x1x4x8xbf16>
      %34 = vector.shape_cast %33 : vector<1x1x4x8xbf16> to vector<4x8xbf16>
      %cst_22 = arith.constant dense<0.000000e+00> : vector<8x8xf32>
      %35 = tpu.matmul %32, %34, %cst_22 {dimension_numbers = #tpu.dot_dimension_numbers<[1], [0], [0], [1], [0, 0, 1, 1], [], []>} : vector<8x4xbf16>, vector<4x8xbf16>, vector<8x8xf32> -> vector<8x8xf32>
      %36 = arith.addf %31, %35 : vector<8x8xf32>
      %37 = vector.extract_strided_slice %12 {offsets = [1, 0], sizes = [8, 4], strides = [1, 1]} : vector<10x4xbf16> to vector<8x4xbf16>
      %38 = vector.extract_strided_slice %0 {offsets = [1, 1, 0, 0], sizes = [1, 1, 4, 8], strides = [1, 1, 1, 1]} : vector<3x3x4x8xbf16> to vector<1x1x4x8xbf16>
      %39 = vector.shape_cast %38 : vector<1x1x4x8xbf16> to vector<4x8xbf16>
      %cst_23 = arith.constant dense<0.000000e+00> : vector<8x8xf32>
      %40 = tpu.matmul %37, %39, %cst_23 {dimension_numbers = #tpu.dot_dimension_numbers<[1], [0], [0], [1], [0, 0, 1, 1], [], []>} : vector<8x4xbf16>, vector<4x8xbf16>, vector<8x8xf32> -> vector<8x8xf32>
      %41 = arith.addf %36, %40 : vector<8x8xf32>
      %42 = vector.extract_strided_slice %12 {offsets = [2, 0], sizes = [8, 4], strides = [1, 1]} : vector<10x4xbf16> to vector<8x4xbf16>
      %43 = vector.extract_strided_slice %0 {offsets = [1, 2, 0, 0], sizes = [1, 1, 4, 8], strides = [1, 1, 1, 1]} : vector<3x3x4x8xbf16> to vector<1x1x4x8xbf16>
      %44 = vector.shape_cast %43 : vector<1x1x4x8xbf16> to vector<4x8xbf16>
      %cst_24 = arith.constant dense<0.000000e+00> : vector<8x8xf32>
      %45 = tpu.matmul %42, %44, %cst_24 {dimension_numbers = #tpu.dot_dimension_numbers<[1], [0], [0], [1], [0, 0, 1, 1], [], []>} : vector<8x4xbf16>, vector<4x8xbf16>, vector<8x8xf32> -> vector<8x8xf32>
      %46 = arith.addf %41, %45 : vector<8x8xf32>
      %47 = vector.extract_strided_slice %16 {offsets = [0, 0], sizes = [8, 4], strides = [1, 1]} : vector<10x4xbf16> to vector<8x4xbf16>
      %48 = vector.extract_strided_slice %0 {offsets = [2, 0, 0, 0], sizes = [1, 1, 4, 8], strides = [1, 1, 1, 1]} : vector<3x3x4x8xbf16> to vector<1x1x4x8xbf16>
      %49 = vector.shape_cast %48 : vector<1x1x4x8xbf16> to vector<4x8xbf16>
      %cst_25 = arith.constant dense<0.000000e+00> : vector<8x8xf32>
      %50 = tpu.matmul %47, %49, %cst_25 {dimension_numbers = #tpu.dot_dimension_numbers<[1], [0], [0], [1], [0, 0, 1, 1], [], []>} : vector<8x4xbf16>, vector<4x8xbf16>, vector<8x8xf32> -> vector<8x8xf32>
      %51 = arith.addf %46, %50 : vector<8x8xf32>
      %52 = vector.extract_strided_slice %16 {offsets = [1, 0], sizes = [8, 4], strides = [1, 1]} : vector<10x4xbf16> to vector<8x4xbf16>
      %53 = vector.extract_strided_slice %0 {offsets = [2, 1, 0, 0], sizes = [1, 1, 4, 8], strides = [1, 1, 1, 1]} : vector<3x3x4x8xbf16> to vector<1x1x4x8xbf16>
      %54 = vector.shape_cast %53 : vector<1x1x4x8xbf16> to vector<4x8xbf16>
      %cst_26 = arith.constant dense<0.000000e+00> : vector<8x8xf32>
      %55 = tpu.matmul %52, %54, %cst_26 {dimension_numbers = #tpu.dot_dimension_numbers<[1], [0], [0], [1], [0, 0, 1, 1], [], []>} : vector<8x4xbf16>, vector<4x8xbf16>, vector<8x8xf32> -> vector<8x8xf32>
      %56 = arith.addf %51, %55 : vector<8x8xf32>
      %57 = vector.extract_strided_slice %16 {offsets = [2, 0], sizes = [8, 4], strides = [1, 1]} : vector<10x4xbf16> to vector<8x4xbf16>
      %58 = vector.extract_strided_slice %0 {offsets = [2, 2, 0, 0], sizes = [1, 1, 4, 8], strides = [1, 1, 1, 1]} : vector<3x3x4x8xbf16> to vector<1x1x4x8xbf16>
      %59 = vector.shape_cast %58 : vector<1x1x4x8xbf16> to vector<4x8xbf16>
      %cst_27 = arith.constant dense<0.000000e+00> : vector<8x8xf32>
      %60 = tpu.matmul %57, %59, %cst_27 {dimension_numbers = #tpu.dot_dimension_numbers<[1], [0], [0], [1], [0, 0, 1, 1], [], []>} : vector<8x4xbf16>, vector<4x8xbf16>, vector<8x8xf32> -> vector<8x8xf32>
      %61 = arith.addf %56, %60 : vector<8x8xf32>
      %62 = vector.broadcast %1 : vector<1x8xf32> to vector<8x8xf32>
      %63 = arith.mulf %61, %62 : vector<8x8xf32>
      %64 = vector.broadcast %2 : vector<1x8xf32> to vector<8x8xf32>
      %65 = arith.addf %63, %64 : vector<8x8xf32>
      %cst_28 = arith.constant 0.000000e+00 : f32
      %66 = vector.broadcast %cst_28 : f32 to vector<8x8xf32>
      %67 = arith.maximumf %65, %66 : vector<8x8xf32>
      %68 = arith.truncf %67 : vector<8x8xf32> to vector<8x8xbf16>
      %c0_29 = arith.constant 0 : index
      %69 = arith.index_cast %arg6 : i32 to index
      %c0_30 = arith.constant 0 : index
      %c0_31 = arith.constant 0 : index
      %70 = vector.load %arg5[%c0_29, %69, %c0_30, %c0_31] : memref<1x8x8x8xbf16, #tpu.memory_space<vmem>>, vector<1x1x8x8xbf16>
      %71 = vector.shape_cast %70 : vector<1x1x8x8xbf16> to vector<8x8xbf16>
      %72 = vector.shape_cast %68 : vector<8x8xbf16> to vector<1x1x8x8xbf16>
      tpu.vector_store %arg5[%c0_29, %69, %c0_30, %c0_31], %72 {strides = array<i32>} : memref<1x8x8x8xbf16, #tpu.memory_space<vmem>>, vector<1x1x8x8xbf16>,
    }
    %c8_i32_7 = arith.constant 8 : i32
    return
  }
  func.func @transform_0(%arg0: i32) -> (i32, i32, i32, i32) {
    %c0_i32 = arith.constant 0 : i32
    %c0_i32_0 = arith.constant 0 : i32
    %c0_i32_1 = arith.constant 0 : i32
    %c0_i32_2 = arith.constant 0 : i32
    return %arg0, %c0_i32, %c0_i32_0, %c0_i32_1 : i32, i32, i32, i32
  }
  func.func @transform_1(%arg0: i32) -> (i32, i32, i32, i32) {
    %c0_i32 = arith.constant 0 : i32
    %c0_i32_0 = arith.constant 0 : i32
    %c0_i32_1 = arith.constant 0 : i32
    %c0_i32_2 = arith.constant 0 : i32
    %c0_i32_3 = arith.constant 0 : i32
    return %c0_i32, %c0_i32_0, %c0_i32_1, %c0_i32_2 : i32, i32, i32, i32
  }
  func.func @transform_2(%arg0: i32) -> (i32, i32) {
    %c0_i32 = arith.constant 0 : i32
    %c0_i32_0 = arith.constant 0 : i32
    %c0_i32_1 = arith.constant 0 : i32
    return %c0_i32, %c0_i32_0 : i32, i32
  }
  func.func @transform_3(%arg0: i32) -> (i32, i32) {
    %c0_i32 = arith.constant 0 : i32
    %c0_i32_0 = arith.constant 0 : i32
    %c0_i32_1 = arith.constant 0 : i32
    return %c0_i32, %c0_i32_0 : i32, i32
  }
  func.func @transform_4(%arg0: i32) -> (i32, i32, i32, i32) {
    %c0_i32 = arith.constant 0 : i32
    %c0_i32_0 = arith.constant 0 : i32
    %c0_i32_1 = arith.constant 0 : i32
    %c0_i32_2 = arith.constant 0 : i32
    return %arg0, %c0_i32, %c0_i32_0, %c0_i32_1 : i32, i32, i32, i32
  }
}

module attributes {stable_mosaic.version = 11 : i64} {
  func.func @_maxpool_kernel(%arg0: i32, %arg1: memref<1x4x2x4x16xbf16, #tpu.memory_space<vmem>>, %arg2: memref<1x4x4x8xbf16, #tpu.memory_space<vmem>>) attributes {dimension_semantics = [#tpu.dimension_semantics<parallel>], iteration_bounds = array<i64: 2>, scalar_prefetch = 0 : i64, scratch_operands = 0 : i64, tpu.core_type = #tpu.core_type<tc>, window_params = [{transform_indices = @transform_0, window_bounds = array<i64: 1, 4, 2, 4, 16>}, {transform_indices = @transform_1, window_bounds = array<i64: 1, 4, 4, 8>}]} {
    %c0 = arith.constant 0 : index
    %c0_0 = arith.constant 0 : index
    %c0_1 = arith.constant 0 : index
    %c0_2 = arith.constant 0 : index
    %c0_3 = arith.constant 0 : index
    %0 = vector.load %arg1[%c0, %c0_0, %c0_1, %c0_2, %c0_3] : memref<1x4x2x4x16xbf16, #tpu.memory_space<vmem>>, vector<1x4x1x4x16xbf16>
    %1 = vector.shape_cast %0 : vector<1x4x1x4x16xbf16> to vector<4x4x16xbf16>
    %c0_4 = arith.constant 0 : index
    %c0_5 = arith.constant 0 : index
    %c1 = arith.constant 1 : index
    %c0_6 = arith.constant 0 : index
    %c0_7 = arith.constant 0 : index
    %2 = vector.load %arg1[%c0_4, %c0_5, %c1, %c0_6, %c0_7] : memref<1x4x2x4x16xbf16, #tpu.memory_space<vmem>>, vector<1x4x1x4x16xbf16>
    %3 = vector.shape_cast %2 : vector<1x4x1x4x16xbf16> to vector<4x4x16xbf16>
    %4 = arith.maximumf %1, %3 : vector<4x4x16xbf16>
    %5 = vector.extract_strided_slice %4 {offsets = [0, 0, 0], sizes = [4, 4, 8], strides = [1, 1, 1]} : vector<4x4x16xbf16> to vector<4x4x8xbf16>
    %6 = vector.extract_strided_slice %4 {offsets = [0, 0, 8], sizes = [4, 4, 8], strides = [1, 1, 1]} : vector<4x4x16xbf16> to vector<4x4x8xbf16>
    %7 = arith.maximumf %5, %6 : vector<4x4x8xbf16>
    %c0_8 = arith.constant 0 : index
    %c0_9 = arith.constant 0 : index
    %c0_10 = arith.constant 0 : index
    %c0_11 = arith.constant 0 : index
    %8 = vector.load %arg2[%c0_8, %c0_9, %c0_10, %c0_11] : memref<1x4x4x8xbf16, #tpu.memory_space<vmem>>, vector<1x4x4x8xbf16>
    %9 = vector.shape_cast %8 : vector<1x4x4x8xbf16> to vector<4x4x8xbf16>
    %10 = vector.shape_cast %7 : vector<4x4x8xbf16> to vector<1x4x4x8xbf16>
    tpu.vector_store %arg2[%c0_8, %c0_9, %c0_10, %c0_11], %10 {strides = array<i32>} : memref<1x4x4x8xbf16, #tpu.memory_space<vmem>>, vector<1x4x4x8xbf16>,
    return
  }
  func.func @transform_0(%arg0: i32) -> (i32, i32, i32, i32, i32) {
    %c0_i32 = arith.constant 0 : i32
    %c0_i32_0 = arith.constant 0 : i32
    %c0_i32_1 = arith.constant 0 : i32
    %c0_i32_2 = arith.constant 0 : i32
    %c0_i32_3 = arith.constant 0 : i32
    return %arg0, %c0_i32, %c0_i32_0, %c0_i32_1, %c0_i32_2 : i32, i32, i32, i32, i32
  }
  func.func @transform_1(%arg0: i32) -> (i32, i32, i32, i32) {
    %c0_i32 = arith.constant 0 : i32
    %c0_i32_0 = arith.constant 0 : i32
    %c0_i32_1 = arith.constant 0 : i32
    %c0_i32_2 = arith.constant 0 : i32
    return %arg0, %c0_i32, %c0_i32_0, %c0_i32_1 : i32, i32, i32, i32
  }
}

module attributes {stable_mosaic.version = 11 : i64} {
  func.func @_conv3x3_kernel(%arg0: i32, %arg1: memref<1x6x6x8xbf16, #tpu.memory_space<vmem>>, %arg2: memref<3x3x8x8xbf16, #tpu.memory_space<vmem>>, %arg3: memref<1x8xf32, #tpu.memory_space<vmem>>, %arg4: memref<1x8xf32, #tpu.memory_space<vmem>>, %arg5: memref<1x4x4x8xbf16, #tpu.memory_space<vmem>>) attributes {dimension_semantics = [#tpu.dimension_semantics<parallel>], iteration_bounds = array<i64: 2>, scalar_prefetch = 0 : i64, scratch_operands = 0 : i64, tpu.core_type = #tpu.core_type<tc>, window_params = [{transform_indices = @transform_0, window_bounds = array<i64: 1, 6, 6, 8>}, {pipeline_mode = #tpu.pipeline_mode<synchronous>, transform_indices = @transform_1, window_bounds = array<i64: 3, 3, 8, 8>}, {pipeline_mode = #tpu.pipeline_mode<synchronous>, transform_indices = @transform_2, window_bounds = array<i64: 1, 8>}, {pipeline_mode = #tpu.pipeline_mode<synchronous>, transform_indices = @transform_3, window_bounds = array<i64: 1, 8>}, {transform_indices = @transform_4, window_bounds = array<i64: 1, 4, 4, 8>}]} {
    %c0 = arith.constant 0 : index
    %c0_0 = arith.constant 0 : index
    %c0_1 = arith.constant 0 : index
    %c0_2 = arith.constant 0 : index
    %0 = vector.load %arg2[%c0, %c0_0, %c0_1, %c0_2] : memref<3x3x8x8xbf16, #tpu.memory_space<vmem>>, vector<3x3x8x8xbf16>
    %c0_3 = arith.constant 0 : index
    %c0_4 = arith.constant 0 : index
    %1 = vector.load %arg3[%c0_3, %c0_4] : memref<1x8xf32, #tpu.memory_space<vmem>>, vector<1x8xf32>
    %c0_5 = arith.constant 0 : index
    %c0_6 = arith.constant 0 : index
    %2 = vector.load %arg4[%c0_5, %c0_6] : memref<1x8xf32, #tpu.memory_space<vmem>>, vector<1x8xf32>
    %c0_i32 = arith.constant 0 : i32
    %c4_i32 = arith.constant 4 : i32
    %3 = arith.addi %c0_i32, %c4_i32 : i32
    %c1_i32 = arith.constant 1 : i32
    scf.for %arg6 = %c0_i32 to %3 step %c1_i32  : i32 {
      %cst = arith.constant 0.000000e+00 : f32
      %4 = vector.broadcast %cst : f32 to vector<4x8xf32>
      %c0_i32_8 = arith.constant 0 : i32
      %5 = arith.addi %arg6, %c0_i32_8 : i32
      %c0_9 = arith.constant 0 : index
      %6 = arith.index_cast %5 : i32 to index
      %c0_10 = arith.constant 0 : index
      %c0_11 = arith.constant 0 : index
      %7 = vector.load %arg1[%c0_9, %6, %c0_10, %c0_11] : memref<1x6x6x8xbf16, #tpu.memory_space<vmem>>, vector<1x1x6x8xbf16>
      %8 = vector.shape_cast %7 : vector<1x1x6x8xbf16> to vector<6x8xbf16>
      %c1_i32_12 = arith.constant 1 : i32
      %9 = arith.addi %arg6, %c1_i32_12 : i32
      %c0_13 = arith.constant 0 : index
      %10 = arith.index_cast %9 : i32 to index
      %c0_14 = arith.constant 0 : index
      %c0_15 = arith.constant 0 : index
      %11 = vector.load %arg1[%c0_13, %10, %c0_14, %c0_15] : memref<1x6x6x8xbf16, #tpu.memory_space<vmem>>, vector<1x1x6x8xbf16>
      %12 = vector.shape_cast %11 : vector<1x1x6x8xbf16> to vector<6x8xbf16>
      %c2_i32 = arith.constant 2 : i32
      %13 = arith.addi %arg6, %c2_i32 : i32
      %c0_16 = arith.constant 0 : index
      %14 = arith.index_cast %13 : i32 to index
      %c0_17 = arith.constant 0 : index
      %c0_18 = arith.constant 0 : index
      %15 = vector.load %arg1[%c0_16, %14, %c0_17, %c0_18] : memref<1x6x6x8xbf16, #tpu.memory_space<vmem>>, vector<1x1x6x8xbf16>
      %16 = vector.shape_cast %15 : vector<1x1x6x8xbf16> to vector<6x8xbf16>
      %17 = vector.extract_strided_slice %8 {offsets = [0, 0], sizes = [4, 8], strides = [1, 1]} : vector<6x8xbf16> to vector<4x8xbf16>
      %18 = vector.extract_strided_slice %0 {offsets = [0, 0, 0, 0], sizes = [1, 1, 8, 8], strides = [1, 1, 1, 1]} : vector<3x3x8x8xbf16> to vector<1x1x8x8xbf16>
      %19 = vector.shape_cast %18 : vector<1x1x8x8xbf16> to vector<8x8xbf16>
      %cst_19 = arith.constant dense<0.000000e+00> : vector<4x8xf32>
      %20 = tpu.matmul %17, %19, %cst_19 {dimension_numbers = #tpu.dot_dimension_numbers<[1], [0], [0], [1], [0, 0, 1, 1], [], []>} : vector<4x8xbf16>, vector<8x8xbf16>, vector<4x8xf32> -> vector<4x8xf32>
      %21 = arith.addf %4, %20 : vector<4x8xf32>
      %22 = vector.extract_strided_slice %8 {offsets = [1, 0], sizes = [4, 8], strides = [1, 1]} : vector<6x8xbf16> to vector<4x8xbf16>
      %23 = vector.extract_strided_slice %0 {offsets = [0, 1, 0, 0], sizes = [1, 1, 8, 8], strides = [1, 1, 1, 1]} : vector<3x3x8x8xbf16> to vector<1x1x8x8xbf16>
      %24 = vector.shape_cast %23 : vector<1x1x8x8xbf16> to vector<8x8xbf16>
      %cst_20 = arith.constant dense<0.000000e+00> : vector<4x8xf32>
      %25 = tpu.matmul %22, %24, %cst_20 {dimension_numbers = #tpu.dot_dimension_numbers<[1], [0], [0], [1], [0, 0, 1, 1], [], []>} : vector<4x8xbf16>, vector<8x8xbf16>, vector<4x8xf32> -> vector<4x8xf32>
      %26 = arith.addf %21, %25 : vector<4x8xf32>
      %27 = vector.extract_strided_slice %8 {offsets = [2, 0], sizes = [4, 8], strides = [1, 1]} : vector<6x8xbf16> to vector<4x8xbf16>
      %28 = vector.extract_strided_slice %0 {offsets = [0, 2, 0, 0], sizes = [1, 1, 8, 8], strides = [1, 1, 1, 1]} : vector<3x3x8x8xbf16> to vector<1x1x8x8xbf16>
      %29 = vector.shape_cast %28 : vector<1x1x8x8xbf16> to vector<8x8xbf16>
      %cst_21 = arith.constant dense<0.000000e+00> : vector<4x8xf32>
      %30 = tpu.matmul %27, %29, %cst_21 {dimension_numbers = #tpu.dot_dimension_numbers<[1], [0], [0], [1], [0, 0, 1, 1], [], []>} : vector<4x8xbf16>, vector<8x8xbf16>, vector<4x8xf32> -> vector<4x8xf32>
      %31 = arith.addf %26, %30 : vector<4x8xf32>
      %32 = vector.extract_strided_slice %12 {offsets = [0, 0], sizes = [4, 8], strides = [1, 1]} : vector<6x8xbf16> to vector<4x8xbf16>
      %33 = vector.extract_strided_slice %0 {offsets = [1, 0, 0, 0], sizes = [1, 1, 8, 8], strides = [1, 1, 1, 1]} : vector<3x3x8x8xbf16> to vector<1x1x8x8xbf16>
      %34 = vector.shape_cast %33 : vector<1x1x8x8xbf16> to vector<8x8xbf16>
      %cst_22 = arith.constant dense<0.000000e+00> : vector<4x8xf32>
      %35 = tpu.matmul %32, %34, %cst_22 {dimension_numbers = #tpu.dot_dimension_numbers<[1], [0], [0], [1], [0, 0, 1, 1], [], []>} : vector<4x8xbf16>, vector<8x8xbf16>, vector<4x8xf32> -> vector<4x8xf32>
      %36 = arith.addf %31, %35 : vector<4x8xf32>
      %37 = vector.extract_strided_slice %12 {offsets = [1, 0], sizes = [4, 8], strides = [1, 1]} : vector<6x8xbf16> to vector<4x8xbf16>
      %38 = vector.extract_strided_slice %0 {offsets = [1, 1, 0, 0], sizes = [1, 1, 8, 8], strides = [1, 1, 1, 1]} : vector<3x3x8x8xbf16> to vector<1x1x8x8xbf16>
      %39 = vector.shape_cast %38 : vector<1x1x8x8xbf16> to vector<8x8xbf16>
      %cst_23 = arith.constant dense<0.000000e+00> : vector<4x8xf32>
      %40 = tpu.matmul %37, %39, %cst_23 {dimension_numbers = #tpu.dot_dimension_numbers<[1], [0], [0], [1], [0, 0, 1, 1], [], []>} : vector<4x8xbf16>, vector<8x8xbf16>, vector<4x8xf32> -> vector<4x8xf32>
      %41 = arith.addf %36, %40 : vector<4x8xf32>
      %42 = vector.extract_strided_slice %12 {offsets = [2, 0], sizes = [4, 8], strides = [1, 1]} : vector<6x8xbf16> to vector<4x8xbf16>
      %43 = vector.extract_strided_slice %0 {offsets = [1, 2, 0, 0], sizes = [1, 1, 8, 8], strides = [1, 1, 1, 1]} : vector<3x3x8x8xbf16> to vector<1x1x8x8xbf16>
      %44 = vector.shape_cast %43 : vector<1x1x8x8xbf16> to vector<8x8xbf16>
      %cst_24 = arith.constant dense<0.000000e+00> : vector<4x8xf32>
      %45 = tpu.matmul %42, %44, %cst_24 {dimension_numbers = #tpu.dot_dimension_numbers<[1], [0], [0], [1], [0, 0, 1, 1], [], []>} : vector<4x8xbf16>, vector<8x8xbf16>, vector<4x8xf32> -> vector<4x8xf32>
      %46 = arith.addf %41, %45 : vector<4x8xf32>
      %47 = vector.extract_strided_slice %16 {offsets = [0, 0], sizes = [4, 8], strides = [1, 1]} : vector<6x8xbf16> to vector<4x8xbf16>
      %48 = vector.extract_strided_slice %0 {offsets = [2, 0, 0, 0], sizes = [1, 1, 8, 8], strides = [1, 1, 1, 1]} : vector<3x3x8x8xbf16> to vector<1x1x8x8xbf16>
      %49 = vector.shape_cast %48 : vector<1x1x8x8xbf16> to vector<8x8xbf16>
      %cst_25 = arith.constant dense<0.000000e+00> : vector<4x8xf32>
      %50 = tpu.matmul %47, %49, %cst_25 {dimension_numbers = #tpu.dot_dimension_numbers<[1], [0], [0], [1], [0, 0, 1, 1], [], []>} : vector<4x8xbf16>, vector<8x8xbf16>, vector<4x8xf32> -> vector<4x8xf32>
      %51 = arith.addf %46, %50 : vector<4x8xf32>
      %52 = vector.extract_strided_slice %16 {offsets = [1, 0], sizes = [4, 8], strides = [1, 1]} : vector<6x8xbf16> to vector<4x8xbf16>
      %53 = vector.extract_strided_slice %0 {offsets = [2, 1, 0, 0], sizes = [1, 1, 8, 8], strides = [1, 1, 1, 1]} : vector<3x3x8x8xbf16> to vector<1x1x8x8xbf16>
      %54 = vector.shape_cast %53 : vector<1x1x8x8xbf16> to vector<8x8xbf16>
      %cst_26 = arith.constant dense<0.000000e+00> : vector<4x8xf32>
      %55 = tpu.matmul %52, %54, %cst_26 {dimension_numbers = #tpu.dot_dimension_numbers<[1], [0], [0], [1], [0, 0, 1, 1], [], []>} : vector<4x8xbf16>, vector<8x8xbf16>, vector<4x8xf32> -> vector<4x8xf32>
      %56 = arith.addf %51, %55 : vector<4x8xf32>
      %57 = vector.extract_strided_slice %16 {offsets = [2, 0], sizes = [4, 8], strides = [1, 1]} : vector<6x8xbf16> to vector<4x8xbf16>
      %58 = vector.extract_strided_slice %0 {offsets = [2, 2, 0, 0], sizes = [1, 1, 8, 8], strides = [1, 1, 1, 1]} : vector<3x3x8x8xbf16> to vector<1x1x8x8xbf16>
      %59 = vector.shape_cast %58 : vector<1x1x8x8xbf16> to vector<8x8xbf16>
      %cst_27 = arith.constant dense<0.000000e+00> : vector<4x8xf32>
      %60 = tpu.matmul %57, %59, %cst_27 {dimension_numbers = #tpu.dot_dimension_numbers<[1], [0], [0], [1], [0, 0, 1, 1], [], []>} : vector<4x8xbf16>, vector<8x8xbf16>, vector<4x8xf32> -> vector<4x8xf32>
      %61 = arith.addf %56, %60 : vector<4x8xf32>
      %62 = vector.broadcast %1 : vector<1x8xf32> to vector<4x8xf32>
      %63 = arith.mulf %61, %62 : vector<4x8xf32>
      %64 = vector.broadcast %2 : vector<1x8xf32> to vector<4x8xf32>
      %65 = arith.addf %63, %64 : vector<4x8xf32>
      %cst_28 = arith.constant 0.000000e+00 : f32
      %66 = vector.broadcast %cst_28 : f32 to vector<4x8xf32>
      %67 = arith.maximumf %65, %66 : vector<4x8xf32>
      %68 = arith.truncf %67 : vector<4x8xf32> to vector<4x8xbf16>
      %c0_29 = arith.constant 0 : index
      %69 = arith.index_cast %arg6 : i32 to index
      %c0_30 = arith.constant 0 : index
      %c0_31 = arith.constant 0 : index
      %70 = vector.load %arg5[%c0_29, %69, %c0_30, %c0_31] : memref<1x4x4x8xbf16, #tpu.memory_space<vmem>>, vector<1x1x4x8xbf16>
      %71 = vector.shape_cast %70 : vector<1x1x4x8xbf16> to vector<4x8xbf16>
      %72 = vector.shape_cast %68 : vector<4x8xbf16> to vector<1x1x4x8xbf16>
      tpu.vector_store %arg5[%c0_29, %69, %c0_30, %c0_31], %72 {strides = array<i32>} : memref<1x4x4x8xbf16, #tpu.memory_space<vmem>>, vector<1x1x4x8xbf16>,
    }
    %c4_i32_7 = arith.constant 4 : i32
    return
  }
  func.func @transform_0(%arg0: i32) -> (i32, i32, i32, i32) {
    %c0_i32 = arith.constant 0 : i32
    %c0_i32_0 = arith.constant 0 : i32
    %c0_i32_1 = arith.constant 0 : i32
    %c0_i32_2 = arith.constant 0 : i32
    return %arg0, %c0_i32, %c0_i32_0, %c0_i32_1 : i32, i32, i32, i32
  }
  func.func @transform_1(%arg0: i32) -> (i32, i32, i32, i32) {
    %c0_i32 = arith.constant 0 : i32
    %c0_i32_0 = arith.constant 0 : i32
    %c0_i32_1 = arith.constant 0 : i32
    %c0_i32_2 = arith.constant 0 : i32
    %c0_i32_3 = arith.constant 0 : i32
    return %c0_i32, %c0_i32_0, %c0_i32_1, %c0_i32_2 : i32, i32, i32, i32
  }
  func.func @transform_2(%arg0: i32) -> (i32, i32) {
    %c0_i32 = arith.constant 0 : i32
    %c0_i32_0 = arith.constant 0 : i32
    %c0_i32_1 = arith.constant 0 : i32
    return %c0_i32, %c0_i32_0 : i32, i32
  }
  func.func @transform_3(%arg0: i32) -> (i32, i32) {
    %c0_i32 = arith.constant 0 : i32
    %c0_i32_0 = arith.constant 0 : i32
    %c0_i32_1 = arith.constant 0 : i32
    return %c0_i32, %c0_i32_0 : i32, i32
  }
  func.func @transform_4(%arg0: i32) -> (i32, i32, i32, i32) {
    %c0_i32 = arith.constant 0 : i32
    %c0_i32_0 = arith.constant 0 : i32
    %c0_i32_1 = arith.constant 0 : i32
    %c0_i32_2 = arith.constant 0 : i32
    return %arg0, %c0_i32, %c0_i32_0, %c0_i32_1 : i32, i32, i32, i32
  }
}

module attributes {stable_mosaic.version = 11 : i64} {
  func.func @_conv_transpose_kernel(%arg0: i32, %arg1: memref<1x4x4x8xbf16, #tpu.memory_space<vmem>>, %arg2: memref<8x16xbf16, #tpu.memory_space<vmem>>, %arg3: memref<8x16xbf16, #tpu.memory_space<vmem>>, %arg4: memref<1x16xf32, #tpu.memory_space<vmem>>, %arg5: memref<1x8x4x16xbf16, #tpu.memory_space<vmem>>) attributes {dimension_semantics = [#tpu.dimension_semantics<parallel>], iteration_bounds = array<i64: 2>, scalar_prefetch = 0 : i64, scratch_operands = 0 : i64, tpu.core_type = #tpu.core_type<tc>, window_params = [{transform_indices = @transform_0, window_bounds = array<i64: 1, 4, 4, 8>}, {pipeline_mode = #tpu.pipeline_mode<synchronous>, transform_indices = @transform_1, window_bounds = array<i64: 8, 16>}, {pipeline_mode = #tpu.pipeline_mode<synchronous>, transform_indices = @transform_2, window_bounds = array<i64: 8, 16>}, {pipeline_mode = #tpu.pipeline_mode<synchronous>, transform_indices = @transform_3, window_bounds = array<i64: 1, 16>}, {transform_indices = @transform_4, window_bounds = array<i64: 1, 8, 4, 16>}]} {
    %c0 = arith.constant 0 : index
    %c0_0 = arith.constant 0 : index
    %0 = vector.load %arg2[%c0, %c0_0] : memref<8x16xbf16, #tpu.memory_space<vmem>>, vector<8x16xbf16>
    %c0_1 = arith.constant 0 : index
    %c0_2 = arith.constant 0 : index
    %1 = vector.load %arg3[%c0_1, %c0_2] : memref<8x16xbf16, #tpu.memory_space<vmem>>, vector<8x16xbf16>
    %c0_3 = arith.constant 0 : index
    %c0_4 = arith.constant 0 : index
    %2 = vector.load %arg4[%c0_3, %c0_4] : memref<1x16xf32, #tpu.memory_space<vmem>>, vector<1x16xf32>
    %c0_i32 = arith.constant 0 : i32
    %c4_i32 = arith.constant 4 : i32
    %3 = arith.addi %c0_i32, %c4_i32 : i32
    %c1_i32 = arith.constant 1 : i32
    scf.for %arg6 = %c0_i32 to %3 step %c1_i32  : i32 {
      %c0_6 = arith.constant 0 : index
      %4 = arith.index_cast %arg6 : i32 to index
      %c0_7 = arith.constant 0 : index
      %c0_8 = arith.constant 0 : index
      %5 = vector.load %arg1[%c0_6, %4, %c0_7, %c0_8] : memref<1x4x4x8xbf16, #tpu.memory_space<vmem>>, vector<1x1x4x8xbf16>
      %6 = vector.shape_cast %5 : vector<1x1x4x8xbf16> to vector<4x8xbf16>
      %cst = arith.constant dense<0.000000e+00> : vector<4x16xf32>
      %7 = tpu.matmul %6, %0, %cst {dimension_numbers = #tpu.dot_dimension_numbers<[1], [0], [0], [1], [0, 0, 1, 1], [], []>} : vector<4x8xbf16>, vector<8x16xbf16>, vector<4x16xf32> -> vector<4x16xf32>
      %8 = vector.broadcast %2 : vector<1x16xf32> to vector<4x16xf32>
      %9 = arith.addf %7, %8 : vector<4x16xf32>
      %cst_9 = arith.constant dense<0.000000e+00> : vector<4x16xf32>
      %10 = tpu.matmul %6, %1, %cst_9 {dimension_numbers = #tpu.dot_dimension_numbers<[1], [0], [0], [1], [0, 0, 1, 1], [], []>} : vector<4x8xbf16>, vector<8x16xbf16>, vector<4x16xf32> -> vector<4x16xf32>
      %11 = vector.broadcast %2 : vector<1x16xf32> to vector<4x16xf32>
      %12 = arith.addf %10, %11 : vector<4x16xf32>
      %cst_10 = arith.constant 0.000000e+00 : f32
      %13 = vector.broadcast %cst_10 : f32 to vector<4x16xf32>
      %14 = arith.maximumf %9, %13 : vector<4x16xf32>
      %15 = arith.truncf %14 : vector<4x16xf32> to vector<4x16xbf16>
      %c2_i32 = arith.constant 2 : i32
      %16 = arith.muli %c2_i32, %arg6 : i32
      %c0_11 = arith.constant 0 : index
      %17 = arith.index_cast %16 : i32 to index
      %c0_12 = arith.constant 0 : index
      %c0_13 = arith.constant 0 : index
      %18 = vector.load %arg5[%c0_11, %17, %c0_12, %c0_13] : memref<1x8x4x16xbf16, #tpu.memory_space<vmem>>, vector<1x1x4x16xbf16>
      %19 = vector.shape_cast %18 : vector<1x1x4x16xbf16> to vector<4x16xbf16>
      %20 = vector.shape_cast %15 : vector<4x16xbf16> to vector<1x1x4x16xbf16>
      tpu.vector_store %arg5[%c0_11, %17, %c0_12, %c0_13], %20 {strides = array<i32>} : memref<1x8x4x16xbf16, #tpu.memory_space<vmem>>, vector<1x1x4x16xbf16>,
      %cst_14 = arith.constant 0.000000e+00 : f32
      %21 = vector.broadcast %cst_14 : f32 to vector<4x16xf32>
      %22 = arith.maximumf %12, %21 : vector<4x16xf32>
      %23 = arith.truncf %22 : vector<4x16xf32> to vector<4x16xbf16>
      %c2_i32_15 = arith.constant 2 : i32
      %24 = arith.muli %c2_i32_15, %arg6 : i32
      %c1_i32_16 = arith.constant 1 : i32
      %25 = arith.addi %24, %c1_i32_16 : i32
      %c0_17 = arith.constant 0 : index
      %26 = arith.index_cast %25 : i32 to index
      %c0_18 = arith.constant 0 : index
      %c0_19 = arith.constant 0 : index
      %27 = vector.load %arg5[%c0_17, %26, %c0_18, %c0_19] : memref<1x8x4x16xbf16, #tpu.memory_space<vmem>>, vector<1x1x4x16xbf16>
      %28 = vector.shape_cast %27 : vector<1x1x4x16xbf16> to vector<4x16xbf16>
      %29 = vector.shape_cast %23 : vector<4x16xbf16> to vector<1x1x4x16xbf16>
      tpu.vector_store %arg5[%c0_17, %26, %c0_18, %c0_19], %29 {strides = array<i32>} : memref<1x8x4x16xbf16, #tpu.memory_space<vmem>>, vector<1x1x4x16xbf16>,
    }
    %c4_i32_5 = arith.constant 4 : i32
    return
  }
  func.func @transform_0(%arg0: i32) -> (i32, i32, i32, i32) {
    %c0_i32 = arith.constant 0 : i32
    %c0_i32_0 = arith.constant 0 : i32
    %c0_i32_1 = arith.constant 0 : i32
    %c0_i32_2 = arith.constant 0 : i32
    return %arg0, %c0_i32, %c0_i32_0, %c0_i32_1 : i32, i32, i32, i32
  }
  func.func @transform_1(%arg0: i32) -> (i32, i32) {
    %c0_i32 = arith.constant 0 : i32
    %c0_i32_0 = arith.constant 0 : i32
    %c0_i32_1 = arith.constant 0 : i32
    return %c0_i32, %c0_i32_0 : i32, i32
  }
  func.func @transform_2(%arg0: i32) -> (i32, i32) {
    %c0_i32 = arith.constant 0 : i32
    %c0_i32_0 = arith.constant 0 : i32
    %c0_i32_1 = arith.constant 0 : i32
    return %c0_i32, %c0_i32_0 : i32, i32
  }
  func.func @transform_3(%arg0: i32) -> (i32, i32) {
    %c0_i32 = arith.constant 0 : i32
    %c0_i32_0 = arith.constant 0 : i32
    %c0_i32_1 = arith.constant 0 : i32
    return %c0_i32, %c0_i32_0 : i32, i32
  }
  func.func @transform_4(%arg0: i32) -> (i32, i32, i32, i32) {
    %c0_i32 = arith.constant 0 : i32
    %c0_i32_0 = arith.constant 0 : i32
    %c0_i32_1 = arith.constant 0 : i32
    %c0_i32_2 = arith.constant 0 : i32
    return %arg0, %c0_i32, %c0_i32_0, %c0_i32_1 : i32, i32, i32, i32
  }
}

module attributes {stable_mosaic.version = 11 : i64} {
  func.func @_attention_gate_kernel(%arg0: i32, %arg1: memref<128x8xbf16, #tpu.memory_space<vmem>>, %arg2: memref<128x8xbf16, #tpu.memory_space<vmem>>, %arg3: memref<8x4xbf16, #tpu.memory_space<vmem>>, %arg4: memref<8x4xbf16, #tpu.memory_space<vmem>>, %arg5: memref<1x4xf32, #tpu.memory_space<vmem>>, %arg6: memref<1x4xf32, #tpu.memory_space<vmem>>, %arg7: memref<1x4xf32, #tpu.memory_space<vmem>>, %arg8: memref<1x4xf32, #tpu.memory_space<vmem>>, %arg9: memref<1x4xf32, #tpu.memory_space<vmem>>, %arg10: memref<1x1xf32, #tpu.memory_space<vmem>>, %arg11: memref<128x8xbf16, #tpu.memory_space<vmem>>) attributes {dimension_semantics = [#tpu.dimension_semantics<parallel>], iteration_bounds = array<i64: 1>, scalar_prefetch = 0 : i64, scratch_operands = 0 : i64, tpu.core_type = #tpu.core_type<tc>, window_params = [{transform_indices = @transform_0, window_bounds = array<i64: 128, 8>}, {transform_indices = @transform_1, window_bounds = array<i64: 128, 8>}, {pipeline_mode = #tpu.pipeline_mode<synchronous>, transform_indices = @transform_2, window_bounds = array<i64: 8, 4>}, {pipeline_mode = #tpu.pipeline_mode<synchronous>, transform_indices = @transform_3, window_bounds = array<i64: 8, 4>}, {pipeline_mode = #tpu.pipeline_mode<synchronous>, transform_indices = @transform_4, window_bounds = array<i64: 1, 4>}, {pipeline_mode = #tpu.pipeline_mode<synchronous>, transform_indices = @transform_5, window_bounds = array<i64: 1, 4>}, {pipeline_mode = #tpu.pipeline_mode<synchronous>, transform_indices = @transform_6, window_bounds = array<i64: 1, 4>}, {pipeline_mode = #tpu.pipeline_mode<synchronous>, transform_indices = @transform_7, window_bounds = array<i64: 1, 4>}, {pipeline_mode = #tpu.pipeline_mode<synchronous>, transform_indices = @transform_8, window_bounds = array<i64: 1, 4>}, {pipeline_mode = #tpu.pipeline_mode<synchronous>, transform_indices = @transform_9, window_bounds = array<i64: 1, 1>}, {transform_indices = @transform_10, window_bounds = array<i64: 128, 8>}]} {
    %c0 = arith.constant 0 : index
    %c0_0 = arith.constant 0 : index
    %0 = vector.load %arg1[%c0, %c0_0] : memref<128x8xbf16, #tpu.memory_space<vmem>>, vector<128x8xbf16>
    %c0_1 = arith.constant 0 : index
    %c0_2 = arith.constant 0 : index
    %1 = vector.load %arg3[%c0_1, %c0_2] : memref<8x4xbf16, #tpu.memory_space<vmem>>, vector<8x4xbf16>
    %cst = arith.constant dense<0.000000e+00> : vector<128x4xf32>
    %2 = tpu.matmul %0, %1, %cst {dimension_numbers = #tpu.dot_dimension_numbers<[1], [0], [0], [1], [0, 0, 1, 1], [], []>} : vector<128x8xbf16>, vector<8x4xbf16>, vector<128x4xf32> -> vector<128x4xf32>
    %c0_3 = arith.constant 0 : index
    %c0_4 = arith.constant 0 : index
    %3 = vector.load %arg5[%c0_3, %c0_4] : memref<1x4xf32, #tpu.memory_space<vmem>>, vector<1x4xf32>
    %4 = vector.broadcast %3 : vector<1x4xf32> to vector<128x4xf32>
    %5 = arith.mulf %2, %4 : vector<128x4xf32>
    %c0_5 = arith.constant 0 : index
    %c0_6 = arith.constant 0 : index
    %6 = vector.load %arg6[%c0_5, %c0_6] : memref<1x4xf32, #tpu.memory_space<vmem>>, vector<1x4xf32>
    %7 = vector.broadcast %6 : vector<1x4xf32> to vector<128x4xf32>
    %8 = arith.addf %5, %7 : vector<128x4xf32>
    %c0_7 = arith.constant 0 : index
    %c0_8 = arith.constant 0 : index
    %9 = vector.load %arg2[%c0_7, %c0_8] : memref<128x8xbf16, #tpu.memory_space<vmem>>, vector<128x8xbf16>
    %c0_9 = arith.constant 0 : index
    %c0_10 = arith.constant 0 : index
    %10 = vector.load %arg4[%c0_9, %c0_10] : memref<8x4xbf16, #tpu.memory_space<vmem>>, vector<8x4xbf16>
    %cst_11 = arith.constant dense<0.000000e+00> : vector<128x4xf32>
    %11 = tpu.matmul %9, %10, %cst_11 {dimension_numbers = #tpu.dot_dimension_numbers<[1], [0], [0], [1], [0, 0, 1, 1], [], []>} : vector<128x8xbf16>, vector<8x4xbf16>, vector<128x4xf32> -> vector<128x4xf32>
    %c0_12 = arith.constant 0 : index
    %c0_13 = arith.constant 0 : index
    %12 = vector.load %arg7[%c0_12, %c0_13] : memref<1x4xf32, #tpu.memory_space<vmem>>, vector<1x4xf32>
    %13 = vector.broadcast %12 : vector<1x4xf32> to vector<128x4xf32>
    %14 = arith.mulf %11, %13 : vector<128x4xf32>
    %c0_14 = arith.constant 0 : index
    %c0_15 = arith.constant 0 : index
    %15 = vector.load %arg8[%c0_14, %c0_15] : memref<1x4xf32, #tpu.memory_space<vmem>>, vector<1x4xf32>
    %16 = vector.broadcast %15 : vector<1x4xf32> to vector<128x4xf32>
    %17 = arith.addf %14, %16 : vector<128x4xf32>
    %18 = arith.addf %8, %17 : vector<128x4xf32>
    %cst_16 = arith.constant 0.000000e+00 : f32
    %19 = vector.broadcast %cst_16 : f32 to vector<128x4xf32>
    %20 = arith.maximumf %18, %19 : vector<128x4xf32>
    %c0_17 = arith.constant 0 : index
    %c0_18 = arith.constant 0 : index
    %21 = vector.load %arg9[%c0_17, %c0_18] : memref<1x4xf32, #tpu.memory_space<vmem>>, vector<1x4xf32>
    %22 = vector.broadcast %21 : vector<1x4xf32> to vector<128x4xf32>
    %23 = arith.mulf %20, %22 : vector<128x4xf32>
    %cst_19 = arith.constant dense<0.000000e+00> : vector<128xf32>
    %24 = vector.multi_reduction <add>, %23, %cst_19 [1] : vector<128x4xf32> to vector<128xf32>
    %25 = vector.shape_cast %24 : vector<128xf32> to vector<128x1xf32>
    %c0_20 = arith.constant 0 : index
    %c0_21 = arith.constant 0 : index
    %26 = vector.load %arg10[%c0_20, %c0_21] : memref<1x1xf32, #tpu.memory_space<vmem>>, vector<1x1xf32>
    %27 = vector.broadcast %26 : vector<1x1xf32> to vector<128x1xf32>
    %28 = arith.addf %25, %27 : vector<128x1xf32>
    %29 = arith.negf %28 : vector<128x1xf32>
    %30 = math.exp %29 : vector<128x1xf32>
    %cst_22 = arith.constant 1.000000e+00 : f32
    %31 = vector.broadcast %cst_22 : f32 to vector<128x1xf32>
    %32 = arith.addf %31, %30 : vector<128x1xf32>
    %33 = arith.divf %31, %32 : vector<128x1xf32>
    %c0_23 = arith.constant 0 : index
    %c0_24 = arith.constant 0 : index
    %34 = vector.load %arg2[%c0_23, %c0_24] : memref<128x8xbf16, #tpu.memory_space<vmem>>, vector<128x8xbf16>
    %35 = arith.extf %34 : vector<128x8xbf16> to vector<128x8xf32>
    %36 = vector.broadcast %33 : vector<128x1xf32> to vector<128x8xf32>
    %37 = arith.mulf %35, %36 : vector<128x8xf32>
    %38 = arith.truncf %37 : vector<128x8xf32> to vector<128x8xbf16>
    %c0_25 = arith.constant 0 : index
    %c0_26 = arith.constant 0 : index
    %39 = vector.load %arg11[%c0_25, %c0_26] : memref<128x8xbf16, #tpu.memory_space<vmem>>, vector<128x8xbf16>
    tpu.vector_store %arg11[%c0_25, %c0_26], %38 {strides = array<i32>} : memref<128x8xbf16, #tpu.memory_space<vmem>>, vector<128x8xbf16>,
    return
  }
  func.func @transform_0(%arg0: i32) -> (i32, i32) {
    %c0_i32 = arith.constant 0 : i32
    %c0_i32_0 = arith.constant 0 : i32
    return %arg0, %c0_i32 : i32, i32
  }
  func.func @transform_1(%arg0: i32) -> (i32, i32) {
    %c0_i32 = arith.constant 0 : i32
    %c0_i32_0 = arith.constant 0 : i32
    return %arg0, %c0_i32 : i32, i32
  }
  func.func @transform_2(%arg0: i32) -> (i32, i32) {
    %c0_i32 = arith.constant 0 : i32
    %c0_i32_0 = arith.constant 0 : i32
    %c0_i32_1 = arith.constant 0 : i32
    return %c0_i32, %c0_i32_0 : i32, i32
  }
  func.func @transform_3(%arg0: i32) -> (i32, i32) {
    %c0_i32 = arith.constant 0 : i32
    %c0_i32_0 = arith.constant 0 : i32
    %c0_i32_1 = arith.constant 0 : i32
    return %c0_i32, %c0_i32_0 : i32, i32
  }
  func.func @transform_4(%arg0: i32) -> (i32, i32) {
    %c0_i32 = arith.constant 0 : i32
    %c0_i32_0 = arith.constant 0 : i32
    %c0_i32_1 = arith.constant 0 : i32
    return %c0_i32, %c0_i32_0 : i32, i32
  }
  func.func @transform_5(%arg0: i32) -> (i32, i32) {
    %c0_i32 = arith.constant 0 : i32
    %c0_i32_0 = arith.constant 0 : i32
    %c0_i32_1 = arith.constant 0 : i32
    return %c0_i32, %c0_i32_0 : i32, i32
  }
  func.func @transform_6(%arg0: i32) -> (i32, i32) {
    %c0_i32 = arith.constant 0 : i32
    %c0_i32_0 = arith.constant 0 : i32
    %c0_i32_1 = arith.constant 0 : i32
    return %c0_i32, %c0_i32_0 : i32, i32
  }
  func.func @transform_7(%arg0: i32) -> (i32, i32) {
    %c0_i32 = arith.constant 0 : i32
    %c0_i32_0 = arith.constant 0 : i32
    %c0_i32_1 = arith.constant 0 : i32
    return %c0_i32, %c0_i32_0 : i32, i32
  }
  func.func @transform_8(%arg0: i32) -> (i32, i32) {
    %c0_i32 = arith.constant 0 : i32
    %c0_i32_0 = arith.constant 0 : i32
    %c0_i32_1 = arith.constant 0 : i32
    return %c0_i32, %c0_i32_0 : i32, i32
  }
  func.func @transform_9(%arg0: i32) -> (i32, i32) {
    %c0_i32 = arith.constant 0 : i32
    %c0_i32_0 = arith.constant 0 : i32
    %c0_i32_1 = arith.constant 0 : i32
    return %c0_i32, %c0_i32_0 : i32, i32
  }
  func.func @transform_10(%arg0: i32) -> (i32, i32) {
    %c0_i32 = arith.constant 0 : i32
    %c0_i32_0 = arith.constant 0 : i32
    return %arg0, %c0_i32 : i32, i32
  }
}

module attributes {stable_mosaic.version = 11 : i64} {
  func.func @_conv3x3_kernel(%arg0: i32, %arg1: memref<1x10x10x8xbf16, #tpu.memory_space<vmem>>, %arg2: memref<1x10x10x8xbf16, #tpu.memory_space<vmem>>, %arg3: memref<3x3x8x8xbf16, #tpu.memory_space<vmem>>, %arg4: memref<3x3x8x8xbf16, #tpu.memory_space<vmem>>, %arg5: memref<1x8xf32, #tpu.memory_space<vmem>>, %arg6: memref<1x8xf32, #tpu.memory_space<vmem>>, %arg7: memref<1x8x8x8xbf16, #tpu.memory_space<vmem>>) attributes {dimension_semantics = [#tpu.dimension_semantics<parallel>], iteration_bounds = array<i64: 2>, scalar_prefetch = 0 : i64, scratch_operands = 0 : i64, tpu.core_type = #tpu.core_type<tc>, window_params = [{transform_indices = @transform_0, window_bounds = array<i64: 1, 10, 10, 8>}, {transform_indices = @transform_1, window_bounds = array<i64: 1, 10, 10, 8>}, {pipeline_mode = #tpu.pipeline_mode<synchronous>, transform_indices = @transform_2, window_bounds = array<i64: 3, 3, 8, 8>}, {pipeline_mode = #tpu.pipeline_mode<synchronous>, transform_indices = @transform_3, window_bounds = array<i64: 3, 3, 8, 8>}, {pipeline_mode = #tpu.pipeline_mode<synchronous>, transform_indices = @transform_4, window_bounds = array<i64: 1, 8>}, {pipeline_mode = #tpu.pipeline_mode<synchronous>, transform_indices = @transform_5, window_bounds = array<i64: 1, 8>}, {transform_indices = @transform_6, window_bounds = array<i64: 1, 8, 8, 8>}]} {
    %c0 = arith.constant 0 : index
    %c0_0 = arith.constant 0 : index
    %c0_1 = arith.constant 0 : index
    %c0_2 = arith.constant 0 : index
    %0 = vector.load %arg3[%c0, %c0_0, %c0_1, %c0_2] : memref<3x3x8x8xbf16, #tpu.memory_space<vmem>>, vector<3x3x8x8xbf16>
    %c0_3 = arith.constant 0 : index
    %c0_4 = arith.constant 0 : index
    %c0_5 = arith.constant 0 : index
    %c0_6 = arith.constant 0 : index
    %1 = vector.load %arg4[%c0_3, %c0_4, %c0_5, %c0_6] : memref<3x3x8x8xbf16, #tpu.memory_space<vmem>>, vector<3x3x8x8xbf16>
    %c0_7 = arith.constant 0 : index
    %c0_8 = arith.constant 0 : index
    %2 = vector.load %arg5[%c0_7, %c0_8] : memref<1x8xf32, #tpu.memory_space<vmem>>, vector<1x8xf32>
    %c0_9 = arith.constant 0 : index
    %c0_10 = arith.constant 0 : index
    %3 = vector.load %arg6[%c0_9, %c0_10] : memref<1x8xf32, #tpu.memory_space<vmem>>, vector<1x8xf32>
    %c0_i32 = arith.constant 0 : i32
    %c8_i32 = arith.constant 8 : i32
    %4 = arith.addi %c0_i32, %c8_i32 : i32
    %c1_i32 = arith.constant 1 : i32
    scf.for %arg8 = %c0_i32 to %4 step %c1_i32  : i32 {
      %cst = arith.constant 0.000000e+00 : f32
      %5 = vector.broadcast %cst : f32 to vector<8x8xf32>
      %c0_i32_12 = arith.constant 0 : i32
      %6 = arith.addi %arg8, %c0_i32_12 : i32
      %c0_13 = arith.constant 0 : index
      %7 = arith.index_cast %6 : i32 to index
      %c0_14 = arith.constant 0 : index
      %c0_15 = arith.constant 0 : index
      %8 = vector.load %arg1[%c0_13, %7, %c0_14, %c0_15] : memref<1x10x10x8xbf16, #tpu.memory_space<vmem>>, vector<1x1x10x8xbf16>
      %9 = vector.shape_cast %8 : vector<1x1x10x8xbf16> to vector<10x8xbf16>
      %c1_i32_16 = arith.constant 1 : i32
      %10 = arith.addi %arg8, %c1_i32_16 : i32
      %c0_17 = arith.constant 0 : index
      %11 = arith.index_cast %10 : i32 to index
      %c0_18 = arith.constant 0 : index
      %c0_19 = arith.constant 0 : index
      %12 = vector.load %arg1[%c0_17, %11, %c0_18, %c0_19] : memref<1x10x10x8xbf16, #tpu.memory_space<vmem>>, vector<1x1x10x8xbf16>
      %13 = vector.shape_cast %12 : vector<1x1x10x8xbf16> to vector<10x8xbf16>
      %c2_i32 = arith.constant 2 : i32
      %14 = arith.addi %arg8, %c2_i32 : i32
      %c0_20 = arith.constant 0 : index
      %15 = arith.index_cast %14 : i32 to index
      %c0_21 = arith.constant 0 : index
      %c0_22 = arith.constant 0 : index
      %16 = vector.load %arg1[%c0_20, %15, %c0_21, %c0_22] : memref<1x10x10x8xbf16, #tpu.memory_space<vmem>>, vector<1x1x10x8xbf16>
      %17 = vector.shape_cast %16 : vector<1x1x10x8xbf16> to vector<10x8xbf16>
      %18 = vector.extract_strided_slice %9 {offsets = [0, 0], sizes = [8, 8], strides = [1, 1]} : vector<10x8xbf16> to vector<8x8xbf16>
      %19 = vector.extract_strided_slice %0 {offsets = [0, 0, 0, 0], sizes = [1, 1, 8, 8], strides = [1, 1, 1, 1]} : vector<3x3x8x8xbf16> to vector<1x1x8x8xbf16>
      %20 = vector.shape_cast %19 : vector<1x1x8x8xbf16> to vector<8x8xbf16>
      %cst_23 = arith.constant dense<0.000000e+00> : vector<8x8xf32>
      %21 = tpu.matmul %18, %20, %cst_23 {dimension_numbers = #tpu.dot_dimension_numbers<[1], [0], [0], [1], [0, 0, 1, 1], [], []>} : vector<8x8xbf16>, vector<8x8xbf16>, vector<8x8xf32> -> vector<8x8xf32>
      %22 = arith.addf %5, %21 : vector<8x8xf32>
      %23 = vector.extract_strided_slice %9 {offsets = [1, 0], sizes = [8, 8], strides = [1, 1]} : vector<10x8xbf16> to vector<8x8xbf16>
      %24 = vector.extract_strided_slice %0 {offsets = [0, 1, 0, 0], sizes = [1, 1, 8, 8], strides = [1, 1, 1, 1]} : vector<3x3x8x8xbf16> to vector<1x1x8x8xbf16>
      %25 = vector.shape_cast %24 : vector<1x1x8x8xbf16> to vector<8x8xbf16>
      %cst_24 = arith.constant dense<0.000000e+00> : vector<8x8xf32>
      %26 = tpu.matmul %23, %25, %cst_24 {dimension_numbers = #tpu.dot_dimension_numbers<[1], [0], [0], [1], [0, 0, 1, 1], [], []>} : vector<8x8xbf16>, vector<8x8xbf16>, vector<8x8xf32> -> vector<8x8xf32>
      %27 = arith.addf %22, %26 : vector<8x8xf32>
      %28 = vector.extract_strided_slice %9 {offsets = [2, 0], sizes = [8, 8], strides = [1, 1]} : vector<10x8xbf16> to vector<8x8xbf16>
      %29 = vector.extract_strided_slice %0 {offsets = [0, 2, 0, 0], sizes = [1, 1, 8, 8], strides = [1, 1, 1, 1]} : vector<3x3x8x8xbf16> to vector<1x1x8x8xbf16>
      %30 = vector.shape_cast %29 : vector<1x1x8x8xbf16> to vector<8x8xbf16>
      %cst_25 = arith.constant dense<0.000000e+00> : vector<8x8xf32>
      %31 = tpu.matmul %28, %30, %cst_25 {dimension_numbers = #tpu.dot_dimension_numbers<[1], [0], [0], [1], [0, 0, 1, 1], [], []>} : vector<8x8xbf16>, vector<8x8xbf16>, vector<8x8xf32> -> vector<8x8xf32>
      %32 = arith.addf %27, %31 : vector<8x8xf32>
      %33 = vector.extract_strided_slice %13 {offsets = [0, 0], sizes = [8, 8], strides = [1, 1]} : vector<10x8xbf16> to vector<8x8xbf16>
      %34 = vector.extract_strided_slice %0 {offsets = [1, 0, 0, 0], sizes = [1, 1, 8, 8], strides = [1, 1, 1, 1]} : vector<3x3x8x8xbf16> to vector<1x1x8x8xbf16>
      %35 = vector.shape_cast %34 : vector<1x1x8x8xbf16> to vector<8x8xbf16>
      %cst_26 = arith.constant dense<0.000000e+00> : vector<8x8xf32>
      %36 = tpu.matmul %33, %35, %cst_26 {dimension_numbers = #tpu.dot_dimension_numbers<[1], [0], [0], [1], [0, 0, 1, 1], [], []>} : vector<8x8xbf16>, vector<8x8xbf16>, vector<8x8xf32> -> vector<8x8xf32>
      %37 = arith.addf %32, %36 : vector<8x8xf32>
      %38 = vector.extract_strided_slice %13 {offsets = [1, 0], sizes = [8, 8], strides = [1, 1]} : vector<10x8xbf16> to vector<8x8xbf16>
      %39 = vector.extract_strided_slice %0 {offsets = [1, 1, 0, 0], sizes = [1, 1, 8, 8], strides = [1, 1, 1, 1]} : vector<3x3x8x8xbf16> to vector<1x1x8x8xbf16>
      %40 = vector.shape_cast %39 : vector<1x1x8x8xbf16> to vector<8x8xbf16>
      %cst_27 = arith.constant dense<0.000000e+00> : vector<8x8xf32>
      %41 = tpu.matmul %38, %40, %cst_27 {dimension_numbers = #tpu.dot_dimension_numbers<[1], [0], [0], [1], [0, 0, 1, 1], [], []>} : vector<8x8xbf16>, vector<8x8xbf16>, vector<8x8xf32> -> vector<8x8xf32>
      %42 = arith.addf %37, %41 : vector<8x8xf32>
      %43 = vector.extract_strided_slice %13 {offsets = [2, 0], sizes = [8, 8], strides = [1, 1]} : vector<10x8xbf16> to vector<8x8xbf16>
      %44 = vector.extract_strided_slice %0 {offsets = [1, 2, 0, 0], sizes = [1, 1, 8, 8], strides = [1, 1, 1, 1]} : vector<3x3x8x8xbf16> to vector<1x1x8x8xbf16>
      %45 = vector.shape_cast %44 : vector<1x1x8x8xbf16> to vector<8x8xbf16>
      %cst_28 = arith.constant dense<0.000000e+00> : vector<8x8xf32>
      %46 = tpu.matmul %43, %45, %cst_28 {dimension_numbers = #tpu.dot_dimension_numbers<[1], [0], [0], [1], [0, 0, 1, 1], [], []>} : vector<8x8xbf16>, vector<8x8xbf16>, vector<8x8xf32> -> vector<8x8xf32>
      %47 = arith.addf %42, %46 : vector<8x8xf32>
      %48 = vector.extract_strided_slice %17 {offsets = [0, 0], sizes = [8, 8], strides = [1, 1]} : vector<10x8xbf16> to vector<8x8xbf16>
      %49 = vector.extract_strided_slice %0 {offsets = [2, 0, 0, 0], sizes = [1, 1, 8, 8], strides = [1, 1, 1, 1]} : vector<3x3x8x8xbf16> to vector<1x1x8x8xbf16>
      %50 = vector.shape_cast %49 : vector<1x1x8x8xbf16> to vector<8x8xbf16>
      %cst_29 = arith.constant dense<0.000000e+00> : vector<8x8xf32>
      %51 = tpu.matmul %48, %50, %cst_29 {dimension_numbers = #tpu.dot_dimension_numbers<[1], [0], [0], [1], [0, 0, 1, 1], [], []>} : vector<8x8xbf16>, vector<8x8xbf16>, vector<8x8xf32> -> vector<8x8xf32>
      %52 = arith.addf %47, %51 : vector<8x8xf32>
      %53 = vector.extract_strided_slice %17 {offsets = [1, 0], sizes = [8, 8], strides = [1, 1]} : vector<10x8xbf16> to vector<8x8xbf16>
      %54 = vector.extract_strided_slice %0 {offsets = [2, 1, 0, 0], sizes = [1, 1, 8, 8], strides = [1, 1, 1, 1]} : vector<3x3x8x8xbf16> to vector<1x1x8x8xbf16>
      %55 = vector.shape_cast %54 : vector<1x1x8x8xbf16> to vector<8x8xbf16>
      %cst_30 = arith.constant dense<0.000000e+00> : vector<8x8xf32>
      %56 = tpu.matmul %53, %55, %cst_30 {dimension_numbers = #tpu.dot_dimension_numbers<[1], [0], [0], [1], [0, 0, 1, 1], [], []>} : vector<8x8xbf16>, vector<8x8xbf16>, vector<8x8xf32> -> vector<8x8xf32>
      %57 = arith.addf %52, %56 : vector<8x8xf32>
      %58 = vector.extract_strided_slice %17 {offsets = [2, 0], sizes = [8, 8], strides = [1, 1]} : vector<10x8xbf16> to vector<8x8xbf16>
      %59 = vector.extract_strided_slice %0 {offsets = [2, 2, 0, 0], sizes = [1, 1, 8, 8], strides = [1, 1, 1, 1]} : vector<3x3x8x8xbf16> to vector<1x1x8x8xbf16>
      %60 = vector.shape_cast %59 : vector<1x1x8x8xbf16> to vector<8x8xbf16>
      %cst_31 = arith.constant dense<0.000000e+00> : vector<8x8xf32>
      %61 = tpu.matmul %58, %60, %cst_31 {dimension_numbers = #tpu.dot_dimension_numbers<[1], [0], [0], [1], [0, 0, 1, 1], [], []>} : vector<8x8xbf16>, vector<8x8xbf16>, vector<8x8xf32> -> vector<8x8xf32>
      %62 = arith.addf %57, %61 : vector<8x8xf32>
      %c0_i32_32 = arith.constant 0 : i32
      %63 = arith.addi %arg8, %c0_i32_32 : i32
      %c0_33 = arith.constant 0 : index
      %64 = arith.index_cast %63 : i32 to index
      %c0_34 = arith.constant 0 : index
      %c0_35 = arith.constant 0 : index
      %65 = vector.load %arg2[%c0_33, %64, %c0_34, %c0_35] : memref<1x10x10x8xbf16, #tpu.memory_space<vmem>>, vector<1x1x10x8xbf16>
      %66 = vector.shape_cast %65 : vector<1x1x10x8xbf16> to vector<10x8xbf16>
      %c1_i32_36 = arith.constant 1 : i32
      %67 = arith.addi %arg8, %c1_i32_36 : i32
      %c0_37 = arith.constant 0 : index
      %68 = arith.index_cast %67 : i32 to index
      %c0_38 = arith.constant 0 : index
      %c0_39 = arith.constant 0 : index
      %69 = vector.load %arg2[%c0_37, %68, %c0_38, %c0_39] : memref<1x10x10x8xbf16, #tpu.memory_space<vmem>>, vector<1x1x10x8xbf16>
      %70 = vector.shape_cast %69 : vector<1x1x10x8xbf16> to vector<10x8xbf16>
      %c2_i32_40 = arith.constant 2 : i32
      %71 = arith.addi %arg8, %c2_i32_40 : i32
      %c0_41 = arith.constant 0 : index
      %72 = arith.index_cast %71 : i32 to index
      %c0_42 = arith.constant 0 : index
      %c0_43 = arith.constant 0 : index
      %73 = vector.load %arg2[%c0_41, %72, %c0_42, %c0_43] : memref<1x10x10x8xbf16, #tpu.memory_space<vmem>>, vector<1x1x10x8xbf16>
      %74 = vector.shape_cast %73 : vector<1x1x10x8xbf16> to vector<10x8xbf16>
      %75 = vector.extract_strided_slice %66 {offsets = [0, 0], sizes = [8, 8], strides = [1, 1]} : vector<10x8xbf16> to vector<8x8xbf16>
      %76 = vector.extract_strided_slice %1 {offsets = [0, 0, 0, 0], sizes = [1, 1, 8, 8], strides = [1, 1, 1, 1]} : vector<3x3x8x8xbf16> to vector<1x1x8x8xbf16>
      %77 = vector.shape_cast %76 : vector<1x1x8x8xbf16> to vector<8x8xbf16>
      %cst_44 = arith.constant dense<0.000000e+00> : vector<8x8xf32>
      %78 = tpu.matmul %75, %77, %cst_44 {dimension_numbers = #tpu.dot_dimension_numbers<[1], [0], [0], [1], [0, 0, 1, 1], [], []>} : vector<8x8xbf16>, vector<8x8xbf16>, vector<8x8xf32> -> vector<8x8xf32>
      %79 = arith.addf %62, %78 : vector<8x8xf32>
      %80 = vector.extract_strided_slice %66 {offsets = [1, 0], sizes = [8, 8], strides = [1, 1]} : vector<10x8xbf16> to vector<8x8xbf16>
      %81 = vector.extract_strided_slice %1 {offsets = [0, 1, 0, 0], sizes = [1, 1, 8, 8], strides = [1, 1, 1, 1]} : vector<3x3x8x8xbf16> to vector<1x1x8x8xbf16>
      %82 = vector.shape_cast %81 : vector<1x1x8x8xbf16> to vector<8x8xbf16>
      %cst_45 = arith.constant dense<0.000000e+00> : vector<8x8xf32>
      %83 = tpu.matmul %80, %82, %cst_45 {dimension_numbers = #tpu.dot_dimension_numbers<[1], [0], [0], [1], [0, 0, 1, 1], [], []>} : vector<8x8xbf16>, vector<8x8xbf16>, vector<8x8xf32> -> vector<8x8xf32>
      %84 = arith.addf %79, %83 : vector<8x8xf32>
      %85 = vector.extract_strided_slice %66 {offsets = [2, 0], sizes = [8, 8], strides = [1, 1]} : vector<10x8xbf16> to vector<8x8xbf16>
      %86 = vector.extract_strided_slice %1 {offsets = [0, 2, 0, 0], sizes = [1, 1, 8, 8], strides = [1, 1, 1, 1]} : vector<3x3x8x8xbf16> to vector<1x1x8x8xbf16>
      %87 = vector.shape_cast %86 : vector<1x1x8x8xbf16> to vector<8x8xbf16>
      %cst_46 = arith.constant dense<0.000000e+00> : vector<8x8xf32>
      %88 = tpu.matmul %85, %87, %cst_46 {dimension_numbers = #tpu.dot_dimension_numbers<[1], [0], [0], [1], [0, 0, 1, 1], [], []>} : vector<8x8xbf16>, vector<8x8xbf16>, vector<8x8xf32> -> vector<8x8xf32>
      %89 = arith.addf %84, %88 : vector<8x8xf32>
      %90 = vector.extract_strided_slice %70 {offsets = [0, 0], sizes = [8, 8], strides = [1, 1]} : vector<10x8xbf16> to vector<8x8xbf16>
      %91 = vector.extract_strided_slice %1 {offsets = [1, 0, 0, 0], sizes = [1, 1, 8, 8], strides = [1, 1, 1, 1]} : vector<3x3x8x8xbf16> to vector<1x1x8x8xbf16>
      %92 = vector.shape_cast %91 : vector<1x1x8x8xbf16> to vector<8x8xbf16>
      %cst_47 = arith.constant dense<0.000000e+00> : vector<8x8xf32>
      %93 = tpu.matmul %90, %92, %cst_47 {dimension_numbers = #tpu.dot_dimension_numbers<[1], [0], [0], [1], [0, 0, 1, 1], [], []>} : vector<8x8xbf16>, vector<8x8xbf16>, vector<8x8xf32> -> vector<8x8xf32>
      %94 = arith.addf %89, %93 : vector<8x8xf32>
      %95 = vector.extract_strided_slice %70 {offsets = [1, 0], sizes = [8, 8], strides = [1, 1]} : vector<10x8xbf16> to vector<8x8xbf16>
      %96 = vector.extract_strided_slice %1 {offsets = [1, 1, 0, 0], sizes = [1, 1, 8, 8], strides = [1, 1, 1, 1]} : vector<3x3x8x8xbf16> to vector<1x1x8x8xbf16>
      %97 = vector.shape_cast %96 : vector<1x1x8x8xbf16> to vector<8x8xbf16>
      %cst_48 = arith.constant dense<0.000000e+00> : vector<8x8xf32>
      %98 = tpu.matmul %95, %97, %cst_48 {dimension_numbers = #tpu.dot_dimension_numbers<[1], [0], [0], [1], [0, 0, 1, 1], [], []>} : vector<8x8xbf16>, vector<8x8xbf16>, vector<8x8xf32> -> vector<8x8xf32>
      %99 = arith.addf %94, %98 : vector<8x8xf32>
      %100 = vector.extract_strided_slice %70 {offsets = [2, 0], sizes = [8, 8], strides = [1, 1]} : vector<10x8xbf16> to vector<8x8xbf16>
      %101 = vector.extract_strided_slice %1 {offsets = [1, 2, 0, 0], sizes = [1, 1, 8, 8], strides = [1, 1, 1, 1]} : vector<3x3x8x8xbf16> to vector<1x1x8x8xbf16>
      %102 = vector.shape_cast %101 : vector<1x1x8x8xbf16> to vector<8x8xbf16>
      %cst_49 = arith.constant dense<0.000000e+00> : vector<8x8xf32>
      %103 = tpu.matmul %100, %102, %cst_49 {dimension_numbers = #tpu.dot_dimension_numbers<[1], [0], [0], [1], [0, 0, 1, 1], [], []>} : vector<8x8xbf16>, vector<8x8xbf16>, vector<8x8xf32> -> vector<8x8xf32>
      %104 = arith.addf %99, %103 : vector<8x8xf32>
      %105 = vector.extract_strided_slice %74 {offsets = [0, 0], sizes = [8, 8], strides = [1, 1]} : vector<10x8xbf16> to vector<8x8xbf16>
      %106 = vector.extract_strided_slice %1 {offsets = [2, 0, 0, 0], sizes = [1, 1, 8, 8], strides = [1, 1, 1, 1]} : vector<3x3x8x8xbf16> to vector<1x1x8x8xbf16>
      %107 = vector.shape_cast %106 : vector<1x1x8x8xbf16> to vector<8x8xbf16>
      %cst_50 = arith.constant dense<0.000000e+00> : vector<8x8xf32>
      %108 = tpu.matmul %105, %107, %cst_50 {dimension_numbers = #tpu.dot_dimension_numbers<[1], [0], [0], [1], [0, 0, 1, 1], [], []>} : vector<8x8xbf16>, vector<8x8xbf16>, vector<8x8xf32> -> vector<8x8xf32>
      %109 = arith.addf %104, %108 : vector<8x8xf32>
      %110 = vector.extract_strided_slice %74 {offsets = [1, 0], sizes = [8, 8], strides = [1, 1]} : vector<10x8xbf16> to vector<8x8xbf16>
      %111 = vector.extract_strided_slice %1 {offsets = [2, 1, 0, 0], sizes = [1, 1, 8, 8], strides = [1, 1, 1, 1]} : vector<3x3x8x8xbf16> to vector<1x1x8x8xbf16>
      %112 = vector.shape_cast %111 : vector<1x1x8x8xbf16> to vector<8x8xbf16>
      %cst_51 = arith.constant dense<0.000000e+00> : vector<8x8xf32>
      %113 = tpu.matmul %110, %112, %cst_51 {dimension_numbers = #tpu.dot_dimension_numbers<[1], [0], [0], [1], [0, 0, 1, 1], [], []>} : vector<8x8xbf16>, vector<8x8xbf16>, vector<8x8xf32> -> vector<8x8xf32>
      %114 = arith.addf %109, %113 : vector<8x8xf32>
      %115 = vector.extract_strided_slice %74 {offsets = [2, 0], sizes = [8, 8], strides = [1, 1]} : vector<10x8xbf16> to vector<8x8xbf16>
      %116 = vector.extract_strided_slice %1 {offsets = [2, 2, 0, 0], sizes = [1, 1, 8, 8], strides = [1, 1, 1, 1]} : vector<3x3x8x8xbf16> to vector<1x1x8x8xbf16>
      %117 = vector.shape_cast %116 : vector<1x1x8x8xbf16> to vector<8x8xbf16>
      %cst_52 = arith.constant dense<0.000000e+00> : vector<8x8xf32>
      %118 = tpu.matmul %115, %117, %cst_52 {dimension_numbers = #tpu.dot_dimension_numbers<[1], [0], [0], [1], [0, 0, 1, 1], [], []>} : vector<8x8xbf16>, vector<8x8xbf16>, vector<8x8xf32> -> vector<8x8xf32>
      %119 = arith.addf %114, %118 : vector<8x8xf32>
      %120 = vector.broadcast %2 : vector<1x8xf32> to vector<8x8xf32>
      %121 = arith.mulf %119, %120 : vector<8x8xf32>
      %122 = vector.broadcast %3 : vector<1x8xf32> to vector<8x8xf32>
      %123 = arith.addf %121, %122 : vector<8x8xf32>
      %cst_53 = arith.constant 0.000000e+00 : f32
      %124 = vector.broadcast %cst_53 : f32 to vector<8x8xf32>
      %125 = arith.maximumf %123, %124 : vector<8x8xf32>
      %126 = arith.truncf %125 : vector<8x8xf32> to vector<8x8xbf16>
      %c0_54 = arith.constant 0 : index
      %127 = arith.index_cast %arg8 : i32 to index
      %c0_55 = arith.constant 0 : index
      %c0_56 = arith.constant 0 : index
      %128 = vector.load %arg7[%c0_54, %127, %c0_55, %c0_56] : memref<1x8x8x8xbf16, #tpu.memory_space<vmem>>, vector<1x1x8x8xbf16>
      %129 = vector.shape_cast %128 : vector<1x1x8x8xbf16> to vector<8x8xbf16>
      %130 = vector.shape_cast %126 : vector<8x8xbf16> to vector<1x1x8x8xbf16>
      tpu.vector_store %arg7[%c0_54, %127, %c0_55, %c0_56], %130 {strides = array<i32>} : memref<1x8x8x8xbf16, #tpu.memory_space<vmem>>, vector<1x1x8x8xbf16>,
    }
    %c8_i32_11 = arith.constant 8 : i32
    return
  }
  func.func @transform_0(%arg0: i32) -> (i32, i32, i32, i32) {
    %c0_i32 = arith.constant 0 : i32
    %c0_i32_0 = arith.constant 0 : i32
    %c0_i32_1 = arith.constant 0 : i32
    %c0_i32_2 = arith.constant 0 : i32
    return %arg0, %c0_i32, %c0_i32_0, %c0_i32_1 : i32, i32, i32, i32
  }
  func.func @transform_1(%arg0: i32) -> (i32, i32, i32, i32) {
    %c0_i32 = arith.constant 0 : i32
    %c0_i32_0 = arith.constant 0 : i32
    %c0_i32_1 = arith.constant 0 : i32
    %c0_i32_2 = arith.constant 0 : i32
    return %arg0, %c0_i32, %c0_i32_0, %c0_i32_1 : i32, i32, i32, i32
  }
  func.func @transform_2(%arg0: i32) -> (i32, i32, i32, i32) {
    %c0_i32 = arith.constant 0 : i32
    %c0_i32_0 = arith.constant 0 : i32
    %c0_i32_1 = arith.constant 0 : i32
    %c0_i32_2 = arith.constant 0 : i32
    %c0_i32_3 = arith.constant 0 : i32
    return %c0_i32, %c0_i32_0, %c0_i32_1, %c0_i32_2 : i32, i32, i32, i32
  }
  func.func @transform_3(%arg0: i32) -> (i32, i32, i32, i32) {
    %c0_i32 = arith.constant 0 : i32
    %c0_i32_0 = arith.constant 0 : i32
    %c0_i32_1 = arith.constant 0 : i32
    %c0_i32_2 = arith.constant 0 : i32
    %c0_i32_3 = arith.constant 0 : i32
    return %c0_i32, %c0_i32_0, %c0_i32_1, %c0_i32_2 : i32, i32, i32, i32
  }
  func.func @transform_4(%arg0: i32) -> (i32, i32) {
    %c0_i32 = arith.constant 0 : i32
    %c0_i32_0 = arith.constant 0 : i32
    %c0_i32_1 = arith.constant 0 : i32
    return %c0_i32, %c0_i32_0 : i32, i32
  }
  func.func @transform_5(%arg0: i32) -> (i32, i32) {
    %c0_i32 = arith.constant 0 : i32
    %c0_i32_0 = arith.constant 0 : i32
    %c0_i32_1 = arith.constant 0 : i32
    return %c0_i32, %c0_i32_0 : i32, i32
  }
  func.func @transform_6(%arg0: i32) -> (i32, i32, i32, i32) {
    %c0_i32 = arith.constant 0 : i32
    %c0_i32_0 = arith.constant 0 : i32
    %c0_i32_1 = arith.constant 0 : i32
    %c0_i32_2 = arith.constant 0 : i32
    return %arg0, %c0_i32, %c0_i32_0, %c0_i32_1 : i32, i32, i32, i32
  }
}

module attributes {stable_mosaic.version = 11 : i64} {
  func.func @_conv_transpose_kernel(%arg0: i32, %arg1: memref<1x8x8x8xbf16, #tpu.memory_space<vmem>>, %arg2: memref<8x8xbf16, #tpu.memory_space<vmem>>, %arg3: memref<8x8xbf16, #tpu.memory_space<vmem>>, %arg4: memref<1x8xf32, #tpu.memory_space<vmem>>, %arg5: memref<1x16x8x8xbf16, #tpu.memory_space<vmem>>) attributes {dimension_semantics = [#tpu.dimension_semantics<parallel>], iteration_bounds = array<i64: 2>, scalar_prefetch = 0 : i64, scratch_operands = 0 : i64, tpu.core_type = #tpu.core_type<tc>, window_params = [{transform_indices = @transform_0, window_bounds = array<i64: 1, 8, 8, 8>}, {pipeline_mode = #tpu.pipeline_mode<synchronous>, transform_indices = @transform_1, window_bounds = array<i64: 8, 8>}, {pipeline_mode = #tpu.pipeline_mode<synchronous>, transform_indices = @transform_2, window_bounds = array<i64: 8, 8>}, {pipeline_mode = #tpu.pipeline_mode<synchronous>, transform_indices = @transform_3, window_bounds = array<i64: 1, 8>}, {transform_indices = @transform_4, window_bounds = array<i64: 1, 16, 8, 8>}]} {
    %c0 = arith.constant 0 : index
    %c0_0 = arith.constant 0 : index
    %0 = vector.load %arg2[%c0, %c0_0] : memref<8x8xbf16, #tpu.memory_space<vmem>>, vector<8x8xbf16>
    %c0_1 = arith.constant 0 : index
    %c0_2 = arith.constant 0 : index
    %1 = vector.load %arg3[%c0_1, %c0_2] : memref<8x8xbf16, #tpu.memory_space<vmem>>, vector<8x8xbf16>
    %c0_3 = arith.constant 0 : index
    %c0_4 = arith.constant 0 : index
    %2 = vector.load %arg4[%c0_3, %c0_4] : memref<1x8xf32, #tpu.memory_space<vmem>>, vector<1x8xf32>
    %c0_i32 = arith.constant 0 : i32
    %c8_i32 = arith.constant 8 : i32
    %3 = arith.addi %c0_i32, %c8_i32 : i32
    %c1_i32 = arith.constant 1 : i32
    scf.for %arg6 = %c0_i32 to %3 step %c1_i32  : i32 {
      %c0_6 = arith.constant 0 : index
      %4 = arith.index_cast %arg6 : i32 to index
      %c0_7 = arith.constant 0 : index
      %c0_8 = arith.constant 0 : index
      %5 = vector.load %arg1[%c0_6, %4, %c0_7, %c0_8] : memref<1x8x8x8xbf16, #tpu.memory_space<vmem>>, vector<1x1x8x8xbf16>
      %6 = vector.shape_cast %5 : vector<1x1x8x8xbf16> to vector<8x8xbf16>
      %cst = arith.constant dense<0.000000e+00> : vector<8x8xf32>
      %7 = tpu.matmul %6, %0, %cst {dimension_numbers = #tpu.dot_dimension_numbers<[1], [0], [0], [1], [0, 0, 1, 1], [], []>} : vector<8x8xbf16>, vector<8x8xbf16>, vector<8x8xf32> -> vector<8x8xf32>
      %8 = vector.broadcast %2 : vector<1x8xf32> to vector<8x8xf32>
      %9 = arith.addf %7, %8 : vector<8x8xf32>
      %cst_9 = arith.constant dense<0.000000e+00> : vector<8x8xf32>
      %10 = tpu.matmul %6, %1, %cst_9 {dimension_numbers = #tpu.dot_dimension_numbers<[1], [0], [0], [1], [0, 0, 1, 1], [], []>} : vector<8x8xbf16>, vector<8x8xbf16>, vector<8x8xf32> -> vector<8x8xf32>
      %11 = vector.broadcast %2 : vector<1x8xf32> to vector<8x8xf32>
      %12 = arith.addf %10, %11 : vector<8x8xf32>
      %cst_10 = arith.constant 0.000000e+00 : f32
      %13 = vector.broadcast %cst_10 : f32 to vector<8x8xf32>
      %14 = arith.maximumf %9, %13 : vector<8x8xf32>
      %15 = arith.truncf %14 : vector<8x8xf32> to vector<8x8xbf16>
      %c2_i32 = arith.constant 2 : i32
      %16 = arith.muli %c2_i32, %arg6 : i32
      %c0_11 = arith.constant 0 : index
      %17 = arith.index_cast %16 : i32 to index
      %c0_12 = arith.constant 0 : index
      %c0_13 = arith.constant 0 : index
      %18 = vector.load %arg5[%c0_11, %17, %c0_12, %c0_13] : memref<1x16x8x8xbf16, #tpu.memory_space<vmem>>, vector<1x1x8x8xbf16>
      %19 = vector.shape_cast %18 : vector<1x1x8x8xbf16> to vector<8x8xbf16>
      %20 = vector.shape_cast %15 : vector<8x8xbf16> to vector<1x1x8x8xbf16>
      tpu.vector_store %arg5[%c0_11, %17, %c0_12, %c0_13], %20 {strides = array<i32>} : memref<1x16x8x8xbf16, #tpu.memory_space<vmem>>, vector<1x1x8x8xbf16>,
      %cst_14 = arith.constant 0.000000e+00 : f32
      %21 = vector.broadcast %cst_14 : f32 to vector<8x8xf32>
      %22 = arith.maximumf %12, %21 : vector<8x8xf32>
      %23 = arith.truncf %22 : vector<8x8xf32> to vector<8x8xbf16>
      %c2_i32_15 = arith.constant 2 : i32
      %24 = arith.muli %c2_i32_15, %arg6 : i32
      %c1_i32_16 = arith.constant 1 : i32
      %25 = arith.addi %24, %c1_i32_16 : i32
      %c0_17 = arith.constant 0 : index
      %26 = arith.index_cast %25 : i32 to index
      %c0_18 = arith.constant 0 : index
      %c0_19 = arith.constant 0 : index
      %27 = vector.load %arg5[%c0_17, %26, %c0_18, %c0_19] : memref<1x16x8x8xbf16, #tpu.memory_space<vmem>>, vector<1x1x8x8xbf16>
      %28 = vector.shape_cast %27 : vector<1x1x8x8xbf16> to vector<8x8xbf16>
      %29 = vector.shape_cast %23 : vector<8x8xbf16> to vector<1x1x8x8xbf16>
      tpu.vector_store %arg5[%c0_17, %26, %c0_18, %c0_19], %29 {strides = array<i32>} : memref<1x16x8x8xbf16, #tpu.memory_space<vmem>>, vector<1x1x8x8xbf16>,
    }
    %c8_i32_5 = arith.constant 8 : i32
    return
  }
  func.func @transform_0(%arg0: i32) -> (i32, i32, i32, i32) {
    %c0_i32 = arith.constant 0 : i32
    %c0_i32_0 = arith.constant 0 : i32
    %c0_i32_1 = arith.constant 0 : i32
    %c0_i32_2 = arith.constant 0 : i32
    return %arg0, %c0_i32, %c0_i32_0, %c0_i32_1 : i32, i32, i32, i32
  }
  func.func @transform_1(%arg0: i32) -> (i32, i32) {
    %c0_i32 = arith.constant 0 : i32
    %c0_i32_0 = arith.constant 0 : i32
    %c0_i32_1 = arith.constant 0 : i32
    return %c0_i32, %c0_i32_0 : i32, i32
  }
  func.func @transform_2(%arg0: i32) -> (i32, i32) {
    %c0_i32 = arith.constant 0 : i32
    %c0_i32_0 = arith.constant 0 : i32
    %c0_i32_1 = arith.constant 0 : i32
    return %c0_i32, %c0_i32_0 : i32, i32
  }
  func.func @transform_3(%arg0: i32) -> (i32, i32) {
    %c0_i32 = arith.constant 0 : i32
    %c0_i32_0 = arith.constant 0 : i32
    %c0_i32_1 = arith.constant 0 : i32
    return %c0_i32, %c0_i32_0 : i32, i32
  }
  func.func @transform_4(%arg0: i32) -> (i32, i32, i32, i32) {
    %c0_i32 = arith.constant 0 : i32
    %c0_i32_0 = arith.constant 0 : i32
    %c0_i32_1 = arith.constant 0 : i32
    %c0_i32_2 = arith.constant 0 : i32
    return %arg0, %c0_i32, %c0_i32_0, %c0_i32_1 : i32, i32, i32, i32
  }
}

module attributes {stable_mosaic.version = 11 : i64} {
  func.func @_attention_gate_kernel(%arg0: i32, %arg1: memref<512x4xbf16, #tpu.memory_space<vmem>>, %arg2: memref<512x4xbf16, #tpu.memory_space<vmem>>, %arg3: memref<4x2xbf16, #tpu.memory_space<vmem>>, %arg4: memref<4x2xbf16, #tpu.memory_space<vmem>>, %arg5: memref<1x2xf32, #tpu.memory_space<vmem>>, %arg6: memref<1x2xf32, #tpu.memory_space<vmem>>, %arg7: memref<1x2xf32, #tpu.memory_space<vmem>>, %arg8: memref<1x2xf32, #tpu.memory_space<vmem>>, %arg9: memref<1x2xf32, #tpu.memory_space<vmem>>, %arg10: memref<1x1xf32, #tpu.memory_space<vmem>>, %arg11: memref<512x4xbf16, #tpu.memory_space<vmem>>) attributes {dimension_semantics = [#tpu.dimension_semantics<parallel>], iteration_bounds = array<i64: 1>, scalar_prefetch = 0 : i64, scratch_operands = 0 : i64, tpu.core_type = #tpu.core_type<tc>, window_params = [{transform_indices = @transform_0, window_bounds = array<i64: 512, 4>}, {transform_indices = @transform_1, window_bounds = array<i64: 512, 4>}, {pipeline_mode = #tpu.pipeline_mode<synchronous>, transform_indices = @transform_2, window_bounds = array<i64: 4, 2>}, {pipeline_mode = #tpu.pipeline_mode<synchronous>, transform_indices = @transform_3, window_bounds = array<i64: 4, 2>}, {pipeline_mode = #tpu.pipeline_mode<synchronous>, transform_indices = @transform_4, window_bounds = array<i64: 1, 2>}, {pipeline_mode = #tpu.pipeline_mode<synchronous>, transform_indices = @transform_5, window_bounds = array<i64: 1, 2>}, {pipeline_mode = #tpu.pipeline_mode<synchronous>, transform_indices = @transform_6, window_bounds = array<i64: 1, 2>}, {pipeline_mode = #tpu.pipeline_mode<synchronous>, transform_indices = @transform_7, window_bounds = array<i64: 1, 2>}, {pipeline_mode = #tpu.pipeline_mode<synchronous>, transform_indices = @transform_8, window_bounds = array<i64: 1, 2>}, {pipeline_mode = #tpu.pipeline_mode<synchronous>, transform_indices = @transform_9, window_bounds = array<i64: 1, 1>}, {transform_indices = @transform_10, window_bounds = array<i64: 512, 4>}]} {
    %c0 = arith.constant 0 : index
    %c0_0 = arith.constant 0 : index
    %0 = vector.load %arg1[%c0, %c0_0] : memref<512x4xbf16, #tpu.memory_space<vmem>>, vector<512x4xbf16>
    %c0_1 = arith.constant 0 : index
    %c0_2 = arith.constant 0 : index
    %1 = vector.load %arg3[%c0_1, %c0_2] : memref<4x2xbf16, #tpu.memory_space<vmem>>, vector<4x2xbf16>
    %cst = arith.constant dense<0.000000e+00> : vector<512x2xf32>
    %2 = tpu.matmul %0, %1, %cst {dimension_numbers = #tpu.dot_dimension_numbers<[1], [0], [0], [1], [0, 0, 1, 1], [], []>} : vector<512x4xbf16>, vector<4x2xbf16>, vector<512x2xf32> -> vector<512x2xf32>
    %c0_3 = arith.constant 0 : index
    %c0_4 = arith.constant 0 : index
    %3 = vector.load %arg5[%c0_3, %c0_4] : memref<1x2xf32, #tpu.memory_space<vmem>>, vector<1x2xf32>
    %4 = vector.broadcast %3 : vector<1x2xf32> to vector<512x2xf32>
    %5 = arith.mulf %2, %4 : vector<512x2xf32>
    %c0_5 = arith.constant 0 : index
    %c0_6 = arith.constant 0 : index
    %6 = vector.load %arg6[%c0_5, %c0_6] : memref<1x2xf32, #tpu.memory_space<vmem>>, vector<1x2xf32>
    %7 = vector.broadcast %6 : vector<1x2xf32> to vector<512x2xf32>
    %8 = arith.addf %5, %7 : vector<512x2xf32>
    %c0_7 = arith.constant 0 : index
    %c0_8 = arith.constant 0 : index
    %9 = vector.load %arg2[%c0_7, %c0_8] : memref<512x4xbf16, #tpu.memory_space<vmem>>, vector<512x4xbf16>
    %c0_9 = arith.constant 0 : index
    %c0_10 = arith.constant 0 : index
    %10 = vector.load %arg4[%c0_9, %c0_10] : memref<4x2xbf16, #tpu.memory_space<vmem>>, vector<4x2xbf16>
    %cst_11 = arith.constant dense<0.000000e+00> : vector<512x2xf32>
    %11 = tpu.matmul %9, %10, %cst_11 {dimension_numbers = #tpu.dot_dimension_numbers<[1], [0], [0], [1], [0, 0, 1, 1], [], []>} : vector<512x4xbf16>, vector<4x2xbf16>, vector<512x2xf32> -> vector<512x2xf32>
    %c0_12 = arith.constant 0 : index
    %c0_13 = arith.constant 0 : index
    %12 = vector.load %arg7[%c0_12, %c0_13] : memref<1x2xf32, #tpu.memory_space<vmem>>, vector<1x2xf32>
    %13 = vector.broadcast %12 : vector<1x2xf32> to vector<512x2xf32>
    %14 = arith.mulf %11, %13 : vector<512x2xf32>
    %c0_14 = arith.constant 0 : index
    %c0_15 = arith.constant 0 : index
    %15 = vector.load %arg8[%c0_14, %c0_15] : memref<1x2xf32, #tpu.memory_space<vmem>>, vector<1x2xf32>
    %16 = vector.broadcast %15 : vector<1x2xf32> to vector<512x2xf32>
    %17 = arith.addf %14, %16 : vector<512x2xf32>
    %18 = arith.addf %8, %17 : vector<512x2xf32>
    %cst_16 = arith.constant 0.000000e+00 : f32
    %19 = vector.broadcast %cst_16 : f32 to vector<512x2xf32>
    %20 = arith.maximumf %18, %19 : vector<512x2xf32>
    %c0_17 = arith.constant 0 : index
    %c0_18 = arith.constant 0 : index
    %21 = vector.load %arg9[%c0_17, %c0_18] : memref<1x2xf32, #tpu.memory_space<vmem>>, vector<1x2xf32>
    %22 = vector.broadcast %21 : vector<1x2xf32> to vector<512x2xf32>
    %23 = arith.mulf %20, %22 : vector<512x2xf32>
    %cst_19 = arith.constant dense<0.000000e+00> : vector<512xf32>
    %24 = vector.multi_reduction <add>, %23, %cst_19 [1] : vector<512x2xf32> to vector<512xf32>
    %25 = vector.shape_cast %24 : vector<512xf32> to vector<512x1xf32>
    %c0_20 = arith.constant 0 : index
    %c0_21 = arith.constant 0 : index
    %26 = vector.load %arg10[%c0_20, %c0_21] : memref<1x1xf32, #tpu.memory_space<vmem>>, vector<1x1xf32>
    %27 = vector.broadcast %26 : vector<1x1xf32> to vector<512x1xf32>
    %28 = arith.addf %25, %27 : vector<512x1xf32>
    %29 = arith.negf %28 : vector<512x1xf32>
    %30 = math.exp %29 : vector<512x1xf32>
    %cst_22 = arith.constant 1.000000e+00 : f32
    %31 = vector.broadcast %cst_22 : f32 to vector<512x1xf32>
    %32 = arith.addf %31, %30 : vector<512x1xf32>
    %33 = arith.divf %31, %32 : vector<512x1xf32>
    %c0_23 = arith.constant 0 : index
    %c0_24 = arith.constant 0 : index
    %34 = vector.load %arg2[%c0_23, %c0_24] : memref<512x4xbf16, #tpu.memory_space<vmem>>, vector<512x4xbf16>
    %35 = arith.extf %34 : vector<512x4xbf16> to vector<512x4xf32>
    %36 = vector.broadcast %33 : vector<512x1xf32> to vector<512x4xf32>
    %37 = arith.mulf %35, %36 : vector<512x4xf32>
    %38 = arith.truncf %37 : vector<512x4xf32> to vector<512x4xbf16>
    %c0_25 = arith.constant 0 : index
    %c0_26 = arith.constant 0 : index
    %39 = vector.load %arg11[%c0_25, %c0_26] : memref<512x4xbf16, #tpu.memory_space<vmem>>, vector<512x4xbf16>
    tpu.vector_store %arg11[%c0_25, %c0_26], %38 {strides = array<i32>} : memref<512x4xbf16, #tpu.memory_space<vmem>>, vector<512x4xbf16>,
    return
  }
  func.func @transform_0(%arg0: i32) -> (i32, i32) {
    %c0_i32 = arith.constant 0 : i32
    %c0_i32_0 = arith.constant 0 : i32
    return %arg0, %c0_i32 : i32, i32
  }
  func.func @transform_1(%arg0: i32) -> (i32, i32) {
    %c0_i32 = arith.constant 0 : i32
    %c0_i32_0 = arith.constant 0 : i32
    return %arg0, %c0_i32 : i32, i32
  }
  func.func @transform_2(%arg0: i32) -> (i32, i32) {
    %c0_i32 = arith.constant 0 : i32
    %c0_i32_0 = arith.constant 0 : i32
    %c0_i32_1 = arith.constant 0 : i32
    return %c0_i32, %c0_i32_0 : i32, i32
  }
  func.func @transform_3(%arg0: i32) -> (i32, i32) {
    %c0_i32 = arith.constant 0 : i32
    %c0_i32_0 = arith.constant 0 : i32
    %c0_i32_1 = arith.constant 0 : i32
    return %c0_i32, %c0_i32_0 : i32, i32
  }
  func.func @transform_4(%arg0: i32) -> (i32, i32) {
    %c0_i32 = arith.constant 0 : i32
    %c0_i32_0 = arith.constant 0 : i32
    %c0_i32_1 = arith.constant 0 : i32
    return %c0_i32, %c0_i32_0 : i32, i32
  }
  func.func @transform_5(%arg0: i32) -> (i32, i32) {
    %c0_i32 = arith.constant 0 : i32
    %c0_i32_0 = arith.constant 0 : i32
    %c0_i32_1 = arith.constant 0 : i32
    return %c0_i32, %c0_i32_0 : i32, i32
  }
  func.func @transform_6(%arg0: i32) -> (i32, i32) {
    %c0_i32 = arith.constant 0 : i32
    %c0_i32_0 = arith.constant 0 : i32
    %c0_i32_1 = arith.constant 0 : i32
    return %c0_i32, %c0_i32_0 : i32, i32
  }
  func.func @transform_7(%arg0: i32) -> (i32, i32) {
    %c0_i32 = arith.constant 0 : i32
    %c0_i32_0 = arith.constant 0 : i32
    %c0_i32_1 = arith.constant 0 : i32
    return %c0_i32, %c0_i32_0 : i32, i32
  }
  func.func @transform_8(%arg0: i32) -> (i32, i32) {
    %c0_i32 = arith.constant 0 : i32
    %c0_i32_0 = arith.constant 0 : i32
    %c0_i32_1 = arith.constant 0 : i32
    return %c0_i32, %c0_i32_0 : i32, i32
  }
  func.func @transform_9(%arg0: i32) -> (i32, i32) {
    %c0_i32 = arith.constant 0 : i32
    %c0_i32_0 = arith.constant 0 : i32
    %c0_i32_1 = arith.constant 0 : i32
    return %c0_i32, %c0_i32_0 : i32, i32
  }
  func.func @transform_10(%arg0: i32) -> (i32, i32) {
    %c0_i32 = arith.constant 0 : i32
    %c0_i32_0 = arith.constant 0 : i32
    return %arg0, %c0_i32 : i32, i32
  }
}

module attributes {stable_mosaic.version = 11 : i64} {
  func.func @_conv3x3_kernel(%arg0: i32, %arg1: memref<1x18x18x4xbf16, #tpu.memory_space<vmem>>, %arg2: memref<1x18x18x4xbf16, #tpu.memory_space<vmem>>, %arg3: memref<3x3x4x4xbf16, #tpu.memory_space<vmem>>, %arg4: memref<3x3x4x4xbf16, #tpu.memory_space<vmem>>, %arg5: memref<1x4xf32, #tpu.memory_space<vmem>>, %arg6: memref<1x4xf32, #tpu.memory_space<vmem>>, %arg7: memref<1x16x16x4xbf16, #tpu.memory_space<vmem>>) attributes {dimension_semantics = [#tpu.dimension_semantics<parallel>], iteration_bounds = array<i64: 2>, scalar_prefetch = 0 : i64, scratch_operands = 0 : i64, tpu.core_type = #tpu.core_type<tc>, window_params = [{transform_indices = @transform_0, window_bounds = array<i64: 1, 18, 18, 4>}, {transform_indices = @transform_1, window_bounds = array<i64: 1, 18, 18, 4>}, {pipeline_mode = #tpu.pipeline_mode<synchronous>, transform_indices = @transform_2, window_bounds = array<i64: 3, 3, 4, 4>}, {pipeline_mode = #tpu.pipeline_mode<synchronous>, transform_indices = @transform_3, window_bounds = array<i64: 3, 3, 4, 4>}, {pipeline_mode = #tpu.pipeline_mode<synchronous>, transform_indices = @transform_4, window_bounds = array<i64: 1, 4>}, {pipeline_mode = #tpu.pipeline_mode<synchronous>, transform_indices = @transform_5, window_bounds = array<i64: 1, 4>}, {transform_indices = @transform_6, window_bounds = array<i64: 1, 16, 16, 4>}]} {
    %c0 = arith.constant 0 : index
    %c0_0 = arith.constant 0 : index
    %c0_1 = arith.constant 0 : index
    %c0_2 = arith.constant 0 : index
    %0 = vector.load %arg3[%c0, %c0_0, %c0_1, %c0_2] : memref<3x3x4x4xbf16, #tpu.memory_space<vmem>>, vector<3x3x4x4xbf16>
    %c0_3 = arith.constant 0 : index
    %c0_4 = arith.constant 0 : index
    %c0_5 = arith.constant 0 : index
    %c0_6 = arith.constant 0 : index
    %1 = vector.load %arg4[%c0_3, %c0_4, %c0_5, %c0_6] : memref<3x3x4x4xbf16, #tpu.memory_space<vmem>>, vector<3x3x4x4xbf16>
    %c0_7 = arith.constant 0 : index
    %c0_8 = arith.constant 0 : index
    %2 = vector.load %arg5[%c0_7, %c0_8] : memref<1x4xf32, #tpu.memory_space<vmem>>, vector<1x4xf32>
    %c0_9 = arith.constant 0 : index
    %c0_10 = arith.constant 0 : index
    %3 = vector.load %arg6[%c0_9, %c0_10] : memref<1x4xf32, #tpu.memory_space<vmem>>, vector<1x4xf32>
    %c0_i32 = arith.constant 0 : i32
    %c16_i32 = arith.constant 16 : i32
    %4 = arith.addi %c0_i32, %c16_i32 : i32
    %c1_i32 = arith.constant 1 : i32
    scf.for %arg8 = %c0_i32 to %4 step %c1_i32  : i32 {
      %cst = arith.constant 0.000000e+00 : f32
      %5 = vector.broadcast %cst : f32 to vector<16x4xf32>
      %c0_i32_12 = arith.constant 0 : i32
      %6 = arith.addi %arg8, %c0_i32_12 : i32
      %c0_13 = arith.constant 0 : index
      %7 = arith.index_cast %6 : i32 to index
      %c0_14 = arith.constant 0 : index
      %c0_15 = arith.constant 0 : index
      %8 = vector.load %arg1[%c0_13, %7, %c0_14, %c0_15] : memref<1x18x18x4xbf16, #tpu.memory_space<vmem>>, vector<1x1x18x4xbf16>
      %9 = vector.shape_cast %8 : vector<1x1x18x4xbf16> to vector<18x4xbf16>
      %c1_i32_16 = arith.constant 1 : i32
      %10 = arith.addi %arg8, %c1_i32_16 : i32
      %c0_17 = arith.constant 0 : index
      %11 = arith.index_cast %10 : i32 to index
      %c0_18 = arith.constant 0 : index
      %c0_19 = arith.constant 0 : index
      %12 = vector.load %arg1[%c0_17, %11, %c0_18, %c0_19] : memref<1x18x18x4xbf16, #tpu.memory_space<vmem>>, vector<1x1x18x4xbf16>
      %13 = vector.shape_cast %12 : vector<1x1x18x4xbf16> to vector<18x4xbf16>
      %c2_i32 = arith.constant 2 : i32
      %14 = arith.addi %arg8, %c2_i32 : i32
      %c0_20 = arith.constant 0 : index
      %15 = arith.index_cast %14 : i32 to index
      %c0_21 = arith.constant 0 : index
      %c0_22 = arith.constant 0 : index
      %16 = vector.load %arg1[%c0_20, %15, %c0_21, %c0_22] : memref<1x18x18x4xbf16, #tpu.memory_space<vmem>>, vector<1x1x18x4xbf16>
      %17 = vector.shape_cast %16 : vector<1x1x18x4xbf16> to vector<18x4xbf16>
      %18 = vector.extract_strided_slice %9 {offsets = [0, 0], sizes = [16, 4], strides = [1, 1]} : vector<18x4xbf16> to vector<16x4xbf16>
      %19 = vector.extract_strided_slice %0 {offsets = [0, 0, 0, 0], sizes = [1, 1, 4, 4], strides = [1, 1, 1, 1]} : vector<3x3x4x4xbf16> to vector<1x1x4x4xbf16>
      %20 = vector.shape_cast %19 : vector<1x1x4x4xbf16> to vector<4x4xbf16>
      %cst_23 = arith.constant dense<0.000000e+00> : vector<16x4xf32>
      %21 = tpu.matmul %18, %20, %cst_23 {dimension_numbers = #tpu.dot_dimension_numbers<[1], [0], [0], [1], [0, 0, 1, 1], [], []>} : vector<16x4xbf16>, vector<4x4xbf16>, vector<16x4xf32> -> vector<16x4xf32>
      %22 = arith.addf %5, %21 : vector<16x4xf32>
      %23 = vector.extract_strided_slice %9 {offsets = [1, 0], sizes = [16, 4], strides = [1, 1]} : vector<18x4xbf16> to vector<16x4xbf16>
      %24 = vector.extract_strided_slice %0 {offsets = [0, 1, 0, 0], sizes = [1, 1, 4, 4], strides = [1, 1, 1, 1]} : vector<3x3x4x4xbf16> to vector<1x1x4x4xbf16>
      %25 = vector.shape_cast %24 : vector<1x1x4x4xbf16> to vector<4x4xbf16>
      %cst_24 = arith.constant dense<0.000000e+00> : vector<16x4xf32>
      %26 = tpu.matmul %23, %25, %cst_24 {dimension_numbers = #tpu.dot_dimension_numbers<[1], [0], [0], [1], [0, 0, 1, 1], [], []>} : vector<16x4xbf16>, vector<4x4xbf16>, vector<16x4xf32> -> vector<16x4xf32>
      %27 = arith.addf %22, %26 : vector<16x4xf32>
      %28 = vector.extract_strided_slice %9 {offsets = [2, 0], sizes = [16, 4], strides = [1, 1]} : vector<18x4xbf16> to vector<16x4xbf16>
      %29 = vector.extract_strided_slice %0 {offsets = [0, 2, 0, 0], sizes = [1, 1, 4, 4], strides = [1, 1, 1, 1]} : vector<3x3x4x4xbf16> to vector<1x1x4x4xbf16>
      %30 = vector.shape_cast %29 : vector<1x1x4x4xbf16> to vector<4x4xbf16>
      %cst_25 = arith.constant dense<0.000000e+00> : vector<16x4xf32>
      %31 = tpu.matmul %28, %30, %cst_25 {dimension_numbers = #tpu.dot_dimension_numbers<[1], [0], [0], [1], [0, 0, 1, 1], [], []>} : vector<16x4xbf16>, vector<4x4xbf16>, vector<16x4xf32> -> vector<16x4xf32>
      %32 = arith.addf %27, %31 : vector<16x4xf32>
      %33 = vector.extract_strided_slice %13 {offsets = [0, 0], sizes = [16, 4], strides = [1, 1]} : vector<18x4xbf16> to vector<16x4xbf16>
      %34 = vector.extract_strided_slice %0 {offsets = [1, 0, 0, 0], sizes = [1, 1, 4, 4], strides = [1, 1, 1, 1]} : vector<3x3x4x4xbf16> to vector<1x1x4x4xbf16>
      %35 = vector.shape_cast %34 : vector<1x1x4x4xbf16> to vector<4x4xbf16>
      %cst_26 = arith.constant dense<0.000000e+00> : vector<16x4xf32>
      %36 = tpu.matmul %33, %35, %cst_26 {dimension_numbers = #tpu.dot_dimension_numbers<[1], [0], [0], [1], [0, 0, 1, 1], [], []>} : vector<16x4xbf16>, vector<4x4xbf16>, vector<16x4xf32> -> vector<16x4xf32>
      %37 = arith.addf %32, %36 : vector<16x4xf32>
      %38 = vector.extract_strided_slice %13 {offsets = [1, 0], sizes = [16, 4], strides = [1, 1]} : vector<18x4xbf16> to vector<16x4xbf16>
      %39 = vector.extract_strided_slice %0 {offsets = [1, 1, 0, 0], sizes = [1, 1, 4, 4], strides = [1, 1, 1, 1]} : vector<3x3x4x4xbf16> to vector<1x1x4x4xbf16>
      %40 = vector.shape_cast %39 : vector<1x1x4x4xbf16> to vector<4x4xbf16>
      %cst_27 = arith.constant dense<0.000000e+00> : vector<16x4xf32>
      %41 = tpu.matmul %38, %40, %cst_27 {dimension_numbers = #tpu.dot_dimension_numbers<[1], [0], [0], [1], [0, 0, 1, 1], [], []>} : vector<16x4xbf16>, vector<4x4xbf16>, vector<16x4xf32> -> vector<16x4xf32>
      %42 = arith.addf %37, %41 : vector<16x4xf32>
      %43 = vector.extract_strided_slice %13 {offsets = [2, 0], sizes = [16, 4], strides = [1, 1]} : vector<18x4xbf16> to vector<16x4xbf16>
      %44 = vector.extract_strided_slice %0 {offsets = [1, 2, 0, 0], sizes = [1, 1, 4, 4], strides = [1, 1, 1, 1]} : vector<3x3x4x4xbf16> to vector<1x1x4x4xbf16>
      %45 = vector.shape_cast %44 : vector<1x1x4x4xbf16> to vector<4x4xbf16>
      %cst_28 = arith.constant dense<0.000000e+00> : vector<16x4xf32>
      %46 = tpu.matmul %43, %45, %cst_28 {dimension_numbers = #tpu.dot_dimension_numbers<[1], [0], [0], [1], [0, 0, 1, 1], [], []>} : vector<16x4xbf16>, vector<4x4xbf16>, vector<16x4xf32> -> vector<16x4xf32>
      %47 = arith.addf %42, %46 : vector<16x4xf32>
      %48 = vector.extract_strided_slice %17 {offsets = [0, 0], sizes = [16, 4], strides = [1, 1]} : vector<18x4xbf16> to vector<16x4xbf16>
      %49 = vector.extract_strided_slice %0 {offsets = [2, 0, 0, 0], sizes = [1, 1, 4, 4], strides = [1, 1, 1, 1]} : vector<3x3x4x4xbf16> to vector<1x1x4x4xbf16>
      %50 = vector.shape_cast %49 : vector<1x1x4x4xbf16> to vector<4x4xbf16>
      %cst_29 = arith.constant dense<0.000000e+00> : vector<16x4xf32>
      %51 = tpu.matmul %48, %50, %cst_29 {dimension_numbers = #tpu.dot_dimension_numbers<[1], [0], [0], [1], [0, 0, 1, 1], [], []>} : vector<16x4xbf16>, vector<4x4xbf16>, vector<16x4xf32> -> vector<16x4xf32>
      %52 = arith.addf %47, %51 : vector<16x4xf32>
      %53 = vector.extract_strided_slice %17 {offsets = [1, 0], sizes = [16, 4], strides = [1, 1]} : vector<18x4xbf16> to vector<16x4xbf16>
      %54 = vector.extract_strided_slice %0 {offsets = [2, 1, 0, 0], sizes = [1, 1, 4, 4], strides = [1, 1, 1, 1]} : vector<3x3x4x4xbf16> to vector<1x1x4x4xbf16>
      %55 = vector.shape_cast %54 : vector<1x1x4x4xbf16> to vector<4x4xbf16>
      %cst_30 = arith.constant dense<0.000000e+00> : vector<16x4xf32>
      %56 = tpu.matmul %53, %55, %cst_30 {dimension_numbers = #tpu.dot_dimension_numbers<[1], [0], [0], [1], [0, 0, 1, 1], [], []>} : vector<16x4xbf16>, vector<4x4xbf16>, vector<16x4xf32> -> vector<16x4xf32>
      %57 = arith.addf %52, %56 : vector<16x4xf32>
      %58 = vector.extract_strided_slice %17 {offsets = [2, 0], sizes = [16, 4], strides = [1, 1]} : vector<18x4xbf16> to vector<16x4xbf16>
      %59 = vector.extract_strided_slice %0 {offsets = [2, 2, 0, 0], sizes = [1, 1, 4, 4], strides = [1, 1, 1, 1]} : vector<3x3x4x4xbf16> to vector<1x1x4x4xbf16>
      %60 = vector.shape_cast %59 : vector<1x1x4x4xbf16> to vector<4x4xbf16>
      %cst_31 = arith.constant dense<0.000000e+00> : vector<16x4xf32>
      %61 = tpu.matmul %58, %60, %cst_31 {dimension_numbers = #tpu.dot_dimension_numbers<[1], [0], [0], [1], [0, 0, 1, 1], [], []>} : vector<16x4xbf16>, vector<4x4xbf16>, vector<16x4xf32> -> vector<16x4xf32>
      %62 = arith.addf %57, %61 : vector<16x4xf32>
      %c0_i32_32 = arith.constant 0 : i32
      %63 = arith.addi %arg8, %c0_i32_32 : i32
      %c0_33 = arith.constant 0 : index
      %64 = arith.index_cast %63 : i32 to index
      %c0_34 = arith.constant 0 : index
      %c0_35 = arith.constant 0 : index
      %65 = vector.load %arg2[%c0_33, %64, %c0_34, %c0_35] : memref<1x18x18x4xbf16, #tpu.memory_space<vmem>>, vector<1x1x18x4xbf16>
      %66 = vector.shape_cast %65 : vector<1x1x18x4xbf16> to vector<18x4xbf16>
      %c1_i32_36 = arith.constant 1 : i32
      %67 = arith.addi %arg8, %c1_i32_36 : i32
      %c0_37 = arith.constant 0 : index
      %68 = arith.index_cast %67 : i32 to index
      %c0_38 = arith.constant 0 : index
      %c0_39 = arith.constant 0 : index
      %69 = vector.load %arg2[%c0_37, %68, %c0_38, %c0_39] : memref<1x18x18x4xbf16, #tpu.memory_space<vmem>>, vector<1x1x18x4xbf16>
      %70 = vector.shape_cast %69 : vector<1x1x18x4xbf16> to vector<18x4xbf16>
      %c2_i32_40 = arith.constant 2 : i32
      %71 = arith.addi %arg8, %c2_i32_40 : i32
      %c0_41 = arith.constant 0 : index
      %72 = arith.index_cast %71 : i32 to index
      %c0_42 = arith.constant 0 : index
      %c0_43 = arith.constant 0 : index
      %73 = vector.load %arg2[%c0_41, %72, %c0_42, %c0_43] : memref<1x18x18x4xbf16, #tpu.memory_space<vmem>>, vector<1x1x18x4xbf16>
      %74 = vector.shape_cast %73 : vector<1x1x18x4xbf16> to vector<18x4xbf16>
      %75 = vector.extract_strided_slice %66 {offsets = [0, 0], sizes = [16, 4], strides = [1, 1]} : vector<18x4xbf16> to vector<16x4xbf16>
      %76 = vector.extract_strided_slice %1 {offsets = [0, 0, 0, 0], sizes = [1, 1, 4, 4], strides = [1, 1, 1, 1]} : vector<3x3x4x4xbf16> to vector<1x1x4x4xbf16>
      %77 = vector.shape_cast %76 : vector<1x1x4x4xbf16> to vector<4x4xbf16>
      %cst_44 = arith.constant dense<0.000000e+00> : vector<16x4xf32>
      %78 = tpu.matmul %75, %77, %cst_44 {dimension_numbers = #tpu.dot_dimension_numbers<[1], [0], [0], [1], [0, 0, 1, 1], [], []>} : vector<16x4xbf16>, vector<4x4xbf16>, vector<16x4xf32> -> vector<16x4xf32>
      %79 = arith.addf %62, %78 : vector<16x4xf32>
      %80 = vector.extract_strided_slice %66 {offsets = [1, 0], sizes = [16, 4], strides = [1, 1]} : vector<18x4xbf16> to vector<16x4xbf16>
      %81 = vector.extract_strided_slice %1 {offsets = [0, 1, 0, 0], sizes = [1, 1, 4, 4], strides = [1, 1, 1, 1]} : vector<3x3x4x4xbf16> to vector<1x1x4x4xbf16>
      %82 = vector.shape_cast %81 : vector<1x1x4x4xbf16> to vector<4x4xbf16>
      %cst_45 = arith.constant dense<0.000000e+00> : vector<16x4xf32>
      %83 = tpu.matmul %80, %82, %cst_45 {dimension_numbers = #tpu.dot_dimension_numbers<[1], [0], [0], [1], [0, 0, 1, 1], [], []>} : vector<16x4xbf16>, vector<4x4xbf16>, vector<16x4xf32> -> vector<16x4xf32>
      %84 = arith.addf %79, %83 : vector<16x4xf32>
      %85 = vector.extract_strided_slice %66 {offsets = [2, 0], sizes = [16, 4], strides = [1, 1]} : vector<18x4xbf16> to vector<16x4xbf16>
      %86 = vector.extract_strided_slice %1 {offsets = [0, 2, 0, 0], sizes = [1, 1, 4, 4], strides = [1, 1, 1, 1]} : vector<3x3x4x4xbf16> to vector<1x1x4x4xbf16>
      %87 = vector.shape_cast %86 : vector<1x1x4x4xbf16> to vector<4x4xbf16>
      %cst_46 = arith.constant dense<0.000000e+00> : vector<16x4xf32>
      %88 = tpu.matmul %85, %87, %cst_46 {dimension_numbers = #tpu.dot_dimension_numbers<[1], [0], [0], [1], [0, 0, 1, 1], [], []>} : vector<16x4xbf16>, vector<4x4xbf16>, vector<16x4xf32> -> vector<16x4xf32>
      %89 = arith.addf %84, %88 : vector<16x4xf32>
      %90 = vector.extract_strided_slice %70 {offsets = [0, 0], sizes = [16, 4], strides = [1, 1]} : vector<18x4xbf16> to vector<16x4xbf16>
      %91 = vector.extract_strided_slice %1 {offsets = [1, 0, 0, 0], sizes = [1, 1, 4, 4], strides = [1, 1, 1, 1]} : vector<3x3x4x4xbf16> to vector<1x1x4x4xbf16>
      %92 = vector.shape_cast %91 : vector<1x1x4x4xbf16> to vector<4x4xbf16>
      %cst_47 = arith.constant dense<0.000000e+00> : vector<16x4xf32>
      %93 = tpu.matmul %90, %92, %cst_47 {dimension_numbers = #tpu.dot_dimension_numbers<[1], [0], [0], [1], [0, 0, 1, 1], [], []>} : vector<16x4xbf16>, vector<4x4xbf16>, vector<16x4xf32> -> vector<16x4xf32>
      %94 = arith.addf %89, %93 : vector<16x4xf32>
      %95 = vector.extract_strided_slice %70 {offsets = [1, 0], sizes = [16, 4], strides = [1, 1]} : vector<18x4xbf16> to vector<16x4xbf16>
      %96 = vector.extract_strided_slice %1 {offsets = [1, 1, 0, 0], sizes = [1, 1, 4, 4], strides = [1, 1, 1, 1]} : vector<3x3x4x4xbf16> to vector<1x1x4x4xbf16>
      %97 = vector.shape_cast %96 : vector<1x1x4x4xbf16> to vector<4x4xbf16>
      %cst_48 = arith.constant dense<0.000000e+00> : vector<16x4xf32>
      %98 = tpu.matmul %95, %97, %cst_48 {dimension_numbers = #tpu.dot_dimension_numbers<[1], [0], [0], [1], [0, 0, 1, 1], [], []>} : vector<16x4xbf16>, vector<4x4xbf16>, vector<16x4xf32> -> vector<16x4xf32>
      %99 = arith.addf %94, %98 : vector<16x4xf32>
      %100 = vector.extract_strided_slice %70 {offsets = [2, 0], sizes = [16, 4], strides = [1, 1]} : vector<18x4xbf16> to vector<16x4xbf16>
      %101 = vector.extract_strided_slice %1 {offsets = [1, 2, 0, 0], sizes = [1, 1, 4, 4], strides = [1, 1, 1, 1]} : vector<3x3x4x4xbf16> to vector<1x1x4x4xbf16>
      %102 = vector.shape_cast %101 : vector<1x1x4x4xbf16> to vector<4x4xbf16>
      %cst_49 = arith.constant dense<0.000000e+00> : vector<16x4xf32>
      %103 = tpu.matmul %100, %102, %cst_49 {dimension_numbers = #tpu.dot_dimension_numbers<[1], [0], [0], [1], [0, 0, 1, 1], [], []>} : vector<16x4xbf16>, vector<4x4xbf16>, vector<16x4xf32> -> vector<16x4xf32>
      %104 = arith.addf %99, %103 : vector<16x4xf32>
      %105 = vector.extract_strided_slice %74 {offsets = [0, 0], sizes = [16, 4], strides = [1, 1]} : vector<18x4xbf16> to vector<16x4xbf16>
      %106 = vector.extract_strided_slice %1 {offsets = [2, 0, 0, 0], sizes = [1, 1, 4, 4], strides = [1, 1, 1, 1]} : vector<3x3x4x4xbf16> to vector<1x1x4x4xbf16>
      %107 = vector.shape_cast %106 : vector<1x1x4x4xbf16> to vector<4x4xbf16>
      %cst_50 = arith.constant dense<0.000000e+00> : vector<16x4xf32>
      %108 = tpu.matmul %105, %107, %cst_50 {dimension_numbers = #tpu.dot_dimension_numbers<[1], [0], [0], [1], [0, 0, 1, 1], [], []>} : vector<16x4xbf16>, vector<4x4xbf16>, vector<16x4xf32> -> vector<16x4xf32>
      %109 = arith.addf %104, %108 : vector<16x4xf32>
      %110 = vector.extract_strided_slice %74 {offsets = [1, 0], sizes = [16, 4], strides = [1, 1]} : vector<18x4xbf16> to vector<16x4xbf16>
      %111 = vector.extract_strided_slice %1 {offsets = [2, 1, 0, 0], sizes = [1, 1, 4, 4], strides = [1, 1, 1, 1]} : vector<3x3x4x4xbf16> to vector<1x1x4x4xbf16>
      %112 = vector.shape_cast %111 : vector<1x1x4x4xbf16> to vector<4x4xbf16>
      %cst_51 = arith.constant dense<0.000000e+00> : vector<16x4xf32>
      %113 = tpu.matmul %110, %112, %cst_51 {dimension_numbers = #tpu.dot_dimension_numbers<[1], [0], [0], [1], [0, 0, 1, 1], [], []>} : vector<16x4xbf16>, vector<4x4xbf16>, vector<16x4xf32> -> vector<16x4xf32>
      %114 = arith.addf %109, %113 : vector<16x4xf32>
      %115 = vector.extract_strided_slice %74 {offsets = [2, 0], sizes = [16, 4], strides = [1, 1]} : vector<18x4xbf16> to vector<16x4xbf16>
      %116 = vector.extract_strided_slice %1 {offsets = [2, 2, 0, 0], sizes = [1, 1, 4, 4], strides = [1, 1, 1, 1]} : vector<3x3x4x4xbf16> to vector<1x1x4x4xbf16>
      %117 = vector.shape_cast %116 : vector<1x1x4x4xbf16> to vector<4x4xbf16>
      %cst_52 = arith.constant dense<0.000000e+00> : vector<16x4xf32>
      %118 = tpu.matmul %115, %117, %cst_52 {dimension_numbers = #tpu.dot_dimension_numbers<[1], [0], [0], [1], [0, 0, 1, 1], [], []>} : vector<16x4xbf16>, vector<4x4xbf16>, vector<16x4xf32> -> vector<16x4xf32>
      %119 = arith.addf %114, %118 : vector<16x4xf32>
      %120 = vector.broadcast %2 : vector<1x4xf32> to vector<16x4xf32>
      %121 = arith.mulf %119, %120 : vector<16x4xf32>
      %122 = vector.broadcast %3 : vector<1x4xf32> to vector<16x4xf32>
      %123 = arith.addf %121, %122 : vector<16x4xf32>
      %cst_53 = arith.constant 0.000000e+00 : f32
      %124 = vector.broadcast %cst_53 : f32 to vector<16x4xf32>
      %125 = arith.maximumf %123, %124 : vector<16x4xf32>
      %126 = arith.truncf %125 : vector<16x4xf32> to vector<16x4xbf16>
      %c0_54 = arith.constant 0 : index
      %127 = arith.index_cast %arg8 : i32 to index
      %c0_55 = arith.constant 0 : index
      %c0_56 = arith.constant 0 : index
      %128 = vector.load %arg7[%c0_54, %127, %c0_55, %c0_56] : memref<1x16x16x4xbf16, #tpu.memory_space<vmem>>, vector<1x1x16x4xbf16>
      %129 = vector.shape_cast %128 : vector<1x1x16x4xbf16> to vector<16x4xbf16>
      %130 = vector.shape_cast %126 : vector<16x4xbf16> to vector<1x1x16x4xbf16>
      tpu.vector_store %arg7[%c0_54, %127, %c0_55, %c0_56], %130 {strides = array<i32>} : memref<1x16x16x4xbf16, #tpu.memory_space<vmem>>, vector<1x1x16x4xbf16>,
    }
    %c16_i32_11 = arith.constant 16 : i32
    return
  }
  func.func @transform_0(%arg0: i32) -> (i32, i32, i32, i32) {
    %c0_i32 = arith.constant 0 : i32
    %c0_i32_0 = arith.constant 0 : i32
    %c0_i32_1 = arith.constant 0 : i32
    %c0_i32_2 = arith.constant 0 : i32
    return %arg0, %c0_i32, %c0_i32_0, %c0_i32_1 : i32, i32, i32, i32
  }
  func.func @transform_1(%arg0: i32) -> (i32, i32, i32, i32) {
    %c0_i32 = arith.constant 0 : i32
    %c0_i32_0 = arith.constant 0 : i32
    %c0_i32_1 = arith.constant 0 : i32
    %c0_i32_2 = arith.constant 0 : i32
    return %arg0, %c0_i32, %c0_i32_0, %c0_i32_1 : i32, i32, i32, i32
  }
  func.func @transform_2(%arg0: i32) -> (i32, i32, i32, i32) {
    %c0_i32 = arith.constant 0 : i32
    %c0_i32_0 = arith.constant 0 : i32
    %c0_i32_1 = arith.constant 0 : i32
    %c0_i32_2 = arith.constant 0 : i32
    %c0_i32_3 = arith.constant 0 : i32
    return %c0_i32, %c0_i32_0, %c0_i32_1, %c0_i32_2 : i32, i32, i32, i32
  }
  func.func @transform_3(%arg0: i32) -> (i32, i32, i32, i32) {
    %c0_i32 = arith.constant 0 : i32
    %c0_i32_0 = arith.constant 0 : i32
    %c0_i32_1 = arith.constant 0 : i32
    %c0_i32_2 = arith.constant 0 : i32
    %c0_i32_3 = arith.constant 0 : i32
    return %c0_i32, %c0_i32_0, %c0_i32_1, %c0_i32_2 : i32, i32, i32, i32
  }
  func.func @transform_4(%arg0: i32) -> (i32, i32) {
    %c0_i32 = arith.constant 0 : i32
    %c0_i32_0 = arith.constant 0 : i32
    %c0_i32_1 = arith.constant 0 : i32
    return %c0_i32, %c0_i32_0 : i32, i32
  }
  func.func @transform_5(%arg0: i32) -> (i32, i32) {
    %c0_i32 = arith.constant 0 : i32
    %c0_i32_0 = arith.constant 0 : i32
    %c0_i32_1 = arith.constant 0 : i32
    return %c0_i32, %c0_i32_0 : i32, i32
  }
  func.func @transform_6(%arg0: i32) -> (i32, i32, i32, i32) {
    %c0_i32 = arith.constant 0 : i32
    %c0_i32_0 = arith.constant 0 : i32
    %c0_i32_1 = arith.constant 0 : i32
    %c0_i32_2 = arith.constant 0 : i32
    return %arg0, %c0_i32, %c0_i32_0, %c0_i32_1 : i32, i32, i32, i32
  }
}

module attributes {stable_mosaic.version = 11 : i64} {
  func.func @_matmul_affine_kernel(%arg0: i32, %arg1: memref<512x4xbf16, #tpu.memory_space<vmem>>, %arg2: memref<4x1xbf16, #tpu.memory_space<vmem>>, %arg3: memref<1x1xf32, #tpu.memory_space<vmem>>, %arg4: memref<1x1xf32, #tpu.memory_space<vmem>>, %arg5: memref<512x1xf32, #tpu.memory_space<vmem>>) attributes {dimension_semantics = [#tpu.dimension_semantics<parallel>], iteration_bounds = array<i64: 1>, scalar_prefetch = 0 : i64, scratch_operands = 0 : i64, tpu.core_type = #tpu.core_type<tc>, window_params = [{transform_indices = @transform_0, window_bounds = array<i64: 512, 4>}, {pipeline_mode = #tpu.pipeline_mode<synchronous>, transform_indices = @transform_1, window_bounds = array<i64: 4, 1>}, {pipeline_mode = #tpu.pipeline_mode<synchronous>, transform_indices = @transform_2, window_bounds = array<i64: 1, 1>}, {pipeline_mode = #tpu.pipeline_mode<synchronous>, transform_indices = @transform_3, window_bounds = array<i64: 1, 1>}, {transform_indices = @transform_4, window_bounds = array<i64: 512, 1>}]} {
    %c0 = arith.constant 0 : index
    %c0_0 = arith.constant 0 : index
    %0 = vector.load %arg1[%c0, %c0_0] : memref<512x4xbf16, #tpu.memory_space<vmem>>, vector<512x4xbf16>
    %c0_1 = arith.constant 0 : index
    %c0_2 = arith.constant 0 : index
    %1 = vector.load %arg2[%c0_1, %c0_2] : memref<4x1xbf16, #tpu.memory_space<vmem>>, vector<4x1xbf16>
    %cst = arith.constant dense<0.000000e+00> : vector<512x1xf32>
    %2 = tpu.matmul %0, %1, %cst {dimension_numbers = #tpu.dot_dimension_numbers<[1], [0], [0], [1], [0, 0, 1, 1], [], []>} : vector<512x4xbf16>, vector<4x1xbf16>, vector<512x1xf32> -> vector<512x1xf32>
    %c0_3 = arith.constant 0 : index
    %c0_4 = arith.constant 0 : index
    %3 = vector.load %arg3[%c0_3, %c0_4] : memref<1x1xf32, #tpu.memory_space<vmem>>, vector<1x1xf32>
    %4 = vector.broadcast %3 : vector<1x1xf32> to vector<512x1xf32>
    %5 = arith.mulf %2, %4 : vector<512x1xf32>
    %c0_5 = arith.constant 0 : index
    %c0_6 = arith.constant 0 : index
    %6 = vector.load %arg4[%c0_5, %c0_6] : memref<1x1xf32, #tpu.memory_space<vmem>>, vector<1x1xf32>
    %7 = vector.broadcast %6 : vector<1x1xf32> to vector<512x1xf32>
    %8 = arith.addf %5, %7 : vector<512x1xf32>
    %cst_7 = arith.constant 0.000000e+00 : f32
    %9 = vector.broadcast %cst_7 : f32 to vector<512x1xf32>
    %10 = arith.maximumf %8, %9 : vector<512x1xf32>
    %c0_8 = arith.constant 0 : index
    %c0_9 = arith.constant 0 : index
    %11 = vector.load %arg5[%c0_8, %c0_9] : memref<512x1xf32, #tpu.memory_space<vmem>>, vector<512x1xf32>
    tpu.vector_store %arg5[%c0_8, %c0_9], %10 {strides = array<i32>} : memref<512x1xf32, #tpu.memory_space<vmem>>, vector<512x1xf32>,
    return
  }
  func.func @transform_0(%arg0: i32) -> (i32, i32) {
    %c0_i32 = arith.constant 0 : i32
    %c0_i32_0 = arith.constant 0 : i32
    return %arg0, %c0_i32 : i32, i32
  }
  func.func @transform_1(%arg0: i32) -> (i32, i32) {
    %c0_i32 = arith.constant 0 : i32
    %c0_i32_0 = arith.constant 0 : i32
    %c0_i32_1 = arith.constant 0 : i32
    return %c0_i32, %c0_i32_0 : i32, i32
  }
  func.func @transform_2(%arg0: i32) -> (i32, i32) {
    %c0_i32 = arith.constant 0 : i32
    %c0_i32_0 = arith.constant 0 : i32
    %c0_i32_1 = arith.constant 0 : i32
    return %c0_i32, %c0_i32_0 : i32, i32
  }
  func.func @transform_3(%arg0: i32) -> (i32, i32) {
    %c0_i32 = arith.constant 0 : i32
    %c0_i32_0 = arith.constant 0 : i32
    %c0_i32_1 = arith.constant 0 : i32
    return %c0_i32, %c0_i32_0 : i32, i32
  }
  func.func @transform_4(%arg0: i32) -> (i32, i32) {
    %c0_i32 = arith.constant 0 : i32
    %c0_i32_0 = arith.constant 0 : i32
    return %arg0, %c0_i32 : i32, i32
  }
}

</mosaic_0001>

<bundles_post_ra>
// kernel: attention_unet_forward.14
= control target key start
LH: loop header
LB: loop body
LE: loop exit
PB: predicated region body
PF: predicated region fallthrough
CT: control target
= control target key end

     0   :  { %s295_s6 = smov 0   ;;  %s324_s0 = inlined_call_operand.vmem [shape: bf16[2,8,2,8,8], index: 0, kind: input, shape index: {}]   ;;  %s325_s1 = inlined_call_operand.vmem [shape: bf16[2,8,8,4], index: 1, kind: output, shape index: {}]  }
   0x1 LB: > { %s246_s7 = sadd.s32 4294967295, %s282_s6   ;;  %p250_p0 = scmp.ge.s32.totalorder %s282_s6, 1  ;;  %s282_s6 = sphi %s295_s6, %s11_s6  }
   0x2   : > { %p87_p1 = scmp.lt.s32.totalorder %s282_s6, 3 }
   0x4   : > { %p88_p2 = pnand %p250_p0, %p87_p1 }
   0x5   : > { %p107_p3 = scmp.lt.s32.totalorder (!%p88_p2), %s246_s7, 1  ;;  %s284_s12 = smov (!%p88_p2), 124   ;;  %vm182_vm0 = vcmask (!%p88_p2), 27648  }
   0x6   : > { %91 = sbr.rel (%p88_p2) target bundleno = 150 (0x96), region = 24 }
   0xd   : > { %s327_s7 = smov (!%p107_p3, %s246_s7), 1 }
   0xe   : > { %s265_s8 = sshll.u32 %s327_s7, 6  ;;  %s266_s13 = sshll.u32 %s327_s7, 5 }
   0xf   : > { %s111_s11 = scalar_lea.vmem %s324_s0, %s265_s8  ;;  %s116_s16 = scalar_lea.vmem %s325_s1, %s266_s13 }
  0x10   : > { %v119_v0 = vld [vmem:[%s111_s11 + $0x10] sm:$0xf]  ;;  %v257_v1 = vld [vmem:[%s111_s11 + $0x14] sm:$0xf]  ;;  %v117_v2 = vld [vmem:[%s111_s11] sm:$0xf] }
  0x11   : > { %v136_v3 = vmax.bf16 %v257_v1, %v119_v0  ;;  %v255_v4 = vld [vmem:[%s111_s11 + $0x4] sm:$0xf]  ;;  %v120_v5 = vld [vmem:[%s111_s11 + $0x18] sm:$0xf]  ;;  %v258_v6 = vld [vmem:[%s111_s11 + $0x1c] sm:$0xf] }
  0x12   : > { %v134_v7 = vmax.bf16 %v255_v4, %v117_v2  ;;  %v118_v8 = vld [vmem:[%s111_s11 + $0x8] sm:$0xf]  ;;  %v256_v9 = vld [vmem:[%s111_s11 + $0xc] sm:$0xf]  ;;  %v137_v10 = vmax.bf16 %v258_v6, %v120_v5  ;;  %v121_v14 = vld [vmem:[%s111_s11 + $0x20] sm:$0xf] }
  0x13   : > { %154 = vrot.lane.b32.xlu1 %v136_v3, %s284_s12  ;;  %v135_v11 = vmax.bf16 %v256_v9, %v118_v8  ;;  %v122_v12 = vld [vmem:[%s111_s11 + $0x28] sm:$0xf]  ;;  %v260_v13 = vld [vmem:[%s111_s11 + $0x2c] sm:$0xf]  ;;  %v259_v15 = vld [vmem:[%s111_s11 + $0x24] sm:$0xf] }
  0x14   : > { %150 = vrot.lane.b32.xlu0 %v134_v7, %s284_s12  ;;  %v139_v16 = vmax.bf16 %v260_v13, %v122_v12  ;;  %v138_v17 = vmax.bf16 %v259_v15, %v121_v14  ;;  %v124_v18 = vld [vmem:[%s111_s11 + $0x38] sm:$0xf]  ;;  %v262_v19 = vld [vmem:[%s111_s11 + $0x3c] sm:$0xf]  ;;  %v123_v20 = vld [vmem:[%s111_s11 + $0x30] sm:$0xf] }
  0x15   : > { %v261_v21 = vld [vmem:[%s111_s11 + $0x34] sm:$0xf]  ;;  %v141_v22 = vmax.bf16 %v262_v19, %v124_v18 }
  0x16   : > { %v140_v23 = vmax.bf16 %v261_v21, %v123_v20 }
  0x17   : > { %156 = vrot.lane.b32.xlu1 %v137_v10, %s284_s12 }
  0x18   : > { %152 = vrot.lane.b32.xlu0 %v135_v11, %s284_s12 }
  0x1b   : > { %160 = vrot.lane.b32.xlu1 %v139_v16, %s284_s12 }
  0x1c   : > { %158 = vrot.lane.b32.xlu0 %v138_v17, %s284_s12 }
  0x1f   : > { %164 = vrot.lane.b32.xlu1 %v141_v22, %s284_s12 }
  0x20   : > { %162 = vrot.lane.b32.xlu0 %v140_v23, %s284_s12 }
  0x85   : > { %v155_v24 = vpop.permute.xlu1 %154 }
  0x86   : > { %v176_v25 = vmax.bf16 %v155_v24, %v136_v3  ;;  %v151_v26 = vpop.permute.xlu0 %150 }
  0x87   : > { %v174_v27 = vmax.bf16 %v151_v26, %v134_v7 }
  0x88   : > { %185 = vst.msk [vmem:[%s116_s16 + $0x8] sm:$0xf] %vm182_vm0, %v176_v25 }
  0x89   : > { %183 = vst.msk [vmem:[%s116_s16] sm:$0xf] %vm182_vm0, %v174_v27  ;;  %v157_v28 = vpop.permute.xlu1 %156 }
  0x8a   : > { %v177_v29 = vmax.bf16 %v157_v28, %v137_v10  ;;  %v153_v30 = vpop.permute.xlu0 %152 }
  0x8b   : > { %v175_v31 = vmax.bf16 %v153_v30, %v135_v11 }
  0x8c   : > { %186 = vst.msk [vmem:[%s116_s16 + $0xc] sm:$0xf] %vm182_vm0, %v177_v29 }
  0x8d   : > { %184 = vst.msk [vmem:[%s116_s16 + $0x4] sm:$0xf] %vm182_vm0, %v175_v31  ;;  %v161_v32 = vpop.permute.xlu1 %160 }
  0x8e   : > { %v179_v33 = vmax.bf16 %v161_v32, %v139_v16  ;;  %v159_v34 = vpop.permute.xlu0 %158 }
  0x8f   : > { %v178_v35 = vmax.bf16 %v159_v34, %v138_v17 }
  0x90   : > { %188 = vst.msk [vmem:[%s116_s16 + $0x14] sm:$0xf] %vm182_vm0, %v179_v33 }
  0x91   : > { %187 = vst.msk [vmem:[%s116_s16 + $0x10] sm:$0xf] %vm182_vm0, %v178_v35  ;;  %v165_v36 = vpop.permute.xlu1 %164 }
  0x92   : > { %v181_v37 = vmax.bf16 %v165_v36, %v141_v22  ;;  %v163_v38 = vpop.permute.xlu0 %162 }
  0x93   : > { %v180_v39 = vmax.bf16 %v163_v38, %v140_v23 }
  0x94   : > { %190 = vst.msk [vmem:[%s116_s16 + $0x1c] sm:$0xf] %vm182_vm0, %v181_v37 }
  0x95   : > { %189 = vst.msk [vmem:[%s116_s16 + $0x18] sm:$0xf] %vm182_vm0, %v180_v39 }
  0x96 PF: > { %s11_s6 = sadd.s32 1, %s282_s6  }
  0x97   : > { %p8_p4 = scmp.ge.s32.totalorder %s11_s6, 4  }
  0x99   :  { %10 = sbr.rel (!%p8_p4) target bundleno = 1 (0x1), region = 55 }

// kernel: attention_unet_forward.13
= control target key start
LH: loop header
LB: loop body
LE: loop exit
PB: predicated region body
PF: predicated region fallthrough
CT: control target
= control target key end

     0   :  { %s1063_s15 = smov 0   ;;  %s1231_s0 = inlined_call_operand.vmem [shape: bf16[2,18,18,3], index: 0, kind: input, shape index: {}]   ;;  %s1232_s1 = inlined_call_operand.vmem [shape: bf16[3,3,3,4], index: 1, kind: input, shape index: {}]   ;;  %s1233_s2 = inlined_call_operand.vmem [shape: f32[1,4], index: 2, kind: input, shape index: {}]   ;;  %s1234_s3 = inlined_call_operand.vmem [shape: f32[1,4], index: 3, kind: input, shape index: {}]   ;;  %s1235_s4 = inlined_call_operand.vmem [shape: bf16[2,16,16,4], index: 4, kind: output, shape index: {}]  }
   0x1 LB: > { %s848_s16 = sadd.s32 4294967295, %s1029_s15   ;;  %p852_p0 = scmp.ge.s32.totalorder %s1029_s15, 1  ;;  %s1029_s15 = sphi %s1063_s15, %s14_s15  }
   0x2   : > { %p162_p1 = scmp.lt.s32.totalorder %s1029_s15, 3 }
   0x4   : > { %p163_p2 = pnand %p852_p0, %p162_p1 }
   0x5   : > { %p188_p3 = scmp.lt.s32.totalorder (!%p163_p2), %s848_s16, 1  ;;  %v1074_v0 = vld [vmem:[%s1232_s1] sm:$0x3] (!%p163_p2)  ;;  %v1079_v1 = vld [vmem:[%s1232_s1 + $0x2] sm:$0x3] (!%p163_p2)  ;;  %s1136_s23 = smov (!%p163_p2), 0  }
   0x6   : > { %166 = sbr.rel (%p163_p2) target bundleno = 302 (0x12e), region = 36  ;;  %v1084_v2 = vld [vmem:[%s1232_s1 + $0x4] sm:$0x3] (!%p163_p2)  ;;  %v1089_v3 = vld [vmem:[%s1232_s1 + $0x6] sm:$0x3] (!%p163_p2) }
   0x7   : > { %v1094_v4 = vld [vmem:[%s1232_s1 + $0x8] sm:$0x3] (!%p163_p2)  ;;  %v1099_v5 = vld [vmem:[%s1232_s1 + $0xa] sm:$0x3] (!%p163_p2)  ;;  %v1104_v6 = vld [vmem:[%s1232_s1 + $0xc] sm:$0x3] (!%p163_p2) }
   0x8   : > { %v1109_v7 = vld [vmem:[%s1232_s1 + $0xe] sm:$0x3] (!%p163_p2)  ;;  %v1114_v8 = vld [vmem:[%s1232_s1 + $0x10] sm:$0x3] (!%p163_p2)  ;;  %v1119_v9 = vld [vmem:[%s1233_s2] ss:$0 sm:$0xff] (!%p163_p2) }
   0x9   : > { %v1124_v10 = vld [vmem:[%s1234_s3] ss:$0 sm:$0xff] (!%p163_p2) }
   0xd   : > { %s1237_s16 = smov (!%p188_p3, %s848_s16), 1 }
   0xe   : > { %s993_s11 = smul.u32 216, %s1237_s16  ;;  %s886_s12 = sshll.u32 %s1237_s16, 7 }
   0xf   : > { %s1129_s19 = scalar_lea.vmem %s1235_s4, %s886_s12 }
  0x10   : > { %s1134_s22 = scalar_lea.vmem %s1231_s0, %s993_s11 }
  0x11 LB: >> { %vm261_vm0 = vcmask 1040384   ;;  %vm262_vm1 = vcmask 1041408   ;;  %v1035_v11 = vmov 0.0   ;;  %v1036_v12 = vmov 65535   ;;  %s887_s16 = smul.u32 12, %s1033_s23  ;;  %s890_s25 = sshll.u32 %s1033_s23, 3  ;;  %s1033_s23 = sphi %s1136_s23, %s215_s23  }
  0x12   : >> { %933 = vmatprep.subr.bf16.mxu0 %v1035_v11  ;;  %909 = vmatprep.subr.bf16.mxu1 %v1035_v11  ;;  %v263_v13 = vsel %vm261_vm0, 4294967295, %v1036_v12  ;;  %vm1037_vm2 = vmmov 0   ;;  %vm244_vm3 = vsmask.f32 7424  ;;  %vm257_vm4 = vcmask 23552   ;;  %s774_s26 = scalar_lea.vmem %s1129_s19, %s890_s25  ;;  %s215_s23 = sadd.s32 1, %s1033_s23  }
  0x13   : >> { %v1143_v14 = vsel %vm262_vm1, %v263_v13, 0  ;;  %911 = vmatprep.mubr.msk.bf16.mxu1 %vm1037_vm2, %v1035_v11  ;;  %935 = vmatprep.mubr.msk.bf16.mxu0 %vm1037_vm2, %v1035_v11  ;;  %s1155_s24 = scalar_lea.vmem %s1134_s22, %s887_s16  ;;  %vm355_vm5 = vcmask 1046528   ;;  %vm775_vm6 = vcmask 27648   ;;  %p212_p4 = scmp.ge.s32.totalorder %s215_s23, 16  }
  0x14   : >> { %v480_v15 = vand.u32 %v1143_v14, %v1094_v4  ;;  %v266_v16 = vand.u32 %v1143_v14, %v1079_v1  ;;  %v1013_v17 = vld [vmem:[%s1155_s24] sm:$0xff]   ;;  %v1014_v18 = vld [vmem:[%s1155_s24 + $0x8] ss:$0 sps:$4 sm:$0x11]   ;;  %v1162_v19 = vld [vmem:[%s1155_s24 + $0xc] sm:$0xff]   ;;  %v312_v32 = vand.u32 %v1143_v14, %v1074_v0  ;;  %v532_v34 = vand.u32 %v1143_v14, %v1099_v5 }
  0x15   : >> { %v246_v20 = vshrl.u32 %v1013_v17, 16  ;;  %v248_v21 = vshll.u32 %v1013_v17, 16  ;;  %v253_v22 = vshll.u32 %v1014_v18, 16  ;;  %v1016_v23 = vld [vmem:[%s1155_s24 + $0x14] ss:$0 sps:$4 sm:$0x11]   ;;  %v363_v39 = vand.u32 %v1143_v14, %v1084_v2 }
  0x16   : >> { %934 = vmatpush3.bf16.msra.mxu0 %v480_v15  ;;  %910 = vmatpush3.bf16.msra.mxu1 %v266_v16  ;;  %v465_v24 = vshrl.u32 %v1162_v19, 16  ;;  %v467_v25 = vshll.u32 %v1162_v19, 16  ;;  %v472_v28 = vshll.u32 %v1016_v23, 16  ;;  %v525_v37 = vrot.slane %v1162_v19, 1  ;;  %v1017_v44 = vld [vmem:[%s1155_s24 + $0x18] sm:$0xff]  }
  0x17   : >> { %939 = vmatprep.subr.bf16.mxu0 %v1035_v11  ;;  %915 = vmatprep.subr.bf16.mxu1 %v1035_v11  ;;  %v250_v26 = vrot.slane %v248_v21, 1  ;;  %v255_v27 = vrot.slane %v253_v22, 1  ;;  %v526_v38 = vrot.slane %v1016_v23, 1  ;;  %v586_v41 = vand.u32 %v1143_v14, %v1104_v6  ;;  %v1018_v48 = vld [vmem:[%s1155_s24 + $0x20] ss:$0 sps:$4 sm:$0x11]  }
  0x18   : >> { %v469_v29 = vrot.slane %v467_v25, 1  ;;  %v474_v31 = vrot.slane %v472_v28, 1  ;;  %v356_v42 = vrot.slane %v1013_v17, 1  ;;  %v357_v43 = vrot.slane %v1014_v18, 1 }
  0x19   : >> { %v251_v30 = vor.u32 %v250_v26, %v246_v20  ;;  %v527_v40 = vsel %vm355_vm5, %v525_v37, %v526_v38  ;;  %v417_v46 = vand.u32 %v1143_v14, %v1089_v3  ;;  %v649_v47 = vand.u32 %v1143_v14, %v1109_v7 }
  0x1a   : >> { %v470_v33 = vor.u32 %v469_v29, %v465_v24  ;;  %v358_v45 = vsel %vm355_vm5, %v356_v42, %v357_v43  ;;  %v636_v49 = vshll.u32 %v1017_v44, 16  ;;  %v634_v50 = vshrl.u32 %v1017_v44, 16 }
  0x1b   : >> { %v256_v35 = vsel %vm244_vm3, %v251_v30, %v255_v27  ;;  %v641_v52 = vshll.u32 %v1018_v48, 16  ;;  %v701_v56 = vand.u32 %v1143_v14, %v1114_v8  ;;  %v694_v57 = vrot.slane %v1017_v44, 1 }
  0x1c   : >> { %912 = vmatmul.mubr.msk.bf16.vlgmr.msra.gmra.mrb[0].mxu1 %vm257_vm4, %v256_v35  ;;  %v475_v36 = vsel %vm244_vm3, %v470_v33, %v474_v31  ;;  %v638_v51 = vrot.slane %v636_v49, 1  ;;  %v695_v58 = vrot.slane %v1018_v48, 1 }
  0x1d   : >> { %936 = vmatmul.mubr.msk.bf16.vlgmr.msra.gmra.mrb[0].mxu0 %vm257_vm4, %v475_v36  ;;  %916 = vmatpush3.bf16.msra.mxu1 %v312_v32  ;;  %v643_v54 = vrot.slane %v641_v52, 1 }
  0x1e   : >> { %940 = vmatpush3.bf16.msra.mxu0 %v532_v34  ;;  %917 = vmatprep.mubr.msk.bf16.mxu1 %vm1037_vm2, %v1035_v11  ;;  %v639_v53 = vor.u32 %v638_v51, %v634_v50  ;;  %v696_v59 = vsel %vm355_vm5, %v694_v57, %v695_v58 }
  0x1f   : >> { %941 = vmatprep.mubr.msk.bf16.mxu0 %vm1037_vm2, %v1035_v11  ;;  %945 = vmatprep.subr.bf16.mxu0 %v1035_v11 }
  0x20   : >> { %921 = vmatprep.subr.bf16.mxu1 %v1035_v11  ;;  %v644_v55 = vsel %vm244_vm3, %v639_v53, %v643_v54 }
  0x28   : >> { %918 = vmatmul.mubr.msk.bf16.vlgmr.msra.gmra.mrb[0].mxu1 %vm257_vm4, %v1013_v17 }
  0x29   : >> { %942 = vmatmul.mubr.msk.bf16.vlgmr.msra.gmra.mrb[0].mxu0 %vm257_vm4, %v527_v40  ;;  %922 = vmatpush3.bf16.msra.mxu1 %v363_v39 }
  0x2a   : >> { %946 = vmatpush3.bf16.msra.mxu0 %v586_v41  ;;  %923 = vmatprep.mubr.msk.bf16.mxu1 %vm1037_vm2, %v1035_v11 }
  0x2b   : >> { %947 = vmatprep.mubr.msk.bf16.mxu0 %vm1037_vm2, %v1035_v11  ;;  %951 = vmatprep.subr.bf16.mxu0 %v1035_v11 }
  0x2c   : >> { %927 = vmatprep.subr.bf16.mxu1 %v1035_v11 }
  0x34   : >> { %924 = vmatmul.mubr.msk.bf16.vlgmr.msra.gmra.mrb[0].mxu1 %vm257_vm4, %v358_v45 }
  0x35   : >> { %948 = vmatmul.mubr.msk.bf16.vlgmr.msra.gmra.mrb[0].mxu0 %vm257_vm4, %v1017_v44  ;;  %928 = vmatpush3.bf16.msra.mxu1 %v417_v46 }
  0x36   : >> { %952 = vmatpush3.bf16.msra.mxu0 %v649_v47  ;;  %929 = vmatprep.mubr.msk.bf16.mxu1 %vm1037_vm2, %v1035_v11 }
  0x37   : >> { %953 = vmatprep.mubr.msk.bf16.mxu0 %vm1037_vm2, %v1035_v11  ;;  %957 = vmatprep.subr.bf16.mxu0 %v1035_v11 }
  0x40   : >> { %930 = vmatmul.mubr.msk.bf16.vlgmr.msra.gmra.mrb[0].mxu1 %vm257_vm4, %v1162_v19 }
  0x41   : >> { %954 = vmatmul.mubr.msk.bf16.vlgmr.msra.gmra.mrb[0].mxu0 %vm257_vm4, %v644_v55 }
  0x42   : >> { %958 = vmatpush3.bf16.msra.mxu0 %v701_v56  ;;  %959 = vmatprep.mubr.msk.bf16.mxu0 %vm1037_vm2, %v1035_v11 }
  0x4d   : >> { %960 = vmatmul.mubr.msk.bf16.vlgmr.msra.gmra.mrb[0].mxu0 %vm257_vm4, %v696_v59 }
 0x113   : >> { %v453_v60 = vpop.f32.mrb[0].mxu1 }
 0x114   : >> { %v931_v61 = vpop.f32.mrb[1].mxu1 }
 0x115   : >> { %v456_v62 = vpop.f32.mrb[2].mxu1 }
 0x116   : >> { %v932_v63 = vpop.f32.mrb[3].mxu1 }
 0x120   : >> { %v737_v12 = vpop.f32.mrb[0].mxu0 }
 0x121   : >> { %v963_v13 = vadd.f32 %v737_v12, %v453_v60  ;;  %v961_v14 = vpop.f32.mrb[1].mxu0 }
 0x122   : >> { %v740_v15 = vpop.f32.mrb[2].mxu0 }
 0x123   : >> { %v752_v16 = vmul.f32 %v963_v13, %v1119_v9  ;;  %v964_v17 = vadd.f32 %v740_v15, %v456_v62  ;;  %v962_v11 = vpop.f32.mrb[3].mxu0 }
 0x125   : >> { %v760_v18 = vadd.f32 %v1124_v10, %v752_v16  ;;  %v753_v19 = vmul.f32 %v964_v17, %v1119_v9 }
 0x127   : >> { %v762_v20 = vmax.f32 %v760_v18, 0.0  ;;  %v761_v21 = vadd.f32 %v1124_v10, %v753_v19  ;;  %214 = sbr.rel (!%p212_p4) target bundleno = 17 (0x11), region = 77 }
 0x129   : >> { %v888_v22 = vpack.c.bf16 %v762_v20, %v762_v20  ;;  %v763_v23 = vmax.f32 %v761_v21, 0.0 }
 0x12b   : >> { %776 = vst.msk [vmem:[%s774_s26] sm:$0xf] %vm775_vm6, %v888_v22  ;;  %v889_v24 = vpack.c.bf16 %v763_v23, %v763_v23 }
 0x12d   : >> { %777 = vst.msk [vmem:[%s774_s26 + $0x4] sm:$0xf] %vm775_vm6, %v889_v24 }
 0x12e PF: > { %s14_s15 = sadd.s32 1, %s1029_s15  }
 0x12f   : > { %p11_p5 = scmp.ge.s32.totalorder %s14_s15, 4  }
 0x131   :  { %13 = sbr.rel (!%p11_p5) target bundleno = 1 (0x1), region = 88 }

// kernel: attention_unet_forward.16
= control target key start
LH: loop header
LB: loop body
LE: loop exit
PB: predicated region body
PF: predicated region fallthrough
CT: control target
= control target key end

     0   :  { %s255_s6 = smov 0   ;;  %s272_s0 = inlined_call_operand.vmem [shape: bf16[2,4,2,4,16], index: 0, kind: input, shape index: {}]   ;;  %s273_s1 = inlined_call_operand.vmem [shape: bf16[2,4,4,8], index: 1, kind: output, shape index: {}]  }
   0x1 LB: > { %s210_s7 = sadd.s32 4294967295, %s242_s6   ;;  %p214_p0 = scmp.ge.s32.totalorder %s242_s6, 1  ;;  %s242_s6 = sphi %s255_s6, %s11_s6  }
   0x2   : > { %p87_p1 = scmp.lt.s32.totalorder %s242_s6, 3 }
   0x4   : > { %p88_p2 = pnand %p214_p0, %p87_p1 }
   0x5   : > { %p107_p3 = scmp.lt.s32.totalorder (!%p88_p2), %s210_s7, 1  ;;  %s244_s12 = smov (!%p88_p2), 120   ;;  %vm150_vm0 = vcmask (!%p88_p2), 58368  }
   0x6   : > { %91 = sbr.rel (%p88_p2) target bundleno = 142 (0x8e), region = 24 }
   0xd   : > { %s275_s7 = smov (!%p107_p3, %s210_s7), 1 }
   0xe   : > { %s225_s8 = sshll.u32 %s275_s7, 4  ;;  %s226_s13 = sshll.u32 %s275_s7, 3 }
   0xf   : > { %s111_s11 = scalar_lea.vmem %s272_s0, %s225_s8  ;;  %s116_s16 = scalar_lea.vmem %s273_s1, %s226_s13 }
  0x10   : > { %v119_v0 = vld [vmem:[%s111_s11 + $0x8] sm:$0x3]  ;;  %v221_v1 = vld [vmem:[%s111_s11 + $0xa] sm:$0x3]  ;;  %v117_v2 = vld [vmem:[%s111_s11] sm:$0x3] }
  0x11   : > { %v128_v3 = vmax.bf16 %v221_v1, %v119_v0  ;;  %v219_v4 = vld [vmem:[%s111_s11 + $0x2] sm:$0x3]  ;;  %v120_v5 = vld [vmem:[%s111_s11 + $0xc] sm:$0x3]  ;;  %v222_v6 = vld [vmem:[%s111_s11 + $0xe] sm:$0x3] }
  0x12   : > { %v126_v7 = vmax.bf16 %v219_v4, %v117_v2  ;;  %v118_v8 = vld [vmem:[%s111_s11 + $0x4] sm:$0x3]  ;;  %v220_v9 = vld [vmem:[%s111_s11 + $0x6] sm:$0x3]  ;;  %v129_v10 = vmax.bf16 %v222_v6, %v120_v5 }
  0x13   : > { %138 = vrot.lane.b32.xlu1 %v128_v3, %s244_s12  ;;  %v127_v11 = vmax.bf16 %v220_v9, %v118_v8 }
  0x14   : > { %134 = vrot.lane.b32.xlu0 %v126_v7, %s244_s12 }
  0x17   : > { %140 = vrot.lane.b32.xlu1 %v129_v10, %s244_s12 }
  0x18   : > { %136 = vrot.lane.b32.xlu0 %v127_v11, %s244_s12 }
  0x85   : > { %v139_v12 = vpop.permute.xlu1 %138 }
  0x86   : > { %v148_v13 = vmax.bf16 %v139_v12, %v128_v3  ;;  %v135_v14 = vpop.permute.xlu0 %134 }
  0x87   : > { %v146_v15 = vmax.bf16 %v135_v14, %v126_v7 }
  0x88   : > { %153 = vst.msk [vmem:[%s116_s16 + $0x4] sm:$0x3] %vm150_vm0, %v148_v13 }
  0x89   : > { %151 = vst.msk [vmem:[%s116_s16] sm:$0x3] %vm150_vm0, %v146_v15  ;;  %v141_v16 = vpop.permute.xlu1 %140 }
  0x8a   : > { %v149_v17 = vmax.bf16 %v141_v16, %v129_v10  ;;  %v137_v18 = vpop.permute.xlu0 %136 }
  0x8b   : > { %v147_v19 = vmax.bf16 %v137_v18, %v127_v11 }
  0x8c   : > { %154 = vst.msk [vmem:[%s116_s16 + $0x6] sm:$0x3] %vm150_vm0, %v149_v17 }
  0x8d   : > { %152 = vst.msk [vmem:[%s116_s16 + $0x2] sm:$0x3] %vm150_vm0, %v147_v19 }
  0x8e PF: > { %s11_s6 = sadd.s32 1, %s242_s6  }
  0x8f   : > { %p8_p4 = scmp.ge.s32.totalorder %s11_s6, 4  }
  0x91   :  { %10 = sbr.rel (!%p8_p4) target bundleno = 1 (0x1), region = 55 }

// kernel: attention_unet_forward.15
= control target key start
LH: loop header
LB: loop body
LE: loop exit
PB: predicated region body
PF: predicated region fallthrough
CT: control target
= control target key end

     0   :  { %s986_s15 = smov 0   ;;  %s1138_s0 = inlined_call_operand.vmem [shape: bf16[2,10,10,4], index: 0, kind: input, shape index: {}]   ;;  %s1139_s1 = inlined_call_operand.vmem [shape: bf16[3,3,4,8], index: 1, kind: input, shape index: {}]   ;;  %s1140_s2 = inlined_call_operand.vmem [shape: f32[1,8], index: 2, kind: input, shape index: {}]   ;;  %s1141_s3 = inlined_call_operand.vmem [shape: f32[1,8], index: 3, kind: input, shape index: {}]   ;;  %s1142_s4 = inlined_call_operand.vmem [shape: bf16[2,8,8,8], index: 4, kind: output, shape index: {}]  }
   0x1 LB: > { %s785_s16 = sadd.s32 4294967295, %s953_s15   ;;  %p789_p0 = scmp.ge.s32.totalorder %s953_s15, 1  ;;  %s953_s15 = sphi %s986_s15, %s14_s15  }
   0x2   : > { %p162_p1 = scmp.lt.s32.totalorder %s953_s15, 3 }
   0x4   : > { %p163_p2 = pnand %p789_p0, %p162_p1 }
   0x5   : > { %p188_p3 = scmp.lt.s32.totalorder (!%p163_p2), %s785_s16, 1  ;;  %v997_v0 = vld [vmem:[%s1139_s1] sm:$0x3] (!%p163_p2)  ;;  %v1002_v1 = vld [vmem:[%s1139_s1 + $0x2] sm:$0x3] (!%p163_p2)  ;;  %s1059_s23 = smov (!%p163_p2), 0  }
   0x6   : > { %166 = sbr.rel (%p163_p2) target bundleno = 300 (0x12c), region = 36  ;;  %v1007_v2 = vld [vmem:[%s1139_s1 + $0x4] sm:$0x3] (!%p163_p2)  ;;  %v1012_v3 = vld [vmem:[%s1139_s1 + $0x6] sm:$0x3] (!%p163_p2) }
   0x7   : > { %v1017_v4 = vld [vmem:[%s1139_s1 + $0x8] sm:$0x3] (!%p163_p2)  ;;  %v1022_v5 = vld [vmem:[%s1139_s1 + $0xa] sm:$0x3] (!%p163_p2)  ;;  %v1027_v6 = vld [vmem:[%s1139_s1 + $0xc] sm:$0x3] (!%p163_p2) }
   0x8   : > { %v1032_v7 = vld [vmem:[%s1139_s1 + $0xe] sm:$0x3] (!%p163_p2)  ;;  %v1037_v8 = vld [vmem:[%s1139_s1 + $0x10] sm:$0x3] (!%p163_p2)  ;;  %v1042_v9 = vld [vmem:[%s1140_s2] ss:$0 sm:$0xff] (!%p163_p2) }
   0x9   : > { %v1047_v10 = vld [vmem:[%s1141_s3] ss:$0 sm:$0xff] (!%p163_p2) }
   0xd   : > { %s1144_s16 = smov (!%p188_p3, %s785_s16), 1 }
   0xe   : > { %s921_s11 = smul.u32 80, %s1144_s16  ;;  %s818_s12 = sshll.u32 %s1144_s16, 5 }
   0xf   : > { %s1052_s19 = scalar_lea.vmem %s1142_s4, %s818_s12 }
  0x10   : > { %s1057_s22 = scalar_lea.vmem %s1138_s0, %s921_s11 }
  0x11 LB: >> { %vm249_vm0 = vcmask 1041408   ;;  %v959_v11 = vmov 0.0   ;;  %s819_s16 = sshll.u32 %s957_s23, 3  ;;  %vm960_vm1 = vmmov 0   ;;  %vm245_vm2 = vcmask 31744   ;;  %s815_s25 = sshll.u32 %s957_s23, 2  ;;  %s957_s23 = sphi %s1059_s23, %s215_s23  }
  0x12   : >> { %862 = vmatprep.subr.bf16.mxu0 %v959_v11  ;;  %838 = vmatprep.subr.bf16.mxu1 %v959_v11  ;;  %v450_v12 = vsel %vm249_vm0, %v1017_v4, 0  ;;  %v251_v13 = vsel %vm249_vm0, %v1002_v1, 0  ;;  %s1076_s24 = scalar_lea.vmem %s1057_s22, %s819_s16  ;;  %v297_v27 = vsel %vm249_vm0, %v997_v0, 0  ;;  %v498_v29 = vsel %vm249_vm0, %v1022_v5, 0  ;;  %s712_s26 = scalar_lea.vmem %s1052_s19, %s815_s25 }
  0x13   : >> { %863 = vmatpush3.bf16.msra.mxu0 %v450_v12  ;;  %839 = vmatpush3.bf16.msra.mxu1 %v251_v13  ;;  %v219_v14 = vld [vmem:[%s1076_s24] sm:$0xf]  ;;  %v220_v15 = vld [vmem:[%s1076_s24 + $0x4] sm:$0x1]  ;;  %v796_v16 = vld [vmem:[%s1076_s24 + $0x8] sm:$0xf] }
  0x14   : >> { %840 = vmatprep.mubr.msk.bf16.mxu1 %vm960_vm1, %v959_v11  ;;  %864 = vmatprep.mubr.msk.bf16.mxu0 %vm960_vm1, %v959_v11  ;;  %v801_v17 = vcombine.low %v219_v14, %v220_v15  ;;  %v797_v18 = vld [vmem:[%s1076_s24 + $0xc] sm:$0x1]  ;;  %v344_v31 = vsel %vm249_vm0, %v1007_v2, 0  ;;  %v545_v32 = vsel %vm249_vm0, %v1027_v6, 0  ;;  %v800_v33 = vld [vmem:[%s1076_s24 + $0x14] sm:$0x1] }
  0x15   : >> { %868 = vmatprep.subr.bf16.mxu0 %v959_v11  ;;  %844 = vmatprep.subr.bf16.mxu1 %v959_v11  ;;  %v806_v19 = vcombine.low %v796_v16, %v797_v18  ;;  %v799_v35 = vld [vmem:[%s1076_s24 + $0x10] sm:$0xf]  ;;  %v391_v37 = vsel %vm249_vm0, %v1012_v3, 0  ;;  %v604_v38 = vsel %vm249_vm0, %v1032_v7, 0  ;;  %v652_v43 = vsel %vm249_vm0, %v1037_v8, 0  ;;  %s215_s23 = sadd.s32 1, %s957_s23  }
  0x16   : >> { %v239_v20 = vshrl.u32 %v801_v17, 16  ;;  %v241_v21 = vshll.u32 %v801_v17, 16  ;;  %v339_v34 = vrot.slane %v801_v17, 1  ;;  %v810_v36 = vcombine.low %v799_v35, %v800_v33  ;;  %p212_p4 = scmp.ge.s32.totalorder %s215_s23, 8  }
  0x17   : >> { %v440_v22 = vshrl.u32 %v806_v19, 16  ;;  %v442_v23 = vshll.u32 %v806_v19, 16  ;;  %v493_v30 = vrot.slane %v806_v19, 1  ;;  %vm713_vm3 = vcmask 60416  }
  0x18   : >> { %v243_v24 = vrot.slane %v241_v21, 1  ;;  %v596_v39 = vshll.u32 %v810_v36, 16  ;;  %v594_v40 = vshrl.u32 %v810_v36, 16  ;;  %v647_v44 = vrot.slane %v810_v36, 1 }
  0x19   : >> { %v444_v25 = vrot.slane %v442_v23, 1 }
  0x1a   : >> { %v244_v26 = vor.u32 %v243_v24, %v239_v20  ;;  %v598_v41 = vrot.slane %v596_v39, 1 }
  0x1b   : >> { %v445_v28 = vor.u32 %v444_v25, %v440_v22 }
  0x1c   : >> { %841 = vmatmul.mubr.msk.bf16.vlgmr.msra.gmra.mrb[0].mxu1 %vm245_vm2, %v244_v26  ;;  %v599_v42 = vor.u32 %v598_v41, %v594_v40 }
  0x1d   : >> { %865 = vmatmul.mubr.msk.bf16.vlgmr.msra.gmra.mrb[0].mxu0 %vm245_vm2, %v445_v28  ;;  %845 = vmatpush3.bf16.msra.mxu1 %v297_v27 }
  0x1e   : >> { %869 = vmatpush3.bf16.msra.mxu0 %v498_v29  ;;  %846 = vmatprep.mubr.msk.bf16.mxu1 %vm960_vm1, %v959_v11 }
  0x1f   : >> { %870 = vmatprep.mubr.msk.bf16.mxu0 %vm960_vm1, %v959_v11  ;;  %874 = vmatprep.subr.bf16.mxu0 %v959_v11 }
  0x20   : >> { %850 = vmatprep.subr.bf16.mxu1 %v959_v11 }
  0x28   : >> { %847 = vmatmul.mubr.msk.bf16.vlgmr.msra.gmra.mrb[0].mxu1 %vm245_vm2, %v219_v14 }
  0x29   : >> { %871 = vmatmul.mubr.msk.bf16.vlgmr.msra.gmra.mrb[0].mxu0 %vm245_vm2, %v493_v30  ;;  %851 = vmatpush3.bf16.msra.mxu1 %v344_v31 }
  0x2a   : >> { %875 = vmatpush3.bf16.msra.mxu0 %v545_v32  ;;  %852 = vmatprep.mubr.msk.bf16.mxu1 %vm960_vm1, %v959_v11 }
  0x2b   : >> { %876 = vmatprep.mubr.msk.bf16.mxu0 %vm960_vm1, %v959_v11  ;;  %880 = vmatprep.subr.bf16.mxu0 %v959_v11 }
  0x2c   : >> { %856 = vmatprep.subr.bf16.mxu1 %v959_v11 }
  0x34   : >> { %853 = vmatmul.mubr.msk.bf16.vlgmr.msra.gmra.mrb[0].mxu1 %vm245_vm2, %v339_v34 }
  0x35   : >> { %877 = vmatmul.mubr.msk.bf16.vlgmr.msra.gmra.mrb[0].mxu0 %vm245_vm2, %v799_v35  ;;  %857 = vmatpush3.bf16.msra.mxu1 %v391_v37 }
  0x36   : >> { %881 = vmatpush3.bf16.msra.mxu0 %v604_v38  ;;  %858 = vmatprep.mubr.msk.bf16.mxu1 %vm960_vm1, %v959_v11 }
  0x37   : >> { %882 = vmatprep.mubr.msk.bf16.mxu0 %vm960_vm1, %v959_v11  ;;  %886 = vmatprep.subr.bf16.mxu0 %v959_v11 }
  0x40   : >> { %859 = vmatmul.mubr.msk.bf16.vlgmr.msra.gmra.mrb[0].mxu1 %vm245_vm2, %v796_v16 }
  0x41   : >> { %883 = vmatmul.mubr.msk.bf16.vlgmr.msra.gmra.mrb[0].mxu0 %vm245_vm2, %v599_v42 }
  0x42   : >> { %887 = vmatpush3.bf16.msra.mxu0 %v652_v43  ;;  %888 = vmatprep.mubr.msk.bf16.mxu0 %vm960_vm1, %v959_v11 }
  0x4d   : >> { %889 = vmatmul.mubr.msk.bf16.vlgmr.msra.gmra.mrb[0].mxu0 %vm245_vm2, %v647_v44 }
 0x113   : >> { %v427_v45 = vpop.f32.mrb[0].mxu1 }
 0x114   : >> { %v860_v46 = vpop.f32.mrb[1].mxu1 }
 0x115   : >> { %v430_v47 = vpop.f32.mrb[2].mxu1 }
 0x116   : >> { %v861_v48 = vpop.f32.mrb[3].mxu1 }
 0x120   : >> { %v688_v49 = vpop.f32.mrb[0].mxu0 }
 0x121   : >> { %v892_v50 = vadd.f32 %v688_v49, %v427_v45  ;;  %v890_v51 = vpop.f32.mrb[1].mxu0 }
 0x122   : >> { %v691_v52 = vpop.f32.mrb[2].mxu0 }
 0x123   : >> { %v701_v53 = vmul.f32 %v892_v50, %v1042_v9  ;;  %v891_v54 = vpop.f32.mrb[3].mxu0 }
 0x125   : >> { %v708_v55 = vadd.f32 %v1047_v10, %v701_v53  ;;  %214 = sbr.rel (!%p212_p4) target bundleno = 17 (0x11), region = 77 }
 0x127   : >> { %v709_v56 = vmax.f32 %v708_v55, 0.0 }
 0x129   : >> { %v710_v57 = vpack.c.bf16 %v709_v56, %v709_v56 }
 0x12b   : >> { %714 = vst.msk [vmem:[%s712_s26] sm:$0xf] %vm713_vm3, %v710_v57 }
 0x12c PF: > { %s14_s15 = sadd.s32 1, %s953_s15  }
 0x12d   : > { %p11_p5 = scmp.ge.s32.totalorder %s14_s15, 4  }
 0x12f   :  { %13 = sbr.rel (!%p11_p5) target bundleno = 1 (0x1), region = 88 }

// kernel: attention_unet_forward.17
= control target key start
LH: loop header
LB: loop body
LE: loop exit
PB: predicated region body
PF: predicated region fallthrough
CT: control target
= control target key end

     0   :  { %s970_s15 = smov 0   ;;  %s1119_s0 = inlined_call_operand.vmem [shape: bf16[2,6,6,8], index: 0, kind: input, shape index: {}]   ;;  %s1120_s1 = inlined_call_operand.vmem [shape: bf16[3,3,8,8], index: 1, kind: input, shape index: {}]   ;;  %s1121_s2 = inlined_call_operand.vmem [shape: f32[1,8], index: 2, kind: input, shape index: {}]   ;;  %s1122_s3 = inlined_call_operand.vmem [shape: f32[1,8], index: 3, kind: input, shape index: {}]   ;;  %s1123_s4 = inlined_call_operand.vmem [shape: bf16[2,4,4,8], index: 4, kind: output, shape index: {}]  }
   0x1 LB: > { %s773_s16 = sadd.s32 4294967295, %s937_s15   ;;  %p777_p0 = scmp.ge.s32.totalorder %s937_s15, 1  ;;  %s937_s15 = sphi %s970_s15, %s14_s15  }
   0x2   : > { %p162_p1 = scmp.lt.s32.totalorder %s937_s15, 3 }
   0x4   : > { %p163_p2 = pnand %p777_p0, %p162_p1 }
   0x5   : > { %p188_p3 = scmp.lt.s32.totalorder (!%p163_p2), %s773_s16, 1  ;;  %v981_v0 = vld [vmem:[%s1120_s1] sm:$0xf] (!%p163_p2)  ;;  %v986_v1 = vld [vmem:[%s1120_s1 + $0x4] sm:$0xf] (!%p163_p2)  ;;  %s1043_s23 = smov (!%p163_p2), 0  }
   0x6   : > { %166 = sbr.rel (%p163_p2) target bundleno = 299 (0x12b), region = 36  ;;  %v991_v2 = vld [vmem:[%s1120_s1 + $0x8] sm:$0xf] (!%p163_p2)  ;;  %v996_v3 = vld [vmem:[%s1120_s1 + $0xc] sm:$0xf] (!%p163_p2) }
   0x7   : > { %v1001_v4 = vld [vmem:[%s1120_s1 + $0x10] sm:$0xf] (!%p163_p2)  ;;  %v1006_v5 = vld [vmem:[%s1120_s1 + $0x14] sm:$0xf] (!%p163_p2)  ;;  %v1011_v6 = vld [vmem:[%s1120_s1 + $0x18] sm:$0xf] (!%p163_p2) }
   0x8   : > { %v1016_v7 = vld [vmem:[%s1120_s1 + $0x1c] sm:$0xf] (!%p163_p2)  ;;  %v1021_v8 = vld [vmem:[%s1120_s1 + $0x20] sm:$0xf] (!%p163_p2) }
   0x9   : > { %v1026_v9 = vld [vmem:[%s1121_s2] ss:$0 sm:$0xff] (!%p163_p2) }
   0xa   : > { %v1031_v10 = vld [vmem:[%s1122_s3] ss:$0 sm:$0xff] (!%p163_p2) }
   0xd   : > { %s1125_s16 = smov (!%p188_p3, %s773_s16), 1 }
   0xe   : > { %s905_s11 = smul.u32 24, %s1125_s16  ;;  %s803_s12 = sshll.u32 %s1125_s16, 3 }
   0xf   : > { %s1036_s19 = scalar_lea.vmem %s1123_s4, %s803_s12 }
  0x10   : > { %s1041_s22 = scalar_lea.vmem %s1119_s0, %s905_s11 }
  0x11 LB: >> { %vm241_vm0 = vcmask 1043456   ;;  %v943_v11 = vmov 0.0   ;;  %s781_s16 = sshll.u32 %s941_s23, 2  ;;  %vm944_vm1 = vmmov 0   ;;  %vm237_vm2 = vcmask 64512   ;;  %s800_s25 = sshll.u32 %s941_s23, 1  ;;  %s941_s23 = sphi %s1043_s23, %s215_s23  }
  0x12   : >> { %846 = vmatprep.subr.bf16.mxu0 %v943_v11  ;;  %822 = vmatprep.subr.bf16.mxu1 %v943_v11  ;;  %v440_v12 = vsel %vm241_vm0, %v1001_v4, 0  ;;  %v243_v13 = vsel %vm241_vm0, %v986_v1, 0  ;;  %s1060_s24 = scalar_lea.vmem %s1041_s22, %s781_s16  ;;  %v488_v26 = vsel %vm241_vm0, %v1006_v5, 0  ;;  %v289_v27 = vsel %vm241_vm0, %v981_v0, 0  ;;  %s700_s26 = scalar_lea.vmem %s1036_s19, %s800_s25 }
  0x13   : >> { %847 = vmatpush3.bf16.msra.mxu0 %v440_v12  ;;  %823 = vmatpush3.bf16.msra.mxu1 %v243_v13  ;;  %v218_v14 = vld [vmem:[%s1060_s24] sm:$0x7]  ;;  %v783_v15 = vld [vmem:[%s1060_s24 + $0x4] sm:$0x7]  ;;  %v535_v29 = vsel %vm241_vm0, %v1011_v6, 0  ;;  %v336_v30 = vsel %vm241_vm0, %v991_v2, 0 }
  0x14   : >> { %824 = vmatprep.mubr.msk.bf16.mxu1 %vm944_vm1, %v943_v11  ;;  %848 = vmatprep.mubr.msk.bf16.mxu0 %vm944_vm1, %v943_v11  ;;  %v786_v16 = vcombine.low %v218_v14, %v218_v14  ;;  %v791_v17 = vcombine.low %v783_v15, %v783_v15  ;;  %v785_v31 = vld [vmem:[%s1060_s24 + $0x8] sm:$0x7]  ;;  %v592_v34 = vsel %vm241_vm0, %v1016_v7, 0  ;;  %v383_v35 = vsel %vm241_vm0, %v996_v3, 0  ;;  %s215_s23 = sadd.s32 1, %s941_s23  }
  0x15   : >> { %852 = vmatprep.subr.bf16.mxu0 %v943_v11  ;;  %828 = vmatprep.subr.bf16.mxu1 %v943_v11  ;;  %v795_v33 = vcombine.low %v785_v31, %v785_v31  ;;  %v640_v40 = vsel %vm241_vm0, %v1021_v8, 0  ;;  %vm701_vm3 = vcmask 58368   ;;  %p212_p4 = scmp.ge.s32.totalorder %s215_s23, 4  }
  0x16   : >> { %v231_v18 = vshrl.u32 %v786_v16, 16  ;;  %v233_v19 = vshll.u32 %v786_v16, 16  ;;  %v430_v20 = vshrl.u32 %v791_v17, 16  ;;  %v432_v21 = vshll.u32 %v791_v17, 16 }
  0x17   : >> { %v483_v28 = vrot.slane %v791_v17, 1  ;;  %v331_v32 = vrot.slane %v786_v16, 1  ;;  %v584_v36 = vshll.u32 %v795_v33, 16  ;;  %v582_v37 = vshrl.u32 %v795_v33, 16 }
  0x18   : >> { %v235_v22 = vrot.slane %v233_v19, 1  ;;  %v434_v23 = vrot.slane %v432_v21, 1  ;;  %v635_v41 = vrot.slane %v795_v33, 1 }
  0x19   : >> { %v586_v38 = vrot.slane %v584_v36, 1 }
  0x1a   : >> { %v236_v24 = vor.u32 %v235_v22, %v231_v18  ;;  %v435_v25 = vor.u32 %v434_v23, %v430_v20 }
  0x1b   : >> { %v587_v39 = vor.u32 %v586_v38, %v582_v37 }
  0x1c   : >> { %825 = vmatmul.mubr.msk.bf16.vlgmr.msra.gmra.mrb[0].mxu1 %vm237_vm2, %v236_v24  ;;  %849 = vmatmul.mubr.msk.bf16.vlgmr.msra.gmra.mrb[0].mxu0 %vm237_vm2, %v435_v25 }
  0x1d   : >> { %853 = vmatpush3.bf16.msra.mxu0 %v488_v26  ;;  %829 = vmatpush3.bf16.msra.mxu1 %v289_v27 }
  0x1e   : >> { %830 = vmatprep.mubr.msk.bf16.mxu1 %vm944_vm1, %v943_v11  ;;  %854 = vmatprep.mubr.msk.bf16.mxu0 %vm944_vm1, %v943_v11 }
  0x1f   : >> { %858 = vmatprep.subr.bf16.mxu0 %v943_v11  ;;  %834 = vmatprep.subr.bf16.mxu1 %v943_v11 }
  0x28   : >> { %831 = vmatmul.mubr.msk.bf16.vlgmr.msra.gmra.mrb[0].mxu1 %vm237_vm2, %v218_v14  ;;  %855 = vmatmul.mubr.msk.bf16.vlgmr.msra.gmra.mrb[0].mxu0 %vm237_vm2, %v483_v28 }
  0x29   : >> { %859 = vmatpush3.bf16.msra.mxu0 %v535_v29  ;;  %835 = vmatpush3.bf16.msra.mxu1 %v336_v30 }
  0x2a   : >> { %836 = vmatprep.mubr.msk.bf16.mxu1 %vm944_vm1, %v943_v11  ;;  %860 = vmatprep.mubr.msk.bf16.mxu0 %vm944_vm1, %v943_v11 }
  0x2b   : >> { %864 = vmatprep.subr.bf16.mxu0 %v943_v11  ;;  %840 = vmatprep.subr.bf16.mxu1 %v943_v11 }
  0x34   : >> { %837 = vmatmul.mubr.msk.bf16.vlgmr.msra.gmra.mrb[0].mxu1 %vm237_vm2, %v331_v32  ;;  %861 = vmatmul.mubr.msk.bf16.vlgmr.msra.gmra.mrb[0].mxu0 %vm237_vm2, %v785_v31 }
  0x35   : >> { %865 = vmatpush3.bf16.msra.mxu0 %v592_v34  ;;  %841 = vmatpush3.bf16.msra.mxu1 %v383_v35 }
  0x36   : >> { %842 = vmatprep.mubr.msk.bf16.mxu1 %vm944_vm1, %v943_v11  ;;  %866 = vmatprep.mubr.msk.bf16.mxu0 %vm944_vm1, %v943_v11 }
  0x37   : >> { %870 = vmatprep.subr.bf16.mxu0 %v943_v11 }
  0x40   : >> { %843 = vmatmul.mubr.msk.bf16.vlgmr.msra.gmra.mrb[0].mxu1 %vm237_vm2, %v783_v15  ;;  %867 = vmatmul.mubr.msk.bf16.vlgmr.msra.gmra.mrb[0].mxu0 %vm237_vm2, %v587_v39 }
  0x41   : >> { %871 = vmatpush3.bf16.msra.mxu0 %v640_v40  ;;  %872 = vmatprep.mubr.msk.bf16.mxu0 %vm944_vm1, %v943_v11 }
  0x4c   : >> { %873 = vmatmul.mubr.msk.bf16.vlgmr.msra.gmra.mrb[0].mxu0 %vm237_vm2, %v635_v41 }
 0x113   : >> { %v419_v42 = vpop.f32.mrb[0].mxu1 }
 0x114   : >> { %v844_v43 = vpop.f32.mrb[1].mxu1 }
 0x115   : >> { %v422_v44 = vpop.f32.mrb[2].mxu1 }
 0x116   : >> { %v845_v45 = vpop.f32.mrb[3].mxu1 }
 0x11f   : >> { %v676_v46 = vpop.f32.mrb[0].mxu0 }
 0x120   : >> { %v876_v47 = vadd.f32 %v676_v46, %v419_v42  ;;  %v874_v48 = vpop.f32.mrb[1].mxu0 }
 0x121   : >> { %v679_v49 = vpop.f32.mrb[2].mxu0 }
 0x122   : >> { %v689_v50 = vmul.f32 %v876_v47, %v1026_v9  ;;  %v875_v51 = vpop.f32.mrb[3].mxu0 }
 0x124   : >> { %v696_v52 = vadd.f32 %v1031_v10, %v689_v50  ;;  %214 = sbr.rel (!%p212_p4) target bundleno = 17 (0x11), region = 77 }
 0x126   : >> { %v697_v53 = vmax.f32 %v696_v52, 0.0 }
 0x128   : >> { %v698_v54 = vpack.c.bf16 %v697_v53, %v697_v53 }
 0x12a   : >> { %702 = vst.msk [vmem:[%s700_s26] sm:$0x3] %vm701_vm3, %v698_v54 }
 0x12b PF: > { %s14_s15 = sadd.s32 1, %s937_s15  }
 0x12c   : > { %p11_p5 = scmp.ge.s32.totalorder %s14_s15, 4  }
 0x12e   :  { %13 = sbr.rel (!%p11_p5) target bundleno = 1 (0x1), region = 88 }

// kernel: attention_unet_forward.19
= control target key start
LH: loop header
LB: loop body
LE: loop exit
PB: predicated region body
PF: predicated region fallthrough
CT: control target
= control target key end

     0   :  { %s490_s15 = smov 0   ;;  %s532_s0 = inlined_call_operand.vmem [shape: bf16[2,4,4,8], index: 0, kind: input, shape index: {}]   ;;  %s533_s1 = inlined_call_operand.vmem [shape: bf16[8,16], index: 1, kind: input, shape index: {}]   ;;  %s534_s2 = inlined_call_operand.vmem [shape: bf16[8,16], index: 2, kind: input, shape index: {}]   ;;  %s535_s3 = inlined_call_operand.vmem [shape: f32[1,16], index: 3, kind: input, shape index: {}]   ;;  %s536_s4 = inlined_call_operand.vmem [shape: bf16[2,8,4,16], index: 4, kind: output, shape index: {}]  }
   0x1 LB: > { %s389_s16 = sadd.s32 4294967295, %s457_s15   ;;  %p393_p0 = scmp.ge.s32.totalorder %s457_s15, 1  ;;  %s457_s15 = sphi %s490_s15, %s14_s15  }
   0x2   : > { %p162_p1 = scmp.lt.s32.totalorder %s457_s15, 3 }
   0x4   : > { %p163_p2 = pnand %p393_p0, %p162_p1 }
   0x5   : > { %p188_p3 = scmp.lt.s32.totalorder (!%p163_p2), %s389_s16, 1  ;;  %v199_v0 = vld [vmem:[%s533_s1] sm:$0xf] (!%p163_p2)  ;;  %s517_s5 = smov (!%p163_p2), 0  }
   0x6   : > { %166 = sbr.rel (%p163_p2) target bundleno = 240 (0xf0), region = 36  ;;  %v200_v1 = vld [vmem:[%s534_s2] sm:$0xf] (!%p163_p2) }
   0x7   : > { %v399_v2 = vld [vmem:[%s535_s3] ss:$0 sm:$0xff] (!%p163_p2) }
   0xd   : > { %s538_s16 = smov (!%p188_p3, %s389_s16), 1 }
   0xe   : > { %s409_s23 = sshll.u32 %s538_s16, 3  ;;  %s410_s24 = sshll.u32 %s538_s16, 4 }
   0xf   : > { %s510_s27 = scalar_lea.vmem %s532_s0, %s409_s23  ;;  %s515_s30 = scalar_lea.vmem %s536_s4, %s410_s24 }
  0x10 LB: >> { %vm221_vm0 = vcmask 1043456   ;;  %v463_v3 = vmov 0.0   ;;  %s398_s6 = sshll.u32 %s461_s5, 1  ;;  %vm217_vm1 = vcmask 64512   ;;  %vm464_vm2 = vmmov 0   ;;  %s411_s8 = sshll.u32 %s461_s5, 2  ;;  %s461_s5 = sphi %s517_s5, %s207_s5  }
  0x11   : >> { %417 = vmatprep.subr.bf16.mxu0 %v463_v3  ;;  %423 = vmatprep.subr.bf16.mxu1 %v463_v3  ;;  %v223_v4 = vsel %vm221_vm0, %v199_v0, 0  ;;  %v266_v5 = vsel %vm221_vm0, %v200_v1, 0  ;;  %s209_s7 = scalar_lea.vmem %s510_s27, %s398_s6  ;;  %s312_s9 = scalar_lea.vmem %s515_s30, %s411_s8  ;;  %vm313_vm3 = vcmask 123904  }
  0x12   : >> { %418 = vmatpush3.bf16.msra.mxu0 %v223_v4  ;;  %424 = vmatpush3.bf16.msra.mxu1 %v266_v5  ;;  %v210_v6 = vld [vmem:[%s209_s7] sm:$0x3]  ;;  %s207_s5 = sadd.s32 1, %s461_s5  }
  0x13   : >> { %419 = vmatprep.mubr.msk.bf16.mxu0 %vm464_vm2, %v463_v3  ;;  %425 = vmatprep.mubr.msk.bf16.mxu1 %vm464_vm2, %v463_v3  ;;  %p204_p4 = scmp.ge.s32.totalorder %s207_s5, 4  }
  0x15   : >> { %420 = vmatmul.mubr.msk.bf16.vlgmr.msra.gmra.mrb[0].mxu0 %vm217_vm1, %v210_v6  ;;  %426 = vmatmul.mubr.msk.bf16.vlgmr.msra.gmra.mrb[0].mxu1 %vm217_vm1, %v210_v6 }
  0xe8   : >> { %v259_v7 = vpop.f32.mrb[0].mxu0  ;;  %v302_v8 = vpop.f32.mrb[0].mxu1 }
  0xe9   : >> { %v260_v9 = vadd.f32 %v399_v2, %v259_v7  ;;  %v303_v10 = vadd.f32 %v399_v2, %v302_v8  ;;  %v421_v11 = vpop.f32.mrb[1].mxu0  ;;  %v427_v12 = vpop.f32.mrb[1].mxu1  ;;  %206 = sbr.rel (!%p204_p4) target bundleno = 16 (0x10), region = 76 }
  0xea   : >> { %v262_v13 = vpop.f32.mrb[2].mxu0  ;;  %v305_v14 = vpop.f32.mrb[2].mxu1 }
  0xeb   : >> { %v308_v15 = vmax.f32 %v260_v9, 0.0  ;;  %v315_v16 = vmax.f32 %v303_v10, 0.0  ;;  %v422_v17 = vpop.f32.mrb[3].mxu0  ;;  %v428_v18 = vpop.f32.mrb[3].mxu1 }
  0xed   : >> { %v309_v19 = vpack.c.bf16 %v308_v15, %v308_v15  ;;  %v316_v20 = vpack.c.bf16 %v315_v16, %v315_v16 }
  0xef   : >> { %314 = vst.msk [vmem:[%s312_s9] sm:$0x3] %vm313_vm3, %v309_v19  ;;  %406 = vst.msk [vmem:[%s312_s9 + $0x2] sm:$0x3] %vm313_vm3, %v316_v20 }
  0xf0 PF: > { %s14_s15 = sadd.s32 1, %s457_s15  }
  0xf1   : > { %p11_p5 = scmp.ge.s32.totalorder %s14_s15, 4  }
  0xf3   :  { %13 = sbr.rel (!%p11_p5) target bundleno = 1 (0x1), region = 87 }

// kernel: attention_unet_forward.20
= control target key start
LH: loop header
LB: loop body
LE: loop exit
PB: predicated region body
PF: predicated region fallthrough
CT: control target
= control target key end

     0   :  { %vm120_vm0 = vcmask 1043456   ;;  %vm95_vm1 = vcmask 64512   ;;  %vm549_vm2 = vcmask 31744   ;;  %vm893_vm3 = vcmask 60416   ;;  %s1519_s2 = inlined_call_operand.vmem [shape: bf16[8,4], index: 2, kind: input, shape index: {}]   ;;  %s1520_s3 = inlined_call_operand.vmem [shape: bf16[8,4], index: 3, kind: input, shape index: {}]   ;;  %s1521_s0 = inlined_call_operand.vmem [shape: bf16[128,8], index: 0, kind: input, shape index: {}]   ;;  %s1522_s1 = inlined_call_operand.vmem [shape: bf16[128,8], index: 1, kind: input, shape index: {}]   ;;  %s1523_s9 = inlined_call_operand.<no memory space> [shape: f32[1,1], index: 9, kind: input, shape index: {}]   ;;  %s1524_s4 = inlined_call_operand.vmem [shape: f32[1,4], index: 4, kind: input, shape index: {}]   ;;  %s1525_s6 = inlined_call_operand.vmem [shape: f32[1,4], index: 6, kind: input, shape index: {}]   ;;  %s1526_s5 = inlined_call_operand.vmem [shape: f32[1,4], index: 5, kind: input, shape index: {}]   ;;  %s1527_s7 = inlined_call_operand.vmem [shape: f32[1,4], index: 7, kind: input, shape index: {}]   ;;  %s1528_s8 = inlined_call_operand.vmem [shape: f32[1,4], index: 8, kind: input, shape index: {}]   ;;  %s1529_s10 = inlined_call_operand.vmem [shape: bf16[128,8], index: 10, kind: output, shape index: {}]  }
   0x1   :  { %v54_v0 = vld [vmem:[%s1519_s2] sm:$0xf]  ;;  %v1061_v6 = vld [vmem:[%s1521_s0 + $0x8] sm:$0xff]   ;;  %v1063_v8 = vld [vmem:[%s1521_s0 + $0x10] sm:$0xff]   ;;  %v15_v20 = vstv %s1523_s9 }
   0x2   :  { %v283_v1 = vld [vmem:[%s1520_s3] sm:$0xf]  ;;  %1054 = vmatprep.subr.msk.bf16.mxu0 %vm120_vm0, %v54_v0  ;;  %v122_v2 = vsel %vm120_vm0, %v54_v0, 0  ;;  %v1224_v7 = vld [vmem:[%s1522_s1 + $0x8] sm:$0xff]   ;;  %v1234_v9 = vld [vmem:[%s1522_s1 + $0x10] sm:$0xff]  }
   0x3   :  { %1055 = vmatprep.subr.msk.bf16.mxu1 %vm120_vm0, %v283_v1  ;;  %v349_v3 = vsel %vm120_vm0, %v283_v1, 0  ;;  %v1059_v4 = vld [vmem:[%s1521_s0] sm:$0xff]   ;;  %1019 = vmatpush3.bf16.msra.mxu0 %v122_v2  ;;  %v1245_v10 = vld [vmem:[%s1522_s1 + $0x18] sm:$0xff]   ;;  %v1267_v14 = vld [vmem:[%s1522_s1 + $0x28] sm:$0xff]   ;;  %16 = vst [vmem:[#allocation2] sm:$0x1] %v15_v20 }
   0x4   :  { %v1215_v5 = vld [vmem:[%s1522_s1] sm:$0xff]   ;;  %1037 = vmatpush3.bf16.msra.mxu1 %v349_v3  ;;  %1020 = vmatprep.mubr.msk.bf16.mxu0 %vm95_vm1, %v1059_v4  ;;  %v1065_v12 = vld [vmem:[%s1521_s0 + $0x18] sm:$0xff]   ;;  %v1272_v15 = vld [vmem:[%s1522_s1 + $0x30] sm:$0xff]  }
   0x5   :  { %1038 = vmatprep.mubr.msk.bf16.mxu1 %vm95_vm1, %v1215_v5  ;;  %v1250_v11 = vld [vmem:[%s1522_s1 + $0x20] sm:$0xff]   ;;  %v1069_v16 = vld [vmem:[%s1521_s0 + $0x28] sm:$0xff]   ;;  %v1071_v17 = vld [vmem:[%s1521_s0 + $0x30] sm:$0xff]  }
   0x6   :  { %1021 = vmatmul.mubr.msk.bf16.vlgmr.msra.gmra.mrb[0].mxu0 %vm95_vm1, %v1061_v6  ;;  %v1067_v13 = vld [vmem:[%s1521_s0 + $0x20] sm:$0xff]   ;;  %v1289_v18 = vld [vmem:[%s1522_s1 + $0x38] sm:$0xff]  }
   0x7   :  { %1039 = vmatmul.mubr.msk.bf16.vlgmr.msra.gmra.mrb[0].mxu1 %vm95_vm1, %v1224_v7  ;;  %1024 = vmatprep.mubr.msk.bf16.mxu0 %vm95_vm1, %v1063_v8  ;;  %v1073_v19 = vld [vmem:[%s1521_s0 + $0x38] sm:$0xff]   ;;  %v1303_v21 = vld [vmem:[%s1524_s4] ss:$0 sm:$0xff] }
   0x8   :  { %1042 = vmatprep.mubr.msk.bf16.mxu1 %vm95_vm1, %v1234_v9  ;;  %v1308_v22 = vld [vmem:[%s1525_s6] ss:$0 sm:$0xff] }
   0x9   :  { %v1313_v24 = vld [vmem:[%s1526_s5] ss:$0 sm:$0xff] }
   0xa   :  { %v1319_v27 = vld [vmem:[%s1527_s7] ss:$0 sm:$0xff] }
   0xb   :  { %v1339_v50 = vld [vmem:[%s1528_s8] ss:$0 sm:$0xff] }
   0xe   :  { %1025 = vmatmul.mubr.msk.bf16.gmra.mrb[4].mxu0 %vm95_vm1, %v1065_v12 }
   0xf   :  { %1043 = vmatmul.mubr.msk.bf16.gmra.mrb[4].mxu1 %vm95_vm1, %v1245_v10  ;;  %1028 = vmatprep.mubr.msk.bf16.mxu0 %vm95_vm1, %v1067_v13 }
  0x10   :  { %1046 = vmatprep.mubr.msk.bf16.mxu1 %vm95_vm1, %v1250_v11 }
  0x16   :  { %1029 = vmatmul.mubr.msk.bf16.gmra.mrb[8].mxu0 %vm95_vm1, %v1069_v16 }
  0x17   :  { %1047 = vmatmul.mubr.msk.bf16.gmra.mrb[8].mxu1 %vm95_vm1, %v1267_v14  ;;  %1032 = vmatprep.mubr.msk.bf16.mxu0 %vm95_vm1, %v1071_v17 }
  0x18   :  { %1050 = vmatprep.mubr.msk.bf16.mxu1 %vm95_vm1, %v1272_v15 }
  0x1e   :  { %1033 = vmatmul.mubr.msk.bf16.gmra.mrb[12].mxu0 %vm95_vm1, %v1073_v19 }
  0x1f   :  { %1051 = vmatmul.mubr.msk.bf16.gmra.mrb[12].mxu1 %vm95_vm1, %v1289_v18 }
  0xd9   :  { %v1022_v23 = vpop.f32.mrb[0].mxu0 }
  0xda   :  { %v230_v25 = vmul.f32 %v1022_v23, %v1303_v21  ;;  %v1040_v26 = vpop.f32.mrb[0].mxu1  ;;  %v158_v28 = vpop.f32.mrb[1].mxu0 }
  0xdb   :  { %v457_v29 = vmul.f32 %v1040_v26, %v1308_v22  ;;  %v228_v30 = vmul.f32 %v1303_v21, %v158_v28  ;;  %v385_v31 = vpop.f32.mrb[1].mxu1  ;;  %v1023_v32 = vpop.f32.mrb[2].mxu0 }
  0xdc   :  { %v253_v33 = vadd.f32 %v1313_v24, %v230_v25  ;;  %v455_v34 = vmul.f32 %v1308_v22, %v385_v31  ;;  %v231_v35 = vmul.f32 %v1023_v32, %v1303_v21  ;;  %v1041_v36 = vpop.f32.mrb[2].mxu1  ;;  %v161_v37 = vpop.f32.mrb[3].mxu0 }
  0xdd   :  { %v480_v38 = vadd.f32 %v1319_v27, %v457_v29  ;;  %v251_v39 = vadd.f32 %v1313_v24, %v228_v30  ;;  %v458_v40 = vmul.f32 %v1041_v36, %v1308_v22  ;;  %v229_v41 = vmul.f32 %v1303_v21, %v161_v37  ;;  %v388_v42 = vpop.f32.mrb[3].mxu1 }
  0xde   :  { %v478_v43 = vadd.f32 %v1319_v27, %v455_v34  ;;  %v254_v44 = vadd.f32 %v1313_v24, %v231_v35  ;;  %v456_v45 = vmul.f32 %v1308_v22, %v388_v42 }
  0xdf   :  { %v481_v46 = vadd.f32 %v1319_v27, %v458_v40  ;;  %v252_v47 = vadd.f32 %v1313_v24, %v229_v41  ;;  %v496_v48 = vadd.f32 %v480_v38, %v253_v33 }
  0xe0   :  { %v479_v49 = vadd.f32 %v1319_v27, %v456_v45  ;;  %v494_v51 = vadd.f32 %v478_v43, %v251_v39 }
  0xe1   :  { %v497_v52 = vadd.f32 %v481_v46, %v254_v44  ;;  %v1026_v53 = vpop.f32.mrb[4].mxu0  ;;  %v512_v54 = vmax.f32 %v496_v48, 0.0 }
  0xe2   :  { %v495_v55 = vadd.f32 %v479_v49, %v252_v47  ;;  %v234_v56 = vmul.f32 %v1026_v53, %v1303_v21  ;;  %v1044_v57 = vpop.f32.mrb[4].mxu1  ;;  %v174_v58 = vpop.f32.mrb[5].mxu0  ;;  %v510_v59 = vmax.f32 %v494_v51, 0.0 }
  0xe3   :  { %v461_v60 = vmul.f32 %v1044_v57, %v1308_v22  ;;  %v232_v61 = vmul.f32 %v1303_v21, %v174_v58  ;;  %v401_v62 = vpop.f32.mrb[5].mxu1  ;;  %v1027_v63 = vpop.f32.mrb[6].mxu0  ;;  %v535_v0 = vmul.f32 %v1339_v50, %v512_v54  ;;  %v513_v1 = vmax.f32 %v497_v52, 0.0 }
  0xe4   :  { %v257_v2 = vadd.f32 %v1313_v24, %v234_v56  ;;  %v459_v3 = vmul.f32 %v1308_v22, %v401_v62  ;;  %v235_v4 = vmul.f32 %v1027_v63, %v1303_v21  ;;  %v1045_v6 = vpop.f32.mrb[6].mxu1  ;;  %v177_v8 = vpop.f32.mrb[7].mxu0  ;;  %v533_v12 = vmul.f32 %v1339_v50, %v510_v59 }
  0xe5   :  { %v484_v13 = vadd.f32 %v1319_v27, %v461_v60  ;;  %v255_v16 = vadd.f32 %v1313_v24, %v232_v61  ;;  %v462_v17 = vmul.f32 %v1045_v6, %v1308_v22  ;;  %v404_v19 = vpop.f32.mrb[7].mxu1  ;;  %v556_v20 = vsel %vm549_vm2, %v535_v0, 0.0 }
  0xe6   :  { %v482_v23 = vadd.f32 %v1319_v27, %v459_v3  ;;  %v258_v25 = vadd.f32 %v1313_v24, %v235_v4  ;;  %v460_v26 = vmul.f32 %v1308_v22, %v404_v19  ;;  %557 = vadd.xlane.f32.xlu1 %v556_v20  ;;  %v233_v28 = vmul.f32 %v1303_v21, %v177_v8 }
  0xe7   :  { %v500_v29 = vadd.f32 %v484_v13, %v257_v2  ;;  %v485_v30 = vadd.f32 %v1319_v27, %v462_v17  ;;  %v550_v31 = vsel %vm549_vm2, %v533_v12, 0.0  ;;  %v536_v32 = vmul.f32 %v1339_v50, %v513_v1 }
  0xe8   :  { %v498_v33 = vadd.f32 %v482_v23, %v255_v16  ;;  %v483_v34 = vadd.f32 %v1319_v27, %v460_v26  ;;  %v256_v35 = vadd.f32 %v1313_v24, %v233_v28  ;;  %551 = vadd.xlane.f32.xlu0 %v550_v31  ;;  %v511_v36 = vmax.f32 %v495_v55, 0.0 }
  0xe9   :  { %v501_v37 = vadd.f32 %v485_v30, %v258_v25  ;;  %v559_v38 = vsel %vm549_vm2, %v536_v32, 0.0  ;;  %v1030_v39 = vpop.f32.mrb[8].mxu0  ;;  %v516_v40 = vmax.f32 %v500_v29, 0.0 }
  0xea   :  { %v499_v41 = vadd.f32 %v483_v34, %v256_v35  ;;  %560 = vadd.xlane.f32.xlu1 %v559_v38  ;;  %v1048_v42 = vpop.f32.mrb[8].mxu1  ;;  %v534_v43 = vmul.f32 %v1339_v50, %v511_v36  ;;  %v238_v44 = vmul.f32 %v1030_v39, %v1303_v21  ;;  %v190_v45 = vpop.f32.mrb[9].mxu0  ;;  %v514_v46 = vmax.f32 %v498_v33, 0.0 }
  0xeb   :  { %v465_v47 = vmul.f32 %v1048_v42, %v1308_v22  ;;  %v236_v48 = vmul.f32 %v1303_v21, %v190_v45  ;;  %v417_v49 = vpop.f32.mrb[9].mxu1  ;;  %v1031_v51 = vpop.f32.mrb[10].mxu0  ;;  %v539_v52 = vmul.f32 %v1339_v50, %v516_v40  ;;  %v517_v53 = vmax.f32 %v501_v37, 0.0 }
  0xec   :  { %v553_v54 = vsel %vm549_vm2, %v534_v43, 0.0  ;;  %v261_v55 = vadd.f32 %v1313_v24, %v238_v44  ;;  %v463_v56 = vmul.f32 %v1308_v22, %v417_v49  ;;  %v239_v57 = vmul.f32 %v1031_v51, %v1303_v21  ;;  %v1049_v58 = vpop.f32.mrb[10].mxu1  ;;  %v193_v59 = vpop.f32.mrb[11].mxu0 }
  0xed   :  { %v488_v60 = vadd.f32 %v1319_v27, %v465_v47  ;;  %554 = vadd.xlane.f32.xlu0 %v553_v54  ;;  %v259_v61 = vadd.f32 %v1313_v24, %v236_v48  ;;  %v466_v62 = vmul.f32 %v1049_v58, %v1308_v22  ;;  %v568_v63 = vsel %vm549_vm2, %v539_v52, 0.0  ;;  %v420_v0 = vpop.f32.mrb[11].mxu1 }
  0xee   :  { %v486_v1 = vadd.f32 %v1319_v27, %v463_v56  ;;  %v262_v2 = vadd.f32 %v1313_v24, %v239_v57  ;;  %v540_v3 = vmul.f32 %v1339_v50, %v517_v53  ;;  %v237_v4 = vmul.f32 %v1303_v21, %v193_v59 }
  0xef   :  { %v504_v6 = vadd.f32 %v488_v60, %v261_v55  ;;  %v489_v8 = vadd.f32 %v1319_v27, %v466_v62  ;;  %v464_v12 = vmul.f32 %v1308_v22, %v420_v0  ;;  %v537_v13 = vmul.f32 %v1339_v50, %v514_v46 }
  0xf0   :  { %v502_v16 = vadd.f32 %v486_v1, %v259_v61  ;;  %v571_v17 = vsel %vm549_vm2, %v540_v3, 0.0  ;;  %v260_v19 = vadd.f32 %v1313_v24, %v237_v4  ;;  %v515_v20 = vmax.f32 %v499_v41, 0.0 }
  0xf1   :  { %v505_v23 = vadd.f32 %v489_v8, %v262_v2  ;;  %569 = vadd.xlane.f32.xlu0 %v568_v63  ;;  %572 = vadd.xlane.f32.xlu1 %v571_v17  ;;  %v487_v25 = vadd.f32 %v1319_v27, %v464_v12  ;;  %v1034_v26 = vpop.f32.mrb[12].mxu0  ;;  %v562_v28 = vsel %vm549_vm2, %v537_v13, 0.0  ;;  %v520_v33 = vmax.f32 %v504_v6, 0.0 }
  0xf2   :  { %v242_v29 = vmul.f32 %v1034_v26, %v1303_v21  ;;  %v1052_v30 = vpop.f32.mrb[12].mxu1  ;;  %v206_v31 = vpop.f32.mrb[13].mxu0  ;;  %v538_v32 = vmul.f32 %v1339_v50, %v515_v20  ;;  %v518_v34 = vmax.f32 %v502_v16, 0.0 }
  0xf3   :  { %v503_v35 = vadd.f32 %v487_v25, %v260_v19  ;;  %v469_v36 = vmul.f32 %v1052_v30, %v1308_v22  ;;  %v433_v37 = vpop.f32.mrb[13].mxu1  ;;  %v240_v38 = vmul.f32 %v1303_v21, %v206_v31  ;;  %v1035_v39 = vpop.f32.mrb[14].mxu0  ;;  %v521_v40 = vmax.f32 %v505_v23, 0.0 }
  0xf4   :  { %v265_v41 = vadd.f32 %v1313_v24, %v242_v29  ;;  %v467_v42 = vmul.f32 %v1308_v22, %v433_v37  ;;  %v1053_v43 = vpop.f32.mrb[14].mxu1  ;;  %v565_v44 = vsel %vm549_vm2, %v538_v32, 0.0  ;;  %v243_v45 = vmul.f32 %v1035_v39, %v1303_v21  ;;  %v209_v46 = vpop.f32.mrb[15].mxu0  ;;  %v1421_v29 = vld [vmem:[#allocation2] ss:$0 sm:$0xff] }
  0xf5   :  { %v492_v47 = vadd.f32 %v1319_v27, %v469_v36  ;;  %563 = vadd.xlane.f32.xlu0 %v562_v28  ;;  %v263_v48 = vadd.f32 %v1313_v24, %v240_v38  ;;  %v470_v49 = vmul.f32 %v1053_v43, %v1308_v22  ;;  %566 = vadd.xlane.f32.xlu1 %v565_v44  ;;  %v436_v51 = vpop.f32.mrb[15].mxu1  ;;  %v519_v52 = vmax.f32 %v503_v35, 0.0 }
  0xf6   :  { %v490_v53 = vadd.f32 %v1319_v27, %v467_v42  ;;  %v266_v54 = vadd.f32 %v1313_v24, %v243_v45  ;;  %v241_v55 = vmul.f32 %v1303_v21, %v209_v46  ;;  %v468_v56 = vmul.f32 %v1308_v22, %v436_v51 }
  0xf7   :  { %v508_v57 = vadd.f32 %v492_v47, %v265_v41  ;;  %v493_v58 = vadd.f32 %v1319_v27, %v470_v49  ;;  %v544_v59 = vmul.f32 %v1339_v50, %v521_v40  ;;  %v543_v60 = vmul.f32 %v1339_v50, %v520_v33 }
  0xf8   :  { %v506_v61 = vadd.f32 %v490_v53, %v263_v48  ;;  %v264_v62 = vadd.f32 %v1313_v24, %v241_v55  ;;  %v491_v63 = vadd.f32 %v1319_v27, %v468_v56  ;;  %v542_v0 = vmul.f32 %v1339_v50, %v519_v52 }
  0xf9   :  { %v509_v1 = vadd.f32 %v493_v58, %v266_v54  ;;  %v583_v2 = vsel %vm549_vm2, %v544_v59, 0.0  ;;  %v580_v21 = vsel %vm549_vm2, %v543_v60, 0.0  ;;  %v541_v22 = vmul.f32 %v1339_v50, %v518_v34 }
  0xfa   :  { %v507_v3 = vadd.f32 %v491_v63, %v264_v62  ;;  %584 = vadd.xlane.f32.xlu1 %v583_v2  ;;  %581 = vadd.xlane.f32.xlu0 %v580_v21  ;;  %v522_v4 = vmax.f32 %v506_v61, 0.0  ;;  %v577_v6 = vsel %vm549_vm2, %v542_v0, 0.0  ;;  %v524_v12 = vmax.f32 %v508_v57, 0.0 }
  0xfb   :  { %v574_v8 = vsel %vm549_vm2, %v541_v22, 0.0  ;;  %v525_v24 = vmax.f32 %v509_v1, 0.0  ;;  %v1147_v28 = vmov 0  }
  0xfc   :  { %v523_v27 = vmax.f32 %v507_v3, 0.0  ;;  %v545_v13 = vmul.f32 %v1339_v50, %v522_v4  ;;  %v547_v20 = vmul.f32 %v1339_v50, %v524_v12  ;;  %1057 = vset.pattern.permute.xlu1 %v1147_v28  ;;  %1058 = vset.pattern.permute.xlu0 %v1147_v28 }
  0xfd   :  { %v548_v19 = vmul.f32 %v1339_v50, %v525_v24 }
  0xfe   :  { %578 = vadd.xlane.f32.xlu1 %v577_v6  ;;  %575 = vadd.xlane.f32.xlu0 %v574_v8  ;;  %v546_v16 = vmul.f32 %v1339_v50, %v523_v27  ;;  %v586_v17 = vsel %vm549_vm2, %v545_v13, 0.0  ;;  %v592_v26 = vsel %vm549_vm2, %v547_v20, 0.0 }
  0xff   :  { %v595_v25 = vsel %vm549_vm2, %v548_v19, 0.0 }
 0x100   :  { %v589_v23 = vsel %vm549_vm2, %v546_v16, 0.0 }
 0x102   :  { %590 = vadd.xlane.f32.xlu1 %v589_v23  ;;  %587 = vadd.xlane.f32.xlu0 %v586_v17 }
 0x106   :  { %596 = vadd.xlane.f32.xlu1 %v595_v25  ;;  %593 = vadd.xlane.f32.xlu0 %v592_v26 }
 0x173   :  { %v558_v30 = vpop.xlane.xlu1 %557 }
 0x174   :  { %v607_v31 = vadd.f32 %v1421_v29, %v558_v30 }
 0x175   :  { %v552_v32 = vpop.xlane.xlu0 %551 }
 0x176   :  { %v954_v50 = vmul.f32 -1.442695, %v607_v31  ;;  %v605_v33 = vadd.f32 %v1421_v29, %v552_v32 }
 0x177   :  { %v561_v34 = vpop.xlane.xlu1 %560 }
 0x178   :  { %1083 = vpow2.f32 %v954_v50  ;;  %v952_v35 = vmul.f32 -1.442695, %v605_v33  ;;  %v608_v36 = vadd.f32 %v1421_v29, %v561_v34 }
 0x17a   :  { %1085 = vpow2.f32 %v952_v35  ;;  %v955_v37 = vmul.f32 -1.442695, %v608_v36  ;;  %v555_v38 = vpop.xlane.xlu0 %554 }
 0x17b   :  { %v606_v39 = vadd.f32 %v1421_v29, %v555_v38 }
 0x17c   :  { %1087 = vpow2.f32 %v955_v37 }
 0x17d   :  { %v953_v40 = vmul.f32 -1.442695, %v606_v39 }
 0x17e   :  { %v570_v41 = vpop.xlane.xlu0 %569  ;;  %v573_v42 = vpop.xlane.xlu1 %572 }
 0x17f   :  { %1089 = vpow2.f32 %v953_v40  ;;  %v611_v43 = vadd.f32 %v1421_v29, %v570_v41  ;;  %v612_v44 = vadd.f32 %v1421_v29, %v573_v42 }
 0x181   :  { %v958_v45 = vmul.f32 -1.442695, %v611_v43  ;;  %v959_v47 = vmul.f32 -1.442695, %v612_v44 }
 0x182   :  { %v1084_v46 = vpop.eup %1083  ;;  %v564_v48 = vpop.xlane.xlu0 %563 }
 0x183   :  { %v567_v49 = vpop.xlane.xlu1 %566  ;;  %v671_v51 = vadd.f32 1.0, %v1084_v46  ;;  %1091 = vpow2.f32 %v958_v45  ;;  %v609_v52 = vadd.f32 %v1421_v29, %v564_v48 }
 0x184   :  { %v610_v53 = vadd.f32 %v1421_v29, %v567_v49  ;;  %v1086_v54 = vpop.eup %1085 }
 0x185   :  { %1093 = vrcp.f32 %v671_v51  ;;  %v669_v55 = vadd.f32 1.0, %v1086_v54  ;;  %v956_v56 = vmul.f32 -1.442695, %v609_v52 }
 0x186   :  { %v1088_v57 = vpop.eup %1087  ;;  %1095 = vpow2.f32 %v959_v47  ;;  %v957_v59 = vmul.f32 -1.442695, %v610_v53 }
 0x187   :  { %1097 = vrcp.f32 %v669_v55  ;;  %v672_v58 = vadd.f32 1.0, %v1088_v57  ;;  %v585_v60 = vpop.xlane.xlu1 %584  ;;  %v582_v61 = vpop.xlane.xlu0 %581 }
 0x188   :  { %1099 = vpow2.f32 %v956_v56  ;;  %v616_v62 = vadd.f32 %v1421_v29, %v585_v60  ;;  %v615_v63 = vadd.f32 %v1421_v29, %v582_v61 }
 0x189   :  { %v1090_v0 = vpop.eup %1089  ;;  %1101 = vrcp.f32 %v672_v58 }
 0x18a   :  { %v670_v1 = vadd.f32 1.0, %v1090_v0  ;;  %v963_v2 = vmul.f32 -1.442695, %v616_v62  ;;  %1103 = vpow2.f32 %v957_v59  ;;  %v962_v21 = vmul.f32 -1.442695, %v615_v63 }
 0x18b   :  { %v579_v22 = vpop.xlane.xlu1 %578  ;;  %v576_v3 = vpop.xlane.xlu0 %575 }
 0x18c   :  { %1105 = vrcp.f32 %v670_v1  ;;  %v614_v4 = vadd.f32 %v1421_v29, %v579_v22  ;;  %v613_v6 = vadd.f32 %v1421_v29, %v576_v3 }
 0x18d   :  { %v1092_v8 = vpop.eup %1091  ;;  %1107 = vpow2.f32 %v963_v2 }
 0x18e   :  { %v675_v24 = vadd.f32 1.0, %v1092_v8  ;;  %v961_v12 = vmul.f32 -1.442695, %v614_v4  ;;  %1109 = vpow2.f32 %v962_v21  ;;  %v960_v13 = vmul.f32 -1.442695, %v613_v6 }
 0x18f   :  { %v1094_v27 = vpop.eup %1093  ;;  %v591_v16 = vpop.xlane.xlu1 %590  ;;  %v719_v4 = vunpack.c.l.bf16 %v1224_v7  ;;  %v717_v6 = vunpack.c.l.bf16 %v1215_v5 }
 0x190   :  { %v588_v17 = vpop.xlane.xlu0 %587  ;;  %v1096_v19 = vpop.eup %1095  ;;  %1111 = vrcp.f32 %v675_v24  ;;  %v618_v20 = vadd.f32 %v1421_v29, %v591_v16  ;;  %745 = vperm.xlu1 %1057, %v1094_v27  }
 0x191   :  { %v617_v23 = vadd.f32 %v1421_v29, %v588_v17  ;;  %v1098_v25 = vpop.eup %1097  ;;  %1113 = vpow2.f32 %v961_v12  ;;  %v676_v37 = vadd.f32 1.0, %v1096_v19  ;;  %v720_v12 = vunpack.c.h.bf16 %v1224_v7 }
 0x192   :  { %v1100_v26 = vpop.eup %1099  ;;  %v965_v28 = vmul.f32 -1.442695, %v618_v20  ;;  %735 = vperm.xlu0 %1058, %v1098_v25   ;;  %1115 = vpow2.f32 %v960_v13 }
 0x193   :  { %v1102_v30 = vpop.eup %1101  ;;  %v673_v31 = vadd.f32 1.0, %v1100_v26  ;;  %v964_v32 = vmul.f32 -1.442695, %v617_v23  ;;  %v597_v50 = vpop.xlane.xlu1 %596  ;;  %v718_v23 = vunpack.c.h.bf16 %v1215_v5 }
 0x194   :  { %v594_v33 = vpop.xlane.xlu0 %593  ;;  %1117 = vpow2.f32 %v965_v28  ;;  %v620_v34 = vadd.f32 %v1421_v29, %v597_v50  ;;  %750 = vperm.xlu1 %1057, %v1102_v30   ;;  %v1104_v36 = vpop.eup %1103  ;;  %v723_v28 = vunpack.c.l.bf16 %v1245_v10 }
 0x195   :  { %v619_v35 = vadd.f32 %v1421_v29, %v594_v33  ;;  %1119 = vrcp.f32 %v673_v31  ;;  %v674_v44 = vadd.f32 1.0, %v1104_v36  ;;  %v728_v36 = vunpack.c.h.bf16 %v1267_v14 }
 0x196   :  { %v1106_v38 = vpop.eup %1105  ;;  %v967_v39 = vmul.f32 -1.442695, %v620_v34  ;;  %1121 = vpow2.f32 %v964_v32  ;;  %v721_v32 = vunpack.c.l.bf16 %v1234_v9 }
 0x197   :  { %v1108_v40 = vpop.eup %1107  ;;  %v966_v42 = vmul.f32 -1.442695, %v619_v35  ;;  %v724_v35 = vunpack.c.h.bf16 %v1245_v10 }
 0x198   :  { %v680_v41 = vadd.f32 1.0, %v1108_v40  ;;  %1123 = vpow2.f32 %v967_v39  ;;  %740 = vperm.xlu1 %1057, %v1106_v38   ;;  %v1110_v43 = vpop.eup %1109 }
 0x199   :  { %1125 = vrcp.f32 %v676_v37  ;;  %v679_v47 = vadd.f32 1.0, %v1110_v43 }
 0x19a   :  { %v1112_v45 = vpop.eup %1111  ;;  %1127 = vrcp.f32 %v680_v41  ;;  %v722_v41 = vunpack.c.h.bf16 %v1234_v9 }
 0x19b   :  { %v1114_v46 = vpop.eup %1113  ;;  %1129 = vpow2.f32 %v966_v42 }
 0x19c   :  { %765 = vperm.xlu1 %1057, %v1112_v45   ;;  %v1116_v29 = vpop.eup %1115  ;;  %1131 = vrcp.f32 %v674_v44  ;;  %v678_v48 = vadd.f32 1.0, %v1114_v46  ;;  %v726_v44 = vunpack.c.h.bf16 %v1250_v11 }
 0x19d   :  { %v677_v53 = vadd.f32 1.0, %v1116_v29 }
 0x19e   :  { %v1118_v49 = vpop.eup %1117  ;;  %1133 = vrcp.f32 %v678_v48 }
 0x19f   :  { %v1120_v51 = vpop.eup %1119  ;;  %v682_v52 = vadd.f32 1.0, %v1118_v49  ;;  %1135 = vrcp.f32 %v679_v47  ;;  %v727_v47 = vunpack.c.l.bf16 %v1267_v14  ;;  %v730_v49 = vunpack.c.h.bf16 %v1272_v15 }
 0x1a0   :  { %755 = vperm.xlu1 %1057, %v1120_v51   ;;  %v1122_v54 = vpop.eup %1121  ;;  %v725_v14 = vunpack.c.l.bf16 %v1250_v11  ;;  %v729_v11 = vunpack.c.l.bf16 %v1272_v15 }
 0x1a1   :  { %1137 = vrcp.f32 %v682_v52  ;;  %v681_v59 = vadd.f32 1.0, %v1122_v54 }
 0x1a2   :  { %v1124_v55 = vpop.eup %1123  ;;  %1139 = vrcp.f32 %v677_v53 }
 0x1a3   :  { %v1126_v56 = vpop.eup %1125  ;;  %v684_v57 = vadd.f32 1.0, %v1124_v55 }
 0x1a4   :  { %v1128_v58 = vpop.eup %1127  ;;  %770 = vperm.xlu1 %1057, %v1126_v56  }
 0x1a5   :  { %1141 = vrcp.f32 %v684_v57  ;;  %790 = vperm.xlu0 %1058, %v1128_v58   ;;  %v1130_v60 = vpop.eup %1129  ;;  %v732_v57 = vunpack.c.h.bf16 %v1289_v18 }
 0x1a6   :  { %v1132_v61 = vpop.eup %1131  ;;  %1143 = vrcp.f32 %v681_v59  ;;  %v683_v63 = vadd.f32 1.0, %v1130_v60 }
 0x1a8   :  { %760 = vperm.xlu1 %1057, %v1132_v61   ;;  %v1134_v62 = vpop.eup %1133  ;;  %1145 = vrcp.f32 %v683_v63 }
 0x1a9   :  { %v1136_v0 = vpop.eup %1135  ;;  %780 = vperm.xlu0 %1058, %v1134_v62  }
 0x1ab   :  { %v1138_v1 = vpop.eup %1137 }
 0x1ac   :  { %785 = vperm.xlu1 %1057, %v1136_v0   ;;  %v1140_v2 = vpop.eup %1139 }
 0x1ad   :  { %800 = vperm.xlu0 %1058, %v1138_v1  }
 0x1af   :  { %v1142_v21 = vpop.eup %1141 }
 0x1b0   :  { %775 = vperm.xlu1 %1057, %v1140_v2   ;;  %v1144_v22 = vpop.eup %1143 }
 0x1b1   :  { %810 = vperm.xlu0 %1058, %v1142_v21   ;;  %v731_v21 = vunpack.c.l.bf16 %v1289_v18 }
 0x1b2   :  { %v1146_v3 = vpop.eup %1145 }
 0x1b4   :  { %795 = vperm.xlu1 %1057, %v1144_v22  }
 0x1b8   :  { %805 = vperm.xlu1 %1057, %v1146_v3  }
 0x20f   :  { %v746_v8 = vpop.permute.xlu1 %745 }
 0x210   :  { %v815_v24 = vmul.f32 %v746_v8, %v719_v4 }
 0x211   :  { %v736_v27 = vpop.permute.xlu0 %735 }
 0x212   :  { %v986_v13 = vpack.c.bf16 %v815_v24, %v815_v24  ;;  %v813_v16 = vmul.f32 %v736_v27, %v717_v6 }
 0x213   :  { %v751_v17 = vpop.permute.xlu1 %750 }
 0x214   :  { %896 = vst.msk [vmem:[%s1529_s10 + $0x8] sm:$0xf] %vm893_vm3, %v986_v13  ;;  %v984_v19 = vpack.c.bf16 %v813_v16, %v813_v16  ;;  %v816_v20 = vmul.f32 %v751_v17, %v720_v12 }
 0x216   :  { %894 = vst.msk [vmem:[%s1529_s10] sm:$0xf] %vm893_vm3, %v984_v19  ;;  %v987_v7 = vpack.c.bf16 %v816_v20, %v816_v20 }
 0x217   :  { %v741_v25 = vpop.permute.xlu1 %740 }
 0x218   :  { %897 = vst.msk [vmem:[%s1529_s10 + $0xc] sm:$0xf] %vm893_vm3, %v987_v7  ;;  %v814_v26 = vmul.f32 %v741_v25, %v718_v23 }
 0x21a   :  { %v985_v30 = vpack.c.bf16 %v814_v26, %v814_v26 }
 0x21b   :  { %v766_v31 = vpop.permute.xlu1 %765 }
 0x21c   :  { %895 = vst.msk [vmem:[%s1529_s10 + $0x4] sm:$0xf] %vm893_vm3, %v985_v30  ;;  %v819_v5 = vmul.f32 %v766_v31, %v723_v28 }
 0x21e   :  { %v990_v50 = vpack.c.bf16 %v819_v5, %v819_v5 }
 0x21f   :  { %v756_v33 = vpop.permute.xlu1 %755 }
 0x220   :  { %900 = vst.msk [vmem:[%s1529_s10 + $0x18] sm:$0xf] %vm893_vm3, %v990_v50  ;;  %v817_v34 = vmul.f32 %v756_v33, %v721_v32 }
 0x222   :  { %v988_v37 = vpack.c.bf16 %v817_v34, %v817_v34 }
 0x223   :  { %v771_v38 = vpop.permute.xlu1 %770 }
 0x224   :  { %898 = vst.msk [vmem:[%s1529_s10 + $0x10] sm:$0xf] %vm893_vm3, %v988_v37  ;;  %v791_v39 = vpop.permute.xlu0 %790  ;;  %v820_v40 = vmul.f32 %v771_v38, %v724_v35 }
 0x225   :  { %v824_v42 = vmul.f32 %v791_v39, %v728_v36 }
 0x226   :  { %v991_v43 = vpack.c.bf16 %v820_v40, %v820_v40 }
 0x227   :  { %v995_v45 = vpack.c.bf16 %v824_v42, %v824_v42  ;;  %v761_v46 = vpop.permute.xlu1 %760 }
 0x228   :  { %901 = vst.msk [vmem:[%s1529_s10 + $0x1c] sm:$0xf] %vm893_vm3, %v991_v43  ;;  %v818_v10 = vmul.f32 %v761_v46, %v722_v41  ;;  %v781_v9 = vpop.permute.xlu0 %780 }
 0x229   :  { %905 = vst.msk [vmem:[%s1529_s10 + $0x2c] sm:$0xf] %vm893_vm3, %v995_v45  ;;  %v822_v29 = vmul.f32 %v781_v9, %v726_v44 }
 0x22a   :  { %v989_v48 = vpack.c.bf16 %v818_v10, %v818_v10 }
 0x22b   :  { %v786_v51 = vpop.permute.xlu1 %785  ;;  %v993_v52 = vpack.c.bf16 %v822_v29, %v822_v29 }
 0x22c   :  { %899 = vst.msk [vmem:[%s1529_s10 + $0x14] sm:$0xf] %vm893_vm3, %v989_v48  ;;  %v823_v53 = vmul.f32 %v786_v51, %v727_v47  ;;  %v801_v54 = vpop.permute.xlu0 %800 }
 0x22d   :  { %903 = vst.msk [vmem:[%s1529_s10 + $0x24] sm:$0xf] %vm893_vm3, %v993_v52  ;;  %v826_v55 = vmul.f32 %v801_v54, %v730_v49 }
 0x22e   :  { %v994_v56 = vpack.c.bf16 %v823_v53, %v823_v53 }
 0x22f   :  { %v776_v58 = vpop.permute.xlu1 %775  ;;  %v997_v59 = vpack.c.bf16 %v826_v55, %v826_v55 }
 0x230   :  { %904 = vst.msk [vmem:[%s1529_s10 + $0x28] sm:$0xf] %vm893_vm3, %v994_v56  ;;  %v821_v60 = vmul.f32 %v776_v58, %v725_v14  ;;  %v811_v61 = vpop.permute.xlu0 %810 }
 0x231   :  { %907 = vst.msk [vmem:[%s1529_s10 + $0x34] sm:$0xf] %vm893_vm3, %v997_v59  ;;  %v828_v62 = vmul.f32 %v811_v61, %v732_v57 }
 0x232   :  { %v992_v63 = vpack.c.bf16 %v821_v60, %v821_v60 }
 0x233   :  { %v796_v0 = vpop.permute.xlu1 %795  ;;  %v999_v1 = vpack.c.bf16 %v828_v62, %v828_v62 }
 0x234   :  { %902 = vst.msk [vmem:[%s1529_s10 + $0x20] sm:$0xf] %vm893_vm3, %v992_v63  ;;  %v825_v2 = vmul.f32 %v796_v0, %v729_v11 }
 0x235   :  { %909 = vst.msk [vmem:[%s1529_s10 + $0x3c] sm:$0xf] %vm893_vm3, %v999_v1 }
 0x236   :  { %v996_v15 = vpack.c.bf16 %v825_v2, %v825_v2 }
 0x237   :  { %v806_v22 = vpop.permute.xlu1 %805 }
 0x238   :  { %906 = vst.msk [vmem:[%s1529_s10 + $0x30] sm:$0xf] %vm893_vm3, %v996_v15  ;;  %v827_v3 = vmul.f32 %v806_v22, %v731_v21 }
 0x23a   :  { %v998_v4 = vpack.c.bf16 %v827_v3, %v827_v3 }
 0x23c   :  { %908 = vst.msk [vmem:[%s1529_s10 + $0x38] sm:$0xf] %vm893_vm3, %v998_v4 }

// kernel: attention_unet_forward.22
= control target key start
LH: loop header
LB: loop body
LE: loop exit
PB: predicated region body
PF: predicated region fallthrough
CT: control target
= control target key end

     0   :  { %s490_s15 = smov 0   ;;  %s532_s0 = inlined_call_operand.vmem [shape: bf16[2,8,8,8], index: 0, kind: input, shape index: {}]   ;;  %s533_s1 = inlined_call_operand.vmem [shape: bf16[8,8], index: 1, kind: input, shape index: {}]   ;;  %s534_s2 = inlined_call_operand.vmem [shape: bf16[8,8], index: 2, kind: input, shape index: {}]   ;;  %s535_s3 = inlined_call_operand.vmem [shape: f32[1,8], index: 3, kind: input, shape index: {}]   ;;  %s536_s4 = inlined_call_operand.vmem [shape: bf16[2,16,8,8], index: 4, kind: output, shape index: {}]  }
   0x1 LB: > { %s389_s16 = sadd.s32 4294967295, %s457_s15   ;;  %p393_p0 = scmp.ge.s32.totalorder %s457_s15, 1  ;;  %s457_s15 = sphi %s490_s15, %s14_s15  }
   0x2   : > { %p162_p1 = scmp.lt.s32.totalorder %s457_s15, 3 }
   0x4   : > { %p163_p2 = pnand %p393_p0, %p162_p1 }
   0x5   : > { %p188_p3 = scmp.lt.s32.totalorder (!%p163_p2), %s389_s16, 1  ;;  %v199_v0 = vld [vmem:[%s533_s1] sm:$0xf] (!%p163_p2)  ;;  %s517_s5 = smov (!%p163_p2), 0  }
   0x6   : > { %166 = sbr.rel (%p163_p2) target bundleno = 240 (0xf0), region = 36  ;;  %v200_v1 = vld [vmem:[%s534_s2] sm:$0xf] (!%p163_p2) }
   0x7   : > { %v399_v2 = vld [vmem:[%s535_s3] ss:$0 sm:$0xff] (!%p163_p2) }
   0xd   : > { %s538_s16 = smov (!%p188_p3, %s389_s16), 1 }
   0xe   : > { %s409_s23 = sshll.u32 %s538_s16, 5  ;;  %s410_s24 = sshll.u32 %s538_s16, 6 }
   0xf   : > { %s510_s27 = scalar_lea.vmem %s532_s0, %s409_s23  ;;  %s515_s30 = scalar_lea.vmem %s536_s4, %s410_s24 }
  0x10 LB: >> { %vm221_vm0 = vcmask 1043456   ;;  %v463_v3 = vmov 0.0   ;;  %s398_s6 = sshll.u32 %s461_s5, 2  ;;  %vm217_vm1 = vcmask 64512   ;;  %vm464_vm2 = vmmov 0   ;;  %s411_s8 = sshll.u32 %s461_s5, 3  ;;  %s461_s5 = sphi %s517_s5, %s207_s5  }
  0x11   : >> { %417 = vmatprep.subr.bf16.mxu0 %v463_v3  ;;  %423 = vmatprep.subr.bf16.mxu1 %v463_v3  ;;  %v223_v4 = vsel %vm221_vm0, %v199_v0, 0  ;;  %v266_v5 = vsel %vm221_vm0, %v200_v1, 0  ;;  %s209_s7 = scalar_lea.vmem %s510_s27, %s398_s6  ;;  %s312_s9 = scalar_lea.vmem %s515_s30, %s411_s8  ;;  %vm313_vm3 = vcmask 60416  }
  0x12   : >> { %418 = vmatpush3.bf16.msra.mxu0 %v223_v4  ;;  %424 = vmatpush3.bf16.msra.mxu1 %v266_v5  ;;  %v210_v6 = vld [vmem:[%s209_s7] sm:$0xf]  ;;  %s207_s5 = sadd.s32 1, %s461_s5  }
  0x13   : >> { %419 = vmatprep.mubr.msk.bf16.mxu0 %vm464_vm2, %v463_v3  ;;  %425 = vmatprep.mubr.msk.bf16.mxu1 %vm464_vm2, %v463_v3  ;;  %p204_p4 = scmp.ge.s32.totalorder %s207_s5, 8  }
  0x15   : >> { %420 = vmatmul.mubr.msk.bf16.vlgmr.msra.gmra.mrb[0].mxu0 %vm217_vm1, %v210_v6  ;;  %426 = vmatmul.mubr.msk.bf16.vlgmr.msra.gmra.mrb[0].mxu1 %vm217_vm1, %v210_v6 }
  0xe8   : >> { %v259_v7 = vpop.f32.mrb[0].mxu0  ;;  %v302_v8 = vpop.f32.mrb[0].mxu1 }
  0xe9   : >> { %v260_v9 = vadd.f32 %v399_v2, %v259_v7  ;;  %v303_v10 = vadd.f32 %v399_v2, %v302_v8  ;;  %v421_v11 = vpop.f32.mrb[1].mxu0  ;;  %v427_v12 = vpop.f32.mrb[1].mxu1  ;;  %206 = sbr.rel (!%p204_p4) target bundleno = 16 (0x10), region = 76 }
  0xea   : >> { %v262_v13 = vpop.f32.mrb[2].mxu0  ;;  %v305_v14 = vpop.f32.mrb[2].mxu1 }
  0xeb   : >> { %v308_v15 = vmax.f32 %v260_v9, 0.0  ;;  %v315_v16 = vmax.f32 %v303_v10, 0.0  ;;  %v422_v17 = vpop.f32.mrb[3].mxu0  ;;  %v428_v18 = vpop.f32.mrb[3].mxu1 }
  0xed   : >> { %v309_v19 = vpack.c.bf16 %v308_v15, %v308_v15  ;;  %v316_v20 = vpack.c.bf16 %v315_v16, %v315_v16 }
  0xef   : >> { %314 = vst.msk [vmem:[%s312_s9] sm:$0xf] %vm313_vm3, %v309_v19  ;;  %406 = vst.msk [vmem:[%s312_s9 + $0x4] sm:$0xf] %vm313_vm3, %v316_v20 }
  0xf0 PF: > { %s14_s15 = sadd.s32 1, %s457_s15  }
  0xf1   : > { %p11_p5 = scmp.ge.s32.totalorder %s14_s15, 4  }
  0xf3   :  { %13 = sbr.rel (!%p11_p5) target bundleno = 1 (0x1), region = 87 }

// kernel: attention_unet_forward.21
= control target key start
LH: loop header
LB: loop body
LE: loop exit
PB: predicated region body
PF: predicated region fallthrough
CT: control target
= control target key end

     0   :  { %s1705_s21 = smov 0   ;;  %s1970_s0 = inlined_call_operand.vmem [shape: bf16[2,10,10,8], index: 0, kind: input, shape index: {}]   ;;  %s1971_s1 = inlined_call_operand.vmem [shape: bf16[2,10,10,8], index: 1, kind: input, shape index: {}]   ;;  %s1972_s2 = inlined_call_operand.vmem [shape: bf16[3,3,8,8], index: 2, kind: input, shape index: {}]   ;;  %s1973_s3 = inlined_call_operand.vmem [shape: bf16[3,3,8,8], index: 3, kind: input, shape index: {}]   ;;  %s1974_s4 = inlined_call_operand.vmem [shape: f32[1,8], index: 4, kind: input, shape index: {}]   ;;  %s1975_s5 = inlined_call_operand.vmem [shape: f32[1,8], index: 5, kind: input, shape index: {}]   ;;  %s1976_s6 = inlined_call_operand.vmem [shape: bf16[2,8,8,8], index: 6, kind: output, shape index: {}]  }
   0x1 LB: > { %s1362_s22 = sadd.s32 4294967295, %s1662_s21   ;;  %p1366_p0 = scmp.ge.s32.totalorder %s1662_s21, 1  ;;  %s1662_s21 = sphi %s1705_s21, %s16_s21  }
   0x2   : > { %p222_p1 = scmp.lt.s32.totalorder %s1662_s21, 3 }
   0x4   : > { %p223_p2 = pnand %p1366_p0, %p222_p1 }
   0x5   : > { %p257_p3 = scmp.lt.s32.totalorder (!%p223_p2), %s1362_s22, 1  ;;  %v1716_v0 = vld [vmem:[%s1972_s2] sm:$0xf] (!%p223_p2)  ;;  %v1721_v1 = vld [vmem:[%s1972_s2 + $0x4] sm:$0xf] (!%p223_p2)  ;;  %s1828_s30 = smov (!%p223_p2), 0  }
   0x6   : > { %226 = sbr.rel (%p223_p2) target bundleno = 348 (0x15c), region = 44  ;;  %v1726_v2 = vld [vmem:[%s1972_s2 + $0x8] sm:$0xf] (!%p223_p2)  ;;  %v1731_v3 = vld [vmem:[%s1972_s2 + $0xc] sm:$0xf] (!%p223_p2) }
   0x7   : > { %v1736_v4 = vld [vmem:[%s1972_s2 + $0x10] sm:$0xf] (!%p223_p2)  ;;  %v1741_v5 = vld [vmem:[%s1972_s2 + $0x14] sm:$0xf] (!%p223_p2)  ;;  %v1746_v6 = vld [vmem:[%s1972_s2 + $0x18] sm:$0xf] (!%p223_p2) }
   0x8   : > { %v1751_v7 = vld [vmem:[%s1972_s2 + $0x1c] sm:$0xf] (!%p223_p2)  ;;  %v1756_v8 = vld [vmem:[%s1972_s2 + $0x20] sm:$0xf] (!%p223_p2)  ;;  %v1766_v10 = vld [vmem:[%s1973_s3 + $0x4] sm:$0xf] (!%p223_p2) }
   0x9   : > { %v1761_v9 = vld [vmem:[%s1973_s3] sm:$0xf] (!%p223_p2)  ;;  %v1771_v11 = vld [vmem:[%s1973_s3 + $0x8] sm:$0xf] (!%p223_p2)  ;;  %v1781_v12 = vld [vmem:[%s1973_s3 + $0xc] sm:$0xf] (!%p223_p2) }
   0xa   : > { %v1786_v13 = vld [vmem:[%s1973_s3 + $0x10] sm:$0xf] (!%p223_p2)  ;;  %v1791_v14 = vld [vmem:[%s1973_s3 + $0x14] sm:$0xf] (!%p223_p2)  ;;  %v1806_v15 = vld [vmem:[%s1973_s3 + $0x18] sm:$0xf] (!%p223_p2) }
   0xb   : > { %v1811_v16 = vld [vmem:[%s1973_s3 + $0x1c] sm:$0xf] (!%p223_p2)  ;;  %v1816_v17 = vld [vmem:[%s1973_s3 + $0x20] sm:$0xf] (!%p223_p2) }
   0xc   : > { %v1821_v18 = vld [vmem:[%s1974_s4] ss:$0 sm:$0xff] (!%p223_p2) }
   0xd   : > { %s1978_s22 = smov (!%p257_p3, %s1362_s22), 1  ;;  %v1826_v19 = vld [vmem:[%s1975_s5] ss:$0 sm:$0xff] }
   0xe   : > { %s1627_s19 = smul.u32 80, %s1978_s22  ;;  %s1415_s20 = sshll.u32 %s1978_s22, 5 }
   0xf   : > { %s1776_s29 = scalar_lea.vmem %s1976_s6, %s1415_s20 }
  0x10   : > { %s1796_s13 = scalar_lea.vmem %s1970_s0, %s1627_s19  ;;  %s1801_s16 = scalar_lea.vmem %s1971_s1, %s1627_s19 }
  0x11 LB: >> { %vm332_vm0 = vcmask 1043456   ;;  %v1668_v20 = vmov 0.0   ;;  %vm1669_vm1 = vmmov 0   ;;  %s1416_s7 = sshll.u32 %s1666_s30, 3  ;;  %vm328_vm2 = vcmask 64512   ;;  %s1412_s9 = sshll.u32 %s1666_s30, 2  ;;  %s1666_s30 = sphi %s1828_s30, %s298_s30  }
  0x12   : >> { %1508 = vmatprep.subr.bf16.mxu0 %v1668_v20  ;;  %v794_v21 = vsel %vm332_vm0, %v1761_v9, 0  ;;  %1510 = vmatprep.mubr.msk.bf16.mxu0 %vm1669_vm1, %v1668_v20  ;;  %v334_v22 = vsel %vm332_vm0, %v1721_v1, 0  ;;  %s1843_s22 = scalar_lea.vmem %s1796_s13, %s1416_s7  ;;  %s1846_s8 = scalar_lea.vmem %s1801_s16, %s1416_s7  ;;  %v853_v23 = vsel %vm332_vm0, %v1766_v10, 0  ;;  %v380_v37 = vsel %vm332_vm0, %v1716_v0, 0 }
  0x13   : >> { %1509 = vmatpush3.bf16.msra.mxu0 %v794_v21  ;;  %1454 = vmatprep.subr.bf16.mxu1 %v1668_v20  ;;  %v780_v24 = vld [vmem:[%s1846_s8] sm:$0xf]  ;;  %v781_v25 = vld [vmem:[%s1846_s8 + $0x4] sm:$0x1]  ;;  %v901_v39 = vsel %vm332_vm0, %v1771_v11, 0  ;;  %v427_v40 = vsel %vm332_vm0, %v1726_v2, 0  ;;  %s1269_s10 = scalar_lea.vmem %s1776_s29, %s1412_s9 }
  0x14   : >> { %1455 = vmatpush3.bf16.msra.mxu1 %v334_v22  ;;  %1456 = vmatprep.mubr.msk.bf16.mxu1 %vm1669_vm1, %v1668_v20  ;;  %v302_v26 = vld [vmem:[%s1843_s22] sm:$0xf]  ;;  %v1399_v27 = vcombine.low %v780_v24, %v781_v25  ;;  %v303_v28 = vld [vmem:[%s1843_s22 + $0x4] sm:$0x1]  ;;  %v948_v42 = vsel %vm332_vm0, %v1781_v12, 0  ;;  %v474_v45 = vsel %vm332_vm0, %v1731_v3, 0 }
  0x15   : >> { %1460 = vmatprep.subr.bf16.mxu1 %v1668_v20  ;;  %1514 = vmatprep.subr.bf16.mxu0 %v1668_v20  ;;  %v1379_v29 = vcombine.low %v302_v26, %v303_v28  ;;  %v1394_v44 = vld [vmem:[%s1846_s8 + $0xc] sm:$0x1]  ;;  %v1393_v46 = vld [vmem:[%s1846_s8 + $0x8] sm:$0xf]  ;;  %v1007_v48 = vsel %vm332_vm0, %v1786_v13, 0  ;;  %v533_v55 = vsel %vm332_vm0, %v1736_v4, 0 }
  0x16   : >> { %1511 = vmatmul.mubr.msk.bf16.vlgmr.msra.gmra.mrb[0].mxu0 %vm328_vm2, %v780_v24  ;;  %v845_v30 = vshll.u32 %v1399_v27, 16  ;;  %v843_v33 = vshrl.u32 %v1399_v27, 16  ;;  %v896_v41 = vrot.slane %v1399_v27, 1  ;;  %v1403_v47 = vcombine.low %v1393_v46, %v1394_v44  ;;  %v1375_v50 = vld [vmem:[%s1843_s22 + $0xc] sm:$0x1]  ;;  %s298_s30 = sadd.s32 1, %s1666_s30  }
  0x17   : >> { %1515 = vmatpush3.bf16.msra.mxu0 %v853_v23  ;;  %1516 = vmatprep.mubr.msk.bf16.mxu0 %vm1669_vm1, %v1668_v20  ;;  %v322_v31 = vshrl.u32 %v1379_v29, 16  ;;  %v324_v32 = vshll.u32 %v1379_v29, 16  ;;  %v422_v43 = vrot.slane %v1379_v29, 1  ;;  %v1374_v53 = vld [vmem:[%s1843_s22 + $0x8] sm:$0xf]  ;;  %v1055_v58 = vsel %vm332_vm0, %v1791_v14, 0 }
  0x18   : >> { %1520 = vmatprep.subr.bf16.mxu0 %v1668_v20  ;;  %v847_v34 = vrot.slane %v845_v30, 1  ;;  %v999_v49 = vshll.u32 %v1403_v47, 16  ;;  %v997_v51 = vshrl.u32 %v1403_v47, 16  ;;  %v1384_v54 = vcombine.low %v1374_v53, %v1375_v50  ;;  %v1397_v23 = vld [vmem:[%s1846_s8 + $0x14] sm:$0x1]  ;;  %p295_p4 = scmp.ge.s32.totalorder %s298_s30, 8  }
  0x19   : >> { %v326_v35 = vrot.slane %v324_v32, 1  ;;  %v581_v62 = vsel %vm332_vm0, %v1741_v5, 0  ;;  %v1050_v63 = vrot.slane %v1403_v47, 1  ;;  %v1102_v21 = vsel %vm332_vm0, %v1806_v15, 0  ;;  %v1396_v25 = vld [vmem:[%s1846_s8 + $0x10] sm:$0xf] }
  0x1a   : >> { %v848_v38 = vor.u32 %v847_v34, %v843_v33  ;;  %v1001_v52 = vrot.slane %v999_v49, 1  ;;  %v525_v57 = vshll.u32 %v1384_v54, 16  ;;  %v523_v59 = vshrl.u32 %v1384_v54, 16  ;;  %v1378_v29 = vld [vmem:[%s1843_s22 + $0x14] sm:$0x1] }
  0x1b   : >> { %v327_v36 = vor.u32 %v326_v35, %v322_v31  ;;  %v576_v22 = vrot.slane %v1384_v54, 1  ;;  %v628_v24 = vsel %vm332_vm0, %v1746_v6, 0  ;;  %v1161_v27 = vsel %vm332_vm0, %v1811_v16, 0  ;;  %v1377_v32 = vld [vmem:[%s1843_s22 + $0x10] sm:$0xf] }
  0x1c   : >> { %v1002_v56 = vor.u32 %v1001_v52, %v997_v51  ;;  %v527_v60 = vrot.slane %v525_v57, 1  ;;  %v1388_v33 = vcombine.low %v1377_v32, %v1378_v29  ;;  %v687_v34 = vsel %vm332_vm0, %v1751_v7, 0 }
  0x1d   : >> { %1457 = vmatmul.mubr.msk.bf16.vlgmr.msra.gmra.mrb[0].mxu1 %vm328_vm2, %v327_v36  ;;  %vm1270_vm3 = vcmask 60416  }
  0x1e   : >> { %1461 = vmatpush3.bf16.msra.mxu1 %v380_v37  ;;  %1462 = vmatprep.mubr.msk.bf16.mxu1 %vm1669_vm1, %v1668_v20  ;;  %v528_v61 = vor.u32 %v527_v60, %v523_v59  ;;  %v679_v36 = vshll.u32 %v1388_v33, 16  ;;  %v1209_v37 = vsel %vm332_vm0, %v1816_v17, 0 }
  0x1f   : >> { %1466 = vmatprep.subr.bf16.mxu1 %v1668_v20 }
  0x22   : >> { %1517 = vmatmul.mubr.msk.bf16.vlgmr.msra.gmra.mrb[0].mxu0 %vm328_vm2, %v848_v38  ;;  %v677_v38 = vshrl.u32 %v1388_v33, 16 }
  0x23   : >> { %1521 = vmatpush3.bf16.msra.mxu0 %v901_v39  ;;  %1522 = vmatprep.mubr.msk.bf16.mxu0 %vm1669_vm1, %v1668_v20  ;;  %v681_v39 = vrot.slane %v679_v36, 1 }
  0x24   : >> { %1526 = vmatprep.subr.bf16.mxu0 %v1668_v20 }
  0x29   : >> { %1463 = vmatmul.mubr.msk.bf16.vlgmr.msra.gmra.mrb[0].mxu1 %vm328_vm2, %v302_v26  ;;  %v1407_v26 = vcombine.low %v1396_v25, %v1397_v23 }
  0x2a   : >> { %1467 = vmatpush3.bf16.msra.mxu1 %v427_v40  ;;  %1468 = vmatprep.mubr.msk.bf16.mxu1 %vm1669_vm1, %v1668_v20  ;;  %v682_v40 = vor.u32 %v681_v39, %v677_v38 }
  0x2b   : >> { %1472 = vmatprep.subr.bf16.mxu1 %v1668_v20  ;;  %v1153_v28 = vshll.u32 %v1407_v26, 16  ;;  %v1151_v30 = vshrl.u32 %v1407_v26, 16 }
  0x2d   : >> { %v1155_v31 = vrot.slane %v1153_v28, 1 }
  0x2e   : >> { %1523 = vmatmul.mubr.msk.bf16.vlgmr.msra.gmra.mrb[0].mxu0 %vm328_vm2, %v896_v41  ;;  %v735_v41 = vsel %vm332_vm0, %v1756_v8, 0 }
  0x2f   : >> { %1527 = vmatpush3.bf16.msra.mxu0 %v948_v42  ;;  %1528 = vmatprep.mubr.msk.bf16.mxu0 %vm1669_vm1, %v1668_v20  ;;  %v1156_v35 = vor.u32 %v1155_v31, %v1151_v30  ;;  %v1204_v42 = vrot.slane %v1407_v26, 1 }
  0x30   : >> { %1532 = vmatprep.subr.bf16.mxu0 %v1668_v20 }
  0x35   : >> { %1469 = vmatmul.mubr.msk.bf16.vlgmr.msra.gmra.mrb[0].mxu1 %vm328_vm2, %v422_v43  ;;  %v730_v43 = vrot.slane %v1388_v33, 1 }
  0x36   : >> { %1473 = vmatpush3.bf16.msra.mxu1 %v474_v45  ;;  %1474 = vmatprep.mubr.msk.bf16.mxu1 %vm1669_vm1, %v1668_v20 }
  0x37   : >> { %1478 = vmatprep.subr.bf16.mxu1 %v1668_v20 }
  0x3a   : >> { %1529 = vmatmul.mubr.msk.bf16.vlgmr.msra.gmra.mrb[0].mxu0 %vm328_vm2, %v1393_v46 }
  0x3b   : >> { %1533 = vmatpush3.bf16.msra.mxu0 %v1007_v48  ;;  %1534 = vmatprep.mubr.msk.bf16.mxu0 %vm1669_vm1, %v1668_v20 }
  0x3c   : >> { %1538 = vmatprep.subr.bf16.mxu0 %v1668_v20 }
  0x41   : >> { %1475 = vmatmul.mubr.msk.bf16.vlgmr.msra.gmra.mrb[0].mxu1 %vm328_vm2, %v1374_v53 }
  0x42   : >> { %1479 = vmatpush3.bf16.msra.mxu1 %v533_v55  ;;  %1480 = vmatprep.mubr.msk.bf16.mxu1 %vm1669_vm1, %v1668_v20 }
  0x43   : >> { %1484 = vmatprep.subr.bf16.mxu1 %v1668_v20 }
  0x46   : >> { %1535 = vmatmul.mubr.msk.bf16.vlgmr.msra.gmra.mrb[0].mxu0 %vm328_vm2, %v1002_v56 }
  0x47   : >> { %1539 = vmatpush3.bf16.msra.mxu0 %v1055_v58  ;;  %1540 = vmatprep.mubr.msk.bf16.mxu0 %vm1669_vm1, %v1668_v20 }
  0x48   : >> { %1544 = vmatprep.subr.bf16.mxu0 %v1668_v20 }
  0x4d   : >> { %1481 = vmatmul.mubr.msk.bf16.vlgmr.msra.gmra.mrb[0].mxu1 %vm328_vm2, %v528_v61 }
  0x4e   : >> { %1485 = vmatpush3.bf16.msra.mxu1 %v581_v62  ;;  %1486 = vmatprep.mubr.msk.bf16.mxu1 %vm1669_vm1, %v1668_v20 }
  0x4f   : >> { %1490 = vmatprep.subr.bf16.mxu1 %v1668_v20 }
  0x52   : >> { %1541 = vmatmul.mubr.msk.bf16.vlgmr.msra.gmra.mrb[0].mxu0 %vm328_vm2, %v1050_v63 }
  0x53   : >> { %1545 = vmatpush3.bf16.msra.mxu0 %v1102_v21  ;;  %1546 = vmatprep.mubr.msk.bf16.mxu0 %vm1669_vm1, %v1668_v20 }
  0x54   : >> { %1550 = vmatprep.subr.bf16.mxu0 %v1668_v20 }
  0x59   : >> { %1487 = vmatmul.mubr.msk.bf16.vlgmr.msra.gmra.mrb[0].mxu1 %vm328_vm2, %v576_v22 }
  0x5a   : >> { %1491 = vmatpush3.bf16.msra.mxu1 %v628_v24  ;;  %1492 = vmatprep.mubr.msk.bf16.mxu1 %vm1669_vm1, %v1668_v20 }
  0x5b   : >> { %1496 = vmatprep.subr.bf16.mxu1 %v1668_v20 }
  0x5e   : >> { %1547 = vmatmul.mubr.msk.bf16.vlgmr.msra.gmra.mrb[0].mxu0 %vm328_vm2, %v1396_v25 }
  0x5f   : >> { %1551 = vmatpush3.bf16.msra.mxu0 %v1161_v27  ;;  %1552 = vmatprep.mubr.msk.bf16.mxu0 %vm1669_vm1, %v1668_v20 }
  0x60   : >> { %1556 = vmatprep.subr.bf16.mxu0 %v1668_v20 }
  0x65   : >> { %1493 = vmatmul.mubr.msk.bf16.vlgmr.msra.gmra.mrb[0].mxu1 %vm328_vm2, %v1377_v32 }
  0x66   : >> { %1497 = vmatpush3.bf16.msra.mxu1 %v687_v34  ;;  %1498 = vmatprep.mubr.msk.bf16.mxu1 %vm1669_vm1, %v1668_v20 }
  0x67   : >> { %1502 = vmatprep.subr.bf16.mxu1 %v1668_v20 }
  0x6a   : >> { %1553 = vmatmul.mubr.msk.bf16.vlgmr.msra.gmra.mrb[0].mxu0 %vm328_vm2, %v1156_v35 }
  0x6b   : >> { %1557 = vmatpush3.bf16.msra.mxu0 %v1209_v37  ;;  %1558 = vmatprep.mubr.msk.bf16.mxu0 %vm1669_vm1, %v1668_v20 }
  0x71   : >> { %1499 = vmatmul.mubr.msk.bf16.vlgmr.msra.gmra.mrb[0].mxu1 %vm328_vm2, %v682_v40 }
  0x72   : >> { %1503 = vmatpush3.bf16.msra.mxu1 %v735_v41  ;;  %1504 = vmatprep.mubr.msk.bf16.mxu1 %vm1669_vm1, %v1668_v20 }
  0x76   : >> { %1559 = vmatmul.mubr.msk.bf16.vlgmr.msra.gmra.mrb[0].mxu0 %vm328_vm2, %v1204_v42 }
  0x7d   : >> { %1505 = vmatmul.mubr.msk.bf16.vlgmr.msra.gmra.mrb[0].mxu1 %vm328_vm2, %v730_v43 }
 0x149   : >> { %v1245_v44 = vpop.f32.mrb[0].mxu0 }
 0x14a   : >> { %v1560_v45 = vpop.f32.mrb[1].mxu0 }
 0x14b   : >> { %v1248_v46 = vpop.f32.mrb[2].mxu0 }
 0x14c   : >> { %v1561_v47 = vpop.f32.mrb[3].mxu0 }
 0x150   : >> { %v771_v48 = vpop.f32.mrb[0].mxu1 }
 0x151   : >> { %v1562_v49 = vadd.f32 %v1245_v44, %v771_v48  ;;  %v1506_v50 = vpop.f32.mrb[1].mxu1 }
 0x152   : >> { %v774_v51 = vpop.f32.mrb[2].mxu1 }
 0x153   : >> { %v1258_v52 = vmul.f32 %v1562_v49, %v1821_v18  ;;  %v1507_v53 = vpop.f32.mrb[3].mxu1 }
 0x155   : >> { %v1265_v54 = vadd.f32 %v1826_v19, %v1258_v52  ;;  %297 = sbr.rel (!%p295_p4) target bundleno = 17 (0x11), region = 91 }
 0x157   : >> { %v1266_v20 = vmax.f32 %v1265_v54, 0.0 }
 0x159   : >> { %v1267_v55 = vpack.c.bf16 %v1266_v20, %v1266_v20 }
 0x15b   : >> { %1271 = vst.msk [vmem:[%s1269_s10] sm:$0xf] %vm1270_vm3, %v1267_v55 }
 0x15c PF: > { %s16_s21 = sadd.s32 1, %s1662_s21  }
 0x15d   : > { %p13_p5 = scmp.ge.s32.totalorder %s16_s21, 4  }
 0x15f   :  { %15 = sbr.rel (!%p13_p5) target bundleno = 1 (0x1), region = 102 }

// kernel: attention_unet_forward.24
= control target key start
LH: loop header
LB: loop body
LE: loop exit
PB: predicated region body
PF: predicated region fallthrough
CT: control target
= control target key end

     0   :  { %s1831_s21 = smov 0   ;;  %s2150_s0 = inlined_call_operand.vmem [shape: bf16[2,18,18,4], index: 0, kind: input, shape index: {}]   ;;  %s2151_s1 = inlined_call_operand.vmem [shape: bf16[2,18,18,4], index: 1, kind: input, shape index: {}]   ;;  %s2152_s2 = inlined_call_operand.vmem [shape: bf16[3,3,4,4], index: 2, kind: input, shape index: {}]   ;;  %s2153_s3 = inlined_call_operand.vmem [shape: bf16[3,3,4,4], index: 3, kind: input, shape index: {}]   ;;  %s2154_s4 = inlined_call_operand.vmem [shape: f32[1,4], index: 4, kind: input, shape index: {}]   ;;  %s2155_s5 = inlined_call_operand.vmem [shape: f32[1,4], index: 5, kind: input, shape index: {}]   ;;  %s2156_s6 = inlined_call_operand.vmem [shape: bf16[2,16,16,4], index: 6, kind: output, shape index: {}]  }
   0x1 LB: > { %s1470_s22 = sadd.s32 4294967295, %s1788_s21   ;;  %p1474_p0 = scmp.ge.s32.totalorder %s1788_s21, 1  ;;  %s1788_s21 = sphi %s1831_s21, %s16_s21  }
   0x2   : > { %p222_p1 = scmp.lt.s32.totalorder %s1788_s21, 3 }
   0x4   : > { %p223_p2 = pnand %p1474_p0, %p222_p1 }
   0x5   : > { %p257_p3 = scmp.lt.s32.totalorder (!%p223_p2), %s1470_s22, 1  ;;  %v1842_v0 = vld [vmem:[%s2152_s2] sm:$0x3] (!%p223_p2)  ;;  %v1847_v1 = vld [vmem:[%s2152_s2 + $0x2] sm:$0x3] (!%p223_p2)  ;;  %s1954_s30 = smov (!%p223_p2), 0  }
   0x6   : > { %226 = sbr.rel (%p223_p2) target bundleno = 350 (0x15e), region = 44  ;;  %v1852_v2 = vld [vmem:[%s2152_s2 + $0x4] sm:$0x3] (!%p223_p2)  ;;  %v1857_v3 = vld [vmem:[%s2152_s2 + $0x6] sm:$0x3] (!%p223_p2) }
   0x7   : > { %v1862_v4 = vld [vmem:[%s2152_s2 + $0x8] sm:$0x3] (!%p223_p2)  ;;  %v1867_v5 = vld [vmem:[%s2152_s2 + $0xa] sm:$0x3] (!%p223_p2)  ;;  %v1872_v6 = vld [vmem:[%s2152_s2 + $0xc] sm:$0x3] (!%p223_p2) }
   0x8   : > { %v1877_v7 = vld [vmem:[%s2152_s2 + $0xe] sm:$0x3] (!%p223_p2)  ;;  %v1882_v8 = vld [vmem:[%s2152_s2 + $0x10] sm:$0x3] (!%p223_p2)  ;;  %v1887_v9 = vld [vmem:[%s2153_s3] sm:$0x3] (!%p223_p2) }
   0x9   : > { %v1892_v10 = vld [vmem:[%s2153_s3 + $0x2] sm:$0x3] (!%p223_p2)  ;;  %v1897_v11 = vld [vmem:[%s2153_s3 + $0x4] sm:$0x3] (!%p223_p2)  ;;  %v1907_v12 = vld [vmem:[%s2153_s3 + $0x6] sm:$0x3] (!%p223_p2) }
   0xa   : > { %v1912_v13 = vld [vmem:[%s2153_s3 + $0x8] sm:$0x3] (!%p223_p2)  ;;  %v1917_v14 = vld [vmem:[%s2153_s3 + $0xa] sm:$0x3] (!%p223_p2)  ;;  %v1932_v15 = vld [vmem:[%s2153_s3 + $0xc] sm:$0x3] (!%p223_p2) }
   0xb   : > { %v1937_v16 = vld [vmem:[%s2153_s3 + $0xe] sm:$0x3] (!%p223_p2)  ;;  %v1942_v17 = vld [vmem:[%s2153_s3 + $0x10] sm:$0x3] (!%p223_p2)  ;;  %v1947_v18 = vld [vmem:[%s2154_s4] ss:$0 sm:$0xff] (!%p223_p2) }
   0xc   : > { %v1952_v19 = vld [vmem:[%s2155_s5] ss:$0 sm:$0xff] (!%p223_p2) }
   0xd   : > { %s2158_s22 = smov (!%p257_p3, %s1470_s22), 1 }
   0xe   : > { %s1747_s19 = smul.u32 216, %s2158_s22  ;;  %s1531_s20 = sshll.u32 %s2158_s22, 7 }
   0xf   : > { %s1902_s29 = scalar_lea.vmem %s2156_s6, %s1531_s20 }
  0x10   : > { %s1922_s13 = scalar_lea.vmem %s2150_s0, %s1747_s19  ;;  %s1927_s16 = scalar_lea.vmem %s2151_s1, %s1747_s19 }
  0x11 LB: >> { %vm344_vm0 = vcmask 1041408   ;;  %v1794_v20 = vmov 0.0   ;;  %vm1795_vm1 = vmmov 0   ;;  %s1532_s7 = smul.u32 12, %s1792_s30  ;;  %vm340_vm2 = vcmask 31744   ;;  %s1536_s9 = sshll.u32 %s1792_s30, 3  ;;  %s1792_s30 = sphi %s1954_s30, %s298_s30  }
  0x12   : >> { %1627 = vmatprep.subr.bf16.mxu0 %v1794_v20  ;;  %v850_v21 = vsel %vm344_vm0, %v1887_v9, 0  ;;  %1629 = vmatprep.mubr.msk.bf16.mxu0 %vm1795_vm1, %v1794_v20  ;;  %v346_v22 = vsel %vm344_vm0, %v1847_v1, 0  ;;  %v913_v24 = vsel %vm344_vm0, %v1892_v10, 0  ;;  %vm327_vm3 = vsmask.f32 7424  ;;  %s1376_s10 = scalar_lea.vmem %s1902_s29, %s1536_s9  ;;  %s298_s30 = sadd.s32 1, %s1792_s30  }
  0x13   : >> { %1628 = vmatpush3.bf16.msra.mxu0 %v850_v21  ;;  %1573 = vmatprep.subr.bf16.mxu1 %v1794_v20  ;;  %s1971_s22 = scalar_lea.vmem %s1927_s16, %s1532_s7  ;;  %s1976_s8 = scalar_lea.vmem %s1922_s13, %s1532_s7  ;;  %v392_v40 = vsel %vm344_vm0, %v1842_v0, 0  ;;  %v965_v43 = vsel %vm344_vm0, %v1897_v11, 0  ;;  %vm435_vm4 = vcmask 1046528   ;;  %vm1377_vm5 = vcmask 27648  }
  0x14   : >> { %1574 = vmatpush3.bf16.msra.mxu1 %v346_v22  ;;  %1575 = vmatprep.mubr.msk.bf16.mxu1 %vm1795_vm1, %v1794_v20  ;;  %v1979_v23 = vld [vmem:[%s1971_s22] sm:$0xff]   ;;  %v1989_v26 = vld [vmem:[%s1976_s8 + $0x8] ss:$0 sps:$4 sm:$0x11]   ;;  %v2010_v44 = vld [vmem:[%s1971_s22 + $0x18] sm:$0xff]   ;;  %p295_p4 = scmp.ge.s32.totalorder %s298_s30, 16  }
  0x15   : >> { %1579 = vmatprep.subr.bf16.mxu1 %v1794_v20  ;;  %1633 = vmatprep.subr.bf16.mxu0 %v1794_v20  ;;  %v1986_v25 = vld [vmem:[%s1976_s8] sm:$0xff]   ;;  %v1769_v27 = vld [vmem:[%s1971_s22 + $0x8] ss:$0 sps:$4 sm:$0x11]   ;;  %v898_v28 = vshrl.u32 %v1979_v23, 16  ;;  %v900_v29 = vshll.u32 %v1979_v23, 16 }
  0x16   : >> { %1630 = vmatmul.mubr.msk.bf16.vlgmr.msra.gmra.mrb[0].mxu0 %vm340_vm2, %v1979_v23  ;;  %v329_v30 = vshrl.u32 %v1986_v25, 16  ;;  %v331_v31 = vshll.u32 %v1986_v25, 16  ;;  %v336_v32 = vshll.u32 %v1989_v26, 16  ;;  %v905_v34 = vshll.u32 %v1769_v27, 16  ;;  %v2014_v45 = vld [vmem:[%s1976_s8 + $0x18] sm:$0xff]  }
  0x17   : >> { %1634 = vmatpush3.bf16.msra.mxu0 %v913_v24  ;;  %1635 = vmatprep.mubr.msk.bf16.mxu0 %vm1795_vm1, %v1794_v20  ;;  %v902_v33 = vrot.slane %v900_v29, 1  ;;  %v1776_v46 = vld [vmem:[%s1971_s22 + $0x20] ss:$0 sps:$4 sm:$0x11]   ;;  %v1236_v47 = vshrl.u32 %v2010_v44, 16  ;;  %v1238_v48 = vshll.u32 %v2010_v44, 16 }
  0x18   : >> { %1639 = vmatprep.subr.bf16.mxu0 %v1794_v20  ;;  %v333_v35 = vrot.slane %v331_v31, 1  ;;  %v338_v36 = vrot.slane %v336_v32, 1  ;;  %v907_v38 = vrot.slane %v905_v34, 1  ;;  %v1777_v49 = vld [vmem:[%s1976_s8 + $0x20] ss:$0 sps:$4 sm:$0x11]  }
  0x19   : >> { %v903_v37 = vor.u32 %v902_v33, %v898_v28  ;;  %v714_v50 = vshrl.u32 %v2014_v45, 16  ;;  %v716_v51 = vshll.u32 %v2014_v45, 16  ;;  %v1240_v52 = vrot.slane %v1238_v48, 1 }
  0x1a   : >> { %v334_v39 = vor.u32 %v333_v35, %v329_v30  ;;  %v1243_v53 = vshll.u32 %v1776_v46, 16  ;;  %v1296_v54 = vrot.slane %v2010_v44, 1  ;;  %v721_v56 = vshll.u32 %v1777_v49, 16 }
  0x1b   : >> { %v908_v42 = vsel %vm327_vm3, %v903_v37, %v907_v38  ;;  %v718_v55 = vrot.slane %v716_v51, 1  ;;  %v1297_v57 = vrot.slane %v1776_v46, 1  ;;  %v774_v58 = vrot.slane %v2014_v45, 1  ;;  %v1772_v37 = vld [vmem:[%s1971_s22 + $0x14] ss:$0 sps:$4 sm:$0x11]  }
  0x1c   : >> { %v339_v41 = vsel %vm327_vm3, %v334_v39, %v338_v36  ;;  %v958_v59 = vrot.slane %v1979_v23, 1  ;;  %v1241_v60 = vor.u32 %v1240_v52, %v1236_v47  ;;  %v1245_v61 = vrot.slane %v1243_v53, 1  ;;  %v1770_v36 = vld [vmem:[%s1971_s22 + $0xc] sm:$0xff]   ;;  %v1773_v46 = vld [vmem:[%s1976_s8 + $0x14] ss:$0 sps:$4 sm:$0x11]  }
  0x1d   : >> { %1576 = vmatmul.mubr.msk.bf16.vlgmr.msra.gmra.mrb[0].mxu1 %vm340_vm2, %v339_v41  ;;  %v775_v62 = vrot.slane %v1777_v49, 1  ;;  %v959_v63 = vrot.slane %v1769_v27, 1  ;;  %v719_v21 = vor.u32 %v718_v55, %v714_v50  ;;  %v723_v22 = vrot.slane %v721_v56, 1  ;;  %v1771_v41 = vld [vmem:[%s1976_s8 + $0xc] sm:$0xff]  }
  0x1e   : >> { %1580 = vmatpush3.bf16.msra.mxu1 %v392_v40  ;;  %1581 = vmatprep.mubr.msk.bf16.mxu1 %vm1795_vm1, %v1794_v20  ;;  %v2030_v24 = vsel %vm435_vm4, %v1296_v54, %v1297_v57  ;;  %v2033_v28 = vsel %vm327_vm3, %v1241_v60, %v1245_v61  ;;  %v443_v30 = vsel %vm344_vm0, %v1852_v2, 0  ;;  %v1019_v31 = vsel %vm344_vm0, %v1907_v12, 0 }
  0x1f   : >> { %1585 = vmatprep.subr.bf16.mxu1 %v1794_v20  ;;  %v2036_v29 = vsel %vm435_vm4, %v774_v58, %v775_v62  ;;  %v2041_v23 = vsel %vm327_vm3, %v719_v21, %v723_v22  ;;  %v960_v27 = vsel %vm435_vm4, %v958_v59, %v959_v63  ;;  %v436_v32 = vrot.slane %v1986_v25, 1 }
  0x20   : >> { %v437_v33 = vrot.slane %v1989_v26, 1  ;;  %v497_v35 = vsel %vm344_vm0, %v1857_v3, 0  ;;  %v1069_v38 = vshll.u32 %v1770_v36, 16  ;;  %v1067_v26 = vshrl.u32 %v1770_v36, 16 }
  0x21   : >> { %v1074_v40 = vshll.u32 %v1772_v37, 16  ;;  %v547_v47 = vshll.u32 %v1771_v41, 16  ;;  %v560_v48 = vsel %vm344_vm0, %v1862_v4, 0  ;;  %v545_v50 = vshrl.u32 %v1771_v41, 16 }
  0x22   : >> { %1636 = vmatmul.mubr.msk.bf16.vlgmr.msra.gmra.mrb[0].mxu0 %vm340_vm2, %v908_v42  ;;  %v438_v34 = vsel %vm435_vm4, %v436_v32, %v437_v33  ;;  %v1071_v39 = vrot.slane %v1069_v38, 1  ;;  %v552_v52 = vshll.u32 %v1773_v46, 16  ;;  %v1134_v53 = vsel %vm344_vm0, %v1917_v14, 0 }
  0x23   : >> { %1640 = vmatpush3.bf16.msra.mxu0 %v965_v43  ;;  %1641 = vmatprep.mubr.msk.bf16.mxu0 %vm1795_vm1, %v1794_v20  ;;  %v1076_v43 = vrot.slane %v1074_v40, 1  ;;  %v549_v51 = vrot.slane %v547_v47, 1  ;;  %v1127_v56 = vrot.slane %v1770_v36, 1  ;;  %v1128_v57 = vrot.slane %v1772_v37, 1 }
  0x24   : >> { %1645 = vmatprep.subr.bf16.mxu0 %v1794_v20  ;;  %v1072_v42 = vor.u32 %v1071_v39, %v1067_v26  ;;  %v554_v55 = vrot.slane %v552_v52, 1  ;;  %v612_v59 = vsel %vm344_vm0, %v1867_v5, 0  ;;  %v1188_v61 = vsel %vm344_vm0, %v1932_v15, 0 }
  0x25   : >> { %v550_v54 = vor.u32 %v549_v51, %v545_v50  ;;  %v1129_v60 = vsel %vm435_vm4, %v1127_v56, %v1128_v57  ;;  %v605_v62 = vrot.slane %v1771_v41, 1  ;;  %v606_v63 = vrot.slane %v1773_v46, 1 }
  0x26   : >> { %v1077_v49 = vsel %vm327_vm3, %v1072_v42, %v1076_v43  ;;  %v666_v22 = vsel %vm344_vm0, %v1872_v6, 0 }
  0x27   : >> { %v555_v58 = vsel %vm327_vm3, %v550_v54, %v554_v55  ;;  %v607_v21 = vsel %vm435_vm4, %v605_v62, %v606_v63 }
  0x29   : >> { %1582 = vmatmul.mubr.msk.bf16.vlgmr.msra.gmra.mrb[0].mxu1 %vm340_vm2, %v1986_v25  ;;  %v1082_v25 = vsel %vm344_vm0, %v1912_v13, 0 }
  0x2a   : >> { %1586 = vmatpush3.bf16.msra.mxu1 %v443_v30  ;;  %1587 = vmatprep.mubr.msk.bf16.mxu1 %vm1795_vm1, %v1794_v20  ;;  %v1251_v30 = vsel %vm344_vm0, %v1937_v16, 0 }
  0x2b   : >> { %1591 = vmatprep.subr.bf16.mxu1 %v1794_v20 }
  0x2e   : >> { %1642 = vmatmul.mubr.msk.bf16.vlgmr.msra.gmra.mrb[0].mxu0 %vm340_vm2, %v960_v27  ;;  %v729_v27 = vsel %vm344_vm0, %v1877_v7, 0 }
  0x2f   : >> { %1646 = vmatpush3.bf16.msra.mxu0 %v1019_v31  ;;  %1647 = vmatprep.mubr.msk.bf16.mxu0 %vm1795_vm1, %v1794_v20  ;;  %v1303_v31 = vsel %vm344_vm0, %v1942_v17, 0 }
  0x30   : >> { %1651 = vmatprep.subr.bf16.mxu0 %v1794_v20 }
  0x35   : >> { %1588 = vmatmul.mubr.msk.bf16.vlgmr.msra.gmra.mrb[0].mxu1 %vm340_vm2, %v438_v34 }
  0x36   : >> { %1592 = vmatpush3.bf16.msra.mxu1 %v497_v35  ;;  %1593 = vmatprep.mubr.msk.bf16.mxu1 %vm1795_vm1, %v1794_v20 }
  0x37   : >> { %1597 = vmatprep.subr.bf16.mxu1 %v1794_v20 }
  0x3a   : >> { %1648 = vmatmul.mubr.msk.bf16.vlgmr.msra.gmra.mrb[0].mxu0 %vm340_vm2, %v1770_v36 }
  0x3b   : >> { %1652 = vmatpush3.bf16.msra.mxu0 %v1082_v25  ;;  %1653 = vmatprep.mubr.msk.bf16.mxu0 %vm1795_vm1, %v1794_v20 }
  0x3c   : >> { %1657 = vmatprep.subr.bf16.mxu0 %v1794_v20 }
  0x41   : >> { %1594 = vmatmul.mubr.msk.bf16.vlgmr.msra.gmra.mrb[0].mxu1 %vm340_vm2, %v1771_v41 }
  0x42   : >> { %1598 = vmatpush3.bf16.msra.mxu1 %v560_v48  ;;  %1599 = vmatprep.mubr.msk.bf16.mxu1 %vm1795_vm1, %v1794_v20 }
  0x43   : >> { %1603 = vmatprep.subr.bf16.mxu1 %v1794_v20 }
  0x46   : >> { %1654 = vmatmul.mubr.msk.bf16.vlgmr.msra.gmra.mrb[0].mxu0 %vm340_vm2, %v1077_v49 }
  0x47   : >> { %1658 = vmatpush3.bf16.msra.mxu0 %v1134_v53  ;;  %1659 = vmatprep.mubr.msk.bf16.mxu0 %vm1795_vm1, %v1794_v20 }
  0x48   : >> { %1663 = vmatprep.subr.bf16.mxu0 %v1794_v20 }
  0x4d   : >> { %1600 = vmatmul.mubr.msk.bf16.vlgmr.msra.gmra.mrb[0].mxu1 %vm340_vm2, %v555_v58 }
  0x4e   : >> { %1604 = vmatpush3.bf16.msra.mxu1 %v612_v59  ;;  %1605 = vmatprep.mubr.msk.bf16.mxu1 %vm1795_vm1, %v1794_v20 }
  0x4f   : >> { %1609 = vmatprep.subr.bf16.mxu1 %v1794_v20 }
  0x52   : >> { %1660 = vmatmul.mubr.msk.bf16.vlgmr.msra.gmra.mrb[0].mxu0 %vm340_vm2, %v1129_v60 }
  0x53   : >> { %1664 = vmatpush3.bf16.msra.mxu0 %v1188_v61  ;;  %1665 = vmatprep.mubr.msk.bf16.mxu0 %vm1795_vm1, %v1794_v20 }
  0x54   : >> { %1669 = vmatprep.subr.bf16.mxu0 %v1794_v20 }
  0x59   : >> { %1606 = vmatmul.mubr.msk.bf16.vlgmr.msra.gmra.mrb[0].mxu1 %vm340_vm2, %v607_v21 }
  0x5a   : >> { %1610 = vmatpush3.bf16.msra.mxu1 %v666_v22  ;;  %1611 = vmatprep.mubr.msk.bf16.mxu1 %vm1795_vm1, %v1794_v20 }
  0x5b   : >> { %1615 = vmatprep.subr.bf16.mxu1 %v1794_v20 }
  0x5e   : >> { %1666 = vmatmul.mubr.msk.bf16.vlgmr.msra.gmra.mrb[0].mxu0 %vm340_vm2, %v2010_v44  ;;  %v781_v44 = vsel %vm344_vm0, %v1882_v8, 0 }
  0x5f   : >> { %1670 = vmatpush3.bf16.msra.mxu0 %v1251_v30  ;;  %1671 = vmatprep.mubr.msk.bf16.mxu0 %vm1795_vm1, %v1794_v20 }
  0x60   : >> { %1675 = vmatprep.subr.bf16.mxu0 %v1794_v20 }
  0x65   : >> { %1612 = vmatmul.mubr.msk.bf16.vlgmr.msra.gmra.mrb[0].mxu1 %vm340_vm2, %v2014_v45 }
  0x66   : >> { %1616 = vmatpush3.bf16.msra.mxu1 %v729_v27  ;;  %1617 = vmatprep.mubr.msk.bf16.mxu1 %vm1795_vm1, %v1794_v20 }
  0x67   : >> { %1621 = vmatprep.subr.bf16.mxu1 %v1794_v20 }
  0x6a   : >> { %1672 = vmatmul.mubr.msk.bf16.vlgmr.msra.gmra.mrb[0].mxu0 %vm340_vm2, %v2033_v28 }
  0x6b   : >> { %1676 = vmatpush3.bf16.msra.mxu0 %v1303_v31  ;;  %1677 = vmatprep.mubr.msk.bf16.mxu0 %vm1795_vm1, %v1794_v20 }
  0x71   : >> { %1618 = vmatmul.mubr.msk.bf16.vlgmr.msra.gmra.mrb[0].mxu1 %vm340_vm2, %v2041_v23 }
  0x72   : >> { %1622 = vmatpush3.bf16.msra.mxu1 %v781_v44  ;;  %1623 = vmatprep.mubr.msk.bf16.mxu1 %vm1795_vm1, %v1794_v20 }
  0x76   : >> { %1678 = vmatmul.mubr.msk.bf16.vlgmr.msra.gmra.mrb[0].mxu0 %vm340_vm2, %v2030_v24 }
  0x7d   : >> { %1624 = vmatmul.mubr.msk.bf16.vlgmr.msra.gmra.mrb[0].mxu1 %vm340_vm2, %v2036_v29 }
 0x149   : >> { %v1339_v45 = vpop.f32.mrb[0].mxu0 }
 0x14a   : >> { %v1679_v28 = vpop.f32.mrb[1].mxu0 }
 0x14b   : >> { %v1342_v32 = vpop.f32.mrb[2].mxu0 }
 0x14c   : >> { %v1680_v33 = vpop.f32.mrb[3].mxu0 }
 0x150   : >> { %v817_v34 = vpop.f32.mrb[0].mxu1 }
 0x151   : >> { %v1681_v35 = vadd.f32 %v1339_v45, %v817_v34  ;;  %v1625_v36 = vpop.f32.mrb[1].mxu1 }
 0x152   : >> { %v820_v23 = vpop.f32.mrb[2].mxu1 }
 0x153   : >> { %v1354_v37 = vmul.f32 %v1681_v35, %v1947_v18  ;;  %v1682_v38 = vadd.f32 %v1342_v32, %v820_v23  ;;  %v1626_v25 = vpop.f32.mrb[3].mxu1 }
 0x155   : >> { %v1362_v20 = vadd.f32 %v1952_v19, %v1354_v37  ;;  %v1355_v24 = vmul.f32 %v1682_v38, %v1947_v18 }
 0x157   : >> { %v1364_v26 = vmax.f32 %v1362_v20, 0.0  ;;  %v1363_v29 = vadd.f32 %v1952_v19, %v1355_v24  ;;  %297 = sbr.rel (!%p295_p4) target bundleno = 17 (0x11), region = 91 }
 0x159   : >> { %v1534_v39 = vpack.c.bf16 %v1364_v26, %v1364_v26  ;;  %v1365_v40 = vmax.f32 %v1363_v29, 0.0 }
 0x15b   : >> { %1378 = vst.msk [vmem:[%s1376_s10] sm:$0xf] %vm1377_vm5, %v1534_v39  ;;  %v1535_v41 = vpack.c.bf16 %v1365_v40, %v1365_v40 }
 0x15d   : >> { %1379 = vst.msk [vmem:[%s1376_s10 + $0x4] sm:$0xf] %vm1377_vm5, %v1535_v41 }
 0x15e PF: > { %s16_s21 = sadd.s32 1, %s1788_s21  }
 0x15f   : > { %p13_p5 = scmp.ge.s32.totalorder %s16_s21, 4  }
 0x161   :  { %15 = sbr.rel (!%p13_p5) target bundleno = 1 (0x1), region = 102 }

// kernel: attention_unet_forward.25
= control target key start
LH: loop header
LB: loop body
LE: loop exit
PB: predicated region body
PF: predicated region fallthrough
CT: control target
= control target key end

     0   :  { %vm344_vm0 = vcmask 1041408   ;;  %vm247_vm1 = vcmask 31744   ;;  %vm843_vm2 = vcmask 7168   ;;  %s1663_s1 = inlined_call_operand.vmem [shape: bf16[4,1], index: 1, kind: input, shape index: {}]   ;;  %s1664_s0 = inlined_call_operand.vmem [shape: bf16[512,4], index: 0, kind: input, shape index: {}]   ;;  %s1665_s2 = inlined_call_operand.<no memory space> [shape: f32[1,1], index: 2, kind: input, shape index: {}]   ;;  %s1666_s3 = inlined_call_operand.<no memory space> [shape: f32[1,1], index: 3, kind: input, shape index: {}]   ;;  %s1667_s4 = inlined_call_operand.vmem [shape: f32[512,1], index: 4, kind: output, shape index: {}]  }
   0x1   :  { %v86_v0 = vld [vmem:[%s1663_s1] sm:$0x3]  ;;  %v9_v1 = vstv %s1665_s2  ;;  %v11_v4 = vstv %s1666_s3  ;;  %v1083_v6 = vld [vmem:[%s1664_s0 + $0x8] sm:$0xff]  }
   0x2   :  { %1079 = vmatprep.subr.msk.bf16.mxu0 %vm344_vm0, %v86_v0  ;;  %1080 = vmatprep.subr.msk.bf16.mxu1 %vm344_vm0, %v86_v0  ;;  %v346_v2 = vsel %vm344_vm0, %v86_v0, 0  ;;  %v1081_v3 = vld [vmem:[%s1664_s0] sm:$0xff]   ;;  %10 = vst [vmem:[#allocation2] sm:$0x1] %v9_v1  ;;  %12 = vst [vmem:[#allocation3] sm:$0x1] %v11_v4 }
   0x3   :  { %1012 = vmatpush3.bf16.msra.mxu0 %v346_v2  ;;  %1078 = vmatpush3.bf16.msra.mxu1 %v346_v2  ;;  %v1082_v5 = vld [vmem:[%s1664_s0 + $0x80] sm:$0xff]   ;;  %v1084_v7 = vld [vmem:[%s1664_s0 + $0x88] sm:$0xff]   ;;  %v1085_v8 = vld [vmem:[%s1664_s0 + $0x10] sm:$0xff]  }
   0x4   :  { %1013 = vmatprep.mubr.msk.bf16.mxu0 %vm247_vm1, %v1081_v3  ;;  %1045 = vmatprep.mubr.msk.bf16.mxu1 %vm247_vm1, %v1082_v5  ;;  %v1086_v9 = vld [vmem:[%s1664_s0 + $0x90] sm:$0xff]   ;;  %v1087_v10 = vld [vmem:[%s1664_s0 + $0x18] sm:$0xff]   ;;  %v1089_v12 = vld [vmem:[%s1664_s0 + $0x20] sm:$0xff]  }
   0x5   :  { %v1088_v11 = vld [vmem:[%s1664_s0 + $0x98] sm:$0xff]   ;;  %v1090_v13 = vld [vmem:[%s1664_s0 + $0xa0] sm:$0xff]   ;;  %v1091_v14 = vld [vmem:[%s1664_s0 + $0x28] sm:$0xff]  }
   0x6   :  { %1014 = vmatmul.mubr.msk.bf16.vlgmr.msra.gmra.mrb[0].mxu0 %vm247_vm1, %v1083_v6  ;;  %1046 = vmatmul.mubr.msk.bf16.vlgmr.msra.gmra.mrb[0].mxu1 %vm247_vm1, %v1084_v7  ;;  %v1092_v15 = vld [vmem:[%s1664_s0 + $0xa8] sm:$0xff]   ;;  %v1093_v16 = vld [vmem:[%s1664_s0 + $0x30] sm:$0xff]   ;;  %v1095_v18 = vld [vmem:[%s1664_s0 + $0x38] sm:$0xff]  }
   0x7   :  { %1017 = vmatprep.mubr.msk.bf16.mxu0 %vm247_vm1, %v1085_v8  ;;  %1049 = vmatprep.mubr.msk.bf16.mxu1 %vm247_vm1, %v1086_v9  ;;  %v1094_v17 = vld [vmem:[%s1664_s0 + $0xb0] sm:$0xff]   ;;  %v1096_v19 = vld [vmem:[%s1664_s0 + $0xb8] sm:$0xff]   ;;  %v1097_v20 = vld [vmem:[%s1664_s0 + $0x40] sm:$0xff]  }
   0x8   :  { %v1098_v21 = vld [vmem:[%s1664_s0 + $0xc0] sm:$0xff]   ;;  %v1099_v22 = vld [vmem:[%s1664_s0 + $0x48] sm:$0xff]   ;;  %v1101_v24 = vld [vmem:[%s1664_s0 + $0x50] sm:$0xff]  }
   0x9   :  { %v1100_v23 = vld [vmem:[%s1664_s0 + $0xc8] sm:$0xff]   ;;  %v1102_v25 = vld [vmem:[%s1664_s0 + $0xd0] sm:$0xff]   ;;  %v1103_v26 = vld [vmem:[%s1664_s0 + $0x58] sm:$0xff]  }
   0xa   :  { %v1104_v27 = vld [vmem:[%s1664_s0 + $0xd8] sm:$0xff]   ;;  %v1105_v28 = vld [vmem:[%s1664_s0 + $0x60] sm:$0xff]   ;;  %v1107_v30 = vld [vmem:[%s1664_s0 + $0x68] sm:$0xff]  }
   0xb   :  { %v1106_v29 = vld [vmem:[%s1664_s0 + $0xe0] sm:$0xff]   ;;  %v1108_v31 = vld [vmem:[%s1664_s0 + $0xe8] sm:$0xff]   ;;  %v1109_v32 = vld [vmem:[%s1664_s0 + $0x70] sm:$0xff]  }
   0xc   :  { %v1110_v33 = vld [vmem:[%s1664_s0 + $0xf0] sm:$0xff]   ;;  %v1111_v34 = vld [vmem:[%s1664_s0 + $0x78] sm:$0xff]   ;;  %v1275_v36 = vld [vmem:[#allocation2] ss:$0 sm:$0xff] }
   0xd   :  { %v1112_v35 = vld [vmem:[%s1664_s0 + $0xf8] sm:$0xff]   ;;  %v1277_v38 = vld [vmem:[#allocation3] ss:$0 sm:$0xff] }
   0xe   :  { %1018 = vmatmul.mubr.msk.bf16.gmra.mrb[4].mxu0 %vm247_vm1, %v1087_v10  ;;  %1050 = vmatmul.mubr.msk.bf16.gmra.mrb[4].mxu1 %vm247_vm1, %v1088_v11 }
   0xf   :  { %1021 = vmatprep.mubr.msk.bf16.mxu0 %vm247_vm1, %v1089_v12  ;;  %1053 = vmatprep.mubr.msk.bf16.mxu1 %vm247_vm1, %v1090_v13 }
  0x16   :  { %1022 = vmatmul.mubr.msk.bf16.gmra.mrb[8].mxu0 %vm247_vm1, %v1091_v14  ;;  %1054 = vmatmul.mubr.msk.bf16.gmra.mrb[8].mxu1 %vm247_vm1, %v1092_v15 }
  0x17   :  { %1025 = vmatprep.mubr.msk.bf16.mxu0 %vm247_vm1, %v1093_v16  ;;  %1057 = vmatprep.mubr.msk.bf16.mxu1 %vm247_vm1, %v1094_v17 }
  0x1e   :  { %1026 = vmatmul.mubr.msk.bf16.gmra.mrb[12].mxu0 %vm247_vm1, %v1095_v18  ;;  %1058 = vmatmul.mubr.msk.bf16.gmra.mrb[12].mxu1 %vm247_vm1, %v1096_v19 }
  0x1f   :  { %1029 = vmatprep.mubr.msk.bf16.mxu0 %vm247_vm1, %v1097_v20  ;;  %1061 = vmatprep.mubr.msk.bf16.mxu1 %vm247_vm1, %v1098_v21 }
  0x26   :  { %1030 = vmatmul.mubr.msk.bf16.gmra.mrb[16].mxu0 %vm247_vm1, %v1099_v22  ;;  %1062 = vmatmul.mubr.msk.bf16.gmra.mrb[16].mxu1 %vm247_vm1, %v1100_v23 }
  0x27   :  { %1033 = vmatprep.mubr.msk.bf16.mxu0 %vm247_vm1, %v1101_v24  ;;  %1065 = vmatprep.mubr.msk.bf16.mxu1 %vm247_vm1, %v1102_v25 }
  0x2e   :  { %1034 = vmatmul.mubr.msk.bf16.gmra.mrb[20].mxu0 %vm247_vm1, %v1103_v26  ;;  %1066 = vmatmul.mubr.msk.bf16.gmra.mrb[20].mxu1 %vm247_vm1, %v1104_v27 }
  0x2f   :  { %1037 = vmatprep.mubr.msk.bf16.mxu0 %vm247_vm1, %v1105_v28  ;;  %1069 = vmatprep.mubr.msk.bf16.mxu1 %vm247_vm1, %v1106_v29 }
  0x36   :  { %1038 = vmatmul.mubr.msk.bf16.gmra.mrb[24].mxu0 %vm247_vm1, %v1107_v30  ;;  %1070 = vmatmul.mubr.msk.bf16.gmra.mrb[24].mxu1 %vm247_vm1, %v1108_v31 }
  0x37   :  { %1041 = vmatprep.mubr.msk.bf16.mxu0 %vm247_vm1, %v1109_v32  ;;  %1073 = vmatprep.mubr.msk.bf16.mxu1 %vm247_vm1, %v1110_v33 }
  0x3e   :  { %1042 = vmatmul.mubr.msk.bf16.gmra.mrb[28].mxu0 %vm247_vm1, %v1111_v34  ;;  %1074 = vmatmul.mubr.msk.bf16.gmra.mrb[28].mxu1 %vm247_vm1, %v1112_v35 }
  0xd9   :  { %v1015_v37 = vpop.f32.mrb[0].mxu0  ;;  %v1047_v40 = vpop.f32.mrb[0].mxu1 }
  0xda   :  { %v646_v39 = vmul.f32 %v1015_v37, %v1275_v36  ;;  %v382_v41 = vpop.f32.mrb[1].mxu0  ;;  %v678_v42 = vmul.f32 %v1047_v40, %v1275_v36  ;;  %v510_v44 = vpop.f32.mrb[1].mxu1 }
  0xdb   :  { %v644_v43 = vmul.f32 %v1275_v36, %v382_v41  ;;  %v1016_v45 = vpop.f32.mrb[2].mxu0  ;;  %v676_v47 = vmul.f32 %v1275_v36, %v510_v44  ;;  %v1048_v49 = vpop.f32.mrb[2].mxu1 }
  0xdc   :  { %v717_v46 = vadd.f32 %v1277_v38, %v646_v39  ;;  %v647_v48 = vmul.f32 %v1016_v45, %v1275_v36  ;;  %v385_v50 = vpop.f32.mrb[3].mxu0  ;;  %v749_v51 = vadd.f32 %v1277_v38, %v678_v42  ;;  %v679_v53 = vmul.f32 %v1048_v49, %v1275_v36  ;;  %v513_v55 = vpop.f32.mrb[3].mxu1 }
  0xdd   :  { %v715_v52 = vadd.f32 %v1277_v38, %v644_v43  ;;  %v645_v54 = vmul.f32 %v1275_v36, %v385_v50  ;;  %v747_v57 = vadd.f32 %v1277_v38, %v676_v47  ;;  %v677_v59 = vmul.f32 %v1275_v36, %v513_v55 }
  0xde   :  { %v781_v56 = vmax.f32 %v717_v46, 0.0  ;;  %v718_v58 = vadd.f32 %v1277_v38, %v647_v48  ;;  %v813_v60 = vmax.f32 %v749_v51, 0.0  ;;  %v750_v62 = vadd.f32 %v1277_v38, %v679_v53 }
  0xdf   :  { %v779_v61 = vmax.f32 %v715_v52, 0.0  ;;  %v716_v63 = vadd.f32 %v1277_v38, %v645_v54  ;;  %v811_v0 = vmax.f32 %v747_v57, 0.0  ;;  %v748_v2 = vadd.f32 %v1277_v38, %v677_v59 }
  0xe0   :  { %846 = vst.msk [vmem:[%s1667_s4 + $0x10] sm:$0xff] %vm843_vm2, %v781_v56  ;;  %v782_v1 = vmax.f32 %v718_v58, 0.0  ;;  %878 = vst.msk [vmem:[%s1667_s4 + $0x110] sm:$0xff] %vm843_vm2, %v813_v60  ;;  %v814_v3 = vmax.f32 %v750_v62, 0.0 }
  0xe1   :  { %844 = vst.msk [vmem:[%s1667_s4] sm:$0xff] %vm843_vm2, %v779_v61  ;;  %v780_v4 = vmax.f32 %v716_v63, 0.0  ;;  %v1019_v5 = vpop.f32.mrb[4].mxu0  ;;  %876 = vst.msk [vmem:[%s1667_s4 + $0x100] sm:$0xff] %vm843_vm2, %v811_v0  ;;  %v812_v6 = vmax.f32 %v748_v2, 0.0  ;;  %v1051_v8 = vpop.f32.mrb[4].mxu1 }
  0xe2   :  { %847 = vst.msk [vmem:[%s1667_s4 + $0x18] sm:$0xff] %vm843_vm2, %v782_v1  ;;  %v650_v7 = vmul.f32 %v1019_v5, %v1275_v36  ;;  %v398_v9 = vpop.f32.mrb[5].mxu0  ;;  %879 = vst.msk [vmem:[%s1667_s4 + $0x118] sm:$0xff] %vm843_vm2, %v814_v3  ;;  %v682_v10 = vmul.f32 %v1051_v8, %v1275_v36  ;;  %v526_v12 = vpop.f32.mrb[5].mxu1 }
  0xe3   :  { %845 = vst.msk [vmem:[%s1667_s4 + $0x8] sm:$0xff] %vm843_vm2, %v780_v4  ;;  %v648_v11 = vmul.f32 %v1275_v36, %v398_v9  ;;  %v1020_v13 = vpop.f32.mrb[6].mxu0  ;;  %877 = vst.msk [vmem:[%s1667_s4 + $0x108] sm:$0xff] %vm843_vm2, %v812_v6  ;;  %v680_v15 = vmul.f32 %v1275_v36, %v526_v12  ;;  %v1052_v17 = vpop.f32.mrb[6].mxu1 }
  0xe4   :  { %v721_v14 = vadd.f32 %v1277_v38, %v650_v7  ;;  %v651_v16 = vmul.f32 %v1020_v13, %v1275_v36  ;;  %v401_v18 = vpop.f32.mrb[7].mxu0  ;;  %v753_v19 = vadd.f32 %v1277_v38, %v682_v10  ;;  %v683_v21 = vmul.f32 %v1052_v17, %v1275_v36  ;;  %v529_v23 = vpop.f32.mrb[7].mxu1 }
  0xe5   :  { %v719_v20 = vadd.f32 %v1277_v38, %v648_v11  ;;  %v649_v22 = vmul.f32 %v1275_v36, %v401_v18  ;;  %v751_v25 = vadd.f32 %v1277_v38, %v680_v15  ;;  %v681_v27 = vmul.f32 %v1275_v36, %v529_v23 }
  0xe6   :  { %v785_v24 = vmax.f32 %v721_v14, 0.0  ;;  %v722_v26 = vadd.f32 %v1277_v38, %v651_v16  ;;  %v817_v28 = vmax.f32 %v753_v19, 0.0  ;;  %v754_v30 = vadd.f32 %v1277_v38, %v683_v21 }
  0xe7   :  { %v783_v29 = vmax.f32 %v719_v20, 0.0  ;;  %v720_v31 = vadd.f32 %v1277_v38, %v649_v22  ;;  %v815_v32 = vmax.f32 %v751_v25, 0.0  ;;  %v752_v34 = vadd.f32 %v1277_v38, %v681_v27 }
  0xe8   :  { %850 = vst.msk [vmem:[%s1667_s4 + $0x30] sm:$0xff] %vm843_vm2, %v785_v24  ;;  %v786_v33 = vmax.f32 %v722_v26, 0.0  ;;  %882 = vst.msk [vmem:[%s1667_s4 + $0x130] sm:$0xff] %vm843_vm2, %v817_v28  ;;  %v818_v35 = vmax.f32 %v754_v30, 0.0 }
  0xe9   :  { %848 = vst.msk [vmem:[%s1667_s4 + $0x20] sm:$0xff] %vm843_vm2, %v783_v29  ;;  %v784_v37 = vmax.f32 %v720_v31, 0.0  ;;  %v1023_v39 = vpop.f32.mrb[8].mxu0  ;;  %880 = vst.msk [vmem:[%s1667_s4 + $0x120] sm:$0xff] %vm843_vm2, %v815_v32  ;;  %v816_v40 = vmax.f32 %v752_v34, 0.0  ;;  %v1055_v42 = vpop.f32.mrb[8].mxu1 }
  0xea   :  { %851 = vst.msk [vmem:[%s1667_s4 + $0x38] sm:$0xff] %vm843_vm2, %v786_v33  ;;  %v654_v41 = vmul.f32 %v1023_v39, %v1275_v36  ;;  %v414_v43 = vpop.f32.mrb[9].mxu0  ;;  %883 = vst.msk [vmem:[%s1667_s4 + $0x138] sm:$0xff] %vm843_vm2, %v818_v35  ;;  %v686_v44 = vmul.f32 %v1055_v42, %v1275_v36  ;;  %v542_v46 = vpop.f32.mrb[9].mxu1 }
  0xeb   :  { %849 = vst.msk [vmem:[%s1667_s4 + $0x28] sm:$0xff] %vm843_vm2, %v784_v37  ;;  %v652_v45 = vmul.f32 %v1275_v36, %v414_v43  ;;  %v1024_v47 = vpop.f32.mrb[10].mxu0  ;;  %881 = vst.msk [vmem:[%s1667_s4 + $0x128] sm:$0xff] %vm843_vm2, %v816_v40  ;;  %v684_v49 = vmul.f32 %v1275_v36, %v542_v46  ;;  %v1056_v51 = vpop.f32.mrb[10].mxu1 }
  0xec   :  { %v725_v48 = vadd.f32 %v1277_v38, %v654_v41  ;;  %v655_v50 = vmul.f32 %v1024_v47, %v1275_v36  ;;  %v417_v52 = vpop.f32.mrb[11].mxu0  ;;  %v757_v53 = vadd.f32 %v1277_v38, %v686_v44  ;;  %v687_v55 = vmul.f32 %v1056_v51, %v1275_v36  ;;  %v545_v57 = vpop.f32.mrb[11].mxu1 }
  0xed   :  { %v723_v54 = vadd.f32 %v1277_v38, %v652_v45  ;;  %v653_v56 = vmul.f32 %v1275_v36, %v417_v52  ;;  %v755_v59 = vadd.f32 %v1277_v38, %v684_v49  ;;  %v685_v61 = vmul.f32 %v1275_v36, %v545_v57 }
  0xee   :  { %v789_v58 = vmax.f32 %v725_v48, 0.0  ;;  %v726_v60 = vadd.f32 %v1277_v38, %v655_v50  ;;  %v821_v62 = vmax.f32 %v757_v53, 0.0  ;;  %v758_v0 = vadd.f32 %v1277_v38, %v687_v55 }
  0xef   :  { %v787_v63 = vmax.f32 %v723_v54, 0.0  ;;  %v724_v1 = vadd.f32 %v1277_v38, %v653_v56  ;;  %v819_v2 = vmax.f32 %v755_v59, 0.0  ;;  %v756_v4 = vadd.f32 %v1277_v38, %v685_v61 }
  0xf0   :  { %854 = vst.msk [vmem:[%s1667_s4 + $0x50] sm:$0xff] %vm843_vm2, %v789_v58  ;;  %v790_v3 = vmax.f32 %v726_v60, 0.0  ;;  %886 = vst.msk [vmem:[%s1667_s4 + $0x150] sm:$0xff] %vm843_vm2, %v821_v62  ;;  %v822_v5 = vmax.f32 %v758_v0, 0.0 }
  0xf1   :  { %852 = vst.msk [vmem:[%s1667_s4 + $0x40] sm:$0xff] %vm843_vm2, %v787_v63  ;;  %v788_v6 = vmax.f32 %v724_v1, 0.0  ;;  %v1027_v7 = vpop.f32.mrb[12].mxu0  ;;  %884 = vst.msk [vmem:[%s1667_s4 + $0x140] sm:$0xff] %vm843_vm2, %v819_v2  ;;  %v820_v8 = vmax.f32 %v756_v4, 0.0  ;;  %v1059_v10 = vpop.f32.mrb[12].mxu1 }
  0xf2   :  { %855 = vst.msk [vmem:[%s1667_s4 + $0x58] sm:$0xff] %vm843_vm2, %v790_v3  ;;  %v658_v9 = vmul.f32 %v1027_v7, %v1275_v36  ;;  %v430_v11 = vpop.f32.mrb[13].mxu0  ;;  %887 = vst.msk [vmem:[%s1667_s4 + $0x158] sm:$0xff] %vm843_vm2, %v822_v5  ;;  %v690_v12 = vmul.f32 %v1059_v10, %v1275_v36  ;;  %v558_v14 = vpop.f32.mrb[13].mxu1 }
  0xf3   :  { %853 = vst.msk [vmem:[%s1667_s4 + $0x48] sm:$0xff] %vm843_vm2, %v788_v6  ;;  %v656_v13 = vmul.f32 %v1275_v36, %v430_v11  ;;  %v1028_v15 = vpop.f32.mrb[14].mxu0  ;;  %885 = vst.msk [vmem:[%s1667_s4 + $0x148] sm:$0xff] %vm843_vm2, %v820_v8  ;;  %v688_v17 = vmul.f32 %v1275_v36, %v558_v14  ;;  %v1060_v19 = vpop.f32.mrb[14].mxu1 }
  0xf4   :  { %v729_v16 = vadd.f32 %v1277_v38, %v658_v9  ;;  %v659_v18 = vmul.f32 %v1028_v15, %v1275_v36  ;;  %v433_v20 = vpop.f32.mrb[15].mxu0  ;;  %v761_v21 = vadd.f32 %v1277_v38, %v690_v12  ;;  %v691_v23 = vmul.f32 %v1060_v19, %v1275_v36  ;;  %v561_v25 = vpop.f32.mrb[15].mxu1 }
  0xf5   :  { %v727_v22 = vadd.f32 %v1277_v38, %v656_v13  ;;  %v657_v24 = vmul.f32 %v1275_v36, %v433_v20  ;;  %v759_v27 = vadd.f32 %v1277_v38, %v688_v17  ;;  %v689_v29 = vmul.f32 %v1275_v36, %v561_v25 }
  0xf6   :  { %v793_v26 = vmax.f32 %v729_v16, 0.0  ;;  %v730_v28 = vadd.f32 %v1277_v38, %v659_v18  ;;  %v825_v30 = vmax.f32 %v761_v21, 0.0  ;;  %v762_v32 = vadd.f32 %v1277_v38, %v691_v23 }
  0xf7   :  { %v791_v31 = vmax.f32 %v727_v22, 0.0  ;;  %v728_v33 = vadd.f32 %v1277_v38, %v657_v24  ;;  %v823_v34 = vmax.f32 %v759_v27, 0.0  ;;  %v760_v37 = vadd.f32 %v1277_v38, %v689_v29 }
  0xf8   :  { %858 = vst.msk [vmem:[%s1667_s4 + $0x70] sm:$0xff] %vm843_vm2, %v793_v26  ;;  %v794_v35 = vmax.f32 %v730_v28, 0.0  ;;  %890 = vst.msk [vmem:[%s1667_s4 + $0x170] sm:$0xff] %vm843_vm2, %v825_v30  ;;  %v826_v39 = vmax.f32 %v762_v32, 0.0 }
  0xf9   :  { %856 = vst.msk [vmem:[%s1667_s4 + $0x60] sm:$0xff] %vm843_vm2, %v791_v31  ;;  %v792_v40 = vmax.f32 %v728_v33, 0.0  ;;  %v1031_v41 = vpop.f32.mrb[16].mxu0  ;;  %888 = vst.msk [vmem:[%s1667_s4 + $0x160] sm:$0xff] %vm843_vm2, %v823_v34  ;;  %v824_v42 = vmax.f32 %v760_v37, 0.0  ;;  %v1063_v44 = vpop.f32.mrb[16].mxu1 }
  0xfa   :  { %859 = vst.msk [vmem:[%s1667_s4 + $0x78] sm:$0xff] %vm843_vm2, %v794_v35  ;;  %v662_v43 = vmul.f32 %v1031_v41, %v1275_v36  ;;  %v446_v45 = vpop.f32.mrb[17].mxu0  ;;  %891 = vst.msk [vmem:[%s1667_s4 + $0x178] sm:$0xff] %vm843_vm2, %v826_v39  ;;  %v694_v46 = vmul.f32 %v1063_v44, %v1275_v36  ;;  %v574_v48 = vpop.f32.mrb[17].mxu1 }
  0xfb   :  { %857 = vst.msk [vmem:[%s1667_s4 + $0x68] sm:$0xff] %vm843_vm2, %v792_v40  ;;  %v660_v47 = vmul.f32 %v1275_v36, %v446_v45  ;;  %v1032_v49 = vpop.f32.mrb[18].mxu0  ;;  %889 = vst.msk [vmem:[%s1667_s4 + $0x168] sm:$0xff] %vm843_vm2, %v824_v42  ;;  %v692_v51 = vmul.f32 %v1275_v36, %v574_v48  ;;  %v1064_v53 = vpop.f32.mrb[18].mxu1 }
  0xfc   :  { %v733_v50 = vadd.f32 %v1277_v38, %v662_v43  ;;  %v663_v52 = vmul.f32 %v1032_v49, %v1275_v36  ;;  %v449_v54 = vpop.f32.mrb[19].mxu0  ;;  %v765_v55 = vadd.f32 %v1277_v38, %v694_v46  ;;  %v695_v57 = vmul.f32 %v1064_v53, %v1275_v36  ;;  %v577_v59 = vpop.f32.mrb[19].mxu1 }
  0xfd   :  { %v731_v56 = vadd.f32 %v1277_v38, %v660_v47  ;;  %v661_v58 = vmul.f32 %v1275_v36, %v449_v54  ;;  %v763_v61 = vadd.f32 %v1277_v38, %v692_v51  ;;  %v693_v63 = vmul.f32 %v1275_v36, %v577_v59 }
  0xfe   :  { %v797_v60 = vmax.f32 %v733_v50, 0.0  ;;  %v734_v62 = vadd.f32 %v1277_v38, %v663_v52  ;;  %v829_v0 = vmax.f32 %v765_v55, 0.0  ;;  %v766_v2 = vadd.f32 %v1277_v38, %v695_v57 }
  0xff   :  { %v795_v1 = vmax.f32 %v731_v56, 0.0  ;;  %v732_v3 = vadd.f32 %v1277_v38, %v661_v58  ;;  %v827_v4 = vmax.f32 %v763_v61, 0.0  ;;  %v764_v6 = vadd.f32 %v1277_v38, %v693_v63 }
 0x100   :  { %862 = vst.msk [vmem:[%s1667_s4 + $0x90] sm:$0xff] %vm843_vm2, %v797_v60  ;;  %v798_v5 = vmax.f32 %v734_v62, 0.0  ;;  %894 = vst.msk [vmem:[%s1667_s4 + $0x190] sm:$0xff] %vm843_vm2, %v829_v0  ;;  %v830_v7 = vmax.f32 %v766_v2, 0.0 }
 0x101   :  { %860 = vst.msk [vmem:[%s1667_s4 + $0x80] sm:$0xff] %vm843_vm2, %v795_v1  ;;  %v796_v8 = vmax.f32 %v732_v3, 0.0  ;;  %v1035_v9 = vpop.f32.mrb[20].mxu0  ;;  %892 = vst.msk [vmem:[%s1667_s4 + $0x180] sm:$0xff] %vm843_vm2, %v827_v4  ;;  %v828_v10 = vmax.f32 %v764_v6, 0.0  ;;  %v1067_v12 = vpop.f32.mrb[20].mxu1 }
 0x102   :  { %863 = vst.msk [vmem:[%s1667_s4 + $0x98] sm:$0xff] %vm843_vm2, %v798_v5  ;;  %v666_v11 = vmul.f32 %v1035_v9, %v1275_v36  ;;  %v462_v13 = vpop.f32.mrb[21].mxu0  ;;  %895 = vst.msk [vmem:[%s1667_s4 + $0x198] sm:$0xff] %vm843_vm2, %v830_v7  ;;  %v698_v14 = vmul.f32 %v1067_v12, %v1275_v36  ;;  %v590_v16 = vpop.f32.mrb[21].mxu1 }
 0x103   :  { %861 = vst.msk [vmem:[%s1667_s4 + $0x88] sm:$0xff] %vm843_vm2, %v796_v8  ;;  %v664_v15 = vmul.f32 %v1275_v36, %v462_v13  ;;  %v1036_v17 = vpop.f32.mrb[22].mxu0  ;;  %893 = vst.msk [vmem:[%s1667_s4 + $0x188] sm:$0xff] %vm843_vm2, %v828_v10  ;;  %v696_v19 = vmul.f32 %v1275_v36, %v590_v16  ;;  %v1068_v21 = vpop.f32.mrb[22].mxu1 }
 0x104   :  { %v737_v18 = vadd.f32 %v1277_v38, %v666_v11  ;;  %v667_v20 = vmul.f32 %v1036_v17, %v1275_v36  ;;  %v465_v22 = vpop.f32.mrb[23].mxu0  ;;  %v769_v23 = vadd.f32 %v1277_v38, %v698_v14  ;;  %v699_v25 = vmul.f32 %v1068_v21, %v1275_v36  ;;  %v593_v27 = vpop.f32.mrb[23].mxu1 }
 0x105   :  { %v735_v24 = vadd.f32 %v1277_v38, %v664_v15  ;;  %v665_v26 = vmul.f32 %v1275_v36, %v465_v22  ;;  %v767_v29 = vadd.f32 %v1277_v38, %v696_v19  ;;  %v697_v31 = vmul.f32 %v1275_v36, %v593_v27 }
 0x106   :  { %v801_v28 = vmax.f32 %v737_v18, 0.0  ;;  %v738_v30 = vadd.f32 %v1277_v38, %v667_v20  ;;  %v833_v32 = vmax.f32 %v769_v23, 0.0  ;;  %v770_v34 = vadd.f32 %v1277_v38, %v699_v25 }
 0x107   :  { %v799_v33 = vmax.f32 %v735_v24, 0.0  ;;  %v736_v35 = vadd.f32 %v1277_v38, %v665_v26  ;;  %v831_v37 = vmax.f32 %v767_v29, 0.0  ;;  %v768_v40 = vadd.f32 %v1277_v38, %v697_v31 }
 0x108   :  { %866 = vst.msk [vmem:[%s1667_s4 + $0xb0] sm:$0xff] %vm843_vm2, %v801_v28  ;;  %v802_v39 = vmax.f32 %v738_v30, 0.0  ;;  %898 = vst.msk [vmem:[%s1667_s4 + $0x1b0] sm:$0xff] %vm843_vm2, %v833_v32  ;;  %v834_v41 = vmax.f32 %v770_v34, 0.0 }
 0x109   :  { %864 = vst.msk [vmem:[%s1667_s4 + $0xa0] sm:$0xff] %vm843_vm2, %v799_v33  ;;  %v800_v42 = vmax.f32 %v736_v35, 0.0  ;;  %v1039_v43 = vpop.f32.mrb[24].mxu0  ;;  %896 = vst.msk [vmem:[%s1667_s4 + $0x1a0] sm:$0xff] %vm843_vm2, %v831_v37  ;;  %v832_v44 = vmax.f32 %v768_v40, 0.0  ;;  %v1071_v46 = vpop.f32.mrb[24].mxu1 }
 0x10a   :  { %867 = vst.msk [vmem:[%s1667_s4 + $0xb8] sm:$0xff] %vm843_vm2, %v802_v39  ;;  %v670_v45 = vmul.f32 %v1039_v43, %v1275_v36  ;;  %v478_v47 = vpop.f32.mrb[25].mxu0  ;;  %899 = vst.msk [vmem:[%s1667_s4 + $0x1b8] sm:$0xff] %vm843_vm2, %v834_v41  ;;  %v702_v48 = vmul.f32 %v1071_v46, %v1275_v36  ;;  %v606_v50 = vpop.f32.mrb[25].mxu1 }
 0x10b   :  { %865 = vst.msk [vmem:[%s1667_s4 + $0xa8] sm:$0xff] %vm843_vm2, %v800_v42  ;;  %v668_v49 = vmul.f32 %v1275_v36, %v478_v47  ;;  %v1040_v51 = vpop.f32.mrb[26].mxu0  ;;  %897 = vst.msk [vmem:[%s1667_s4 + $0x1a8] sm:$0xff] %vm843_vm2, %v832_v44  ;;  %v700_v53 = vmul.f32 %v1275_v36, %v606_v50  ;;  %v1072_v55 = vpop.f32.mrb[26].mxu1 }
 0x10c   :  { %v741_v52 = vadd.f32 %v1277_v38, %v670_v45  ;;  %v671_v54 = vmul.f32 %v1040_v51, %v1275_v36  ;;  %v481_v56 = vpop.f32.mrb[27].mxu0  ;;  %v773_v57 = vadd.f32 %v1277_v38, %v702_v48  ;;  %v703_v59 = vmul.f32 %v1072_v55, %v1275_v36  ;;  %v609_v61 = vpop.f32.mrb[27].mxu1 }
 0x10d   :  { %v739_v58 = vadd.f32 %v1277_v38, %v668_v49  ;;  %v669_v60 = vmul.f32 %v1275_v36, %v481_v56  ;;  %v771_v63 = vadd.f32 %v1277_v38, %v700_v53  ;;  %v701_v1 = vmul.f32 %v1275_v36, %v609_v61 }
 0x10e   :  { %v805_v62 = vmax.f32 %v741_v52, 0.0  ;;  %v742_v0 = vadd.f32 %v1277_v38, %v671_v54  ;;  %v837_v2 = vmax.f32 %v773_v57, 0.0  ;;  %v774_v4 = vadd.f32 %v1277_v38, %v703_v59 }
 0x10f   :  { %v803_v3 = vmax.f32 %v739_v58, 0.0  ;;  %v740_v5 = vadd.f32 %v1277_v38, %v669_v60  ;;  %v835_v6 = vmax.f32 %v771_v63, 0.0  ;;  %v772_v8 = vadd.f32 %v1277_v38, %v701_v1 }
 0x110   :  { %870 = vst.msk [vmem:[%s1667_s4 + $0xd0] sm:$0xff] %vm843_vm2, %v805_v62  ;;  %v806_v7 = vmax.f32 %v742_v0, 0.0  ;;  %902 = vst.msk [vmem:[%s1667_s4 + $0x1d0] sm:$0xff] %vm843_vm2, %v837_v2  ;;  %v838_v9 = vmax.f32 %v774_v4, 0.0 }
 0x111   :  { %868 = vst.msk [vmem:[%s1667_s4 + $0xc0] sm:$0xff] %vm843_vm2, %v803_v3  ;;  %v804_v10 = vmax.f32 %v740_v5, 0.0  ;;  %v1043_v11 = vpop.f32.mrb[28].mxu0  ;;  %900 = vst.msk [vmem:[%s1667_s4 + $0x1c0] sm:$0xff] %vm843_vm2, %v835_v6  ;;  %v836_v12 = vmax.f32 %v772_v8, 0.0  ;;  %v1075_v14 = vpop.f32.mrb[28].mxu1 }
 0x112   :  { %871 = vst.msk [vmem:[%s1667_s4 + $0xd8] sm:$0xff] %vm843_vm2, %v806_v7  ;;  %v674_v13 = vmul.f32 %v1043_v11, %v1275_v36  ;;  %v494_v15 = vpop.f32.mrb[29].mxu0  ;;  %903 = vst.msk [vmem:[%s1667_s4 + $0x1d8] sm:$0xff] %vm843_vm2, %v838_v9  ;;  %v706_v16 = vmul.f32 %v1075_v14, %v1275_v36  ;;  %v622_v18 = vpop.f32.mrb[29].mxu1 }
 0x113   :  { %869 = vst.msk [vmem:[%s1667_s4 + $0xc8] sm:$0xff] %vm843_vm2, %v804_v10  ;;  %v672_v17 = vmul.f32 %v1275_v36, %v494_v15  ;;  %v1044_v19 = vpop.f32.mrb[30].mxu0  ;;  %901 = vst.msk [vmem:[%s1667_s4 + $0x1c8] sm:$0xff] %vm843_vm2, %v836_v12  ;;  %v704_v21 = vmul.f32 %v1275_v36, %v622_v18  ;;  %v1076_v23 = vpop.f32.mrb[30].mxu1 }
 0x114   :  { %v745_v20 = vadd.f32 %v1277_v38, %v674_v13  ;;  %v675_v22 = vmul.f32 %v1044_v19, %v1275_v36  ;;  %v497_v24 = vpop.f32.mrb[31].mxu0  ;;  %v777_v25 = vadd.f32 %v1277_v38, %v706_v16  ;;  %v707_v27 = vmul.f32 %v1076_v23, %v1275_v36  ;;  %v625_v29 = vpop.f32.mrb[31].mxu1 }
 0x115   :  { %v743_v26 = vadd.f32 %v1277_v38, %v672_v17  ;;  %v673_v28 = vmul.f32 %v1275_v36, %v497_v24  ;;  %v775_v31 = vadd.f32 %v1277_v38, %v704_v21  ;;  %v705_v33 = vmul.f32 %v1275_v36, %v625_v29 }
 0x116   :  { %v809_v30 = vmax.f32 %v745_v20, 0.0  ;;  %v746_v32 = vadd.f32 %v1277_v38, %v675_v22  ;;  %v841_v34 = vmax.f32 %v777_v25, 0.0  ;;  %v778_v37 = vadd.f32 %v1277_v38, %v707_v27 }
 0x117   :  { %v807_v35 = vmax.f32 %v743_v26, 0.0  ;;  %v744_v39 = vadd.f32 %v1277_v38, %v673_v28  ;;  %v839_v40 = vmax.f32 %v775_v31, 0.0  ;;  %v776_v42 = vadd.f32 %v1277_v38, %v705_v33 }
 0x118   :  { %874 = vst.msk [vmem:[%s1667_s4 + $0xf0] sm:$0xff] %vm843_vm2, %v809_v30  ;;  %v810_v41 = vmax.f32 %v746_v32, 0.0  ;;  %906 = vst.msk [vmem:[%s1667_s4 + $0x1f0] sm:$0xff] %vm843_vm2, %v841_v34  ;;  %v842_v36 = vmax.f32 %v778_v37, 0.0 }
 0x119   :  { %872 = vst.msk [vmem:[%s1667_s4 + $0xe0] sm:$0xff] %vm843_vm2, %v807_v35  ;;  %v808_v43 = vmax.f32 %v744_v39, 0.0  ;;  %904 = vst.msk [vmem:[%s1667_s4 + $0x1e0] sm:$0xff] %vm843_vm2, %v839_v40  ;;  %v840_v38 = vmax.f32 %v776_v42, 0.0 }
 0x11a   :  { %875 = vst.msk [vmem:[%s1667_s4 + $0xf8] sm:$0xff] %vm843_vm2, %v810_v41  ;;  %907 = vst.msk [vmem:[%s1667_s4 + $0x1f8] sm:$0xff] %vm843_vm2, %v842_v36 }
 0x11b   :  { %873 = vst.msk [vmem:[%s1667_s4 + $0xe8] sm:$0xff] %vm843_vm2, %v808_v43  ;;  %905 = vst.msk [vmem:[%s1667_s4 + $0x1e8] sm:$0xff] %vm843_vm2, %v840_v38 }

// kernel: attention_unet_forward.23
= control target key start
LH: loop header
LB: loop body
LE: loop exit
PB: predicated region body
PF: predicated region fallthrough
CT: control target
= control target key end

     0   :  { %vm360_vm0 = vcmask 1041408   ;;  %vm263_vm1 = vcmask 31744   ;;  %vm1749_vm2 = vcmask 15360   ;;  %vm3101_vm3 = vcmask 27648   ;;  %s5261_s2 = inlined_call_operand.vmem [shape: bf16[4,2], index: 2, kind: input, shape index: {}]   ;;  %s5262_s3 = inlined_call_operand.vmem [shape: bf16[4,2], index: 3, kind: input, shape index: {}]   ;;  %s5263_s0 = inlined_call_operand.vmem [shape: bf16[512,4], index: 0, kind: input, shape index: {}]   ;;  %s5264_s1 = inlined_call_operand.vmem [shape: bf16[512,4], index: 1, kind: input, shape index: {}]   ;;  %s5265_s4 = inlined_call_operand.vmem [shape: f32[1,2], index: 4, kind: input, shape index: {}]   ;;  %s5266_s6 = inlined_call_operand.vmem [shape: f32[1,2], index: 6, kind: input, shape index: {}]   ;;  %s5267_s5 = inlined_call_operand.vmem [shape: f32[1,2], index: 5, kind: input, shape index: {}]   ;;  %s5268_s7 = inlined_call_operand.vmem [shape: f32[1,2], index: 7, kind: input, shape index: {}]   ;;  %s5269_s8 = inlined_call_operand.vmem [shape: f32[1,2], index: 8, kind: input, shape index: {}]   ;;  %s5270_s9 = inlined_call_operand.<no memory space> [shape: f32[1,1], index: 9, kind: input, shape index: {}]   ;;  %s5271_s10 = inlined_call_operand.vmem [shape: bf16[512,4], index: 10, kind: output, shape index: {}]  }
   0x1   :  { %v102_v0 = vld [vmem:[%s5261_s2] sm:$0x3]  ;;  %v3701_v6 = vld [vmem:[%s5263_s0 + $0x8] sm:$0xff]   ;;  %v3703_v8 = vld [vmem:[%s5263_s0 + $0x10] sm:$0xff]  }
   0x2   :  { %v859_v1 = vld [vmem:[%s5262_s3] sm:$0x3]  ;;  %3694 = vmatprep.subr.msk.bf16.mxu0 %vm360_vm0, %v102_v0  ;;  %v362_v2 = vsel %vm360_vm0, %v102_v0, 0  ;;  %v797_v7 = vld [vmem:[%s5264_s1 + $0x8] sm:$0xff]   ;;  %v799_v9 = vld [vmem:[%s5264_s1 + $0x10] sm:$0xff]  }
   0x3   :  { %3695 = vmatprep.subr.msk.bf16.mxu1 %vm360_vm0, %v859_v1  ;;  %v1117_v3 = vsel %vm360_vm0, %v859_v1, 0  ;;  %v3699_v4 = vld [vmem:[%s5263_s0] sm:$0xff]   ;;  %3563 = vmatpush3.bf16.msra.mxu0 %v362_v2  ;;  %v801_v10 = vld [vmem:[%s5264_s1 + $0x18] sm:$0xff]   ;;  %v805_v14 = vld [vmem:[%s5264_s1 + $0x28] sm:$0xff]  }
   0x4   :  { %v795_v5 = vld [vmem:[%s5264_s1] sm:$0xff]   ;;  %3629 = vmatpush3.bf16.msra.mxu1 %v1117_v3  ;;  %3564 = vmatprep.mubr.msk.bf16.mxu0 %vm263_vm1, %v3699_v4  ;;  %v3705_v12 = vld [vmem:[%s5263_s0 + $0x18] sm:$0xff]   ;;  %v807_v15 = vld [vmem:[%s5264_s1 + $0x30] sm:$0xff]  }
   0x5   :  { %3630 = vmatprep.mubr.msk.bf16.mxu1 %vm263_vm1, %v795_v5  ;;  %v803_v11 = vld [vmem:[%s5264_s1 + $0x20] sm:$0xff]   ;;  %v3709_v16 = vld [vmem:[%s5263_s0 + $0x28] sm:$0xff]   ;;  %v3711_v17 = vld [vmem:[%s5263_s0 + $0x30] sm:$0xff]  }
   0x6   :  { %3565 = vmatmul.mubr.msk.bf16.vlgmr.msra.gmra.mrb[0].mxu0 %vm263_vm1, %v3701_v6  ;;  %v3707_v13 = vld [vmem:[%s5263_s0 + $0x20] sm:$0xff]   ;;  %v809_v18 = vld [vmem:[%s5264_s1 + $0x38] sm:$0xff]   ;;  %v813_v22 = vld [vmem:[%s5264_s1 + $0x48] sm:$0xff]  }
   0x7   :  { %3631 = vmatmul.mubr.msk.bf16.vlgmr.msra.gmra.mrb[0].mxu1 %vm263_vm1, %v797_v7  ;;  %3568 = vmatprep.mubr.msk.bf16.mxu0 %vm263_vm1, %v3703_v8  ;;  %v811_v19 = vld [vmem:[%s5264_s1 + $0x40] sm:$0xff]   ;;  %v3713_v20 = vld [vmem:[%s5263_s0 + $0x38] sm:$0xff]   ;;  %v815_v23 = vld [vmem:[%s5264_s1 + $0x50] sm:$0xff]  }
   0x8   :  { %3634 = vmatprep.mubr.msk.bf16.mxu1 %vm263_vm1, %v799_v9  ;;  %v3715_v21 = vld [vmem:[%s5263_s0 + $0x40] sm:$0xff]   ;;  %v3717_v24 = vld [vmem:[%s5263_s0 + $0x48] sm:$0xff]   ;;  %v3719_v25 = vld [vmem:[%s5263_s0 + $0x50] sm:$0xff]  }
   0x9   :  { %v817_v26 = vld [vmem:[%s5264_s1 + $0x58] sm:$0xff]   ;;  %v819_v27 = vld [vmem:[%s5264_s1 + $0x60] sm:$0xff]   ;;  %v821_v30 = vld [vmem:[%s5264_s1 + $0x68] sm:$0xff]  }
   0xa   :  { %v3721_v28 = vld [vmem:[%s5263_s0 + $0x58] sm:$0xff]   ;;  %v3723_v29 = vld [vmem:[%s5263_s0 + $0x60] sm:$0xff]   ;;  %v823_v31 = vld [vmem:[%s5264_s1 + $0x70] sm:$0xff]  }
   0xb   :  { %v3725_v32 = vld [vmem:[%s5263_s0 + $0x68] sm:$0xff]   ;;  %v3727_v33 = vld [vmem:[%s5263_s0 + $0x70] sm:$0xff]   ;;  %v825_v34 = vld [vmem:[%s5264_s1 + $0x78] sm:$0xff]  }
   0xc   :  { %v827_v35 = vld [vmem:[%s5264_s1 + $0x80] sm:$0xff]   ;;  %v3729_v36 = vld [vmem:[%s5263_s0 + $0x78] sm:$0xff]   ;;  %v829_v38 = vld [vmem:[%s5264_s1 + $0x88] sm:$0xff]  }
   0xd   :  { %v3731_v37 = vld [vmem:[%s5263_s0 + $0x80] sm:$0xff]   ;;  %v831_v39 = vld [vmem:[%s5264_s1 + $0x90] sm:$0xff]   ;;  %v3733_v40 = vld [vmem:[%s5263_s0 + $0x88] sm:$0xff]  }
   0xe   :  { %3569 = vmatmul.mubr.msk.bf16.gmra.mrb[4].mxu0 %vm263_vm1, %v3705_v12  ;;  %v3735_v41 = vld [vmem:[%s5263_s0 + $0x90] sm:$0xff]   ;;  %v833_v42 = vld [vmem:[%s5264_s1 + $0x98] sm:$0xff]   ;;  %v835_v43 = vld [vmem:[%s5264_s1 + $0xa0] sm:$0xff]  }
   0xf   :  { %3635 = vmatmul.mubr.msk.bf16.gmra.mrb[4].mxu1 %vm263_vm1, %v801_v10  ;;  %3572 = vmatprep.mubr.msk.bf16.mxu0 %vm263_vm1, %v3707_v13  ;;  %v3737_v44 = vld [vmem:[%s5263_s0 + $0x98] sm:$0xff]   ;;  %v3739_v45 = vld [vmem:[%s5263_s0 + $0xa0] sm:$0xff]   ;;  %v837_v46 = vld [vmem:[%s5264_s1 + $0xa8] sm:$0xff]  }
  0x10   :  { %3638 = vmatprep.mubr.msk.bf16.mxu1 %vm263_vm1, %v803_v11  ;;  %v839_v47 = vld [vmem:[%s5264_s1 + $0xb0] sm:$0xff]   ;;  %v3741_v48 = vld [vmem:[%s5263_s0 + $0xa8] sm:$0xff]   ;;  %v841_v50 = vld [vmem:[%s5264_s1 + $0xb8] sm:$0xff]  }
  0x11   :  { %v3743_v49 = vld [vmem:[%s5263_s0 + $0xb0] sm:$0xff]   ;;  %v843_v51 = vld [vmem:[%s5264_s1 + $0xc0] sm:$0xff]   ;;  %v3745_v52 = vld [vmem:[%s5263_s0 + $0xb8] sm:$0xff]  }
  0x12   :  { %v3747_v53 = vld [vmem:[%s5263_s0 + $0xc0] sm:$0xff]   ;;  %v845_v54 = vld [vmem:[%s5264_s1 + $0xc8] sm:$0xff]   ;;  %v847_v55 = vld [vmem:[%s5264_s1 + $0xd0] sm:$0xff]  }
  0x13   :  { %v3749_v56 = vld [vmem:[%s5263_s0 + $0xc8] sm:$0xff]   ;;  %v3751_v57 = vld [vmem:[%s5263_s0 + $0xd0] sm:$0xff]   ;;  %v849_v58 = vld [vmem:[%s5264_s1 + $0xd8] sm:$0xff]  }
  0x14   :  { %v851_v59 = vld [vmem:[%s5264_s1 + $0xe0] sm:$0xff]   ;;  %v3753_v60 = vld [vmem:[%s5263_s0 + $0xd8] sm:$0xff]   ;;  %v853_v62 = vld [vmem:[%s5264_s1 + $0xe8] sm:$0xff]  }
  0x15   :  { %v3755_v61 = vld [vmem:[%s5263_s0 + $0xe0] sm:$0xff]   ;;  %v855_v63 = vld [vmem:[%s5264_s1 + $0xf0] sm:$0xff]   ;;  %v3757_v0 = vld [vmem:[%s5263_s0 + $0xe8] sm:$0xff]  }
  0x16   :  { %3573 = vmatmul.mubr.msk.bf16.gmra.mrb[8].mxu0 %vm263_vm1, %v3709_v16  ;;  %v3759_v1 = vld [vmem:[%s5263_s0 + $0xf0] sm:$0xff]   ;;  %v857_v2 = vld [vmem:[%s5264_s1 + $0xf8] sm:$0xff]   ;;  %v4409_v4 = vld [vmem:[%s5265_s4] ss:$0 sm:$0xff] }
  0x17   :  { %3639 = vmatmul.mubr.msk.bf16.gmra.mrb[8].mxu1 %vm263_vm1, %v805_v14  ;;  %3576 = vmatprep.mubr.msk.bf16.mxu0 %vm263_vm1, %v3711_v17  ;;  %v3761_v3 = vld [vmem:[%s5263_s0 + $0xf8] sm:$0xff]   ;;  %v4414_v5 = vld [vmem:[%s5266_s6] ss:$0 sm:$0xff] }
  0x18   :  { %3642 = vmatprep.mubr.msk.bf16.mxu1 %vm263_vm1, %v807_v15  ;;  %v4419_v7 = vld [vmem:[%s5267_s5] ss:$0 sm:$0xff] }
  0x19   :  { %v4425_v10 = vld [vmem:[%s5268_s7] ss:$0 sm:$0xff] }
  0x1e   :  { %3577 = vmatmul.mubr.msk.bf16.gmra.mrb[12].mxu0 %vm263_vm1, %v3713_v20 }
  0x1f   :  { %3643 = vmatmul.mubr.msk.bf16.gmra.mrb[12].mxu1 %vm263_vm1, %v809_v18  ;;  %3580 = vmatprep.mubr.msk.bf16.mxu0 %vm263_vm1, %v3715_v21 }
  0x20   :  { %3646 = vmatprep.mubr.msk.bf16.mxu1 %vm263_vm1, %v811_v19 }
  0x26   :  { %3581 = vmatmul.mubr.msk.bf16.gmra.mrb[16].mxu0 %vm263_vm1, %v3717_v24 }
  0x27   :  { %3647 = vmatmul.mubr.msk.bf16.gmra.mrb[16].mxu1 %vm263_vm1, %v813_v22  ;;  %3584 = vmatprep.mubr.msk.bf16.mxu0 %vm263_vm1, %v3719_v25 }
  0x28   :  { %3650 = vmatprep.mubr.msk.bf16.mxu1 %vm263_vm1, %v815_v23 }
  0x2e   :  { %3585 = vmatmul.mubr.msk.bf16.gmra.mrb[20].mxu0 %vm263_vm1, %v3721_v28 }
  0x2f   :  { %3651 = vmatmul.mubr.msk.bf16.gmra.mrb[20].mxu1 %vm263_vm1, %v817_v26  ;;  %3588 = vmatprep.mubr.msk.bf16.mxu0 %vm263_vm1, %v3723_v29 }
  0x30   :  { %3654 = vmatprep.mubr.msk.bf16.mxu1 %vm263_vm1, %v819_v27 }
  0x36   :  { %3589 = vmatmul.mubr.msk.bf16.gmra.mrb[24].mxu0 %vm263_vm1, %v3725_v32 }
  0x37   :  { %3655 = vmatmul.mubr.msk.bf16.gmra.mrb[24].mxu1 %vm263_vm1, %v821_v30  ;;  %3592 = vmatprep.mubr.msk.bf16.mxu0 %vm263_vm1, %v3727_v33  ;;  %v4445_v33 = vld [vmem:[%s5269_s8] ss:$0 sm:$0xff] }
  0x38   :  { %3658 = vmatprep.mubr.msk.bf16.mxu1 %vm263_vm1, %v823_v31 }
  0x3e   :  { %3593 = vmatmul.mubr.msk.bf16.gmra.mrb[28].mxu0 %vm263_vm1, %v3729_v36 }
  0x3f   :  { %3659 = vmatmul.mubr.msk.bf16.gmra.mrb[28].mxu1 %vm263_vm1, %v825_v34  ;;  %3596 = vmatprep.mubr.msk.bf16.mxu0 %vm263_vm1, %v3731_v37 }
  0x40   :  { %3662 = vmatprep.mubr.msk.bf16.mxu1 %vm263_vm1, %v827_v35 }
  0x46   :  { %3597 = vmatmul.mubr.msk.bf16.gmra.mrb[32].mxu0 %vm263_vm1, %v3733_v40 }
  0x47   :  { %3663 = vmatmul.mubr.msk.bf16.gmra.mrb[32].mxu1 %vm263_vm1, %v829_v38  ;;  %3600 = vmatprep.mubr.msk.bf16.mxu0 %vm263_vm1, %v3735_v41 }
  0x48   :  { %3666 = vmatprep.mubr.msk.bf16.mxu1 %vm263_vm1, %v831_v39 }
  0x4e   :  { %3601 = vmatmul.mubr.msk.bf16.gmra.mrb[36].mxu0 %vm263_vm1, %v3737_v44 }
  0x4f   :  { %3667 = vmatmul.mubr.msk.bf16.gmra.mrb[36].mxu1 %vm263_vm1, %v833_v42  ;;  %3604 = vmatprep.mubr.msk.bf16.mxu0 %vm263_vm1, %v3739_v45 }
  0x50   :  { %3670 = vmatprep.mubr.msk.bf16.mxu1 %vm263_vm1, %v835_v43 }
  0x56   :  { %3605 = vmatmul.mubr.msk.bf16.gmra.mrb[40].mxu0 %vm263_vm1, %v3741_v48 }
  0x57   :  { %3671 = vmatmul.mubr.msk.bf16.gmra.mrb[40].mxu1 %vm263_vm1, %v837_v46  ;;  %3608 = vmatprep.mubr.msk.bf16.mxu0 %vm263_vm1, %v3743_v49 }
  0x58   :  { %3674 = vmatprep.mubr.msk.bf16.mxu1 %vm263_vm1, %v839_v47 }
  0x5e   :  { %3609 = vmatmul.mubr.msk.bf16.gmra.mrb[44].mxu0 %vm263_vm1, %v3745_v52 }
  0x5f   :  { %3675 = vmatmul.mubr.msk.bf16.gmra.mrb[44].mxu1 %vm263_vm1, %v841_v50  ;;  %3612 = vmatprep.mubr.msk.bf16.mxu0 %vm263_vm1, %v3747_v53 }
  0x60   :  { %3678 = vmatprep.mubr.msk.bf16.mxu1 %vm263_vm1, %v843_v51 }
  0x66   :  { %3613 = vmatmul.mubr.msk.bf16.gmra.mrb[48].mxu0 %vm263_vm1, %v3749_v56 }
  0x67   :  { %3679 = vmatmul.mubr.msk.bf16.gmra.mrb[48].mxu1 %vm263_vm1, %v845_v54  ;;  %3616 = vmatprep.mubr.msk.bf16.mxu0 %vm263_vm1, %v3751_v57 }
  0x68   :  { %3682 = vmatprep.mubr.msk.bf16.mxu1 %vm263_vm1, %v847_v55 }
  0x6e   :  { %3617 = vmatmul.mubr.msk.bf16.gmra.mrb[52].mxu0 %vm263_vm1, %v3753_v60 }
  0x6f   :  { %3683 = vmatmul.mubr.msk.bf16.gmra.mrb[52].mxu1 %vm263_vm1, %v849_v58  ;;  %3620 = vmatprep.mubr.msk.bf16.mxu0 %vm263_vm1, %v3755_v61 }
  0x70   :  { %3686 = vmatprep.mubr.msk.bf16.mxu1 %vm263_vm1, %v851_v59 }
  0x76   :  { %3621 = vmatmul.mubr.msk.bf16.gmra.mrb[56].mxu0 %vm263_vm1, %v3757_v0 }
  0x77   :  { %3687 = vmatmul.mubr.msk.bf16.gmra.mrb[56].mxu1 %vm263_vm1, %v853_v62  ;;  %3624 = vmatprep.mubr.msk.bf16.mxu0 %vm263_vm1, %v3759_v1 }
  0x78   :  { %3690 = vmatprep.mubr.msk.bf16.mxu1 %vm263_vm1, %v855_v63 }
  0x7e   :  { %3625 = vmatmul.mubr.msk.bf16.gmra.mrb[60].mxu0 %vm263_vm1, %v3761_v3 }
  0x7f   :  { %3691 = vmatmul.mubr.msk.bf16.gmra.mrb[60].mxu1 %vm263_vm1, %v857_v2 }
  0xd9   :  { %v3566_v6 = vpop.f32.mrb[0].mxu0 }
  0xda   :  { %v662_v8 = vmul.f32 %v3566_v6, %v4409_v4  ;;  %v3632_v9 = vpop.f32.mrb[0].mxu1  ;;  %v398_v11 = vpop.f32.mrb[1].mxu0 }
  0xdb   :  { %v1417_v12 = vmul.f32 %v3632_v9, %v4414_v5  ;;  %v660_v13 = vmul.f32 %v4409_v4, %v398_v11  ;;  %v1153_v14 = vpop.f32.mrb[1].mxu1  ;;  %v3567_v15 = vpop.f32.mrb[2].mxu0 }
  0xdc   :  { %v733_v16 = vadd.f32 %v4419_v7, %v662_v8  ;;  %v1415_v17 = vmul.f32 %v4414_v5, %v1153_v14  ;;  %v663_v18 = vmul.f32 %v3567_v15, %v4409_v4  ;;  %v3633_v19 = vpop.f32.mrb[2].mxu1  ;;  %v401_v20 = vpop.f32.mrb[3].mxu0 }
  0xdd   :  { %v1488_v21 = vadd.f32 %v4425_v10, %v1417_v12  ;;  %v731_v22 = vadd.f32 %v4419_v7, %v660_v13  ;;  %v1418_v23 = vmul.f32 %v3633_v19, %v4414_v5  ;;  %v661_v24 = vmul.f32 %v4409_v4, %v401_v20  ;;  %v1156_v25 = vpop.f32.mrb[3].mxu1 }
  0xde   :  { %v1486_v26 = vadd.f32 %v4425_v10, %v1415_v17  ;;  %v734_v27 = vadd.f32 %v4419_v7, %v663_v18  ;;  %v1416_v28 = vmul.f32 %v4414_v5, %v1156_v25 }
  0xdf   :  { %v1489_v29 = vadd.f32 %v4425_v10, %v1418_v23  ;;  %v732_v30 = vadd.f32 %v4419_v7, %v661_v24  ;;  %v1552_v31 = vadd.f32 %v1488_v21, %v733_v16  ;;  %v15_v16 = vstv %s5270_s9 }
  0xe0   :  { %v1487_v32 = vadd.f32 %v4425_v10, %v1416_v28  ;;  %v1550_v34 = vadd.f32 %v1486_v26, %v731_v22  ;;  %16 = vst [vmem:[#allocation2] sm:$0x1] %v15_v16 }
  0xe1   :  { %v1553_v35 = vadd.f32 %v1489_v29, %v734_v27  ;;  %v3570_v36 = vpop.f32.mrb[4].mxu0  ;;  %v1616_v37 = vmax.f32 %v1552_v31, 0.0 }
  0xe2   :  { %v1551_v38 = vadd.f32 %v1487_v32, %v732_v30  ;;  %v666_v39 = vmul.f32 %v3570_v36, %v4409_v4  ;;  %v3636_v40 = vpop.f32.mrb[4].mxu1  ;;  %v414_v41 = vpop.f32.mrb[5].mxu0  ;;  %v1614_v42 = vmax.f32 %v1550_v34, 0.0 }
  0xe3   :  { %v1421_v43 = vmul.f32 %v3636_v40, %v4414_v5  ;;  %v664_v44 = vmul.f32 %v4409_v4, %v414_v41  ;;  %v1169_v45 = vpop.f32.mrb[5].mxu1  ;;  %v3571_v46 = vpop.f32.mrb[6].mxu0  ;;  %v1687_v47 = vmul.f32 %v4445_v33, %v1616_v37  ;;  %v1617_v48 = vmax.f32 %v1553_v35, 0.0 }
  0xe4   :  { %v737_v49 = vadd.f32 %v4419_v7, %v666_v39  ;;  %v1419_v50 = vmul.f32 %v4414_v5, %v1169_v45  ;;  %v667_v51 = vmul.f32 %v3571_v46, %v4409_v4  ;;  %v3637_v52 = vpop.f32.mrb[6].mxu1  ;;  %v417_v53 = vpop.f32.mrb[7].mxu0  ;;  %v1685_v54 = vmul.f32 %v4445_v33, %v1614_v42 }
  0xe5   :  { %v1492_v55 = vadd.f32 %v4425_v10, %v1421_v43  ;;  %v735_v56 = vadd.f32 %v4419_v7, %v664_v44  ;;  %v1422_v57 = vmul.f32 %v3637_v52, %v4414_v5  ;;  %v1172_v58 = vpop.f32.mrb[7].mxu1  ;;  %v1756_v59 = vsel %vm1749_vm2, %v1687_v47, 0.0 }
  0xe6   :  { %v1490_v60 = vadd.f32 %v4425_v10, %v1419_v50  ;;  %v738_v61 = vadd.f32 %v4419_v7, %v667_v51  ;;  %v1420_v62 = vmul.f32 %v4414_v5, %v1172_v58  ;;  %1757 = vadd.xlane.f32.xlu1 %v1756_v59  ;;  %v665_v63 = vmul.f32 %v4409_v4, %v417_v53 }
  0xe7   :  { %v1556_v0 = vadd.f32 %v1492_v55, %v737_v49  ;;  %v1493_v1 = vadd.f32 %v4425_v10, %v1422_v57  ;;  %v1750_v2 = vsel %vm1749_vm2, %v1685_v54, 0.0  ;;  %v1688_v3 = vmul.f32 %v4445_v33, %v1617_v48 }
  0xe8   :  { %v1554_v6 = vadd.f32 %v1490_v60, %v735_v56  ;;  %v1491_v8 = vadd.f32 %v4425_v10, %v1420_v62  ;;  %v736_v9 = vadd.f32 %v4419_v7, %v665_v63  ;;  %1751 = vadd.xlane.f32.xlu0 %v1750_v2  ;;  %v1615_v11 = vmax.f32 %v1551_v38, 0.0 }
  0xe9   :  { %v1557_v12 = vadd.f32 %v1493_v1, %v738_v61  ;;  %v1759_v13 = vsel %vm1749_vm2, %v1688_v3, 0.0  ;;  %v3574_v14 = vpop.f32.mrb[8].mxu0  ;;  %v1620_v15 = vmax.f32 %v1556_v0, 0.0 }
  0xea   :  { %v1555_v17 = vadd.f32 %v1491_v8, %v736_v9  ;;  %v3640_v18 = vpop.f32.mrb[8].mxu1  ;;  %1760 = vadd.xlane.f32.xlu1 %v1759_v13  ;;  %v670_v19 = vmul.f32 %v3574_v14, %v4409_v4  ;;  %v1686_v20 = vmul.f32 %v4445_v33, %v1615_v11  ;;  %v430_v21 = vpop.f32.mrb[9].mxu0  ;;  %v1618_v22 = vmax.f32 %v1554_v6, 0.0 }
  0xeb   :  { %v1425_v23 = vmul.f32 %v3640_v18, %v4414_v5  ;;  %v1185_v24 = vpop.f32.mrb[9].mxu1  ;;  %v668_v25 = vmul.f32 %v4409_v4, %v430_v21  ;;  %v3575_v26 = vpop.f32.mrb[10].mxu0  ;;  %v1691_v27 = vmul.f32 %v4445_v33, %v1620_v15  ;;  %v1621_v28 = vmax.f32 %v1557_v12, 0.0 }
  0xec   :  { %v741_v29 = vadd.f32 %v4419_v7, %v670_v19  ;;  %v1423_v30 = vmul.f32 %v4414_v5, %v1185_v24  ;;  %v1753_v31 = vsel %vm1749_vm2, %v1686_v20, 0.0  ;;  %v671_v32 = vmul.f32 %v3575_v26, %v4409_v4  ;;  %v3641_v34 = vpop.f32.mrb[10].mxu1  ;;  %v433_v35 = vpop.f32.mrb[11].mxu0 }
  0xed   :  { %v1496_v36 = vadd.f32 %v4425_v10, %v1425_v23  ;;  %1754 = vadd.xlane.f32.xlu0 %v1753_v31  ;;  %v739_v37 = vadd.f32 %v4419_v7, %v668_v25  ;;  %v1426_v38 = vmul.f32 %v3641_v34, %v4414_v5  ;;  %v1768_v39 = vsel %vm1749_vm2, %v1691_v27, 0.0  ;;  %v1188_v40 = vpop.f32.mrb[11].mxu1 }
  0xee   :  { %v1494_v41 = vadd.f32 %v4425_v10, %v1423_v30  ;;  %v742_v42 = vadd.f32 %v4419_v7, %v671_v32  ;;  %v1424_v43 = vmul.f32 %v4414_v5, %v1188_v40  ;;  %v1692_v44 = vmul.f32 %v4445_v33, %v1621_v28 }
  0xef   :  { %v1560_v45 = vadd.f32 %v1496_v36, %v741_v29  ;;  %v1497_v46 = vadd.f32 %v4425_v10, %v1426_v38  ;;  %v669_v47 = vmul.f32 %v4409_v4, %v433_v35  ;;  %v1689_v48 = vmul.f32 %v4445_v33, %v1618_v22 }
  0xf0   :  { %v1558_v49 = vadd.f32 %v1494_v41, %v739_v37  ;;  %v1495_v50 = vadd.f32 %v4425_v10, %v1424_v43  ;;  %v1771_v51 = vsel %vm1749_vm2, %v1692_v44, 0.0  ;;  %v1619_v52 = vmax.f32 %v1555_v17, 0.0 }
  0xf1   :  { %v1561_v53 = vadd.f32 %v1497_v46, %v742_v42  ;;  %1769 = vadd.xlane.f32.xlu0 %v1768_v39  ;;  %1772 = vadd.xlane.f32.xlu1 %v1771_v51  ;;  %v740_v54 = vadd.f32 %v4419_v7, %v669_v47  ;;  %v3578_v55 = vpop.f32.mrb[12].mxu0  ;;  %v1624_v56 = vmax.f32 %v1560_v45, 0.0  ;;  %v1762_v59 = vsel %vm1749_vm2, %v1689_v48, 0.0 }
  0xf2   :  { %v674_v57 = vmul.f32 %v3578_v55, %v4409_v4  ;;  %v3644_v58 = vpop.f32.mrb[12].mxu1  ;;  %v446_v60 = vpop.f32.mrb[13].mxu0  ;;  %v1690_v61 = vmul.f32 %v4445_v33, %v1619_v52  ;;  %v1622_v62 = vmax.f32 %v1558_v49, 0.0 }
  0xf3   :  { %v1559_v63 = vadd.f32 %v1495_v50, %v740_v54  ;;  %v1429_v0 = vmul.f32 %v3644_v58, %v4414_v5  ;;  %v1201_v1 = vpop.f32.mrb[13].mxu1  ;;  %v672_v2 = vmul.f32 %v4409_v4, %v446_v60  ;;  %v3579_v3 = vpop.f32.mrb[14].mxu0  ;;  %v1695_v6 = vmul.f32 %v4445_v33, %v1624_v56 }
  0xf4   :  { %v745_v8 = vadd.f32 %v4419_v7, %v674_v57  ;;  %v1427_v9 = vmul.f32 %v4414_v5, %v1201_v1  ;;  %v3645_v11 = vpop.f32.mrb[14].mxu1  ;;  %v1765_v12 = vsel %vm1749_vm2, %v1690_v61, 0.0  ;;  %v675_v13 = vmul.f32 %v3579_v3, %v4409_v4  ;;  %v449_v14 = vpop.f32.mrb[15].mxu0 }
  0xf5   :  { %v1500_v15 = vadd.f32 %v4425_v10, %v1429_v0  ;;  %1763 = vadd.xlane.f32.xlu0 %v1762_v59  ;;  %v743_v16 = vadd.f32 %v4419_v7, %v672_v2  ;;  %v1430_v17 = vmul.f32 %v3645_v11, %v4414_v5  ;;  %1766 = vadd.xlane.f32.xlu1 %v1765_v12  ;;  %v1204_v18 = vpop.f32.mrb[15].mxu1  ;;  %v1780_v19 = vsel %vm1749_vm2, %v1695_v6, 0.0 }
  0xf6   :  { %v1498_v20 = vadd.f32 %v4425_v10, %v1427_v9  ;;  %v746_v21 = vadd.f32 %v4419_v7, %v675_v13  ;;  %v1428_v22 = vmul.f32 %v4414_v5, %v1204_v18  ;;  %v1625_v23 = vmax.f32 %v1561_v53, 0.0 }
  0xf7   :  { %v1564_v24 = vadd.f32 %v1500_v15, %v745_v8  ;;  %v1501_v25 = vadd.f32 %v4425_v10, %v1430_v17  ;;  %v673_v26 = vmul.f32 %v4409_v4, %v449_v14  ;;  %v1693_v27 = vmul.f32 %v4445_v33, %v1622_v62 }
  0xf8   :  { %v1562_v28 = vadd.f32 %v1498_v20, %v743_v16  ;;  %v1499_v29 = vadd.f32 %v4425_v10, %v1428_v22  ;;  %v1696_v30 = vmul.f32 %v4445_v33, %v1625_v23  ;;  %v1623_v31 = vmax.f32 %v1559_v63, 0.0 }
  0xf9   :  { %v1565_v32 = vadd.f32 %v1501_v25, %v746_v21  ;;  %1781 = vadd.xlane.f32.xlu0 %v1780_v19  ;;  %v744_v34 = vadd.f32 %v4419_v7, %v673_v26  ;;  %v3582_v35 = vpop.f32.mrb[16].mxu0  ;;  %v1774_v36 = vsel %vm1749_vm2, %v1693_v27, 0.0  ;;  %v1628_v37 = vmax.f32 %v1564_v24, 0.0 }
  0xfa   :  { %v1783_v38 = vsel %vm1749_vm2, %v1696_v30, 0.0  ;;  %v678_v39 = vmul.f32 %v3582_v35, %v4409_v4  ;;  %v3648_v40 = vpop.f32.mrb[16].mxu1  ;;  %v462_v41 = vpop.f32.mrb[17].mxu0  ;;  %v1694_v42 = vmul.f32 %v4445_v33, %v1623_v31  ;;  %v1626_v43 = vmax.f32 %v1562_v28, 0.0 }
  0xfb   :  { %1784 = vadd.xlane.f32.xlu1 %v1783_v38  ;;  %v1563_v44 = vadd.f32 %v1499_v29, %v744_v34  ;;  %v1433_v45 = vmul.f32 %v3648_v40, %v4414_v5  ;;  %v676_v46 = vmul.f32 %v4409_v4, %v462_v41  ;;  %v1217_v47 = vpop.f32.mrb[17].mxu1  ;;  %v3583_v48 = vpop.f32.mrb[18].mxu0  ;;  %v1699_v49 = vmul.f32 %v4445_v33, %v1628_v37 }
  0xfc   :  { %v749_v50 = vadd.f32 %v4419_v7, %v678_v39  ;;  %v1431_v51 = vmul.f32 %v4414_v5, %v1217_v47  ;;  %v3649_v52 = vpop.f32.mrb[18].mxu1  ;;  %v1777_v53 = vsel %vm1749_vm2, %v1694_v42, 0.0  ;;  %v679_v54 = vmul.f32 %v3583_v48, %v4409_v4  ;;  %v465_v55 = vpop.f32.mrb[19].mxu0 }
  0xfd   :  { %v1504_v56 = vadd.f32 %v4425_v10, %v1433_v45  ;;  %v747_v57 = vadd.f32 %v4419_v7, %v676_v46  ;;  %v1434_v58 = vmul.f32 %v3649_v52, %v4414_v5  ;;  %1775 = vadd.xlane.f32.xlu0 %v1774_v36  ;;  %v1220_v59 = vpop.f32.mrb[19].mxu1  ;;  %v1792_v60 = vsel %vm1749_vm2, %v1699_v49, 0.0 }
  0xfe   :  { %v1502_v61 = vadd.f32 %v4425_v10, %v1431_v51  ;;  %v750_v62 = vadd.f32 %v4419_v7, %v679_v54  ;;  %v1432_v63 = vmul.f32 %v4414_v5, %v1220_v59  ;;  %v1629_v0 = vmax.f32 %v1565_v32, 0.0 }
  0xff   :  { %v1568_v1 = vadd.f32 %v1504_v56, %v749_v50  ;;  %v1505_v2 = vadd.f32 %v4425_v10, %v1434_v58  ;;  %1778 = vadd.xlane.f32.xlu1 %v1777_v53  ;;  %v677_v3 = vmul.f32 %v4409_v4, %v465_v55  ;;  %v1697_v6 = vmul.f32 %v4445_v33, %v1626_v43 }
 0x100   :  { %v1566_v8 = vadd.f32 %v1502_v61, %v747_v57  ;;  %v1503_v9 = vadd.f32 %v4425_v10, %v1432_v63  ;;  %v1700_v11 = vmul.f32 %v4445_v33, %v1629_v0  ;;  %v1627_v12 = vmax.f32 %v1563_v44, 0.0 }
 0x101   :  { %v1569_v13 = vadd.f32 %v1505_v2, %v750_v62  ;;  %1793 = vadd.xlane.f32.xlu0 %v1792_v60  ;;  %v748_v14 = vadd.f32 %v4419_v7, %v677_v3  ;;  %v3586_v15 = vpop.f32.mrb[20].mxu0  ;;  %v1786_v16 = vsel %vm1749_vm2, %v1697_v6, 0.0  ;;  %v1632_v17 = vmax.f32 %v1568_v1, 0.0 }
 0x102   :  { %v1795_v18 = vsel %vm1749_vm2, %v1700_v11, 0.0  ;;  %v682_v19 = vmul.f32 %v3586_v15, %v4409_v4  ;;  %v3652_v20 = vpop.f32.mrb[20].mxu1  ;;  %v478_v21 = vpop.f32.mrb[21].mxu0  ;;  %v1698_v22 = vmul.f32 %v4445_v33, %v1627_v12  ;;  %v1630_v23 = vmax.f32 %v1566_v8, 0.0 }
 0x103   :  { %1796 = vadd.xlane.f32.xlu1 %v1795_v18  ;;  %v1567_v24 = vadd.f32 %v1503_v9, %v748_v14  ;;  %v1437_v25 = vmul.f32 %v3652_v20, %v4414_v5  ;;  %v680_v26 = vmul.f32 %v4409_v4, %v478_v21  ;;  %v1233_v27 = vpop.f32.mrb[21].mxu1  ;;  %v3587_v28 = vpop.f32.mrb[22].mxu0  ;;  %v1703_v29 = vmul.f32 %v4445_v33, %v1632_v17 }
 0x104   :  { %v753_v30 = vadd.f32 %v4419_v7, %v682_v19  ;;  %v1435_v31 = vmul.f32 %v4414_v5, %v1233_v27  ;;  %v3653_v32 = vpop.f32.mrb[22].mxu1  ;;  %v1789_v34 = vsel %vm1749_vm2, %v1698_v22, 0.0  ;;  %v683_v35 = vmul.f32 %v3587_v28, %v4409_v4  ;;  %v481_v36 = vpop.f32.mrb[23].mxu0 }
 0x105   :  { %v1508_v37 = vadd.f32 %v4425_v10, %v1437_v25  ;;  %v751_v38 = vadd.f32 %v4419_v7, %v680_v26  ;;  %v1438_v39 = vmul.f32 %v3653_v32, %v4414_v5  ;;  %1787 = vadd.xlane.f32.xlu0 %v1786_v16  ;;  %v1236_v40 = vpop.f32.mrb[23].mxu1  ;;  %v1804_v41 = vsel %vm1749_vm2, %v1703_v29, 0.0 }
 0x106   :  { %v1506_v42 = vadd.f32 %v4425_v10, %v1435_v31  ;;  %v754_v43 = vadd.f32 %v4419_v7, %v683_v35  ;;  %v1436_v44 = vmul.f32 %v4414_v5, %v1236_v40  ;;  %v1633_v45 = vmax.f32 %v1569_v13, 0.0 }
 0x107   :  { %v1572_v46 = vadd.f32 %v1508_v37, %v753_v30  ;;  %v1509_v47 = vadd.f32 %v4425_v10, %v1438_v39  ;;  %1790 = vadd.xlane.f32.xlu1 %v1789_v34  ;;  %v681_v48 = vmul.f32 %v4409_v4, %v481_v36  ;;  %v1701_v49 = vmul.f32 %v4445_v33, %v1630_v23 }
 0x108   :  { %v1570_v50 = vadd.f32 %v1506_v42, %v751_v38  ;;  %v1507_v51 = vadd.f32 %v4425_v10, %v1436_v44  ;;  %v1704_v52 = vmul.f32 %v4445_v33, %v1633_v45  ;;  %v1631_v53 = vmax.f32 %v1567_v24, 0.0 }
 0x109   :  { %v1573_v54 = vadd.f32 %v1509_v47, %v754_v43  ;;  %1805 = vadd.xlane.f32.xlu0 %v1804_v41  ;;  %v752_v55 = vadd.f32 %v4419_v7, %v681_v48  ;;  %v3590_v56 = vpop.f32.mrb[24].mxu0  ;;  %v1798_v57 = vsel %vm1749_vm2, %v1701_v49, 0.0  ;;  %v1636_v58 = vmax.f32 %v1572_v46, 0.0 }
 0x10a   :  { %v1807_v59 = vsel %vm1749_vm2, %v1704_v52, 0.0  ;;  %v686_v60 = vmul.f32 %v3590_v56, %v4409_v4  ;;  %v3656_v61 = vpop.f32.mrb[24].mxu1  ;;  %v494_v62 = vpop.f32.mrb[25].mxu0  ;;  %v1702_v63 = vmul.f32 %v4445_v33, %v1631_v53  ;;  %v1634_v0 = vmax.f32 %v1570_v50, 0.0 }
 0x10b   :  { %1808 = vadd.xlane.f32.xlu1 %v1807_v59  ;;  %v1571_v1 = vadd.f32 %v1507_v51, %v752_v55  ;;  %v1441_v2 = vmul.f32 %v3656_v61, %v4414_v5  ;;  %v684_v3 = vmul.f32 %v4409_v4, %v494_v62  ;;  %v1249_v6 = vpop.f32.mrb[25].mxu1  ;;  %v3591_v8 = vpop.f32.mrb[26].mxu0  ;;  %v1707_v9 = vmul.f32 %v4445_v33, %v1636_v58 }
 0x10c   :  { %v757_v11 = vadd.f32 %v4419_v7, %v686_v60  ;;  %v1439_v12 = vmul.f32 %v4414_v5, %v1249_v6  ;;  %v3657_v13 = vpop.f32.mrb[26].mxu1  ;;  %v1801_v14 = vsel %vm1749_vm2, %v1702_v63, 0.0  ;;  %v687_v15 = vmul.f32 %v3591_v8, %v4409_v4  ;;  %v497_v16 = vpop.f32.mrb[27].mxu0 }
 0x10d   :  { %v1512_v17 = vadd.f32 %v4425_v10, %v1441_v2  ;;  %v755_v18 = vadd.f32 %v4419_v7, %v684_v3  ;;  %v1442_v19 = vmul.f32 %v3657_v13, %v4414_v5  ;;  %1799 = vadd.xlane.f32.xlu0 %v1798_v57  ;;  %v1252_v20 = vpop.f32.mrb[27].mxu1  ;;  %v1816_v21 = vsel %vm1749_vm2, %v1707_v9, 0.0 }
 0x10e   :  { %v1510_v22 = vadd.f32 %v4425_v10, %v1439_v12  ;;  %v758_v23 = vadd.f32 %v4419_v7, %v687_v15  ;;  %v1440_v24 = vmul.f32 %v4414_v5, %v1252_v20  ;;  %v1637_v25 = vmax.f32 %v1573_v54, 0.0 }
 0x10f   :  { %v1576_v26 = vadd.f32 %v1512_v17, %v757_v11  ;;  %v1513_v27 = vadd.f32 %v4425_v10, %v1442_v19  ;;  %1802 = vadd.xlane.f32.xlu1 %v1801_v14  ;;  %v685_v28 = vmul.f32 %v4409_v4, %v497_v16  ;;  %v1705_v29 = vmul.f32 %v4445_v33, %v1634_v0 }
 0x110   :  { %v1574_v30 = vadd.f32 %v1510_v22, %v755_v18  ;;  %v1511_v31 = vadd.f32 %v4425_v10, %v1440_v24  ;;  %v1708_v32 = vmul.f32 %v4445_v33, %v1637_v25  ;;  %v1635_v34 = vmax.f32 %v1571_v1, 0.0 }
 0x111   :  { %v1577_v35 = vadd.f32 %v1513_v27, %v758_v23  ;;  %1817 = vadd.xlane.f32.xlu0 %v1816_v21  ;;  %v756_v36 = vadd.f32 %v4419_v7, %v685_v28  ;;  %v3594_v37 = vpop.f32.mrb[28].mxu0  ;;  %v1810_v38 = vsel %vm1749_vm2, %v1705_v29, 0.0  ;;  %v1640_v39 = vmax.f32 %v1576_v26, 0.0 }
 0x112   :  { %v1819_v40 = vsel %vm1749_vm2, %v1708_v32, 0.0  ;;  %v690_v41 = vmul.f32 %v3594_v37, %v4409_v4  ;;  %v3660_v42 = vpop.f32.mrb[28].mxu1  ;;  %v510_v43 = vpop.f32.mrb[29].mxu0  ;;  %v1706_v44 = vmul.f32 %v4445_v33, %v1635_v34  ;;  %v1638_v45 = vmax.f32 %v1574_v30, 0.0 }
 0x113   :  { %1820 = vadd.xlane.f32.xlu1 %v1819_v40  ;;  %v1575_v46 = vadd.f32 %v1511_v31, %v756_v36  ;;  %v1445_v47 = vmul.f32 %v3660_v42, %v4414_v5  ;;  %v688_v48 = vmul.f32 %v4409_v4, %v510_v43  ;;  %v1265_v49 = vpop.f32.mrb[29].mxu1  ;;  %v3595_v50 = vpop.f32.mrb[30].mxu0  ;;  %v1711_v51 = vmul.f32 %v4445_v33, %v1640_v39 }
 0x114   :  { %v761_v52 = vadd.f32 %v4419_v7, %v690_v41  ;;  %v1443_v53 = vmul.f32 %v4414_v5, %v1265_v49  ;;  %v3661_v54 = vpop.f32.mrb[30].mxu1  ;;  %v1813_v55 = vsel %vm1749_vm2, %v1706_v44, 0.0  ;;  %v691_v56 = vmul.f32 %v3595_v50, %v4409_v4  ;;  %v513_v57 = vpop.f32.mrb[31].mxu0 }
 0x115   :  { %v1516_v58 = vadd.f32 %v4425_v10, %v1445_v47  ;;  %v759_v59 = vadd.f32 %v4419_v7, %v688_v48  ;;  %v1446_v60 = vmul.f32 %v3661_v54, %v4414_v5  ;;  %1811 = vadd.xlane.f32.xlu0 %v1810_v38  ;;  %v1268_v61 = vpop.f32.mrb[31].mxu1  ;;  %v1828_v62 = vsel %vm1749_vm2, %v1711_v51, 0.0 }
 0x116   :  { %v1514_v63 = vadd.f32 %v4425_v10, %v1443_v53  ;;  %v762_v0 = vadd.f32 %v4419_v7, %v691_v56  ;;  %v1444_v1 = vmul.f32 %v4414_v5, %v1268_v61  ;;  %v1641_v2 = vmax.f32 %v1577_v35, 0.0 }
 0x117   :  { %v1580_v3 = vadd.f32 %v1516_v58, %v761_v52  ;;  %v1517_v6 = vadd.f32 %v4425_v10, %v1446_v60  ;;  %1814 = vadd.xlane.f32.xlu1 %v1813_v55  ;;  %v689_v8 = vmul.f32 %v4409_v4, %v513_v57  ;;  %v1709_v9 = vmul.f32 %v4445_v33, %v1638_v45 }
 0x118   :  { %v1578_v11 = vadd.f32 %v1514_v63, %v759_v59  ;;  %v1515_v12 = vadd.f32 %v4425_v10, %v1444_v1  ;;  %v1712_v13 = vmul.f32 %v4445_v33, %v1641_v2  ;;  %v1639_v14 = vmax.f32 %v1575_v46, 0.0 }
 0x119   :  { %v1581_v15 = vadd.f32 %v1517_v6, %v762_v0  ;;  %1829 = vadd.xlane.f32.xlu0 %v1828_v62  ;;  %v760_v16 = vadd.f32 %v4419_v7, %v689_v8  ;;  %v3598_v17 = vpop.f32.mrb[32].mxu0  ;;  %v1822_v18 = vsel %vm1749_vm2, %v1709_v9, 0.0  ;;  %v1644_v19 = vmax.f32 %v1580_v3, 0.0 }
 0x11a   :  { %v1831_v20 = vsel %vm1749_vm2, %v1712_v13, 0.0  ;;  %v694_v21 = vmul.f32 %v3598_v17, %v4409_v4  ;;  %v3664_v22 = vpop.f32.mrb[32].mxu1  ;;  %v526_v23 = vpop.f32.mrb[33].mxu0  ;;  %v1710_v24 = vmul.f32 %v4445_v33, %v1639_v14  ;;  %v1642_v25 = vmax.f32 %v1578_v11, 0.0 }
 0x11b   :  { %1832 = vadd.xlane.f32.xlu1 %v1831_v20  ;;  %v1579_v26 = vadd.f32 %v1515_v12, %v760_v16  ;;  %v1449_v27 = vmul.f32 %v3664_v22, %v4414_v5  ;;  %v692_v28 = vmul.f32 %v4409_v4, %v526_v23  ;;  %v1281_v29 = vpop.f32.mrb[33].mxu1  ;;  %v3599_v30 = vpop.f32.mrb[34].mxu0  ;;  %v1715_v31 = vmul.f32 %v4445_v33, %v1644_v19 }
 0x11c   :  { %v765_v32 = vadd.f32 %v4419_v7, %v694_v21  ;;  %v1447_v34 = vmul.f32 %v4414_v5, %v1281_v29  ;;  %v3665_v35 = vpop.f32.mrb[34].mxu1  ;;  %v1825_v36 = vsel %vm1749_vm2, %v1710_v24, 0.0  ;;  %v695_v37 = vmul.f32 %v3599_v30, %v4409_v4  ;;  %v529_v38 = vpop.f32.mrb[35].mxu0 }
 0x11d   :  { %v1520_v39 = vadd.f32 %v4425_v10, %v1449_v27  ;;  %v763_v40 = vadd.f32 %v4419_v7, %v692_v28  ;;  %v1450_v41 = vmul.f32 %v3665_v35, %v4414_v5  ;;  %1823 = vadd.xlane.f32.xlu0 %v1822_v18  ;;  %v1284_v42 = vpop.f32.mrb[35].mxu1  ;;  %v1840_v43 = vsel %vm1749_vm2, %v1715_v31, 0.0 }
 0x11e   :  { %v1518_v44 = vadd.f32 %v4425_v10, %v1447_v34  ;;  %v766_v45 = vadd.f32 %v4419_v7, %v695_v37  ;;  %v1448_v46 = vmul.f32 %v4414_v5, %v1284_v42  ;;  %v1645_v47 = vmax.f32 %v1581_v15, 0.0 }
 0x11f   :  { %v1584_v48 = vadd.f32 %v1520_v39, %v765_v32  ;;  %v1521_v49 = vadd.f32 %v4425_v10, %v1450_v41  ;;  %1826 = vadd.xlane.f32.xlu1 %v1825_v36  ;;  %v693_v50 = vmul.f32 %v4409_v4, %v529_v38  ;;  %v1713_v51 = vmul.f32 %v4445_v33, %v1642_v25 }
 0x120   :  { %v1582_v52 = vadd.f32 %v1518_v44, %v763_v40  ;;  %v1519_v53 = vadd.f32 %v4425_v10, %v1448_v46  ;;  %v1716_v54 = vmul.f32 %v4445_v33, %v1645_v47  ;;  %v1643_v55 = vmax.f32 %v1579_v26, 0.0 }
 0x121   :  { %v1585_v56 = vadd.f32 %v1521_v49, %v766_v45  ;;  %1841 = vadd.xlane.f32.xlu0 %v1840_v43  ;;  %v764_v57 = vadd.f32 %v4419_v7, %v693_v50  ;;  %v3602_v58 = vpop.f32.mrb[36].mxu0  ;;  %v1834_v59 = vsel %vm1749_vm2, %v1713_v51, 0.0  ;;  %v1648_v60 = vmax.f32 %v1584_v48, 0.0 }
 0x122   :  { %v1843_v61 = vsel %vm1749_vm2, %v1716_v54, 0.0  ;;  %v698_v62 = vmul.f32 %v3602_v58, %v4409_v4  ;;  %v3668_v63 = vpop.f32.mrb[36].mxu1  ;;  %v542_v0 = vpop.f32.mrb[37].mxu0  ;;  %v1714_v1 = vmul.f32 %v4445_v33, %v1643_v55  ;;  %v1646_v2 = vmax.f32 %v1582_v52, 0.0 }
 0x123   :  { %1844 = vadd.xlane.f32.xlu1 %v1843_v61  ;;  %v1583_v3 = vadd.f32 %v1519_v53, %v764_v57  ;;  %v1453_v6 = vmul.f32 %v3668_v63, %v4414_v5  ;;  %v696_v8 = vmul.f32 %v4409_v4, %v542_v0  ;;  %v1297_v9 = vpop.f32.mrb[37].mxu1  ;;  %v3603_v11 = vpop.f32.mrb[38].mxu0  ;;  %v1719_v12 = vmul.f32 %v4445_v33, %v1648_v60 }
 0x124   :  { %v769_v13 = vadd.f32 %v4419_v7, %v698_v62  ;;  %v1451_v14 = vmul.f32 %v4414_v5, %v1297_v9  ;;  %v3669_v15 = vpop.f32.mrb[38].mxu1  ;;  %v1837_v16 = vsel %vm1749_vm2, %v1714_v1, 0.0  ;;  %v699_v17 = vmul.f32 %v3603_v11, %v4409_v4  ;;  %v545_v18 = vpop.f32.mrb[39].mxu0 }
 0x125   :  { %v1524_v19 = vadd.f32 %v4425_v10, %v1453_v6  ;;  %v767_v20 = vadd.f32 %v4419_v7, %v696_v8  ;;  %v1454_v21 = vmul.f32 %v3669_v15, %v4414_v5  ;;  %1835 = vadd.xlane.f32.xlu0 %v1834_v59  ;;  %v1300_v22 = vpop.f32.mrb[39].mxu1  ;;  %v1852_v23 = vsel %vm1749_vm2, %v1719_v12, 0.0 }
 0x126   :  { %v1522_v24 = vadd.f32 %v4425_v10, %v1451_v14  ;;  %v770_v25 = vadd.f32 %v4419_v7, %v699_v17  ;;  %v1452_v26 = vmul.f32 %v4414_v5, %v1300_v22  ;;  %v1649_v27 = vmax.f32 %v1585_v56, 0.0 }
 0x127   :  { %v1588_v28 = vadd.f32 %v1524_v19, %v769_v13  ;;  %v1525_v29 = vadd.f32 %v4425_v10, %v1454_v21  ;;  %1838 = vadd.xlane.f32.xlu1 %v1837_v16  ;;  %v697_v30 = vmul.f32 %v4409_v4, %v545_v18  ;;  %v1717_v31 = vmul.f32 %v4445_v33, %v1646_v2 }
 0x128   :  { %v1586_v32 = vadd.f32 %v1522_v24, %v767_v20  ;;  %v1523_v34 = vadd.f32 %v4425_v10, %v1452_v26  ;;  %v1720_v35 = vmul.f32 %v4445_v33, %v1649_v27  ;;  %v1647_v36 = vmax.f32 %v1583_v3, 0.0 }
 0x129   :  { %v1589_v37 = vadd.f32 %v1525_v29, %v770_v25  ;;  %1853 = vadd.xlane.f32.xlu0 %v1852_v23  ;;  %v768_v38 = vadd.f32 %v4419_v7, %v697_v30  ;;  %v3606_v39 = vpop.f32.mrb[40].mxu0  ;;  %v1846_v40 = vsel %vm1749_vm2, %v1717_v31, 0.0  ;;  %v1652_v41 = vmax.f32 %v1588_v28, 0.0 }
 0x12a   :  { %v1855_v42 = vsel %vm1749_vm2, %v1720_v35, 0.0  ;;  %v702_v43 = vmul.f32 %v3606_v39, %v4409_v4  ;;  %v3672_v44 = vpop.f32.mrb[40].mxu1  ;;  %v558_v45 = vpop.f32.mrb[41].mxu0  ;;  %v1718_v46 = vmul.f32 %v4445_v33, %v1647_v36  ;;  %v1650_v47 = vmax.f32 %v1586_v32, 0.0 }
 0x12b   :  { %1856 = vadd.xlane.f32.xlu1 %v1855_v42  ;;  %v1587_v48 = vadd.f32 %v1523_v34, %v768_v38  ;;  %v1457_v49 = vmul.f32 %v3672_v44, %v4414_v5  ;;  %v700_v50 = vmul.f32 %v4409_v4, %v558_v45  ;;  %v1313_v51 = vpop.f32.mrb[41].mxu1  ;;  %v3607_v52 = vpop.f32.mrb[42].mxu0  ;;  %v1723_v53 = vmul.f32 %v4445_v33, %v1652_v41 }
 0x12c   :  { %v773_v54 = vadd.f32 %v4419_v7, %v702_v43  ;;  %v1455_v55 = vmul.f32 %v4414_v5, %v1313_v51  ;;  %v3673_v56 = vpop.f32.mrb[42].mxu1  ;;  %v1849_v57 = vsel %vm1749_vm2, %v1718_v46, 0.0  ;;  %v703_v58 = vmul.f32 %v3607_v52, %v4409_v4  ;;  %v561_v59 = vpop.f32.mrb[43].mxu0 }
 0x12d   :  { %v1528_v60 = vadd.f32 %v4425_v10, %v1457_v49  ;;  %v771_v61 = vadd.f32 %v4419_v7, %v700_v50  ;;  %v1458_v62 = vmul.f32 %v3673_v56, %v4414_v5  ;;  %1847 = vadd.xlane.f32.xlu0 %v1846_v40  ;;  %v1316_v63 = vpop.f32.mrb[43].mxu1  ;;  %v1864_v0 = vsel %vm1749_vm2, %v1723_v53, 0.0 }
 0x12e   :  { %v1526_v1 = vadd.f32 %v4425_v10, %v1455_v55  ;;  %v774_v2 = vadd.f32 %v4419_v7, %v703_v58  ;;  %v1456_v3 = vmul.f32 %v4414_v5, %v1316_v63  ;;  %v1653_v6 = vmax.f32 %v1589_v37, 0.0 }
 0x12f   :  { %v1592_v8 = vadd.f32 %v1528_v60, %v773_v54  ;;  %v1529_v9 = vadd.f32 %v4425_v10, %v1458_v62  ;;  %1850 = vadd.xlane.f32.xlu1 %v1849_v57  ;;  %v701_v11 = vmul.f32 %v4409_v4, %v561_v59  ;;  %v1721_v12 = vmul.f32 %v4445_v33, %v1650_v47 }
 0x130   :  { %v1590_v13 = vadd.f32 %v1526_v1, %v771_v61  ;;  %v1527_v14 = vadd.f32 %v4425_v10, %v1456_v3  ;;  %v1724_v15 = vmul.f32 %v4445_v33, %v1653_v6  ;;  %v1651_v16 = vmax.f32 %v1587_v48, 0.0  ;;  %v4722_v3 = vld [vmem:[%s5266_s6] ss:$0 sm:$0xff] }
 0x131   :  { %v1593_v17 = vadd.f32 %v1529_v9, %v774_v2  ;;  %1865 = vadd.xlane.f32.xlu0 %v1864_v0  ;;  %v772_v18 = vadd.f32 %v4419_v7, %v701_v11  ;;  %v3610_v19 = vpop.f32.mrb[44].mxu0  ;;  %v1858_v20 = vsel %vm1749_vm2, %v1721_v12, 0.0  ;;  %v1656_v21 = vmax.f32 %v1592_v8, 0.0 }
 0x132   :  { %v1867_v22 = vsel %vm1749_vm2, %v1724_v15, 0.0  ;;  %v706_v23 = vmul.f32 %v3610_v19, %v4409_v4  ;;  %v3676_v24 = vpop.f32.mrb[44].mxu1  ;;  %v574_v25 = vpop.f32.mrb[45].mxu0  ;;  %v1722_v26 = vmul.f32 %v4445_v33, %v1651_v16  ;;  %v1654_v27 = vmax.f32 %v1590_v13, 0.0  ;;  %v4730_v13 = vld [vmem:[%s5267_s5] ss:$0 sm:$0xff] }
 0x133   :  { %1868 = vadd.xlane.f32.xlu1 %v1867_v22  ;;  %v1591_v28 = vadd.f32 %v1527_v14, %v772_v18  ;;  %v1461_v29 = vmul.f32 %v3676_v24, %v4414_v5  ;;  %v704_v30 = vmul.f32 %v4409_v4, %v574_v25  ;;  %v1329_v31 = vpop.f32.mrb[45].mxu1  ;;  %v3611_v32 = vpop.f32.mrb[46].mxu0  ;;  %v1727_v34 = vmul.f32 %v4445_v33, %v1656_v21 }
 0x134   :  { %v777_v35 = vadd.f32 %v4419_v7, %v706_v23  ;;  %v1459_v36 = vmul.f32 %v4414_v5, %v1329_v31  ;;  %v3677_v37 = vpop.f32.mrb[46].mxu1  ;;  %v1861_v38 = vsel %vm1749_vm2, %v1722_v26, 0.0  ;;  %v707_v39 = vmul.f32 %v3611_v32, %v4409_v4  ;;  %v577_v40 = vpop.f32.mrb[47].mxu0  ;;  %v4753_v32 = vld [vmem:[%s5269_s8] ss:$0 sm:$0xff] }
 0x135   :  { %v1532_v41 = vadd.f32 %v4425_v10, %v1461_v29  ;;  %v775_v42 = vadd.f32 %v4419_v7, %v704_v30  ;;  %v1462_v43 = vmul.f32 %v3677_v37, %v4414_v5  ;;  %1859 = vadd.xlane.f32.xlu0 %v1858_v20  ;;  %v1332_v44 = vpop.f32.mrb[47].mxu1  ;;  %v1876_v45 = vsel %vm1749_vm2, %v1727_v34, 0.0  ;;  %v4739_v20 = vld [vmem:[%s5268_s7] ss:$0 sm:$0xff] }
 0x136   :  { %v1530_v46 = vadd.f32 %v4425_v10, %v1459_v36  ;;  %v778_v47 = vadd.f32 %v4419_v7, %v707_v39  ;;  %v1460_v48 = vmul.f32 %v4414_v5, %v1332_v44  ;;  %v1657_v49 = vmax.f32 %v1593_v17, 0.0 }
 0x137   :  { %v1596_v50 = vadd.f32 %v1532_v41, %v777_v35  ;;  %v1533_v51 = vadd.f32 %v4425_v10, %v1462_v43  ;;  %1862 = vadd.xlane.f32.xlu1 %v1861_v38  ;;  %v705_v52 = vmul.f32 %v4409_v4, %v577_v40  ;;  %v1725_v53 = vmul.f32 %v4445_v33, %v1654_v27  ;;  %v4715_v4 = vld [vmem:[%s5265_s4] ss:$0 sm:$0xff] }
 0x138   :  { %v1594_v54 = vadd.f32 %v1530_v46, %v775_v42  ;;  %v1531_v55 = vadd.f32 %v4425_v10, %v1460_v48  ;;  %v1728_v56 = vmul.f32 %v4445_v33, %v1657_v49  ;;  %v1655_v57 = vmax.f32 %v1591_v28, 0.0 }
 0x139   :  { %v1597_v58 = vadd.f32 %v1533_v51, %v778_v47  ;;  %1877 = vadd.xlane.f32.xlu0 %v1876_v45  ;;  %v776_v59 = vadd.f32 %v4419_v7, %v705_v52  ;;  %v3614_v5 = vpop.f32.mrb[48].mxu0  ;;  %v1870_v60 = vsel %vm1749_vm2, %v1725_v53, 0.0  ;;  %v1660_v61 = vmax.f32 %v1596_v50, 0.0 }
 0x13a   :  { %v1879_v62 = vsel %vm1749_vm2, %v1728_v56, 0.0  ;;  %v710_v10 = vmul.f32 %v4715_v4, %v3614_v5  ;;  %v3680_v63 = vpop.f32.mrb[48].mxu1  ;;  %v590_v0 = vpop.f32.mrb[49].mxu0  ;;  %v1726_v1 = vmul.f32 %v4445_v33, %v1655_v57  ;;  %v1658_v2 = vmax.f32 %v1594_v54, 0.0 }
 0x13b   :  { %1880 = vadd.xlane.f32.xlu1 %v1879_v62  ;;  %v1595_v7 = vadd.f32 %v1531_v55, %v776_v59  ;;  %v1465_v6 = vmul.f32 %v4722_v3, %v3680_v63  ;;  %v708_v8 = vmul.f32 %v4715_v4, %v590_v0  ;;  %v1345_v9 = vpop.f32.mrb[49].mxu1  ;;  %v3615_v11 = vpop.f32.mrb[50].mxu0  ;;  %v1731_v12 = vmul.f32 %v4445_v33, %v1660_v61 }
 0x13c   :  { %v781_v14 = vadd.f32 %v4730_v13, %v710_v10  ;;  %v1463_v15 = vmul.f32 %v4722_v3, %v1345_v9  ;;  %v3681_v16 = vpop.f32.mrb[50].mxu1  ;;  %v1873_v17 = vsel %vm1749_vm2, %v1726_v1, 0.0  ;;  %v711_v18 = vmul.f32 %v4715_v4, %v3615_v11  ;;  %v593_v19 = vpop.f32.mrb[51].mxu0 }
 0x13d   :  { %v1536_v33 = vadd.f32 %v4739_v20, %v1465_v6  ;;  %v779_v21 = vadd.f32 %v4730_v13, %v708_v8  ;;  %v1466_v22 = vmul.f32 %v4722_v3, %v3681_v16  ;;  %1871 = vadd.xlane.f32.xlu0 %v1870_v60  ;;  %v1348_v23 = vpop.f32.mrb[51].mxu1  ;;  %v1888_v24 = vsel %vm1749_vm2, %v1731_v12, 0.0 }
 0x13e   :  { %v1534_v25 = vadd.f32 %v4739_v20, %v1463_v15  ;;  %v782_v26 = vadd.f32 %v4730_v13, %v711_v18  ;;  %v1464_v27 = vmul.f32 %v4722_v3, %v1348_v23  ;;  %v1661_v28 = vmax.f32 %v1597_v58, 0.0 }
 0x13f   :  { %v1600_v29 = vadd.f32 %v1536_v33, %v781_v14  ;;  %v1537_v30 = vadd.f32 %v4739_v20, %v1466_v22  ;;  %1874 = vadd.xlane.f32.xlu1 %v1873_v17  ;;  %v709_v31 = vmul.f32 %v4715_v4, %v593_v19  ;;  %v1729_v34 = vmul.f32 %v4753_v32, %v1658_v2 }
 0x140   :  { %v1598_v35 = vadd.f32 %v1534_v25, %v779_v21  ;;  %v1535_v36 = vadd.f32 %v4739_v20, %v1464_v27  ;;  %v1732_v37 = vmul.f32 %v4753_v32, %v1661_v28  ;;  %v1659_v38 = vmax.f32 %v1595_v7, 0.0 }
 0x141   :  { %v1601_v39 = vadd.f32 %v1537_v30, %v782_v26  ;;  %1889 = vadd.xlane.f32.xlu0 %v1888_v24  ;;  %v780_v40 = vadd.f32 %v4730_v13, %v709_v31  ;;  %v3618_v41 = vpop.f32.mrb[52].mxu0  ;;  %v1882_v42 = vsel %vm1749_vm2, %v1729_v34, 0.0  ;;  %v1664_v43 = vmax.f32 %v1600_v29, 0.0 }
 0x142   :  { %v1891_v44 = vsel %vm1749_vm2, %v1732_v37, 0.0  ;;  %v714_v45 = vmul.f32 %v4715_v4, %v3618_v41  ;;  %v3684_v46 = vpop.f32.mrb[52].mxu1  ;;  %v606_v47 = vpop.f32.mrb[53].mxu0  ;;  %v1730_v48 = vmul.f32 %v4753_v32, %v1659_v38  ;;  %v1662_v49 = vmax.f32 %v1598_v35, 0.0 }
 0x143   :  { %1892 = vadd.xlane.f32.xlu1 %v1891_v44  ;;  %v1599_v50 = vadd.f32 %v1535_v36, %v780_v40  ;;  %v1469_v51 = vmul.f32 %v4722_v3, %v3684_v46  ;;  %v712_v52 = vmul.f32 %v4715_v4, %v606_v47  ;;  %v1361_v53 = vpop.f32.mrb[53].mxu1  ;;  %v3619_v54 = vpop.f32.mrb[54].mxu0  ;;  %v1735_v55 = vmul.f32 %v4753_v32, %v1664_v43 }
 0x144   :  { %v785_v56 = vadd.f32 %v4730_v13, %v714_v45  ;;  %v1467_v57 = vmul.f32 %v4722_v3, %v1361_v53  ;;  %v3685_v58 = vpop.f32.mrb[54].mxu1  ;;  %v1885_v59 = vsel %vm1749_vm2, %v1730_v48, 0.0  ;;  %v715_v5 = vmul.f32 %v4715_v4, %v3619_v54  ;;  %v609_v60 = vpop.f32.mrb[55].mxu0 }
 0x145   :  { %v1540_v61 = vadd.f32 %v4739_v20, %v1469_v51  ;;  %v783_v62 = vadd.f32 %v4730_v13, %v712_v52  ;;  %v1470_v10 = vmul.f32 %v4722_v3, %v3685_v58  ;;  %1883 = vadd.xlane.f32.xlu0 %v1882_v42  ;;  %v1364_v63 = vpop.f32.mrb[55].mxu1  ;;  %v1900_v0 = vsel %vm1749_vm2, %v1735_v55, 0.0 }
 0x146   :  { %v1538_v1 = vadd.f32 %v4739_v20, %v1467_v57  ;;  %v786_v2 = vadd.f32 %v4730_v13, %v715_v5  ;;  %v1468_v7 = vmul.f32 %v4722_v3, %v1364_v63  ;;  %v1665_v6 = vmax.f32 %v1601_v39, 0.0 }
 0x147   :  { %v1604_v8 = vadd.f32 %v1540_v61, %v785_v56  ;;  %v1541_v9 = vadd.f32 %v4739_v20, %v1470_v10  ;;  %1886 = vadd.xlane.f32.xlu1 %v1885_v59  ;;  %v713_v11 = vmul.f32 %v4715_v4, %v609_v60  ;;  %v1733_v12 = vmul.f32 %v4753_v32, %v1662_v49 }
 0x148   :  { %v1602_v14 = vadd.f32 %v1538_v1, %v783_v62  ;;  %v1539_v15 = vadd.f32 %v4739_v20, %v1468_v7  ;;  %v1736_v16 = vmul.f32 %v4753_v32, %v1665_v6  ;;  %v1663_v17 = vmax.f32 %v1599_v50, 0.0 }
 0x149   :  { %v1605_v18 = vadd.f32 %v1541_v9, %v786_v2  ;;  %1901 = vadd.xlane.f32.xlu0 %v1900_v0  ;;  %v784_v19 = vadd.f32 %v4730_v13, %v713_v11  ;;  %v3622_v33 = vpop.f32.mrb[56].mxu0  ;;  %v1894_v21 = vsel %vm1749_vm2, %v1733_v12, 0.0  ;;  %v1668_v22 = vmax.f32 %v1604_v8, 0.0 }
 0x14a   :  { %v1903_v23 = vsel %vm1749_vm2, %v1736_v16, 0.0  ;;  %v718_v24 = vmul.f32 %v4715_v4, %v3622_v33  ;;  %v3688_v25 = vpop.f32.mrb[56].mxu1  ;;  %v622_v26 = vpop.f32.mrb[57].mxu0  ;;  %v1734_v27 = vmul.f32 %v4753_v32, %v1663_v17  ;;  %v1666_v28 = vmax.f32 %v1602_v14, 0.0 }
 0x14b   :  { %1904 = vadd.xlane.f32.xlu1 %v1903_v23  ;;  %v1603_v29 = vadd.f32 %v1539_v15, %v784_v19  ;;  %v1473_v30 = vmul.f32 %v4722_v3, %v3688_v25  ;;  %v716_v31 = vmul.f32 %v4715_v4, %v622_v26  ;;  %v1377_v34 = vpop.f32.mrb[57].mxu1  ;;  %v3623_v35 = vpop.f32.mrb[58].mxu0  ;;  %v1739_v36 = vmul.f32 %v4753_v32, %v1668_v22 }
 0x14c   :  { %v789_v37 = vadd.f32 %v4730_v13, %v718_v24  ;;  %v1471_v38 = vmul.f32 %v4722_v3, %v1377_v34  ;;  %v3689_v39 = vpop.f32.mrb[58].mxu1  ;;  %v1897_v40 = vsel %vm1749_vm2, %v1734_v27, 0.0  ;;  %v719_v41 = vmul.f32 %v4715_v4, %v3623_v35  ;;  %v625_v42 = vpop.f32.mrb[59].mxu0 }
 0x14d   :  { %v1544_v43 = vadd.f32 %v4739_v20, %v1473_v30  ;;  %v787_v44 = vadd.f32 %v4730_v13, %v716_v31  ;;  %v1474_v45 = vmul.f32 %v4722_v3, %v3689_v39  ;;  %1895 = vadd.xlane.f32.xlu0 %v1894_v21  ;;  %v1380_v46 = vpop.f32.mrb[59].mxu1  ;;  %v1912_v47 = vsel %vm1749_vm2, %v1739_v36, 0.0 }
 0x14e   :  { %v1542_v48 = vadd.f32 %v4739_v20, %v1471_v38  ;;  %v790_v49 = vadd.f32 %v4730_v13, %v719_v41  ;;  %v1472_v50 = vmul.f32 %v4722_v3, %v1380_v46  ;;  %v1669_v51 = vmax.f32 %v1605_v18, 0.0 }
 0x14f   :  { %v1608_v52 = vadd.f32 %v1544_v43, %v789_v37  ;;  %v1545_v53 = vadd.f32 %v4739_v20, %v1474_v45  ;;  %1898 = vadd.xlane.f32.xlu1 %v1897_v40  ;;  %v717_v54 = vmul.f32 %v4715_v4, %v625_v42  ;;  %v1737_v55 = vmul.f32 %v4753_v32, %v1666_v28 }
 0x150   :  { %v1606_v56 = vadd.f32 %v1542_v48, %v787_v44  ;;  %v1543_v57 = vadd.f32 %v4739_v20, %v1472_v50  ;;  %v1740_v58 = vmul.f32 %v4753_v32, %v1669_v51  ;;  %v1667_v59 = vmax.f32 %v1603_v29, 0.0 }
 0x151   :  { %v1609_v5 = vadd.f32 %v1545_v53, %v790_v49  ;;  %1913 = vadd.xlane.f32.xlu0 %v1912_v47  ;;  %v788_v60 = vadd.f32 %v4730_v13, %v717_v54  ;;  %v3626_v61 = vpop.f32.mrb[60].mxu0  ;;  %v1906_v62 = vsel %vm1749_vm2, %v1737_v55, 0.0  ;;  %v1672_v10 = vmax.f32 %v1608_v52, 0.0 }
 0x152   :  { %v1915_v63 = vsel %vm1749_vm2, %v1740_v58, 0.0  ;;  %v722_v0 = vmul.f32 %v4715_v4, %v3626_v61  ;;  %v3692_v1 = vpop.f32.mrb[60].mxu1  ;;  %v638_v2 = vpop.f32.mrb[61].mxu0  ;;  %v1738_v7 = vmul.f32 %v4753_v32, %v1667_v59  ;;  %v1670_v6 = vmax.f32 %v1606_v56, 0.0 }
 0x153   :  { %1916 = vadd.xlane.f32.xlu1 %v1915_v63  ;;  %v1607_v8 = vadd.f32 %v1543_v57, %v788_v60  ;;  %v1477_v9 = vmul.f32 %v4722_v3, %v3692_v1  ;;  %v720_v11 = vmul.f32 %v4715_v4, %v638_v2  ;;  %v1393_v12 = vpop.f32.mrb[61].mxu1  ;;  %v3627_v14 = vpop.f32.mrb[62].mxu0  ;;  %v1743_v15 = vmul.f32 %v4753_v32, %v1672_v10  ;;  %v4843_v57 = vld [vmem:[#allocation2] ss:$0 sm:$0xff] }
 0x154   :  { %v793_v16 = vadd.f32 %v4730_v13, %v722_v0  ;;  %v1475_v17 = vmul.f32 %v4722_v3, %v1393_v12  ;;  %v3693_v18 = vpop.f32.mrb[62].mxu1  ;;  %v1909_v19 = vsel %vm1749_vm2, %v1738_v7, 0.0  ;;  %v723_v33 = vmul.f32 %v4715_v4, %v3627_v14  ;;  %v641_v21 = vpop.f32.mrb[63].mxu0 }
 0x155   :  { %v1548_v22 = vadd.f32 %v4739_v20, %v1477_v9  ;;  %v791_v23 = vadd.f32 %v4730_v13, %v720_v11  ;;  %v1478_v24 = vmul.f32 %v4722_v3, %v3693_v18  ;;  %1907 = vadd.xlane.f32.xlu0 %v1906_v62  ;;  %v1396_v25 = vpop.f32.mrb[63].mxu1  ;;  %v1924_v26 = vsel %vm1749_vm2, %v1743_v15, 0.0 }
 0x156   :  { %v1546_v27 = vadd.f32 %v4739_v20, %v1475_v17  ;;  %v794_v28 = vadd.f32 %v4730_v13, %v723_v33  ;;  %v1476_v29 = vmul.f32 %v4722_v3, %v1396_v25  ;;  %v1673_v30 = vmax.f32 %v1609_v5, 0.0 }
 0x157   :  { %v1612_v31 = vadd.f32 %v1548_v22, %v793_v16  ;;  %v1549_v34 = vadd.f32 %v4739_v20, %v1478_v24  ;;  %1910 = vadd.xlane.f32.xlu1 %v1909_v19  ;;  %v721_v35 = vmul.f32 %v4715_v4, %v641_v21  ;;  %v1741_v36 = vmul.f32 %v4753_v32, %v1670_v6 }
 0x158   :  { %v1610_v37 = vadd.f32 %v1546_v27, %v791_v23  ;;  %v1547_v38 = vadd.f32 %v4739_v20, %v1476_v29  ;;  %v1744_v39 = vmul.f32 %v4753_v32, %v1673_v30  ;;  %v1671_v40 = vmax.f32 %v1607_v8, 0.0 }
 0x159   :  { %v1613_v41 = vadd.f32 %v1549_v34, %v794_v28  ;;  %1925 = vadd.xlane.f32.xlu0 %v1924_v26  ;;  %v792_v42 = vadd.f32 %v4730_v13, %v721_v35  ;;  %v1918_v3 = vsel %vm1749_vm2, %v1741_v36, 0.0  ;;  %v1676_v43 = vmax.f32 %v1612_v31, 0.0 }
 0x15a   :  { %v1927_v44 = vsel %vm1749_vm2, %v1744_v39, 0.0  ;;  %v1742_v45 = vmul.f32 %v4753_v32, %v1671_v40  ;;  %v1674_v4 = vmax.f32 %v1610_v37, 0.0  ;;  %v4088_v48 = vmov 0  }
 0x15b   :  { %1928 = vadd.xlane.f32.xlu1 %v1927_v44  ;;  %v1611_v46 = vadd.f32 %v1547_v38, %v792_v42  ;;  %v1747_v47 = vmul.f32 %v4753_v32, %v1676_v43  ;;  %v1677_v20 = vmax.f32 %v1613_v41, 0.0  ;;  %3698 = vset.pattern.permute.xlu0 %v4088_v48 }
 0x15c   :  { %v1921_v49 = vsel %vm1749_vm2, %v1742_v45, 0.0  ;;  %3697 = vset.pattern.permute.xlu1 %v4088_v48  ;;  %v1745_v52 = vmul.f32 %v4753_v32, %v1674_v4 }
 0x15d   :  { %1919 = vadd.xlane.f32.xlu0 %v1918_v3  ;;  %v1748_v13 = vmul.f32 %v4753_v32, %v1677_v20  ;;  %v1675_v50 = vmax.f32 %v1611_v46, 0.0  ;;  %v1936_v51 = vsel %vm1749_vm2, %v1747_v47, 0.0 }
 0x15e   :  { %v1930_v55 = vsel %vm1749_vm2, %v1745_v52, 0.0 }
 0x15f   :  { %1922 = vadd.xlane.f32.xlu1 %v1921_v49  ;;  %v1939_v53 = vsel %vm1749_vm2, %v1748_v13, 0.0  ;;  %v1746_v54 = vmul.f32 %v4753_v32, %v1675_v50 }
 0x161   :  { %1937 = vadd.xlane.f32.xlu0 %v1936_v51  ;;  %v1933_v56 = vsel %vm1749_vm2, %v1746_v54, 0.0 }
 0x163   :  { %1940 = vadd.xlane.f32.xlu1 %v1939_v53 }
 0x165   :  { %1931 = vadd.xlane.f32.xlu0 %v1930_v55 }
 0x167   :  { %1934 = vadd.xlane.f32.xlu1 %v1933_v56 }
 0x173   :  { %v1758_v58 = vpop.xlane.xlu1 %1757 }
 0x174   :  { %v1951_v59 = vadd.f32 %v4843_v57, %v1758_v58 }
 0x175   :  { %v1752_v5 = vpop.xlane.xlu0 %1751 }
 0x176   :  { %v3306_v60 = vmul.f32 -1.442695, %v1951_v59  ;;  %v1949_v61 = vadd.f32 %v4843_v57, %v1752_v5 }
 0x177   :  { %v1761_v62 = vpop.xlane.xlu1 %1760 }
 0x178   :  { %3795 = vpow2.f32 %v3306_v60  ;;  %v3304_v32 = vmul.f32 -1.442695, %v1949_v61  ;;  %v1952_v10 = vadd.f32 %v4843_v57, %v1761_v62 }
 0x17a   :  { %3797 = vpow2.f32 %v3304_v32  ;;  %v3307_v63 = vmul.f32 -1.442695, %v1952_v10  ;;  %v1755_v0 = vpop.xlane.xlu0 %1754 }
 0x17b   :  { %v1950_v1 = vadd.f32 %v4843_v57, %v1755_v0 }
 0x17c   :  { %3799 = vpow2.f32 %v3307_v63 }
 0x17d   :  { %v3305_v2 = vmul.f32 -1.442695, %v1950_v1 }
 0x17e   :  { %v1770_v7 = vpop.xlane.xlu0 %1769  ;;  %v1773_v6 = vpop.xlane.xlu1 %1772 }
 0x17f   :  { %3801 = vpow2.f32 %v3305_v2  ;;  %v1955_v8 = vadd.f32 %v4843_v57, %v1770_v7  ;;  %v1956_v9 = vadd.f32 %v4843_v57, %v1773_v6 }
 0x181   :  { %v3310_v11 = vmul.f32 -1.442695, %v1955_v8  ;;  %v3311_v12 = vmul.f32 -1.442695, %v1956_v9 }
 0x182   :  { %v3796_v14 = vpop.eup %3795  ;;  %v1764_v15 = vpop.xlane.xlu0 %1763 }
 0x183   :  { %v1767_v16 = vpop.xlane.xlu1 %1766  ;;  %v2207_v17 = vadd.f32 1.0, %v3796_v14  ;;  %3803 = vpow2.f32 %v3310_v11  ;;  %v1953_v18 = vadd.f32 %v4843_v57, %v1764_v15 }
 0x184   :  { %v1954_v19 = vadd.f32 %v4843_v57, %v1767_v16  ;;  %v3798_v33 = vpop.eup %3797  ;;  %3805 = vpow2.f32 %v3311_v12 }
 0x185   :  { %3807 = vrcp.f32 %v2207_v17  ;;  %v2205_v21 = vadd.f32 1.0, %v3798_v33  ;;  %v3308_v22 = vmul.f32 -1.442695, %v1953_v18 }
 0x186   :  { %v3800_v23 = vpop.eup %3799  ;;  %v3309_v24 = vmul.f32 -1.442695, %v1954_v19  ;;  %v1782_v25 = vpop.xlane.xlu0 %1781 }
 0x187   :  { %3809 = vrcp.f32 %v2205_v21  ;;  %v2208_v26 = vadd.f32 1.0, %v3800_v23  ;;  %v1959_v27 = vadd.f32 %v4843_v57, %v1782_v25 }
 0x188   :  { %3811 = vpow2.f32 %v3308_v22  ;;  %v1785_v28 = vpop.xlane.xlu1 %1784 }
 0x189   :  { %v3802_v29 = vpop.eup %3801  ;;  %3813 = vrcp.f32 %v2208_v26  ;;  %v3314_v30 = vmul.f32 -1.442695, %v1959_v27  ;;  %v1960_v31 = vadd.f32 %v4843_v57, %v1785_v28 }
 0x18a   :  { %v2206_v34 = vadd.f32 1.0, %v3802_v29  ;;  %3815 = vpow2.f32 %v3309_v24  ;;  %v1776_v35 = vpop.xlane.xlu0 %1775 }
 0x18b   :  { %3817 = vpow2.f32 %v3314_v30  ;;  %v3315_v36 = vmul.f32 -1.442695, %v1960_v31  ;;  %v1957_v37 = vadd.f32 %v4843_v57, %v1776_v35 }
 0x18c   :  { %3819 = vrcp.f32 %v2206_v34  ;;  %v1779_v38 = vpop.xlane.xlu1 %1778 }
 0x18d   :  { %v3804_v39 = vpop.eup %3803  ;;  %3821 = vpow2.f32 %v3315_v36  ;;  %v3312_v40 = vmul.f32 -1.442695, %v1957_v37  ;;  %v1958_v41 = vadd.f32 %v4843_v57, %v1779_v38 }
 0x18e   :  { %v3806_v42 = vpop.eup %3805  ;;  %v2211_v3 = vadd.f32 1.0, %v3804_v39  ;;  %v1794_v43 = vpop.xlane.xlu0 %1793 }
 0x18f   :  { %v3808_v44 = vpop.eup %3807  ;;  %3823 = vpow2.f32 %v3312_v40  ;;  %v3313_v45 = vmul.f32 -1.442695, %v1958_v41  ;;  %v1963_v4 = vadd.f32 %v4843_v57, %v1794_v43  ;;  %v2212_v13 = vadd.f32 1.0, %v3806_v42 }
 0x190   :  { %3825 = vrcp.f32 %v2211_v3  ;;  %v1797_v46 = vpop.xlane.xlu1 %1796  ;;  %2473 = vperm.xlu1 %3697, %v3808_v44  }
 0x191   :  { %v3810_v47 = vpop.eup %3809  ;;  %v3318_v20 = vmul.f32 -1.442695, %v1963_v4  ;;  %v1964_v48 = vadd.f32 %v4843_v57, %v1797_v46  ;;  %3827 = vpow2.f32 %v3313_v45 }
 0x192   :  { %v3812_v49 = vpop.eup %3811  ;;  %v1788_v50 = vpop.xlane.xlu0 %1787  ;;  %2463 = vperm.xlu0 %3698, %v3810_v47  }
 0x193   :  { %v3814_v51 = vpop.eup %3813  ;;  %v2209_v52 = vadd.f32 1.0, %v3812_v49  ;;  %3829 = vpow2.f32 %v3318_v20  ;;  %v3319_v53 = vmul.f32 -1.442695, %v1964_v48  ;;  %v1961_v54 = vadd.f32 %v4843_v57, %v1788_v50 }
 0x194   :  { %v3816_v55 = vpop.eup %3815  ;;  %v1791_v56 = vpop.xlane.xlu1 %1790  ;;  %2478 = vperm.xlu1 %3697, %v3814_v51  }
 0x195   :  { %v3818_v58 = vpop.eup %3817  ;;  %3831 = vrcp.f32 %v2209_v52  ;;  %v2210_v59 = vadd.f32 1.0, %v3816_v55  ;;  %v3316_v5 = vmul.f32 -1.442695, %v1961_v54  ;;  %v1962_v60 = vadd.f32 %v4843_v57, %v1791_v56 }
 0x196   :  { %v3820_v61 = vpop.eup %3819  ;;  %3833 = vpow2.f32 %v3319_v53  ;;  %v1806_v62 = vpop.xlane.xlu0 %1805  ;;  %v2215_v0 = vadd.f32 1.0, %v3818_v58 }
 0x197   :  { %v3822_v32 = vpop.eup %3821  ;;  %3835 = vrcp.f32 %v2212_v13  ;;  %v3317_v10 = vmul.f32 -1.442695, %v1962_v60  ;;  %v1967_v63 = vadd.f32 %v4843_v57, %v1806_v62 }
 0x198   :  { %3837 = vrcp.f32 %v2210_v59  ;;  %v2216_v1 = vadd.f32 1.0, %v3822_v32  ;;  %v1809_v2 = vpop.xlane.xlu1 %1808  ;;  %2468 = vperm.xlu1 %3697, %v3820_v61  }
 0x199   :  { %v3824_v7 = vpop.eup %3823  ;;  %3839 = vpow2.f32 %v3316_v5  ;;  %v3322_v6 = vmul.f32 -1.442695, %v1967_v63  ;;  %v1968_v8 = vadd.f32 %v4843_v57, %v1809_v2 }
 0x19a   :  { %v3826_v9 = vpop.eup %3825  ;;  %3841 = vrcp.f32 %v2216_v1  ;;  %v1800_v11 = vpop.xlane.xlu0 %1799  ;;  %v2213_v16 = vadd.f32 1.0, %v3824_v7 }
 0x19b   :  { %3843 = vpow2.f32 %v3317_v10  ;;  %v3323_v12 = vmul.f32 -1.442695, %v1968_v8  ;;  %v1965_v14 = vadd.f32 %v4843_v57, %v1800_v11  ;;  %v3828_v15 = vpop.eup %3827 }
 0x19c   :  { %3845 = vrcp.f32 %v2215_v0  ;;  %v1803_v17 = vpop.xlane.xlu1 %1802  ;;  %2493 = vperm.xlu1 %3697, %v3826_v9   ;;  %v2214_v19 = vadd.f32 1.0, %v3828_v15 }
 0x19d   :  { %v3830_v18 = vpop.eup %3829  ;;  %3847 = vpow2.f32 %v3322_v6  ;;  %v3320_v33 = vmul.f32 -1.442695, %v1965_v14  ;;  %v1966_v21 = vadd.f32 %v4843_v57, %v1803_v17 }
 0x19e   :  { %3849 = vpow2.f32 %v3323_v12  ;;  %v1818_v22 = vpop.xlane.xlu0 %1817  ;;  %v2219_v27 = vadd.f32 1.0, %v3830_v18 }
 0x19f   :  { %v3832_v23 = vpop.eup %3831  ;;  %3851 = vrcp.f32 %v2214_v19  ;;  %v3321_v24 = vmul.f32 -1.442695, %v1966_v21  ;;  %v1971_v25 = vadd.f32 %v4843_v57, %v1818_v22 }
 0x1a0   :  { %v3834_v26 = vpop.eup %3833  ;;  %3853 = vrcp.f32 %v2213_v16  ;;  %v1821_v28 = vpop.xlane.xlu1 %1820  ;;  %2483 = vperm.xlu1 %3697, %v3832_v23  }
 0x1a1   :  { %v3836_v29 = vpop.eup %3835  ;;  %v2220_v30 = vadd.f32 1.0, %v3834_v26  ;;  %3855 = vpow2.f32 %v3320_v33  ;;  %v1972_v31 = vadd.f32 %v4843_v57, %v1821_v28  ;;  %v3326_v35 = vmul.f32 -1.442695, %v1971_v25 }
 0x1a2   :  { %v3838_v34 = vpop.eup %3837  ;;  %3857 = vpow2.f32 %v3321_v24  ;;  %v1812_v36 = vpop.xlane.xlu0 %1811 }
 0x1a3   :  { %v3840_v37 = vpop.eup %3839  ;;  %3859 = vrcp.f32 %v2220_v30  ;;  %v3327_v38 = vmul.f32 -1.442695, %v1972_v31  ;;  %v1969_v39 = vadd.f32 %v4843_v57, %v1812_v36 }
 0x1a4   :  { %v3842_v40 = vpop.eup %3841  ;;  %3861 = vrcp.f32 %v2219_v27  ;;  %v2217_v41 = vadd.f32 1.0, %v3840_v37  ;;  %v1815_v42 = vpop.xlane.xlu1 %1814  ;;  %2498 = vperm.xlu1 %3697, %v3836_v29  }
 0x1a5   :  { %v3844_v3 = vpop.eup %3843  ;;  %3863 = vpow2.f32 %v3327_v38  ;;  %v1970_v43 = vadd.f32 %v4843_v57, %v1815_v42  ;;  %2518 = vperm.xlu0 %3698, %v3842_v40   ;;  %v3324_v4 = vmul.f32 -1.442695, %v1969_v39 }
 0x1a6   :  { %v3846_v44 = vpop.eup %3845  ;;  %v2218_v45 = vadd.f32 1.0, %v3844_v3  ;;  %3865 = vpow2.f32 %v3326_v35  ;;  %v1830_v46 = vpop.xlane.xlu0 %1829 }
 0x1a7   :  { %v3848_v47 = vpop.eup %3847  ;;  %3867 = vrcp.f32 %v2217_v41  ;;  %v3325_v20 = vmul.f32 -1.442695, %v1970_v43  ;;  %v1975_v48 = vadd.f32 %v4843_v57, %v1830_v46 }
 0x1a8   :  { %v3850_v49 = vpop.eup %3849  ;;  %3869 = vrcp.f32 %v2218_v45  ;;  %v1833_v13 = vpop.xlane.xlu1 %1832  ;;  %2488 = vperm.xlu1 %3697, %v3838_v34   ;;  %v2223_v5 = vadd.f32 1.0, %v3848_v47 }
 0x1a9   :  { %v3852_v50 = vpop.eup %3851  ;;  %v2224_v51 = vadd.f32 1.0, %v3850_v49  ;;  %3871 = vpow2.f32 %v3325_v20  ;;  %v3330_v52 = vmul.f32 -1.442695, %v1975_v48  ;;  %v1976_v53 = vadd.f32 %v4843_v57, %v1833_v13 }
 0x1aa   :  { %v3854_v54 = vpop.eup %3853  ;;  %3873 = vpow2.f32 %v3324_v4  ;;  %2508 = vperm.xlu0 %3698, %v3852_v50   ;;  %v1824_v55 = vpop.xlane.xlu0 %1823 }
 0x1ab   :  { %v3856_v56 = vpop.eup %3855  ;;  %3875 = vrcp.f32 %v2224_v51  ;;  %v3331_v58 = vmul.f32 -1.442695, %v1976_v53  ;;  %v1973_v60 = vadd.f32 %v4843_v57, %v1824_v55 }
 0x1ac   :  { %v3858_v59 = vpop.eup %3857  ;;  %3877 = vpow2.f32 %v3330_v52  ;;  %v1827_v61 = vpop.xlane.xlu1 %1826  ;;  %2513 = vperm.xlu1 %3697, %v3846_v44   ;;  %v2221_v32 = vadd.f32 1.0, %v3856_v56 }
 0x1ad   :  { %v3860_v62 = vpop.eup %3859  ;;  %v2222_v10 = vadd.f32 1.0, %v3858_v59  ;;  %3879 = vpow2.f32 %v3331_v58  ;;  %v1974_v63 = vadd.f32 %v4843_v57, %v1827_v61  ;;  %v3328_v11 = vmul.f32 -1.442695, %v1973_v60 }
 0x1ae   :  { %v3862_v0 = vpop.eup %3861  ;;  %2538 = vperm.xlu0 %3698, %v3860_v62   ;;  %v1842_v1 = vpop.xlane.xlu0 %1841 }
 0x1af   :  { %v3864_v2 = vpop.eup %3863  ;;  %3881 = vrcp.f32 %v2222_v10  ;;  %v3329_v7 = vmul.f32 -1.442695, %v1974_v63  ;;  %v1979_v6 = vadd.f32 %v4843_v57, %v1842_v1 }
 0x1b0   :  { %v3866_v8 = vpop.eup %3865  ;;  %3883 = vrcp.f32 %v2223_v5  ;;  %v2228_v9 = vadd.f32 1.0, %v3864_v2  ;;  %v1845_v12 = vpop.xlane.xlu1 %1844  ;;  %2503 = vperm.xlu1 %3697, %v3854_v54  }
 0x1b1   :  { %v3868_v14 = vpop.eup %3867  ;;  %3885 = vrcp.f32 %v2221_v32  ;;  %v3334_v15 = vmul.f32 -1.442695, %v1979_v6  ;;  %v1980_v16 = vadd.f32 %v4843_v57, %v1845_v12  ;;  %v2227_v23 = vadd.f32 1.0, %v3866_v8 }
 0x1b2   :  { %v3870_v17 = vpop.eup %3869  ;;  %3887 = vrcp.f32 %v2228_v9  ;;  %v1836_v18 = vpop.xlane.xlu0 %1835 }
 0x1b3   :  { %v3872_v19 = vpop.eup %3871  ;;  %3889 = vpow2.f32 %v3329_v7  ;;  %v3335_v33 = vmul.f32 -1.442695, %v1980_v16  ;;  %2528 = vperm.xlu0 %3698, %v3870_v17   ;;  %v1977_v21 = vadd.f32 %v4843_v57, %v1836_v18 }
 0x1b4   :  { %v3874_v22 = vpop.eup %3873  ;;  %v2226_v24 = vadd.f32 1.0, %v3872_v19  ;;  %3891 = vpow2.f32 %v3328_v11  ;;  %v1839_v25 = vpop.xlane.xlu1 %1838  ;;  %2533 = vperm.xlu1 %3697, %v3862_v0  }
 0x1b5   :  { %v3876_v26 = vpop.eup %3875  ;;  %3893 = vpow2.f32 %v3334_v15  ;;  %v3332_v27 = vmul.f32 -1.442695, %v1977_v21  ;;  %v1978_v28 = vadd.f32 %v4843_v57, %v1839_v25  ;;  %v2225_v36 = vadd.f32 1.0, %v3874_v22 }
 0x1b6   :  { %v3878_v29 = vpop.eup %3877  ;;  %3895 = vrcp.f32 %v2226_v24  ;;  %v1854_v30 = vpop.xlane.xlu0 %1853 }
 0x1b7   :  { %v3880_v31 = vpop.eup %3879  ;;  %3897 = vpow2.f32 %v3335_v33  ;;  %v3333_v34 = vmul.f32 -1.442695, %v1978_v28  ;;  %2558 = vperm.xlu0 %3698, %v3876_v26   ;;  %v1983_v35 = vadd.f32 %v4843_v57, %v1854_v30  ;;  %v2231_v40 = vadd.f32 1.0, %v3878_v29 }
 0x1b8   :  { %3899 = vrcp.f32 %v2227_v23  ;;  %v2232_v37 = vadd.f32 1.0, %v3880_v31  ;;  %v1857_v38 = vpop.xlane.xlu1 %1856  ;;  %2523 = vperm.xlu1 %3697, %v3868_v14  }
 0x1b9   :  { %v3882_v39 = vpop.eup %3881  ;;  %3901 = vpow2.f32 %v3332_v27  ;;  %v1984_v41 = vadd.f32 %v4843_v57, %v1857_v38  ;;  %v3338_v44 = vmul.f32 -1.442695, %v1983_v35 }
 0x1ba   :  { %v3884_v42 = vpop.eup %3883  ;;  %3903 = vrcp.f32 %v2232_v37  ;;  %v1848_v3 = vpop.xlane.xlu0 %1847 }
 0x1bb   :  { %v3886_v43 = vpop.eup %3885  ;;  %3905 = vpow2.f32 %v3333_v34  ;;  %v3339_v45 = vmul.f32 -1.442695, %v1984_v41  ;;  %2548 = vperm.xlu0 %3698, %v3882_v39   ;;  %v1981_v4 = vadd.f32 %v4843_v57, %v1848_v3 }
 0x1bc   :  { %v3888_v46 = vpop.eup %3887  ;;  %3907 = vrcp.f32 %v2225_v36  ;;  %v1851_v47 = vpop.xlane.xlu1 %1850  ;;  %2553 = vperm.xlu1 %3697, %v3884_v42  }
 0x1bd   :  { %v3890_v20 = vpop.eup %3889  ;;  %3909 = vrcp.f32 %v2231_v40  ;;  %v1982_v48 = vadd.f32 %v4843_v57, %v1851_v47  ;;  %v3336_v50 = vmul.f32 -1.442695, %v1981_v4 }
 0x1be   :  { %v3892_v49 = vpop.eup %3891  ;;  %v2230_v13 = vadd.f32 1.0, %v3890_v20  ;;  %3911 = vpow2.f32 %v3339_v45  ;;  %v1866_v51 = vpop.xlane.xlu0 %1865 }
 0x1bf   :  { %v3894_v52 = vpop.eup %3893  ;;  %3913 = vpow2.f32 %v3338_v44  ;;  %v3337_v53 = vmul.f32 -1.442695, %v1982_v48  ;;  %2578 = vperm.xlu0 %3698, %v3888_v46   ;;  %v1987_v54 = vadd.f32 %v4843_v57, %v1866_v51  ;;  %v2229_v59 = vadd.f32 1.0, %v3892_v49 }
 0x1c0   :  { %v3896_v55 = vpop.eup %3895  ;;  %3915 = vrcp.f32 %v2230_v13  ;;  %v1869_v56 = vpop.xlane.xlu1 %1868  ;;  %2543 = vperm.xlu1 %3697, %v3886_v43   ;;  %v2235_v63 = vadd.f32 1.0, %v3894_v52 }
 0x1c1   :  { %v3898_v58 = vpop.eup %3897  ;;  %3917 = vpow2.f32 %v3337_v53  ;;  %v3342_v5 = vmul.f32 -1.442695, %v1987_v54  ;;  %v1988_v60 = vadd.f32 %v4843_v57, %v1869_v56 }
 0x1c2   :  { %v3900_v61 = vpop.eup %3899  ;;  %v2236_v62 = vadd.f32 1.0, %v3898_v58  ;;  %3919 = vpow2.f32 %v3336_v50  ;;  %v1860_v32 = vpop.xlane.xlu0 %1859 }
 0x1c3   :  { %v3902_v10 = vpop.eup %3901  ;;  %3921 = vpow2.f32 %v3342_v5  ;;  %v3343_v0 = vmul.f32 -1.442695, %v1988_v60  ;;  %2568 = vperm.xlu0 %3698, %v3896_v55   ;;  %v1985_v1 = vadd.f32 %v4843_v57, %v1860_v32 }
 0x1c4   :  { %v3904_v2 = vpop.eup %3903  ;;  %3923 = vrcp.f32 %v2236_v62  ;;  %v1863_v7 = vpop.xlane.xlu1 %1862  ;;  %2573 = vperm.xlu1 %3697, %v3900_v61   ;;  %v2233_v19 = vadd.f32 1.0, %v3902_v10 }
 0x1c5   :  { %v3906_v6 = vpop.eup %3905  ;;  %3925 = vrcp.f32 %v2229_v59  ;;  %v3340_v8 = vmul.f32 -1.442695, %v1985_v1  ;;  %v1986_v9 = vadd.f32 %v4843_v57, %v1863_v7 }
 0x1c6   :  { %v3908_v11 = vpop.eup %3907  ;;  %v2234_v12 = vadd.f32 1.0, %v3906_v6  ;;  %3927 = vpow2.f32 %v3343_v0  ;;  %v1878_v14 = vpop.xlane.xlu0 %1877 }
 0x1c7   :  { %v3910_v15 = vpop.eup %3909  ;;  %3929 = vrcp.f32 %v2235_v63  ;;  %v3341_v16 = vmul.f32 -1.442695, %v1986_v9  ;;  %2598 = vperm.xlu0 %3698, %v3904_v2   ;;  %v1991_v17 = vadd.f32 %v4843_v57, %v1878_v14 }
 0x1c8   :  { %v3912_v18 = vpop.eup %3911  ;;  %3931 = vrcp.f32 %v2234_v12  ;;  %v1881_v33 = vpop.xlane.xlu1 %1880  ;;  %2563 = vperm.xlu1 %3697, %v3908_v11  }
 0x1c9   :  { %v3914_v21 = vpop.eup %3913  ;;  %v2240_v22 = vadd.f32 1.0, %v3912_v18  ;;  %3933 = vpow2.f32 %v3340_v8  ;;  %v3346_v23 = vmul.f32 -1.442695, %v1991_v17  ;;  %v1992_v24 = vadd.f32 %v4843_v57, %v1881_v33 }
 0x1ca   :  { %v3916_v25 = vpop.eup %3915  ;;  %3935 = vpow2.f32 %v3341_v16  ;;  %v1872_v26 = vpop.xlane.xlu0 %1871  ;;  %v2239_v31 = vadd.f32 1.0, %v3914_v21 }
 0x1cb   :  { %v3918_v27 = vpop.eup %3917  ;;  %3937 = vrcp.f32 %v2240_v22  ;;  %v3347_v28 = vmul.f32 -1.442695, %v1992_v24  ;;  %2588 = vperm.xlu0 %3698, %v3916_v25   ;;  %v1989_v29 = vadd.f32 %v4843_v57, %v1872_v26 }
 0x1cc   :  { %v3920_v30 = vpop.eup %3919  ;;  %3939 = vrcp.f32 %v2233_v19  ;;  %v2238_v34 = vadd.f32 1.0, %v3918_v27  ;;  %v1875_v35 = vpop.xlane.xlu1 %1874  ;;  %2593 = vperm.xlu1 %3697, %v3910_v15  }
 0x1cd   :  { %v3922_v36 = vpop.eup %3921  ;;  %3941 = vpow2.f32 %v3346_v23  ;;  %v3344_v37 = vmul.f32 -1.442695, %v1989_v29  ;;  %v1990_v38 = vadd.f32 %v4843_v57, %v1875_v35  ;;  %v2237_v43 = vadd.f32 1.0, %v3920_v30 }
 0x1ce   :  { %v3924_v39 = vpop.eup %3923  ;;  %3943 = vrcp.f32 %v2238_v34  ;;  %v1890_v40 = vpop.xlane.xlu0 %1889  ;;  %v2243_v46 = vadd.f32 1.0, %v3922_v36 }
 0x1cf   :  { %v3926_v41 = vpop.eup %3925  ;;  %3945 = vpow2.f32 %v3347_v28  ;;  %v3345_v42 = vmul.f32 -1.442695, %v1990_v38  ;;  %2618 = vperm.xlu0 %3698, %v3924_v39   ;;  %v1995_v44 = vadd.f32 %v4843_v57, %v1890_v40 }
 0x1d0   :  { %v3928_v3 = vpop.eup %3927  ;;  %3947 = vrcp.f32 %v2239_v31  ;;  %v1893_v45 = vpop.xlane.xlu1 %1892  ;;  %2583 = vperm.xlu1 %3697, %v3926_v41  }
 0x1d1   :  { %v3930_v4 = vpop.eup %3929  ;;  %v2244_v47 = vadd.f32 1.0, %v3928_v3  ;;  %3949 = vpow2.f32 %v3344_v37  ;;  %v1996_v20 = vadd.f32 %v4843_v57, %v1893_v45  ;;  %v3350_v53 = vmul.f32 -1.442695, %v1995_v44 }
 0x1d2   :  { %v3932_v48 = vpop.eup %3931  ;;  %3951 = vpow2.f32 %v3345_v42  ;;  %v1884_v49 = vpop.xlane.xlu0 %1883 }
 0x1d3   :  { %v3934_v13 = vpop.eup %3933  ;;  %3953 = vrcp.f32 %v2244_v47  ;;  %v3351_v50 = vmul.f32 -1.442695, %v1996_v20  ;;  %2608 = vperm.xlu0 %3698, %v3932_v48   ;;  %v1993_v51 = vadd.f32 %v4843_v57, %v1884_v49 }
 0x1d4   :  { %v3936_v52 = vpop.eup %3935  ;;  %3955 = vrcp.f32 %v2237_v43  ;;  %v1887_v54 = vpop.xlane.xlu1 %1886  ;;  %2613 = vperm.xlu1 %3697, %v3930_v4   ;;  %v2241_v5 = vadd.f32 1.0, %v3934_v13 }
 0x1d5   :  { %v3938_v55 = vpop.eup %3937  ;;  %3957 = vrcp.f32 %v2243_v46  ;;  %v2242_v56 = vadd.f32 1.0, %v3936_v52  ;;  %v1994_v58 = vadd.f32 %v4843_v57, %v1887_v54  ;;  %v3348_v62 = vmul.f32 -1.442695, %v1993_v51 }
 0x1d6   :  { %v3940_v59 = vpop.eup %3939  ;;  %3959 = vpow2.f32 %v3351_v50  ;;  %v1902_v60 = vpop.xlane.xlu0 %1901 }
 0x1d7   :  { %v3942_v61 = vpop.eup %3941  ;;  %3961 = vrcp.f32 %v2242_v56  ;;  %v3349_v32 = vmul.f32 -1.442695, %v1994_v58  ;;  %2638 = vperm.xlu0 %3698, %v3938_v55   ;;  %v1999_v63 = vadd.f32 %v4843_v57, %v1902_v60 }
 0x1d8   :  { %v3944_v10 = vpop.eup %3943  ;;  %3963 = vpow2.f32 %v3350_v53  ;;  %v1905_v0 = vpop.xlane.xlu1 %1904  ;;  %2603 = vperm.xlu1 %3697, %v3940_v59   ;;  %v2247_v6 = vadd.f32 1.0, %v3942_v61 }
 0x1d9   :  { %v3946_v1 = vpop.eup %3945  ;;  %3965 = vpow2.f32 %v3349_v32  ;;  %v2000_v2 = vadd.f32 %v4843_v57, %v1905_v0  ;;  %v3354_v15 = vmul.f32 -1.442695, %v1999_v63 }
 0x1da   :  { %v3948_v7 = vpop.eup %3947  ;;  %3967 = vrcp.f32 %v2241_v5  ;;  %v2248_v8 = vadd.f32 1.0, %v3946_v1  ;;  %v1896_v9 = vpop.xlane.xlu0 %1895 }
 0x1db   :  { %v3950_v11 = vpop.eup %3949  ;;  %3969 = vpow2.f32 %v3348_v62  ;;  %v3355_v12 = vmul.f32 -1.442695, %v2000_v2  ;;  %2628 = vperm.xlu0 %3698, %v3944_v10   ;;  %v1997_v16 = vadd.f32 %v4843_v57, %v1896_v9 }
 0x1dc   :  { %v3952_v14 = vpop.eup %3951  ;;  %3971 = vrcp.f32 %v2248_v8  ;;  %v1899_v17 = vpop.xlane.xlu1 %1898  ;;  %2633 = vperm.xlu1 %3697, %v3948_v7   ;;  %v2245_v22 = vadd.f32 1.0, %v3950_v11 }
 0x1dd   :  { %v3954_v18 = vpop.eup %3953  ;;  %v2246_v19 = vadd.f32 1.0, %v3952_v14  ;;  %3973 = vpow2.f32 %v3355_v12  ;;  %v1998_v33 = vadd.f32 %v4843_v57, %v1899_v17  ;;  %v3352_v28 = vmul.f32 -1.442695, %v1997_v16 }
 0x1de   :  { %v3956_v21 = vpop.eup %3955  ;;  %3975 = vrcp.f32 %v2247_v6  ;;  %v1914_v23 = vpop.xlane.xlu0 %1913 }
 0x1df   :  { %v3958_v24 = vpop.eup %3957  ;;  %3977 = vrcp.f32 %v2246_v19  ;;  %v3353_v25 = vmul.f32 -1.442695, %v1998_v33  ;;  %2658 = vperm.xlu0 %3698, %v3954_v18   ;;  %v2003_v26 = vadd.f32 %v4843_v57, %v1914_v23 }
 0x1e0   :  { %v3960_v27 = vpop.eup %3959  ;;  %3979 = vpow2.f32 %v3354_v15  ;;  %v1917_v29 = vpop.xlane.xlu1 %1916  ;;  %2623 = vperm.xlu1 %3697, %v3956_v21  }
 0x1e1   :  { %v3962_v30 = vpop.eup %3961  ;;  %v2252_v31 = vadd.f32 1.0, %v3960_v27  ;;  %3981 = vpow2.f32 %v3353_v25  ;;  %v3358_v34 = vmul.f32 -1.442695, %v2003_v26  ;;  %v2004_v35 = vadd.f32 %v4843_v57, %v1917_v29 }
 0x1e2   :  { %v3964_v36 = vpop.eup %3963  ;;  %3983 = vrcp.f32 %v2245_v22  ;;  %v1908_v37 = vpop.xlane.xlu0 %1907 }
 0x1e3   :  { %v3966_v38 = vpop.eup %3965  ;;  %3985 = vrcp.f32 %v2252_v31  ;;  %v3359_v39 = vmul.f32 -1.442695, %v2004_v35  ;;  %2648 = vperm.xlu0 %3698, %v3962_v30   ;;  %v2001_v42 = vadd.f32 %v4843_v57, %v1908_v37  ;;  %v2251_v44 = vadd.f32 1.0, %v3964_v36 }
 0x1e4   :  { %v3968_v40 = vpop.eup %3967  ;;  %v2250_v41 = vadd.f32 1.0, %v3966_v38  ;;  %3987 = vpow2.f32 %v3352_v28  ;;  %v1911_v3 = vpop.xlane.xlu1 %1910  ;;  %2653 = vperm.xlu1 %3697, %v3958_v24  }
 0x1e5   :  { %v3970_v43 = vpop.eup %3969  ;;  %3989 = vpow2.f32 %v3358_v34  ;;  %v2002_v45 = vadd.f32 %v4843_v57, %v1911_v3  ;;  %v3356_v13 = vmul.f32 -1.442695, %v2001_v42 }
 0x1e6   :  { %v3972_v4 = vpop.eup %3971  ;;  %3991 = vrcp.f32 %v2250_v41  ;;  %v1926_v46 = vpop.xlane.xlu0 %1925  ;;  %v2249_v53 = vadd.f32 1.0, %v3970_v43 }
 0x1e7   :  { %v3974_v47 = vpop.eup %3973  ;;  %3993 = vpow2.f32 %v3359_v39  ;;  %v3357_v20 = vmul.f32 -1.442695, %v2002_v45  ;;  %2678 = vperm.xlu0 %3698, %v3972_v4   ;;  %v2007_v50 = vadd.f32 %v4843_v57, %v1926_v46 }
 0x1e8   :  { %v3976_v48 = vpop.eup %3975  ;;  %v2256_v49 = vadd.f32 1.0, %v3974_v47  ;;  %v1929_v51 = vpop.xlane.xlu1 %1928  ;;  %2643 = vperm.xlu1 %3697, %v3968_v40   ;;  %3995 = vrcp.f32 %v2251_v44 }
 0x1e9   :  { %v3978_v52 = vpop.eup %3977  ;;  %v2008_v54 = vadd.f32 %v4843_v57, %v1929_v51  ;;  %v3362_v62 = vmul.f32 -1.442695, %v2007_v50 }
 0x1ea   :  { %v3980_v55 = vpop.eup %3979  ;;  %3997 = vrcp.f32 %v2256_v49  ;;  %v1920_v56 = vpop.xlane.xlu0 %1919 }
 0x1eb   :  { %v3982_v58 = vpop.eup %3981  ;;  %3999 = vpow2.f32 %v3357_v20  ;;  %v3363_v59 = vmul.f32 -1.442695, %v2008_v54  ;;  %2668 = vperm.xlu0 %3698, %v3978_v52   ;;  %v2005_v5 = vadd.f32 %v4843_v57, %v1920_v56  ;;  %v2255_v63 = vadd.f32 1.0, %v3980_v55 }
 0x1ec   :  { %v3984_v60 = vpop.eup %3983  ;;  %v2254_v61 = vadd.f32 1.0, %v3982_v58  ;;  %4001 = vpow2.f32 %v3356_v13  ;;  %v1923_v32 = vpop.xlane.xlu1 %1922  ;;  %2673 = vperm.xlu1 %3697, %v3976_v48   ;;  %v4056_v58 = vld [vmem:[%s5264_s1 + $0x8] sm:$0xff]  }
 0x1ed   :  { %v3986_v10 = vpop.eup %3985  ;;  %4003 = vrcp.f32 %v2249_v53  ;;  %v2006_v0 = vadd.f32 %v4843_v57, %v1923_v32  ;;  %v3360_v6 = vmul.f32 -1.442695, %v2005_v5  ;;  %v4057_v5 = vld [vmem:[%s5264_s1] sm:$0xff]  }
 0x1ee   :  { %v3988_v1 = vpop.eup %3987  ;;  %4005 = vrcp.f32 %v2254_v61  ;;  %v1938_v2 = vpop.xlane.xlu0 %1937 }
 0x1ef   :  { %v3990_v7 = vpop.eup %3989  ;;  %4007 = vpow2.f32 %v3363_v59  ;;  %v3361_v8 = vmul.f32 -1.442695, %v2006_v0  ;;  %2698 = vperm.xlu0 %3698, %v3986_v10   ;;  %v2253_v14 = vadd.f32 1.0, %v3988_v1  ;;  %v2011_v33 = vadd.f32 %v4843_v57, %v1938_v2 }
 0x1f0   :  { %v3992_v9 = vpop.eup %3991  ;;  %4009 = vpow2.f32 %v3362_v62  ;;  %v1941_v11 = vpop.xlane.xlu1 %1940  ;;  %2663 = vperm.xlu1 %3697, %v3984_v60   ;;  %v2259_v16 = vadd.f32 1.0, %v3990_v7  ;;  %v2399_v59 = vunpack.c.l.bf16 %v4056_v58  ;;  %v2397_v60 = vunpack.c.l.bf16 %v4057_v5 }
 0x1f1   :  { %v3994_v12 = vpop.eup %3993  ;;  %4011 = vrcp.f32 %v2255_v63  ;;  %v2012_v15 = vadd.f32 %v4843_v57, %v1941_v11  ;;  %v3366_v31 = vmul.f32 -1.442695, %v2011_v33  ;;  %v2400_v10 = vunpack.c.h.bf16 %v4056_v58 }
 0x1f2   :  { %v2260_v17 = vadd.f32 1.0, %v3994_v12  ;;  %4013 = vpow2.f32 %v3361_v8  ;;  %v1932_v18 = vpop.xlane.xlu0 %1931  ;;  %v3996_v19 = vpop.eup %3995  ;;  %v2398_v11 = vunpack.c.h.bf16 %v4057_v5 }
 0x1f3   :  { %4015 = vpow2.f32 %v3360_v6  ;;  %2688 = vperm.xlu0 %3698, %v3992_v9   ;;  %v2009_v21 = vadd.f32 %v4843_v57, %v1932_v18  ;;  %v3367_v25 = vmul.f32 -1.442695, %v2012_v15  ;;  %v4058_v18 = vld [vmem:[%s5264_s1 + $0x18] sm:$0xff]  }
 0x1f4   :  { %v3998_v22 = vpop.eup %3997  ;;  %4017 = vrcp.f32 %v2260_v17  ;;  %v1935_v23 = vpop.xlane.xlu1 %1934  ;;  %2693 = vperm.xlu1 %3697, %v3996_v19   ;;  %v2403_v19 = vunpack.c.l.bf16 %v4058_v18 }
 0x1f5   :  { %v4000_v24 = vpop.eup %3999  ;;  %4019 = vrcp.f32 %v2253_v14  ;;  %v3364_v26 = vmul.f32 -1.442695, %v2009_v21  ;;  %v2010_v27 = vadd.f32 %v4843_v57, %v1935_v23  ;;  %v4059_v23 = vld [vmem:[%s5264_s1 + $0x10] sm:$0xff]  }
 0x1f6   :  { %v4002_v28 = vpop.eup %4001  ;;  %4021 = vrcp.f32 %v2259_v16  ;;  %v2258_v29 = vadd.f32 1.0, %v4000_v24  ;;  %v2401_v24 = vunpack.c.l.bf16 %v4059_v23 }
 0x1f7   :  { %v4004_v30 = vpop.eup %4003  ;;  %4023 = vpow2.f32 %v3364_v26  ;;  %v3365_v34 = vmul.f32 -1.442695, %v2010_v27  ;;  %2718 = vperm.xlu0 %3698, %v3998_v22   ;;  %v2257_v37 = vadd.f32 1.0, %v4002_v28  ;;  %v2404_v28 = vunpack.c.h.bf16 %v4058_v18 }
 0x1f8   :  { %v4006_v35 = vpop.eup %4005  ;;  %4025 = vrcp.f32 %v2258_v29  ;;  %2683 = vperm.xlu1 %3697, %v4004_v30   ;;  %v4060_v29 = vld [vmem:[%s5264_s1 + $0x28] sm:$0xff]  }
 0x1f9   :  { %v4008_v36 = vpop.eup %4007  ;;  %4027 = vpow2.f32 %v3367_v25  ;;  %v2408_v30 = vunpack.c.h.bf16 %v4060_v29 }
 0x1fa   :  { %v4010_v38 = vpop.eup %4009  ;;  %v2264_v39 = vadd.f32 1.0, %v4008_v36  ;;  %4029 = vpow2.f32 %v3365_v34 }
 0x1fb   :  { %v4012_v40 = vpop.eup %4011  ;;  %4031 = vpow2.f32 %v3366_v31  ;;  %2708 = vperm.xlu0 %3698, %v4006_v35   ;;  %v2263_v42 = vadd.f32 1.0, %v4010_v38 }
 0x1fc   :  { %v4014_v57 = vpop.eup %4013  ;;  %4033 = vrcp.f32 %v2264_v39  ;;  %2713 = vperm.xlu1 %3697, %v4012_v40   ;;  %v4061_v40 = vld [vmem:[%s5264_s1 + $0x20] sm:$0xff]  }
 0x1fd   :  { %v4016_v41 = vpop.eup %4015  ;;  %4035 = vrcp.f32 %v2257_v37  ;;  %v2262_v3 = vadd.f32 1.0, %v4014_v57  ;;  %v2402_v37 = vunpack.c.h.bf16 %v4059_v23  ;;  %v2406_v57 = vunpack.c.h.bf16 %v4061_v40 }
 0x1fe   :  { %v4018_v43 = vpop.eup %4017  ;;  %v2261_v46 = vadd.f32 1.0, %v4016_v41 }
 0x1ff   :  { %v4020_v44 = vpop.eup %4019  ;;  %4037 = vrcp.f32 %v2262_v3  ;;  %2738 = vperm.xlu0 %3698, %v4018_v43   ;;  %v2407_v43 = vunpack.c.l.bf16 %v4060_v29 }
 0x200   :  { %v4022_v45 = vpop.eup %4021  ;;  %2703 = vperm.xlu1 %3697, %v4020_v44   ;;  %4039 = vrcp.f32 %v2263_v42 }
 0x201   :  { %v4024_v4 = vpop.eup %4023  ;;  %4041 = vrcp.f32 %v2261_v46  ;;  %v4062_v46 = vld [vmem:[%s5264_s1 + $0x38] sm:$0xff]  }
 0x202   :  { %v4026_v47 = vpop.eup %4025  ;;  %v2265_v13 = vadd.f32 1.0, %v4024_v4 }
 0x203   :  { %v4028_v20 = vpop.eup %4027  ;;  %2728 = vperm.xlu0 %3698, %v4026_v47   ;;  %v2412_v47 = vunpack.c.h.bf16 %v4062_v46 }
 0x204   :  { %v4030_v48 = vpop.eup %4029  ;;  %2733 = vperm.xlu1 %3697, %v4022_v45   ;;  %v2268_v53 = vadd.f32 1.0, %v4028_v20 }
 0x205   :  { %v4032_v49 = vpop.eup %4031  ;;  %v2266_v50 = vadd.f32 1.0, %v4030_v48 }
 0x206   :  { %v4034_v51 = vpop.eup %4033  ;;  %v2267_v55 = vadd.f32 1.0, %v4032_v49 }
 0x207   :  { %v4036_v52 = vpop.eup %4035  ;;  %4043 = vrcp.f32 %v2266_v50  ;;  %2758 = vperm.xlu0 %3698, %v4034_v51  }
 0x208   :  { %2723 = vperm.xlu1 %3697, %v4036_v52   ;;  %4045 = vrcp.f32 %v2265_v13  ;;  %v2405_v13 = vunpack.c.l.bf16 %v4061_v40 }
 0x209   :  { %v4038_v54 = vpop.eup %4037  ;;  %4047 = vrcp.f32 %v2268_v53  ;;  %v4063_v53 = vld [vmem:[%s5264_s1 + $0x30] sm:$0xff]  }
 0x20a   :  { %v4040_v56 = vpop.eup %4039  ;;  %4049 = vrcp.f32 %v2267_v55 }
 0x20b   :  { %2748 = vperm.xlu0 %3698, %v4038_v54   ;;  %v4042_v61 = vpop.eup %4041  ;;  %v2410_v54 = vunpack.c.h.bf16 %v4063_v53 }
 0x20c   :  { %2753 = vperm.xlu1 %3697, %v4040_v56  }
 0x20f   :  { %v2474_v62 = vpop.permute.xlu1 %2473 }
 0x210   :  { %v2783_v32 = vmul.f32 %v2474_v62, %v2399_v59  ;;  %2743 = vperm.xlu1 %3697, %v4042_v61   ;;  %v2411_v59 = vunpack.c.l.bf16 %v4062_v46  ;;  %v4064_v62 = vld [vmem:[%s5264_s1 + $0x48] sm:$0xff]  }
 0x211   :  { %v4044_v63 = vpop.eup %4043  ;;  %v2464_v0 = vpop.permute.xlu0 %2463 }
 0x212   :  { %2768 = vperm.xlu0 %3698, %v4044_v63   ;;  %v3434_v1 = vpack.c.bf16 %v2783_v32, %v2783_v32  ;;  %v2781_v2 = vmul.f32 %v2464_v0, %v2397_v60  ;;  %v4046_v7 = vpop.eup %4045  ;;  %v2416_v32 = vunpack.c.h.bf16 %v4064_v62  ;;  %v2409_v0 = vunpack.c.l.bf16 %v4063_v53 }
 0x213   :  { %v2479_v6 = vpop.permute.xlu1 %2478  ;;  %v4048_v12 = vpop.eup %4047 }
 0x214   :  { %3104 = vst.msk [vmem:[%s5271_s10 + $0x8] sm:$0xf] %vm3101_vm3, %v3434_v1  ;;  %v3432_v8 = vpack.c.bf16 %v2781_v2, %v2781_v2  ;;  %v2784_v9 = vmul.f32 %v2479_v6, %v2400_v10  ;;  %2763 = vperm.xlu1 %3697, %v4046_v7   ;;  %v4050_v15 = vpop.eup %4049 }
 0x216   :  { %3102 = vst.msk [vmem:[%s5271_s10] sm:$0xf] %vm3101_vm3, %v3432_v8  ;;  %2778 = vperm.xlu0 %3698, %v4048_v12   ;;  %v3435_v14 = vpack.c.bf16 %v2784_v9, %v2784_v9  ;;  %v4065_v8 = vld [vmem:[%s5264_s1 + $0x40] sm:$0xff]  }
 0x217   :  { %v2469_v16 = vpop.permute.xlu1 %2468  ;;  %v2414_v9 = vunpack.c.h.bf16 %v4065_v8  ;;  %v2413_v23 = vunpack.c.l.bf16 %v4065_v8 }
 0x218   :  { %3105 = vst.msk [vmem:[%s5271_s10 + $0xc] sm:$0xf] %vm3101_vm3, %v3435_v14  ;;  %v2782_v17 = vmul.f32 %v2469_v16, %v2398_v11  ;;  %2773 = vperm.xlu1 %3697, %v4050_v15   ;;  %v2415_v14 = vunpack.c.l.bf16 %v4064_v62 }
 0x21a   :  { %v3433_v33 = vpack.c.bf16 %v2782_v17, %v2782_v17 }
 0x21b   :  { %v2494_v21 = vpop.permute.xlu1 %2493 }
 0x21c   :  { %3103 = vst.msk [vmem:[%s5271_s10 + $0x4] sm:$0xf] %vm3101_vm3, %v3433_v33  ;;  %v2787_v22 = vmul.f32 %v2494_v21, %v2403_v19  ;;  %v4066_v19 = vld [vmem:[%s5264_s1 + $0x58] sm:$0xff]  }
 0x21d   :  { %v2420_v33 = vunpack.c.h.bf16 %v4066_v19 }
 0x21e   :  { %v3438_v25 = vpack.c.bf16 %v2787_v22, %v2787_v22 }
 0x21f   :  { %v2484_v26 = vpop.permute.xlu1 %2483 }
 0x220   :  { %3108 = vst.msk [vmem:[%s5271_s10 + $0x18] sm:$0xf] %vm3101_vm3, %v3438_v25  ;;  %v2785_v27 = vmul.f32 %v2484_v26, %v2401_v24 }
 0x222   :  { %v3436_v31 = vpack.c.bf16 %v2785_v27, %v2785_v27 }
 0x223   :  { %v2499_v34 = vpop.permute.xlu1 %2498 }
 0x224   :  { %3106 = vst.msk [vmem:[%s5271_s10 + $0x10] sm:$0xf] %vm3101_vm3, %v3436_v31  ;;  %v2519_v35 = vpop.permute.xlu0 %2518  ;;  %v2788_v36 = vmul.f32 %v2499_v34, %v2404_v28  ;;  %v4067_v28 = vld [vmem:[%s5264_s1 + $0x50] sm:$0xff]   ;;  %v2419_v34 = vunpack.c.l.bf16 %v4066_v19 }
 0x225   :  { %v2792_v38 = vmul.f32 %v2519_v35, %v2408_v30  ;;  %v2418_v29 = vunpack.c.h.bf16 %v4067_v28 }
 0x226   :  { %v3439_v39 = vpack.c.bf16 %v2788_v36, %v2788_v36 }
 0x227   :  { %v3443_v41 = vpack.c.bf16 %v2792_v38, %v2792_v38  ;;  %v2489_v42 = vpop.permute.xlu1 %2488 }
 0x228   :  { %3109 = vst.msk [vmem:[%s5271_s10 + $0x1c] sm:$0xf] %vm3101_vm3, %v3439_v39  ;;  %v2786_v3 = vmul.f32 %v2489_v42, %v2402_v37  ;;  %v4068_v39 = vld [vmem:[%s5264_s1 + $0x68] sm:$0xff]   ;;  %v2417_v42 = vunpack.c.l.bf16 %v4067_v28 }
 0x229   :  { %3113 = vst.msk [vmem:[%s5271_s10 + $0x2c] sm:$0xf] %vm3101_vm3, %v3443_v41  ;;  %v2509_v44 = vpop.permute.xlu0 %2508  ;;  %v2424_v40 = vunpack.c.h.bf16 %v4068_v39 }
 0x22a   :  { %v2790_v45 = vmul.f32 %v2509_v44, %v2406_v57  ;;  %v3437_v4 = vpack.c.bf16 %v2786_v3, %v2786_v3 }
 0x22b   :  { %v2514_v20 = vpop.permute.xlu1 %2513 }
 0x22c   :  { %v3441_v48 = vpack.c.bf16 %v2790_v45, %v2790_v45  ;;  %3107 = vst.msk [vmem:[%s5271_s10 + $0x14] sm:$0xf] %vm3101_vm3, %v3437_v4  ;;  %v2791_v49 = vmul.f32 %v2514_v20, %v2407_v43  ;;  %v4069_v4 = vld [vmem:[%s5264_s1 + $0x60] sm:$0xff]  }
 0x22d   :  { %v2539_v50 = vpop.permute.xlu0 %2538  ;;  %v2422_v46 = vunpack.c.h.bf16 %v4069_v4 }
 0x22e   :  { %3111 = vst.msk [vmem:[%s5271_s10 + $0x24] sm:$0xf] %vm3101_vm3, %v3441_v48  ;;  %v2796_v51 = vmul.f32 %v2539_v50, %v2412_v47  ;;  %v3442_v52 = vpack.c.bf16 %v2791_v49, %v2791_v49  ;;  %v2423_v48 = vunpack.c.l.bf16 %v4068_v39 }
 0x22f   :  { %v2504_v55 = vpop.permute.xlu1 %2503 }
 0x230   :  { %v3447_v56 = vpack.c.bf16 %v2796_v51, %v2796_v51  ;;  %3112 = vst.msk [vmem:[%s5271_s10 + $0x28] sm:$0xf] %vm3101_vm3, %v3442_v52  ;;  %v2789_v58 = vmul.f32 %v2504_v55, %v2405_v13  ;;  %v4070_v52 = vld [vmem:[%s5264_s1 + $0x78] sm:$0xff]  }
 0x231   :  { %v2428_v53 = vunpack.c.h.bf16 %v4070_v52 }
 0x232   :  { %3117 = vst.msk [vmem:[%s5271_s10 + $0x3c] sm:$0xf] %vm3101_vm3, %v3447_v56  ;;  %v2529_v5 = vpop.permute.xlu0 %2528  ;;  %v3440_v60 = vpack.c.bf16 %v2789_v58, %v2789_v58  ;;  %v2421_v56 = vunpack.c.l.bf16 %v4069_v4 }
 0x233   :  { %v2794_v61 = vmul.f32 %v2529_v5, %v2410_v54  ;;  %v2534_v10 = vpop.permute.xlu1 %2533 }
 0x234   :  { %3110 = vst.msk [vmem:[%s5271_s10 + $0x20] sm:$0xf] %vm3101_vm3, %v3440_v60  ;;  %v2795_v63 = vmul.f32 %v2534_v10, %v2411_v59 }
 0x235   :  { %v3445_v1 = vpack.c.bf16 %v2794_v61, %v2794_v61  ;;  %v4071_v61 = vld [vmem:[%s5264_s1 + $0x70] sm:$0xff]  }
 0x236   :  { %v2559_v2 = vpop.permute.xlu0 %2558  ;;  %v3446_v7 = vpack.c.bf16 %v2795_v63, %v2795_v63  ;;  %v2426_v62 = vunpack.c.h.bf16 %v4071_v61  ;;  %v2427_v63 = vunpack.c.l.bf16 %v4070_v52 }
 0x237   :  { %3115 = vst.msk [vmem:[%s5271_s10 + $0x34] sm:$0xf] %vm3101_vm3, %v3445_v1  ;;  %v2800_v6 = vmul.f32 %v2559_v2, %v2416_v32  ;;  %v2524_v11 = vpop.permute.xlu1 %2523 }
 0x238   :  { %3116 = vst.msk [vmem:[%s5271_s10 + $0x38] sm:$0xf] %vm3101_vm3, %v3446_v7  ;;  %v2793_v12 = vmul.f32 %v2524_v11, %v2409_v0 }
 0x239   :  { %v3451_v15 = vpack.c.bf16 %v2800_v6, %v2800_v6  ;;  %v4072_v6 = vld [vmem:[%s5264_s1 + $0x88] sm:$0xff]  }
 0x23a   :  { %v2549_v16 = vpop.permute.xlu0 %2548  ;;  %v3444_v17 = vpack.c.bf16 %v2793_v12, %v2793_v12  ;;  %v2432_v8 = vunpack.c.h.bf16 %v4072_v6  ;;  %v2425_v12 = vunpack.c.l.bf16 %v4071_v61 }
 0x23b   :  { %3121 = vst.msk [vmem:[%s5271_s10 + $0x4c] sm:$0xf] %vm3101_vm3, %v3451_v15  ;;  %v2798_v18 = vmul.f32 %v2549_v16, %v2414_v9  ;;  %v2554_v21 = vpop.permute.xlu1 %2553 }
 0x23c   :  { %3114 = vst.msk [vmem:[%s5271_s10 + $0x30] sm:$0xf] %vm3101_vm3, %v3444_v17  ;;  %v2799_v22 = vmul.f32 %v2554_v21, %v2415_v14 }
 0x23d   :  { %v3449_v24 = vpack.c.bf16 %v2798_v18, %v2798_v18  ;;  %v4073_v18 = vld [vmem:[%s5264_s1 + $0x80] sm:$0xff]  }
 0x23e   :  { %v2579_v25 = vpop.permute.xlu0 %2578  ;;  %v3450_v26 = vpack.c.bf16 %v2799_v22, %v2799_v22  ;;  %v2430_v19 = vunpack.c.h.bf16 %v4073_v18  ;;  %v2431_v22 = vunpack.c.l.bf16 %v4072_v6 }
 0x23f   :  { %3119 = vst.msk [vmem:[%s5271_s10 + $0x44] sm:$0xf] %vm3101_vm3, %v3449_v24  ;;  %v2804_v27 = vmul.f32 %v2579_v25, %v2420_v33  ;;  %v2544_v30 = vpop.permute.xlu1 %2543 }
 0x240   :  { %3120 = vst.msk [vmem:[%s5271_s10 + $0x48] sm:$0xf] %vm3101_vm3, %v3450_v26  ;;  %v2797_v31 = vmul.f32 %v2544_v30, %v2413_v23 }
 0x241   :  { %v3455_v35 = vpack.c.bf16 %v2804_v27, %v2804_v27  ;;  %v4074_v27 = vld [vmem:[%s5264_s1 + $0x98] sm:$0xff]  }
 0x242   :  { %v2569_v36 = vpop.permute.xlu0 %2568  ;;  %v3448_v37 = vpack.c.bf16 %v2797_v31, %v2797_v31  ;;  %v2436_v28 = vunpack.c.h.bf16 %v4074_v27  ;;  %v2429_v31 = vunpack.c.l.bf16 %v4073_v18 }
 0x243   :  { %3125 = vst.msk [vmem:[%s5271_s10 + $0x5c] sm:$0xf] %vm3101_vm3, %v3455_v35  ;;  %v2802_v38 = vmul.f32 %v2569_v36, %v2418_v29  ;;  %v2574_v57 = vpop.permute.xlu1 %2573 }
 0x244   :  { %3118 = vst.msk [vmem:[%s5271_s10 + $0x40] sm:$0xf] %vm3101_vm3, %v3448_v37  ;;  %v2803_v41 = vmul.f32 %v2574_v57, %v2419_v34 }
 0x245   :  { %v3453_v3 = vpack.c.bf16 %v2802_v38, %v2802_v38  ;;  %v4075_v38 = vld [vmem:[%s5264_s1 + $0x90] sm:$0xff]  }
 0x246   :  { %v2599_v43 = vpop.permute.xlu0 %2598  ;;  %v3454_v44 = vpack.c.bf16 %v2803_v41, %v2803_v41  ;;  %v2434_v39 = vunpack.c.h.bf16 %v4075_v38  ;;  %v2435_v41 = vunpack.c.l.bf16 %v4074_v27 }
 0x247   :  { %3123 = vst.msk [vmem:[%s5271_s10 + $0x54] sm:$0xf] %vm3101_vm3, %v3453_v3  ;;  %v2808_v45 = vmul.f32 %v2599_v43, %v2424_v40  ;;  %v2564_v47 = vpop.permute.xlu1 %2563 }
 0x248   :  { %3124 = vst.msk [vmem:[%s5271_s10 + $0x58] sm:$0xf] %vm3101_vm3, %v3454_v44  ;;  %v2801_v20 = vmul.f32 %v2564_v47, %v2417_v42 }
 0x249   :  { %v3459_v49 = vpack.c.bf16 %v2808_v45, %v2808_v45  ;;  %v4076_v45 = vld [vmem:[%s5264_s1 + $0xa8] sm:$0xff]  }
 0x24a   :  { %v2589_v13 = vpop.permute.xlu0 %2588  ;;  %v3452_v50 = vpack.c.bf16 %v2801_v20, %v2801_v20  ;;  %v2440_v4 = vunpack.c.h.bf16 %v4076_v45  ;;  %v2433_v20 = vunpack.c.l.bf16 %v4075_v38 }
 0x24b   :  { %3129 = vst.msk [vmem:[%s5271_s10 + $0x6c] sm:$0xf] %vm3101_vm3, %v3459_v49  ;;  %v2806_v51 = vmul.f32 %v2589_v13, %v2422_v46  ;;  %v2594_v54 = vpop.permute.xlu1 %2593 }
 0x24c   :  { %3122 = vst.msk [vmem:[%s5271_s10 + $0x50] sm:$0xf] %vm3101_vm3, %v3452_v50  ;;  %v2807_v55 = vmul.f32 %v2594_v54, %v2423_v48 }
 0x24d   :  { %v3457_v58 = vpack.c.bf16 %v2806_v51, %v2806_v51  ;;  %v4077_v51 = vld [vmem:[%s5264_s1 + $0xa0] sm:$0xff]  }
 0x24e   :  { %v2619_v59 = vpop.permute.xlu0 %2618  ;;  %v3458_v5 = vpack.c.bf16 %v2807_v55, %v2807_v55  ;;  %v2438_v52 = vunpack.c.h.bf16 %v4077_v51  ;;  %v2439_v55 = vunpack.c.l.bf16 %v4076_v45 }
 0x24f   :  { %3127 = vst.msk [vmem:[%s5271_s10 + $0x64] sm:$0xf] %vm3101_vm3, %v3457_v58  ;;  %v2812_v60 = vmul.f32 %v2619_v59, %v2428_v53  ;;  %v2584_v32 = vpop.permute.xlu1 %2583 }
 0x250   :  { %3128 = vst.msk [vmem:[%s5271_s10 + $0x68] sm:$0xf] %vm3101_vm3, %v3458_v5  ;;  %v2805_v10 = vmul.f32 %v2584_v32, %v2421_v56 }
 0x251   :  { %v3463_v0 = vpack.c.bf16 %v2812_v60, %v2812_v60  ;;  %v4078_v60 = vld [vmem:[%s5264_s1 + $0xb8] sm:$0xff]  }
 0x252   :  { %v2609_v1 = vpop.permute.xlu0 %2608  ;;  %v3456_v2 = vpack.c.bf16 %v2805_v10, %v2805_v10  ;;  %v2444_v61 = vunpack.c.h.bf16 %v4078_v60  ;;  %v2437_v10 = vunpack.c.l.bf16 %v4077_v51 }
 0x253   :  { %3133 = vst.msk [vmem:[%s5271_s10 + $0x7c] sm:$0xf] %vm3101_vm3, %v3463_v0  ;;  %v2810_v7 = vmul.f32 %v2609_v1, %v2426_v62  ;;  %v2614_v9 = vpop.permute.xlu1 %2613 }
 0x254   :  { %3126 = vst.msk [vmem:[%s5271_s10 + $0x60] sm:$0xf] %vm3101_vm3, %v3456_v2  ;;  %v2811_v11 = vmul.f32 %v2614_v9, %v2427_v63 }
 0x255   :  { %v3461_v14 = vpack.c.bf16 %v2810_v7, %v2810_v7  ;;  %v4079_v7 = vld [vmem:[%s5264_s1 + $0xb0] sm:$0xff]  }
 0x256   :  { %v2639_v15 = vpop.permute.xlu0 %2638  ;;  %v3462_v16 = vpack.c.bf16 %v2811_v11, %v2811_v11  ;;  %v2442_v6 = vunpack.c.h.bf16 %v4079_v7  ;;  %v2443_v11 = vunpack.c.l.bf16 %v4078_v60 }
 0x257   :  { %3131 = vst.msk [vmem:[%s5271_s10 + $0x74] sm:$0xf] %vm3101_vm3, %v3461_v14  ;;  %v2816_v17 = vmul.f32 %v2639_v15, %v2432_v8  ;;  %v2604_v33 = vpop.permute.xlu1 %2603 }
 0x258   :  { %3132 = vst.msk [vmem:[%s5271_s10 + $0x78] sm:$0xf] %vm3101_vm3, %v3462_v16  ;;  %v2809_v21 = vmul.f32 %v2604_v33, %v2425_v12 }
 0x259   :  { %v3467_v23 = vpack.c.bf16 %v2816_v17, %v2816_v17  ;;  %v4080_v17 = vld [vmem:[%s5264_s1 + $0xc8] sm:$0xff]  }
 0x25a   :  { %v2629_v24 = vpop.permute.xlu0 %2628  ;;  %v3460_v25 = vpack.c.bf16 %v2809_v21, %v2809_v21  ;;  %v2448_v18 = vunpack.c.h.bf16 %v4080_v17  ;;  %v2441_v21 = vunpack.c.l.bf16 %v4079_v7 }
 0x25b   :  { %3137 = vst.msk [vmem:[%s5271_s10 + $0x8c] sm:$0xf] %vm3101_vm3, %v3467_v23  ;;  %v2814_v26 = vmul.f32 %v2629_v24, %v2430_v19  ;;  %v2634_v29 = vpop.permute.xlu1 %2633 }
 0x25c   :  { %3130 = vst.msk [vmem:[%s5271_s10 + $0x70] sm:$0xf] %vm3101_vm3, %v3460_v25  ;;  %v2815_v30 = vmul.f32 %v2634_v29, %v2431_v22 }
 0x25d   :  { %v3465_v34 = vpack.c.bf16 %v2814_v26, %v2814_v26  ;;  %v4081_v26 = vld [vmem:[%s5264_s1 + $0xc0] sm:$0xff]  }
 0x25e   :  { %v2659_v35 = vpop.permute.xlu0 %2658  ;;  %v3466_v36 = vpack.c.bf16 %v2815_v30, %v2815_v30  ;;  %v2446_v27 = vunpack.c.h.bf16 %v4081_v26  ;;  %v2447_v30 = vunpack.c.l.bf16 %v4080_v17 }
 0x25f   :  { %3135 = vst.msk [vmem:[%s5271_s10 + $0x84] sm:$0xf] %vm3101_vm3, %v3465_v34  ;;  %v2820_v37 = vmul.f32 %v2659_v35, %v2436_v28  ;;  %v2624_v40 = vpop.permute.xlu1 %2623 }
 0x260   :  { %3136 = vst.msk [vmem:[%s5271_s10 + $0x88] sm:$0xf] %vm3101_vm3, %v3466_v36  ;;  %v2813_v57 = vmul.f32 %v2624_v40, %v2429_v31 }
 0x261   :  { %v3471_v42 = vpack.c.bf16 %v2820_v37, %v2820_v37  ;;  %v4082_v37 = vld [vmem:[%s5264_s1 + $0xd8] sm:$0xff]  }
 0x262   :  { %v2649_v3 = vpop.permute.xlu0 %2648  ;;  %v3464_v43 = vpack.c.bf16 %v2813_v57, %v2813_v57  ;;  %v2452_v38 = vunpack.c.h.bf16 %v4082_v37  ;;  %v2445_v57 = vunpack.c.l.bf16 %v4081_v26 }
 0x263   :  { %3141 = vst.msk [vmem:[%s5271_s10 + $0x9c] sm:$0xf] %vm3101_vm3, %v3471_v42  ;;  %v2818_v44 = vmul.f32 %v2649_v3, %v2434_v39  ;;  %v2654_v46 = vpop.permute.xlu1 %2653 }
 0x264   :  { %3134 = vst.msk [vmem:[%s5271_s10 + $0x80] sm:$0xf] %vm3101_vm3, %v3464_v43  ;;  %v2819_v47 = vmul.f32 %v2654_v46, %v2435_v41 }
 0x265   :  { %v3469_v48 = vpack.c.bf16 %v2818_v44, %v2818_v44  ;;  %v4083_v44 = vld [vmem:[%s5264_s1 + $0xd0] sm:$0xff]  }
 0x266   :  { %v2679_v49 = vpop.permute.xlu0 %2678  ;;  %v3470_v13 = vpack.c.bf16 %v2819_v47, %v2819_v47  ;;  %v2450_v45 = vunpack.c.h.bf16 %v4083_v44  ;;  %v2451_v47 = vunpack.c.l.bf16 %v4082_v37 }
 0x267   :  { %3139 = vst.msk [vmem:[%s5271_s10 + $0x94] sm:$0xf] %vm3101_vm3, %v3469_v48  ;;  %v2824_v50 = vmul.f32 %v2679_v49, %v2440_v4  ;;  %v2644_v53 = vpop.permute.xlu1 %2643 }
 0x268   :  { %3140 = vst.msk [vmem:[%s5271_s10 + $0x98] sm:$0xf] %vm3101_vm3, %v3470_v13  ;;  %v2817_v54 = vmul.f32 %v2644_v53, %v2433_v20 }
 0x269   :  { %v3475_v56 = vpack.c.bf16 %v2824_v50, %v2824_v50  ;;  %v4084_v50 = vld [vmem:[%s5264_s1 + $0xe8] sm:$0xff]  }
 0x26a   :  { %v2669_v58 = vpop.permute.xlu0 %2668  ;;  %v3468_v59 = vpack.c.bf16 %v2817_v54, %v2817_v54  ;;  %v2456_v51 = vunpack.c.h.bf16 %v4084_v50  ;;  %v2449_v54 = vunpack.c.l.bf16 %v4083_v44 }
 0x26b   :  { %3145 = vst.msk [vmem:[%s5271_s10 + $0xac] sm:$0xf] %vm3101_vm3, %v3475_v56  ;;  %v2822_v5 = vmul.f32 %v2669_v58, %v2438_v52  ;;  %v2674_v62 = vpop.permute.xlu1 %2673 }
 0x26c   :  { %3138 = vst.msk [vmem:[%s5271_s10 + $0x90] sm:$0xf] %vm3101_vm3, %v3468_v59  ;;  %v2823_v32 = vmul.f32 %v2674_v62, %v2439_v55 }
 0x26d   :  { %v3473_v63 = vpack.c.bf16 %v2822_v5, %v2822_v5  ;;  %v4085_v5 = vld [vmem:[%s5264_s1 + $0xe0] sm:$0xff]  }
 0x26e   :  { %v2699_v0 = vpop.permute.xlu0 %2698  ;;  %v3474_v1 = vpack.c.bf16 %v2823_v32, %v2823_v32  ;;  %v2454_v60 = vunpack.c.h.bf16 %v4085_v5  ;;  %v2455_v32 = vunpack.c.l.bf16 %v4084_v50 }
 0x26f   :  { %3143 = vst.msk [vmem:[%s5271_s10 + $0xa4] sm:$0xf] %vm3101_vm3, %v3473_v63  ;;  %v2828_v2 = vmul.f32 %v2699_v0, %v2444_v61  ;;  %v2664_v8 = vpop.permute.xlu1 %2663 }
 0x270   :  { %3144 = vst.msk [vmem:[%s5271_s10 + $0xa8] sm:$0xf] %vm3101_vm3, %v3474_v1  ;;  %v2821_v9 = vmul.f32 %v2664_v8, %v2437_v10 }
 0x271   :  { %v3479_v12 = vpack.c.bf16 %v2828_v2, %v2828_v2 }
 0x272   :  { %v2689_v14 = vpop.permute.xlu0 %2688  ;;  %v3472_v15 = vpack.c.bf16 %v2821_v9, %v2821_v9 }
 0x273   :  { %3149 = vst.msk [vmem:[%s5271_s10 + $0xbc] sm:$0xf] %vm3101_vm3, %v3479_v12  ;;  %v2826_v16 = vmul.f32 %v2689_v14, %v2442_v6  ;;  %v2694_v19 = vpop.permute.xlu1 %2693  ;;  %v2453_v6 = vunpack.c.l.bf16 %v4085_v5 }
 0x274   :  { %3142 = vst.msk [vmem:[%s5271_s10 + $0xa0] sm:$0xf] %vm3101_vm3, %v3472_v15  ;;  %v2827_v33 = vmul.f32 %v2694_v19, %v2443_v11  ;;  %v4086_v11 = vld [vmem:[%s5264_s1 + $0xf0] sm:$0xff]  }
 0x275   :  { %v3477_v22 = vpack.c.bf16 %v2826_v16, %v2826_v16  ;;  %v2458_v12 = vunpack.c.h.bf16 %v4086_v11  ;;  %v2457_v16 = vunpack.c.l.bf16 %v4086_v11 }
 0x276   :  { %v2719_v23 = vpop.permute.xlu0 %2718  ;;  %v3478_v24 = vpack.c.bf16 %v2827_v33, %v2827_v33  ;;  %v4087_v33 = vld [vmem:[%s5264_s1 + $0xf8] sm:$0xff]  }
 0x277   :  { %3147 = vst.msk [vmem:[%s5271_s10 + $0xb4] sm:$0xf] %vm3101_vm3, %v3477_v22  ;;  %v2832_v25 = vmul.f32 %v2719_v23, %v2448_v18  ;;  %v2684_v28 = vpop.permute.xlu1 %2683 }
 0x278   :  { %3148 = vst.msk [vmem:[%s5271_s10 + $0xb8] sm:$0xf] %vm3101_vm3, %v3478_v24  ;;  %v2825_v29 = vmul.f32 %v2684_v28, %v2441_v21  ;;  %v2460_v21 = vunpack.c.h.bf16 %v4087_v33 }
 0x279   :  { %v3483_v31 = vpack.c.bf16 %v2832_v25, %v2832_v25  ;;  %v2459_v25 = vunpack.c.l.bf16 %v4087_v33 }
 0x27a   :  { %v2709_v34 = vpop.permute.xlu0 %2708  ;;  %v3476_v35 = vpack.c.bf16 %v2825_v29, %v2825_v29 }
 0x27b   :  { %3153 = vst.msk [vmem:[%s5271_s10 + $0xcc] sm:$0xf] %vm3101_vm3, %v3483_v31  ;;  %v2830_v36 = vmul.f32 %v2709_v34, %v2446_v27  ;;  %v2714_v39 = vpop.permute.xlu1 %2713 }
 0x27c   :  { %3146 = vst.msk [vmem:[%s5271_s10 + $0xb0] sm:$0xf] %vm3101_vm3, %v3476_v35  ;;  %v2831_v40 = vmul.f32 %v2714_v39, %v2447_v30 }
 0x27d   :  { %v3481_v41 = vpack.c.bf16 %v2830_v36, %v2830_v36 }
 0x27e   :  { %v2739_v42 = vpop.permute.xlu0 %2738  ;;  %v3482_v3 = vpack.c.bf16 %v2831_v40, %v2831_v40 }
 0x27f   :  { %3151 = vst.msk [vmem:[%s5271_s10 + $0xc4] sm:$0xf] %vm3101_vm3, %v3481_v41  ;;  %v2836_v43 = vmul.f32 %v2739_v42, %v2452_v38  ;;  %v2704_v4 = vpop.permute.xlu1 %2703 }
 0x280   :  { %3152 = vst.msk [vmem:[%s5271_s10 + $0xc8] sm:$0xf] %vm3101_vm3, %v3482_v3  ;;  %v2829_v46 = vmul.f32 %v2704_v4, %v2445_v57 }
 0x281   :  { %v3487_v20 = vpack.c.bf16 %v2836_v43, %v2836_v43 }
 0x282   :  { %v2729_v48 = vpop.permute.xlu0 %2728  ;;  %v3480_v49 = vpack.c.bf16 %v2829_v46, %v2829_v46 }
 0x283   :  { %3157 = vst.msk [vmem:[%s5271_s10 + $0xdc] sm:$0xf] %vm3101_vm3, %v3487_v20  ;;  %v2834_v13 = vmul.f32 %v2729_v48, %v2450_v45  ;;  %v2734_v52 = vpop.permute.xlu1 %2733 }
 0x284   :  { %3150 = vst.msk [vmem:[%s5271_s10 + $0xc0] sm:$0xf] %vm3101_vm3, %v3480_v49  ;;  %v2835_v53 = vmul.f32 %v2734_v52, %v2451_v47 }
 0x285   :  { %v3485_v55 = vpack.c.bf16 %v2834_v13, %v2834_v13 }
 0x286   :  { %v2759_v56 = vpop.permute.xlu0 %2758  ;;  %v3486_v58 = vpack.c.bf16 %v2835_v53, %v2835_v53 }
 0x287   :  { %3155 = vst.msk [vmem:[%s5271_s10 + $0xd4] sm:$0xf] %vm3101_vm3, %v3485_v55  ;;  %v2840_v59 = vmul.f32 %v2759_v56, %v2456_v51  ;;  %v2724_v61 = vpop.permute.xlu1 %2723 }
 0x288   :  { %3156 = vst.msk [vmem:[%s5271_s10 + $0xd8] sm:$0xf] %vm3101_vm3, %v3486_v58  ;;  %v2833_v62 = vmul.f32 %v2724_v61, %v2449_v54 }
 0x289   :  { %v3491_v10 = vpack.c.bf16 %v2840_v59, %v2840_v59 }
 0x28a   :  { %v2749_v63 = vpop.permute.xlu0 %2748  ;;  %v3484_v0 = vpack.c.bf16 %v2833_v62, %v2833_v62 }
 0x28b   :  { %3161 = vst.msk [vmem:[%s5271_s10 + $0xec] sm:$0xf] %vm3101_vm3, %v3491_v10  ;;  %v2838_v1 = vmul.f32 %v2749_v63, %v2454_v60  ;;  %v2754_v2 = vpop.permute.xlu1 %2753 }
 0x28c   :  { %3154 = vst.msk [vmem:[%s5271_s10 + $0xd0] sm:$0xf] %vm3101_vm3, %v3484_v0  ;;  %v2839_v7 = vmul.f32 %v2754_v2, %v2455_v32 }
 0x28d   :  { %v3489_v8 = vpack.c.bf16 %v2838_v1, %v2838_v1 }
 0x28e   :  { %v3490_v9 = vpack.c.bf16 %v2839_v7, %v2839_v7 }
 0x28f   :  { %3159 = vst.msk [vmem:[%s5271_s10 + $0xe4] sm:$0xf] %vm3101_vm3, %v3489_v8  ;;  %v2744_v14 = vpop.permute.xlu1 %2743 }
 0x290   :  { %3160 = vst.msk [vmem:[%s5271_s10 + $0xe8] sm:$0xf] %vm3101_vm3, %v3490_v9  ;;  %v2837_v15 = vmul.f32 %v2744_v14, %v2453_v6 }
 0x291   :  { %v2769_v17 = vpop.permute.xlu0 %2768 }
 0x292   :  { %v2842_v18 = vmul.f32 %v2769_v17, %v2458_v12  ;;  %v3488_v19 = vpack.c.bf16 %v2837_v15, %v2837_v15 }
 0x293   :  { %v2764_v22 = vpop.permute.xlu1 %2763 }
 0x294   :  { %v3493_v23 = vpack.c.bf16 %v2842_v18, %v2842_v18  ;;  %3158 = vst.msk [vmem:[%s5271_s10 + $0xe0] sm:$0xf] %vm3101_vm3, %v3488_v19  ;;  %v2841_v24 = vmul.f32 %v2764_v22, %v2457_v16 }
 0x295   :  { %v2779_v26 = vpop.permute.xlu0 %2778 }
 0x296   :  { %3163 = vst.msk [vmem:[%s5271_s10 + $0xf4] sm:$0xf] %vm3101_vm3, %v3493_v23  ;;  %v2844_v27 = vmul.f32 %v2779_v26, %v2460_v21  ;;  %v3492_v28 = vpack.c.bf16 %v2841_v24, %v2841_v24 }
 0x297   :  { %v2774_v29 = vpop.permute.xlu1 %2773 }
 0x298   :  { %v3495_v30 = vpack.c.bf16 %v2844_v27, %v2844_v27  ;;  %3162 = vst.msk [vmem:[%s5271_s10 + $0xf0] sm:$0xf] %vm3101_vm3, %v3492_v28  ;;  %v2843_v31 = vmul.f32 %v2774_v29, %v2459_v25 }
 0x29a   :  { %3165 = vst.msk [vmem:[%s5271_s10 + $0xfc] sm:$0xf] %vm3101_vm3, %v3495_v30  ;;  %v3494_v34 = vpack.c.bf16 %v2843_v31, %v2843_v31 }
 0x29c   :  { %3164 = vst.msk [vmem:[%s5271_s10 + $0xf8] sm:$0xf] %vm3101_vm3, %v3494_v34 }

</bundles_post_ra>
